<compile_context>
chip_gen: v5e
topology: v5e:2x2
jax: 0.10.0
libtpu: 0.0.40
codegen_flags: <defaults>
</compile_context>

<pallas_src>
import math

import jax
import jax.numpy as jnp
from jax.experimental import pallas as pl
from jax.experimental.pallas import tpu as pltpu

N_STATION = 3
N_QPROJ = 9          # Wq, W1..W8  (query-side projections)
N_PROJ = 11          # + Wk, Wv
MXU_DT = jnp.bfloat16  # MXU operand dtype; accumulation stays float32


# ---------------------------------------------------------------------------
# helpers used inside the kernel
# ---------------------------------------------------------------------------
def _bn(x, g, b, eps=1e-5):
    # Training-mode BatchNorm1d statistics (biased variance), as nn.BatchNorm1d.
    # TODO(synk): running mean/var buffers (and eval-mode statistics) unmodeled.
    mean = jnp.mean(x, axis=0, keepdims=True)
    xc = x - mean
    var = jnp.mean(xc * xc, axis=0, keepdims=True)
    return xc * jax.lax.rsqrt(var + eps) * g + b


def _mm(a, b):  # 2-D matmul, bf16 operands, f32 accumulate
    return jnp.dot(a.astype(MXU_DT), b.astype(MXU_DT),
                   preferred_element_type=jnp.float32)


def _bmm(a, b):  # (g,m,k) x (g,k,n) -> (g,m,n)
    return jax.lax.dot_general(a.astype(MXU_DT), b.astype(MXU_DT),
                               (((2,), (1,)), ((0,), (0,))),
                               preferred_element_type=jnp.float32)


def _bmm_t(a, b):  # (g,m,k) x (g,n,k) -> (g,m,n)   (contract last dims)
    return jax.lax.dot_general(a.astype(MXU_DT), b.astype(MXU_DT),
                               (((2,), (2,)), ((0,), (0,))),
                               preferred_element_type=jnp.float32)


# ---------------------------------------------------------------------------
# Fused encoder kernel
# ---------------------------------------------------------------------------
def _make_encoder_kernel(B, N, NP, NS, H, Kd, E, F, L):
    norm = 1.0 / math.sqrt(Kd)
    G = H * B            # merged (head, batch) batch dim
    BN = B * N

    def kernel(x_ref, iw_ref, ib_ref, wstk_ref, wout_ref,
               bn1g_ref, bn1b_ref, ffw1_ref, ffb1_ref, ffw2_ref, ffb2_ref,
               bn2g_ref, bn2b_ref, out_ref):
        f32 = jnp.float32

        # ---- init_embed: (BN, node_dim) @ (node_dim, E) + b -----------------
        h = _mm(x_ref[...], iw_ref[...]) + ib_ref[...]                  # (BN, E) f32

        # ---- row/column masks for the 9 score matrices (built once) ---------
        row = jax.lax.broadcasted_iota(jnp.int32, (N, N), 0)
        col = jax.lax.broadcasted_iota(jnp.int32, (N, N), 1)
        pick_r = row < NP
        del_r = (row >= NP) & (row < 2 * NP)
        pick_c = col < NP
        del_c = (col >= NP) & (col < 2 * NP)
        st_c = (col >= 2 * NP) & (col < 2 * NP + NS)
        masks = jnp.stack([
            jnp.ones((N, N), dtype=jnp.bool_),   # Wq : all rows x all cols
            pick_r & (col == row + NP),          # W1 : pick -> its delivery
            pick_r & pick_c,                     # W2 : pick -> all picks
            pick_r & del_c,                      # W3 : pick -> all deliveries
            del_r & (col == row - NP),           # W4 : delivery -> its pick
            del_r & del_c,                       # W5 : delivery -> all deliveries
            del_r & pick_c,                      # W6 : delivery -> all picks
            pick_r & st_c,                       # W7 : pick -> stations
            del_r & st_c,                        # W8 : delivery -> stations
        ], axis=0)[:, None]                      # (NQPROJ, 1, N, N)
        neg_inf = jnp.float32(-1e30)

        # ---- encoder layers (static unroll; one launch for everything) ------
        for l in range(L):
            # all 11*H projections for every row: one batched matmul on the MXU
            h_b = jnp.broadcast_to(h.astype(MXU_DT)[None], (N_PROJ * H, BN, E))
            P = _bmm(h_b, wstk_ref[l])                       # (11H, BN, Kd) f32
            P = P.reshape(N_PROJ, G, N, Kd)                  # g = head*B + batch
            Qs = P[:N_QPROJ]                                 # (9, G, N, Kd)
            K = P[N_QPROJ]                                   # (G, N, Kd)
            V = P[N_QPROJ + 1]                               # (G, N, Kd)

            # 9 score matrices in one batched matmul
            q_f = Qs.reshape(N_QPROJ * G, N, Kd)
            k_f = jnp.broadcast_to(K[None], (N_QPROJ, G, N, Kd)).reshape(
                N_QPROJ * G, N, Kd)
            S = norm * _bmm_t(q_f, k_f)                      # (9G, N, N)
            S = S.reshape(N_QPROJ, G, N, N)

            # segmented softmax == softmax over the (N, 3N) -inf-padded compat
            Sm = jnp.where(masks, S, neg_inf)                # (9, G, N, N)
            m = jnp.max(Sm, axis=3, keepdims=True)           # (9, G, N, 1)
            m = jnp.max(m, axis=0, keepdims=True)            # (1, G, N, 1)
            Ex = jnp.exp(Sm - m)                             # masked entries -> 0
            A = jnp.sum(Ex, axis=0)                          # (G, N, N)
            denom = jnp.sum(A, axis=-1, keepdims=True)       # (G, N, 1)

            num = _bmm(A, V)                                 # (G, N, Kd)
            heads = num * pl.reciprocal(denom, approx=True)  # (G, N, Kd)

            # output projection: out[b,n] = sum_h heads[h,b,n] @ W_out[h]
            wout_g = jnp.broadcast_to(wout_ref[l][:, None],
                                      (H, B, Kd, E)).reshape(G, Kd, E)
            per_g = _bmm(heads, wout_g)                      # (G, N, E)
            attn_out = jnp.sum(per_g.reshape(H, B, N, E), axis=0).reshape(BN, E)

            # residual + BN1 + FFN-with-skip + BN2 (all fused, f32)
            x1 = h + attn_out
            x1 = _bn(x1, bn1g_ref[l], bn1b_ref[l])
            hid = jnp.maximum(_mm(x1, ffw1_ref[l]) + ffb1_ref[l], 0.0)
            x2 = x1 + _mm(hid, ffw2_ref[l]) + ffb2_ref[l]
            h = _bn(x2, bn2g_ref[l], bn2b_ref[l])

        out_ref[...] = h                                     # single full store

    return kernel


# ---------------------------------------------------------------------------
# Parameter init (matches the module's shapes / uniform ranges); projection
# weights are pre-stacked for the batched-dot layout, matmul weights in bf16.
# ---------------------------------------------------------------------------
def _uniform(key, shape, bound):
    return jax.random.uniform(key, shape, jnp.float32, -bound, bound)


def init_params(key, n_heads, embed_dim, n_layers, node_dim, ff_hidden):
    H, E, F = n_heads, embed_dim, ff_hidden
    Kd = E // H
    params = {}
    key, k1, k2 = jax.random.split(key, 3)
    params["init_w"] = _uniform(k1, (node_dim, E), 1.0 / math.sqrt(node_dim)).astype(MXU_DT)
    params["init_b"] = _uniform(k2, (1, E), 1.0 / math.sqrt(node_dim))

    wstk, wout = [], []
    bn1g, bn1b, bn2g, bn2b = [], [], [], []
    fw1, fb1, fw2, fb2 = [], [], [], []
    for _ in range(n_layers):
        key, *ks = jax.random.split(key, 17)
        # query projections [Wq, W1..W8], then Wk, Wv; each (H, E, Kd), ±1/sqrt(Kd)
        proj = [_uniform(ks[i], (H, E, Kd), 1.0 / math.sqrt(Kd)) for i in range(N_PROJ)]
        wstk.append(jnp.stack(proj, axis=0).reshape(N_PROJ * H, E, Kd))
        wout.append(_uniform(ks[11], (H, Kd, E), 1.0 / math.sqrt(E)))
        bn1g.append(jnp.ones((1, E), jnp.float32)); bn1b.append(jnp.zeros((1, E), jnp.float32))
        bn2g.append(jnp.ones((1, E), jnp.float32)); bn2b.append(jnp.zeros((1, E), jnp.float32))
        fw1.append(_uniform(ks[12], (E, F), 1.0 / math.sqrt(E)))
        fb1.append(_uniform(ks[13], (1, F), 1.0 / math.sqrt(E)))
        fw2.append(_uniform(ks[14], (F, E), 1.0 / math.sqrt(F)))
        fb2.append(_uniform(ks[15], (1, E), 1.0 / math.sqrt(F)))

    params["w_stack"] = jnp.stack(wstk, 0).astype(MXU_DT)   # (L, 11H, E, Kd)
    params["w_out"] = jnp.stack(wout, 0).astype(MXU_DT)     # (L, H, Kd, E)
    params["bn1_g"] = jnp.stack(bn1g, 0); params["bn1_b"] = jnp.stack(bn1b, 0)
    params["bn2_g"] = jnp.stack(bn2g, 0); params["bn2_b"] = jnp.stack(bn2b, 0)
    params["ff_w1"] = jnp.stack(fw1, 0).astype(MXU_DT)      # (L, E, F)
    params["ff_b1"] = jnp.stack(fb1, 0)                     # (L, 1, F)
    params["ff_w2"] = jnp.stack(fw2, 0).astype(MXU_DT)      # (L, F, E)
    params["ff_b2"] = jnp.stack(fb2, 0)                     # (L, 1, E)
    return params


# ---------------------------------------------------------------------------
# Encoder forward (one pallas_call for the whole encoder)
# ---------------------------------------------------------------------------
def encoder_forward(x, params, n_heads):
    B, N, node_dim = x.shape
    E = params["init_b"].shape[-1]
    F = params["ff_w1"].shape[-1]
    L = params["w_stack"].shape[0]
    Kd = E // n_heads
    NS = N_STATION
    NP = (N - 1 - NS) // 2

    kernel = _make_encoder_kernel(B, N, NP, NS, n_heads, Kd, E, F, L)
    h = pl.pallas_call(
        kernel,
        out_shape=jax.ShapeDtypeStruct((B * N, E), jnp.float32),
        compiler_params=pltpu.CompilerParams(vmem_limit_bytes=32 * 1024 * 1024),
    )(x.reshape(B * N, node_dim),
      params["init_w"], params["init_b"],
      params["w_stack"], params["w_out"],
      params["bn1_g"], params["bn1_b"],
      params["ff_w1"], params["ff_b1"], params["ff_w2"], params["ff_b2"],
      params["bn2_g"], params["bn2_b"])

    h = h.reshape(B, N, E)
    return h, jnp.mean(h, axis=1)


if __name__ == "__main__":
    key = jax.random.PRNGKey(0)
    kp, kx = jax.random.split(key)

    n_heads = 2
    embed_dim = 16
    n_layers = 2
    node_dim = 4
    ff_hidden = 64
    batch = 2
    n_pick = 4
    graph_size = 2 * n_pick + N_STATION + 1   # 12 nodes: pick|delivery|stations|depot

    params = init_params(kp, n_heads, embed_dim, n_layers, node_dim, ff_hidden)
    x = jax.random.normal(kx, (batch, graph_size, node_dim), jnp.float32)

    h, h_mean = encoder_forward(x, params, n_heads)
    jax.block_until_ready((h, h_mean))
    assert h.shape == (batch, graph_size, embed_dim)
    assert h_mean.shape == (batch, embed_dim)
    assert bool(jnp.all(jnp.isfinite(h))) and bool(jnp.all(jnp.isfinite(h_mean)))
    print("KERNEL_OK")
</pallas_src>

<mosaic_0001>
module attributes {stable_mosaic.version = 11 : i64} {
  func.func @kernel(%arg0: memref<24x4xf32, #tpu.memory_space<vmem>>, %arg1: memref<4x16xbf16, #tpu.memory_space<vmem>>, %arg2: memref<1x16xf32, #tpu.memory_space<vmem>>, %arg3: memref<2x22x16x8xbf16, #tpu.memory_space<vmem>>, %arg4: memref<2x2x8x16xbf16, #tpu.memory_space<vmem>>, %arg5: memref<2x1x16xf32, #tpu.memory_space<vmem>>, %arg6: memref<2x1x16xf32, #tpu.memory_space<vmem>>, %arg7: memref<2x16x64xbf16, #tpu.memory_space<vmem>>, %arg8: memref<2x1x64xf32, #tpu.memory_space<vmem>>, %arg9: memref<2x64x16xbf16, #tpu.memory_space<vmem>>, %arg10: memref<2x1x16xf32, #tpu.memory_space<vmem>>, %arg11: memref<2x1x16xf32, #tpu.memory_space<vmem>>, %arg12: memref<2x1x16xf32, #tpu.memory_space<vmem>>, %arg13: memref<24x16xf32, #tpu.memory_space<vmem>>) attributes {dimension_semantics = [], scalar_prefetch = 0 : i64, scratch_operands = 0 : i64, tpu.core_type = #tpu.core_type<tc>} {
    %c0 = arith.constant 0 : index
    %c0_0 = arith.constant 0 : index
    %0 = vector.load %arg0[%c0, %c0_0] : memref<24x4xf32, #tpu.memory_space<vmem>>, vector<24x4xf32>
    %c0_1 = arith.constant 0 : index
    %c0_2 = arith.constant 0 : index
    %1 = vector.load %arg1[%c0_1, %c0_2] : memref<4x16xbf16, #tpu.memory_space<vmem>>, vector<4x16xbf16>
    %2 = arith.truncf %0 : vector<24x4xf32> to vector<24x4xbf16>
    %cst = arith.constant dense<0.000000e+00> : vector<24x16xf32>
    %3 = tpu.matmul %2, %1, %cst {dimension_numbers = #tpu.dot_dimension_numbers<[1], [0], [0], [1], [0, 0, 1, 1], [], []>} : vector<24x4xbf16>, vector<4x16xbf16>, vector<24x16xf32> -> vector<24x16xf32>
    %c0_3 = arith.constant 0 : index
    %c0_4 = arith.constant 0 : index
    %4 = vector.load %arg2[%c0_3, %c0_4] : memref<1x16xf32, #tpu.memory_space<vmem>>, vector<1x16xf32>
    %5 = vector.broadcast %4 : vector<1x16xf32> to vector<24x16xf32>
    %6 = arith.addf %3, %5 : vector<24x16xf32>
    %7 = tpu.iota {dimensions = array<i32: 0>} : vector<12x12xi32>
    %8 = tpu.iota {dimensions = array<i32: 1>} : vector<12x12xi32>
    %c4_i32 = arith.constant 4 : i32
    %9 = vector.broadcast %c4_i32 : i32 to vector<12x12xi32>
    %10 = arith.cmpi slt, %7, %9 : vector<12x12xi32>
    %c4_i32_5 = arith.constant 4 : i32
    %11 = vector.broadcast %c4_i32_5 : i32 to vector<12x12xi32>
    %12 = arith.cmpi sge, %7, %11 : vector<12x12xi32>
    %c8_i32 = arith.constant 8 : i32
    %13 = vector.broadcast %c8_i32 : i32 to vector<12x12xi32>
    %14 = arith.cmpi slt, %7, %13 : vector<12x12xi32>
    %15 = arith.andi %12, %14 : vector<12x12xi1>
    %c4_i32_6 = arith.constant 4 : i32
    %16 = vector.broadcast %c4_i32_6 : i32 to vector<12x12xi32>
    %17 = arith.cmpi slt, %8, %16 : vector<12x12xi32>
    %c4_i32_7 = arith.constant 4 : i32
    %18 = vector.broadcast %c4_i32_7 : i32 to vector<12x12xi32>
    %19 = arith.cmpi sge, %8, %18 : vector<12x12xi32>
    %c8_i32_8 = arith.constant 8 : i32
    %20 = vector.broadcast %c8_i32_8 : i32 to vector<12x12xi32>
    %21 = arith.cmpi slt, %8, %20 : vector<12x12xi32>
    %22 = arith.andi %19, %21 : vector<12x12xi1>
    %c8_i32_9 = arith.constant 8 : i32
    %23 = vector.broadcast %c8_i32_9 : i32 to vector<12x12xi32>
    %24 = arith.cmpi sge, %8, %23 : vector<12x12xi32>
    %c11_i32 = arith.constant 11 : i32
    %25 = vector.broadcast %c11_i32 : i32 to vector<12x12xi32>
    %26 = arith.cmpi slt, %8, %25 : vector<12x12xi32>
    %27 = arith.andi %24, %26 : vector<12x12xi1>
    %true = arith.constant true
    %28 = vector.broadcast %true : i1 to vector<12x12xi1>
    %c4_i32_10 = arith.constant 4 : i32
    %29 = vector.broadcast %c4_i32_10 : i32 to vector<12x12xi32>
    %30 = arith.addi %7, %29 : vector<12x12xi32>
    %31 = arith.cmpi eq, %8, %30 : vector<12x12xi32>
    %32 = arith.andi %10, %31 : vector<12x12xi1>
    %33 = arith.andi %10, %17 : vector<12x12xi1>
    %34 = arith.andi %10, %22 : vector<12x12xi1>
    %c4_i32_11 = arith.constant 4 : i32
    %35 = vector.broadcast %c4_i32_11 : i32 to vector<12x12xi32>
    %36 = arith.subi %7, %35 : vector<12x12xi32>
    %37 = arith.cmpi eq, %8, %36 : vector<12x12xi32>
    %38 = arith.andi %15, %37 : vector<12x12xi1>
    %39 = arith.andi %15, %22 : vector<12x12xi1>
    %40 = arith.andi %15, %17 : vector<12x12xi1>
    %41 = arith.andi %10, %27 : vector<12x12xi1>
    %42 = arith.andi %15, %27 : vector<12x12xi1>
    %43 = vector.shape_cast %28 : vector<12x12xi1> to vector<1x12x12xi1>
    %44 = vector.shape_cast %32 : vector<12x12xi1> to vector<1x12x12xi1>
    %45 = vector.shape_cast %33 : vector<12x12xi1> to vector<1x12x12xi1>
    %46 = vector.shape_cast %34 : vector<12x12xi1> to vector<1x12x12xi1>
    %47 = vector.shape_cast %38 : vector<12x12xi1> to vector<1x12x12xi1>
    %48 = vector.shape_cast %39 : vector<12x12xi1> to vector<1x12x12xi1>
    %49 = vector.shape_cast %40 : vector<12x12xi1> to vector<1x12x12xi1>
    %50 = vector.shape_cast %41 : vector<12x12xi1> to vector<1x12x12xi1>
    %51 = vector.shape_cast %42 : vector<12x12xi1> to vector<1x12x12xi1>
    %52 = tpu.concatenate %43, %44, %45, %46, %47, %48, %49, %50, %51 in 0 : vector<1x12x12xi1>, vector<1x12x12xi1>, vector<1x12x12xi1>, vector<1x12x12xi1>, vector<1x12x12xi1>, vector<1x12x12xi1>, vector<1x12x12xi1>, vector<1x12x12xi1>, vector<1x12x12xi1> -> vector<9x12x12xi1>
    %53 = vector.shape_cast %52 : vector<9x12x12xi1> to vector<9x1x12x12xi1>
    %54 = arith.truncf %6 : vector<24x16xf32> to vector<24x16xbf16>
    %55 = vector.shape_cast %54 : vector<24x16xbf16> to vector<1x24x16xbf16>
    %56 = vector.shape_cast %55 : vector<1x24x16xbf16> to vector<1x24x16xbf16>
    %57 = vector.broadcast %56 : vector<1x24x16xbf16> to vector<22x24x16xbf16>
    %c0_12 = arith.constant 0 : index
    %c0_13 = arith.constant 0 : index
    %c0_14 = arith.constant 0 : index
    %c0_15 = arith.constant 0 : index
    %58 = vector.load %arg3[%c0_12, %c0_13, %c0_14, %c0_15] : memref<2x22x16x8xbf16, #tpu.memory_space<vmem>>, vector<1x22x16x8xbf16>
    %59 = vector.shape_cast %58 : vector<1x22x16x8xbf16> to vector<22x16x8xbf16>
    %cst_16 = arith.constant dense<0.000000e+00> : vector<22x24x8xf32>
    %60 = tpu.matmul %57, %59, %cst_16 {dimension_numbers = #tpu.dot_dimension_numbers<[2], [1], [1], [2], [0, 0, 0, 1, 1, 2], [0], [0]>} : vector<22x24x16xbf16>, vector<22x16x8xbf16>, vector<22x24x8xf32> -> vector<22x24x8xf32>
    %61 = vector.shape_cast %60 : vector<22x24x8xf32> to vector<11x4x12x8xf32>
    %62 = vector.extract_strided_slice %61 {offsets = [0, 0, 0, 0], sizes = [9, 4, 12, 8], strides = [1, 1, 1, 1]} : vector<11x4x12x8xf32> to vector<9x4x12x8xf32>
    %63 = vector.extract_strided_slice %61 {offsets = [9, 0, 0, 0], sizes = [1, 4, 12, 8], strides = [1, 1, 1, 1]} : vector<11x4x12x8xf32> to vector<1x4x12x8xf32>
    %64 = vector.shape_cast %63 : vector<1x4x12x8xf32> to vector<4x12x8xf32>
    %65 = vector.extract_strided_slice %61 {offsets = [10, 0, 0, 0], sizes = [1, 4, 12, 8], strides = [1, 1, 1, 1]} : vector<11x4x12x8xf32> to vector<1x4x12x8xf32>
    %66 = vector.shape_cast %65 : vector<1x4x12x8xf32> to vector<4x12x8xf32>
    %67 = vector.shape_cast %62 : vector<9x4x12x8xf32> to vector<36x12x8xf32>
    %68 = vector.shape_cast %64 : vector<4x12x8xf32> to vector<1x4x12x8xf32>
    %69 = vector.shape_cast %68 : vector<1x4x12x8xf32> to vector<1x4x12x8xf32>
    %70 = vector.broadcast %69 : vector<1x4x12x8xf32> to vector<9x4x12x8xf32>
    %71 = vector.shape_cast %70 : vector<9x4x12x8xf32> to vector<36x12x8xf32>
    %72 = arith.truncf %67 : vector<36x12x8xf32> to vector<36x12x8xbf16>
    %73 = arith.truncf %71 : vector<36x12x8xf32> to vector<36x12x8xbf16>
    %cst_17 = arith.constant dense<0.000000e+00> : vector<36x12x12xf32>
    %74 = tpu.matmul %72, %73, %cst_17 {dimension_numbers = #tpu.dot_dimension_numbers<[2], [2], [1], [1], [0, 0, 0, 1, 1, 1], [0], [0]>} : vector<36x12x8xbf16>, vector<36x12x8xbf16>, vector<36x12x12xf32> -> vector<36x12x12xf32>
    %cst_18 = arith.constant 0.353553385 : f32
    %75 = vector.broadcast %cst_18 : f32 to vector<36x12x12xf32>
    %76 = arith.mulf %75, %74 : vector<36x12x12xf32>
    %77 = vector.shape_cast %76 : vector<36x12x12xf32> to vector<9x4x12x12xf32>
    %cst_19 = arith.constant -1.000000e+30 : f32
    %78 = vector.shape_cast %53 : vector<9x1x12x12xi1> to vector<9x1x12x12xi1>
    %79 = vector.broadcast %78 : vector<9x1x12x12xi1> to vector<9x4x12x12xi1>
    %80 = vector.broadcast %cst_19 : f32 to vector<9x4x12x12xf32>
    %81 = arith.select %79, %77, %80 : vector<9x4x12x12xi1>, vector<9x4x12x12xf32>
    %cst_20 = arith.constant dense<0xFF800000> : vector<9x4x12xf32>
    %82 = vector.multi_reduction <maximumf>, %81, %cst_20 [3] : vector<9x4x12x12xf32> to vector<9x4x12xf32>
    %83 = vector.shape_cast %82 : vector<9x4x12xf32> to vector<9x4x12x1xf32>
    %cst_21 = arith.constant dense<0xFF800000> : vector<4x12x1xf32>
    %84 = vector.multi_reduction <maximumf>, %83, %cst_21 [0] : vector<9x4x12x1xf32> to vector<4x12x1xf32>
    %85 = vector.shape_cast %84 : vector<4x12x1xf32> to vector<1x4x12x1xf32>
    %86 = vector.broadcast %85 : vector<1x4x12x1xf32> to vector<9x4x12x12xf32>
    %87 = arith.subf %81, %86 : vector<9x4x12x12xf32>
    %88 = math.exp %87 : vector<9x4x12x12xf32>
    %cst_22 = arith.constant dense<0.000000e+00> : vector<4x12x12xf32>
    %89 = vector.multi_reduction <add>, %88, %cst_22 [0] : vector<9x4x12x12xf32> to vector<4x12x12xf32>
    %cst_23 = arith.constant dense<0.000000e+00> : vector<4x12xf32>
    %90 = vector.multi_reduction <add>, %89, %cst_23 [2] : vector<4x12x12xf32> to vector<4x12xf32>
    %91 = vector.shape_cast %90 : vector<4x12xf32> to vector<4x12x1xf32>
    %92 = arith.truncf %89 : vector<4x12x12xf32> to vector<4x12x12xbf16>
    %93 = arith.truncf %66 : vector<4x12x8xf32> to vector<4x12x8xbf16>
    %cst_24 = arith.constant dense<0.000000e+00> : vector<4x12x8xf32>
    %94 = tpu.matmul %92, %93, %cst_24 {dimension_numbers = #tpu.dot_dimension_numbers<[2], [1], [1], [2], [0, 0, 0, 1, 1, 2], [0], [0]>} : vector<4x12x12xbf16>, vector<4x12x8xbf16>, vector<4x12x8xf32> -> vector<4x12x8xf32>
    %95 = tpu.reciprocal %91 {approx = true} : vector<4x12x1xf32> -> vector<4x12x1xf32>
    %96 = vector.broadcast %95 : vector<4x12x1xf32> to vector<4x12x8xf32>
    %97 = arith.mulf %94, %96 : vector<4x12x8xf32>
    %c0_25 = arith.constant 0 : index
    %c0_26 = arith.constant 0 : index
    %c0_27 = arith.constant 0 : index
    %c0_28 = arith.constant 0 : index
    %98 = vector.load %arg4[%c0_25, %c0_26, %c0_27, %c0_28] : memref<2x2x8x16xbf16, #tpu.memory_space<vmem>>, vector<1x2x8x16xbf16>
    %99 = vector.shape_cast %98 : vector<1x2x8x16xbf16> to vector<2x8x16xbf16>
    %100 = vector.shape_cast %99 : vector<2x8x16xbf16> to vector<2x1x8x16xbf16>
    %101 = vector.shape_cast %100 : vector<2x1x8x16xbf16> to vector<2x1x8x16xbf16>
    %102 = vector.broadcast %101 : vector<2x1x8x16xbf16> to vector<2x2x8x16xbf16>
    %103 = vector.shape_cast %102 : vector<2x2x8x16xbf16> to vector<4x8x16xbf16>
    %104 = arith.truncf %97 : vector<4x12x8xf32> to vector<4x12x8xbf16>
    %cst_29 = arith.constant dense<0.000000e+00> : vector<4x12x16xf32>
    %105 = tpu.matmul %104, %103, %cst_29 {dimension_numbers = #tpu.dot_dimension_numbers<[2], [1], [1], [2], [0, 0, 0, 1, 1, 2], [0], [0]>} : vector<4x12x8xbf16>, vector<4x8x16xbf16>, vector<4x12x16xf32> -> vector<4x12x16xf32>
    %106 = vector.shape_cast %105 : vector<4x12x16xf32> to vector<2x2x12x16xf32>
    %cst_30 = arith.constant dense<0.000000e+00> : vector<2x12x16xf32>
    %107 = vector.multi_reduction <add>, %106, %cst_30 [0] : vector<2x2x12x16xf32> to vector<2x12x16xf32>
    %108 = vector.shape_cast %107 : vector<2x12x16xf32> to vector<24x16xf32>
    %109 = arith.addf %6, %108 : vector<24x16xf32>
    %c0_31 = arith.constant 0 : index
    %c0_32 = arith.constant 0 : index
    %c0_33 = arith.constant 0 : index
    %110 = vector.load %arg5[%c0_31, %c0_32, %c0_33] : memref<2x1x16xf32, #tpu.memory_space<vmem>>, vector<1x1x16xf32>
    %111 = vector.shape_cast %110 : vector<1x1x16xf32> to vector<1x16xf32>
    %c0_34 = arith.constant 0 : index
    %c0_35 = arith.constant 0 : index
    %c0_36 = arith.constant 0 : index
    %112 = vector.load %arg6[%c0_34, %c0_35, %c0_36] : memref<2x1x16xf32, #tpu.memory_space<vmem>>, vector<1x1x16xf32>
    %113 = vector.shape_cast %112 : vector<1x1x16xf32> to vector<1x16xf32>
    %cst_37 = arith.constant dense<0.000000e+00> : vector<16xf32>
    %114 = vector.multi_reduction <add>, %109, %cst_37 [0] : vector<24x16xf32> to vector<16xf32>
    %115 = vector.shape_cast %114 : vector<16xf32> to vector<1x16xf32>
    %cst_38 = arith.constant 2.400000e+01 : f32
    %116 = vector.broadcast %cst_38 : f32 to vector<1x16xf32>
    %117 = arith.divf %115, %116 : vector<1x16xf32>
    %118 = vector.broadcast %117 : vector<1x16xf32> to vector<24x16xf32>
    %119 = arith.subf %109, %118 : vector<24x16xf32>
    %120 = arith.mulf %119, %119 : vector<24x16xf32>
    %cst_39 = arith.constant dense<0.000000e+00> : vector<16xf32>
    %121 = vector.multi_reduction <add>, %120, %cst_39 [0] : vector<24x16xf32> to vector<16xf32>
    %122 = vector.shape_cast %121 : vector<16xf32> to vector<1x16xf32>
    %cst_40 = arith.constant 2.400000e+01 : f32
    %123 = vector.broadcast %cst_40 : f32 to vector<1x16xf32>
    %124 = arith.divf %122, %123 : vector<1x16xf32>
    %cst_41 = arith.constant 9.99999974E-6 : f32
    %125 = vector.broadcast %cst_41 : f32 to vector<1x16xf32>
    %126 = arith.addf %124, %125 : vector<1x16xf32>
    %127 = math.rsqrt %126 : vector<1x16xf32>
    %128 = vector.broadcast %127 : vector<1x16xf32> to vector<24x16xf32>
    %129 = arith.mulf %119, %128 : vector<24x16xf32>
    %130 = vector.broadcast %111 : vector<1x16xf32> to vector<24x16xf32>
    %131 = arith.mulf %129, %130 : vector<24x16xf32>
    %132 = vector.broadcast %113 : vector<1x16xf32> to vector<24x16xf32>
    %133 = arith.addf %131, %132 : vector<24x16xf32>
    %c0_42 = arith.constant 0 : index
    %c0_43 = arith.constant 0 : index
    %c0_44 = arith.constant 0 : index
    %134 = vector.load %arg7[%c0_42, %c0_43, %c0_44] : memref<2x16x64xbf16, #tpu.memory_space<vmem>>, vector<1x16x64xbf16>
    %135 = vector.shape_cast %134 : vector<1x16x64xbf16> to vector<16x64xbf16>
    %136 = arith.truncf %133 : vector<24x16xf32> to vector<24x16xbf16>
    %cst_45 = arith.constant dense<0.000000e+00> : vector<24x64xf32>
    %137 = tpu.matmul %136, %135, %cst_45 {dimension_numbers = #tpu.dot_dimension_numbers<[1], [0], [0], [1], [0, 0, 1, 1], [], []>} : vector<24x16xbf16>, vector<16x64xbf16>, vector<24x64xf32> -> vector<24x64xf32>
    %c0_46 = arith.constant 0 : index
    %c0_47 = arith.constant 0 : index
    %c0_48 = arith.constant 0 : index
    %138 = vector.load %arg8[%c0_46, %c0_47, %c0_48] : memref<2x1x64xf32, #tpu.memory_space<vmem>>, vector<1x1x64xf32>
    %139 = vector.shape_cast %138 : vector<1x1x64xf32> to vector<1x64xf32>
    %140 = vector.broadcast %139 : vector<1x64xf32> to vector<24x64xf32>
    %141 = arith.addf %137, %140 : vector<24x64xf32>
    %cst_49 = arith.constant 0.000000e+00 : f32
    %142 = vector.broadcast %cst_49 : f32 to vector<24x64xf32>
    %143 = arith.maximumf %141, %142 : vector<24x64xf32>
    %c0_50 = arith.constant 0 : index
    %c0_51 = arith.constant 0 : index
    %c0_52 = arith.constant 0 : index
    %144 = vector.load %arg9[%c0_50, %c0_51, %c0_52] : memref<2x64x16xbf16, #tpu.memory_space<vmem>>, vector<1x64x16xbf16>
    %145 = vector.shape_cast %144 : vector<1x64x16xbf16> to vector<64x16xbf16>
    %146 = arith.truncf %143 : vector<24x64xf32> to vector<24x64xbf16>
    %cst_53 = arith.constant dense<0.000000e+00> : vector<24x16xf32>
    %147 = tpu.matmul %146, %145, %cst_53 {dimension_numbers = #tpu.dot_dimension_numbers<[1], [0], [0], [1], [0, 0, 1, 1], [], []>} : vector<24x64xbf16>, vector<64x16xbf16>, vector<24x16xf32> -> vector<24x16xf32>
    %148 = arith.addf %133, %147 : vector<24x16xf32>
    %c0_54 = arith.constant 0 : index
    %c0_55 = arith.constant 0 : index
    %c0_56 = arith.constant 0 : index
    %149 = vector.load %arg10[%c0_54, %c0_55, %c0_56] : memref<2x1x16xf32, #tpu.memory_space<vmem>>, vector<1x1x16xf32>
    %150 = vector.shape_cast %149 : vector<1x1x16xf32> to vector<1x16xf32>
    %151 = vector.broadcast %150 : vector<1x16xf32> to vector<24x16xf32>
    %152 = arith.addf %148, %151 : vector<24x16xf32>
    %c0_57 = arith.constant 0 : index
    %c0_58 = arith.constant 0 : index
    %c0_59 = arith.constant 0 : index
    %153 = vector.load %arg11[%c0_57, %c0_58, %c0_59] : memref<2x1x16xf32, #tpu.memory_space<vmem>>, vector<1x1x16xf32>
    %154 = vector.shape_cast %153 : vector<1x1x16xf32> to vector<1x16xf32>
    %c0_60 = arith.constant 0 : index
    %c0_61 = arith.constant 0 : index
    %c0_62 = arith.constant 0 : index
    %155 = vector.load %arg12[%c0_60, %c0_61, %c0_62] : memref<2x1x16xf32, #tpu.memory_space<vmem>>, vector<1x1x16xf32>
    %156 = vector.shape_cast %155 : vector<1x1x16xf32> to vector<1x16xf32>
    %cst_63 = arith.constant dense<0.000000e+00> : vector<16xf32>
    %157 = vector.multi_reduction <add>, %152, %cst_63 [0] : vector<24x16xf32> to vector<16xf32>
    %158 = vector.shape_cast %157 : vector<16xf32> to vector<1x16xf32>
    %cst_64 = arith.constant 2.400000e+01 : f32
    %159 = vector.broadcast %cst_64 : f32 to vector<1x16xf32>
    %160 = arith.divf %158, %159 : vector<1x16xf32>
    %161 = vector.broadcast %160 : vector<1x16xf32> to vector<24x16xf32>
    %162 = arith.subf %152, %161 : vector<24x16xf32>
    %163 = arith.mulf %162, %162 : vector<24x16xf32>
    %cst_65 = arith.constant dense<0.000000e+00> : vector<16xf32>
    %164 = vector.multi_reduction <add>, %163, %cst_65 [0] : vector<24x16xf32> to vector<16xf32>
    %165 = vector.shape_cast %164 : vector<16xf32> to vector<1x16xf32>
    %cst_66 = arith.constant 2.400000e+01 : f32
    %166 = vector.broadcast %cst_66 : f32 to vector<1x16xf32>
    %167 = arith.divf %165, %166 : vector<1x16xf32>
    %cst_67 = arith.constant 9.99999974E-6 : f32
    %168 = vector.broadcast %cst_67 : f32 to vector<1x16xf32>
    %169 = arith.addf %167, %168 : vector<1x16xf32>
    %170 = math.rsqrt %169 : vector<1x16xf32>
    %171 = vector.broadcast %170 : vector<1x16xf32> to vector<24x16xf32>
    %172 = arith.mulf %162, %171 : vector<24x16xf32>
    %173 = vector.broadcast %154 : vector<1x16xf32> to vector<24x16xf32>
    %174 = arith.mulf %172, %173 : vector<24x16xf32>
    %175 = vector.broadcast %156 : vector<1x16xf32> to vector<24x16xf32>
    %176 = arith.addf %174, %175 : vector<24x16xf32>
    %177 = arith.truncf %176 : vector<24x16xf32> to vector<24x16xbf16>
    %178 = vector.shape_cast %177 : vector<24x16xbf16> to vector<1x24x16xbf16>
    %179 = vector.shape_cast %178 : vector<1x24x16xbf16> to vector<1x24x16xbf16>
    %180 = vector.broadcast %179 : vector<1x24x16xbf16> to vector<22x24x16xbf16>
    %c1 = arith.constant 1 : index
    %c0_68 = arith.constant 0 : index
    %c0_69 = arith.constant 0 : index
    %c0_70 = arith.constant 0 : index
    %181 = vector.load %arg3[%c1, %c0_68, %c0_69, %c0_70] : memref<2x22x16x8xbf16, #tpu.memory_space<vmem>>, vector<1x22x16x8xbf16>
    %182 = vector.shape_cast %181 : vector<1x22x16x8xbf16> to vector<22x16x8xbf16>
    %cst_71 = arith.constant dense<0.000000e+00> : vector<22x24x8xf32>
    %183 = tpu.matmul %180, %182, %cst_71 {dimension_numbers = #tpu.dot_dimension_numbers<[2], [1], [1], [2], [0, 0, 0, 1, 1, 2], [0], [0]>} : vector<22x24x16xbf16>, vector<22x16x8xbf16>, vector<22x24x8xf32> -> vector<22x24x8xf32>
    %184 = vector.shape_cast %183 : vector<22x24x8xf32> to vector<11x4x12x8xf32>
    %185 = vector.extract_strided_slice %184 {offsets = [0, 0, 0, 0], sizes = [9, 4, 12, 8], strides = [1, 1, 1, 1]} : vector<11x4x12x8xf32> to vector<9x4x12x8xf32>
    %186 = vector.extract_strided_slice %184 {offsets = [9, 0, 0, 0], sizes = [1, 4, 12, 8], strides = [1, 1, 1, 1]} : vector<11x4x12x8xf32> to vector<1x4x12x8xf32>
    %187 = vector.shape_cast %186 : vector<1x4x12x8xf32> to vector<4x12x8xf32>
    %188 = vector.extract_strided_slice %184 {offsets = [10, 0, 0, 0], sizes = [1, 4, 12, 8], strides = [1, 1, 1, 1]} : vector<11x4x12x8xf32> to vector<1x4x12x8xf32>
    %189 = vector.shape_cast %188 : vector<1x4x12x8xf32> to vector<4x12x8xf32>
    %190 = vector.shape_cast %185 : vector<9x4x12x8xf32> to vector<36x12x8xf32>
    %191 = vector.shape_cast %187 : vector<4x12x8xf32> to vector<1x4x12x8xf32>
    %192 = vector.shape_cast %191 : vector<1x4x12x8xf32> to vector<1x4x12x8xf32>
    %193 = vector.broadcast %192 : vector<1x4x12x8xf32> to vector<9x4x12x8xf32>
    %194 = vector.shape_cast %193 : vector<9x4x12x8xf32> to vector<36x12x8xf32>
    %195 = arith.truncf %190 : vector<36x12x8xf32> to vector<36x12x8xbf16>
    %196 = arith.truncf %194 : vector<36x12x8xf32> to vector<36x12x8xbf16>
    %cst_72 = arith.constant dense<0.000000e+00> : vector<36x12x12xf32>
    %197 = tpu.matmul %195, %196, %cst_72 {dimension_numbers = #tpu.dot_dimension_numbers<[2], [2], [1], [1], [0, 0, 0, 1, 1, 1], [0], [0]>} : vector<36x12x8xbf16>, vector<36x12x8xbf16>, vector<36x12x12xf32> -> vector<36x12x12xf32>
    %cst_73 = arith.constant 0.353553385 : f32
    %198 = vector.broadcast %cst_73 : f32 to vector<36x12x12xf32>
    %199 = arith.mulf %198, %197 : vector<36x12x12xf32>
    %200 = vector.shape_cast %199 : vector<36x12x12xf32> to vector<9x4x12x12xf32>
    %cst_74 = arith.constant -1.000000e+30 : f32
    %201 = vector.shape_cast %53 : vector<9x1x12x12xi1> to vector<9x1x12x12xi1>
    %202 = vector.broadcast %201 : vector<9x1x12x12xi1> to vector<9x4x12x12xi1>
    %203 = vector.broadcast %cst_74 : f32 to vector<9x4x12x12xf32>
    %204 = arith.select %202, %200, %203 : vector<9x4x12x12xi1>, vector<9x4x12x12xf32>
    %cst_75 = arith.constant dense<0xFF800000> : vector<9x4x12xf32>
    %205 = vector.multi_reduction <maximumf>, %204, %cst_75 [3] : vector<9x4x12x12xf32> to vector<9x4x12xf32>
    %206 = vector.shape_cast %205 : vector<9x4x12xf32> to vector<9x4x12x1xf32>
    %cst_76 = arith.constant dense<0xFF800000> : vector<4x12x1xf32>
    %207 = vector.multi_reduction <maximumf>, %206, %cst_76 [0] : vector<9x4x12x1xf32> to vector<4x12x1xf32>
    %208 = vector.shape_cast %207 : vector<4x12x1xf32> to vector<1x4x12x1xf32>
    %209 = vector.broadcast %208 : vector<1x4x12x1xf32> to vector<9x4x12x12xf32>
    %210 = arith.subf %204, %209 : vector<9x4x12x12xf32>
    %211 = math.exp %210 : vector<9x4x12x12xf32>
    %cst_77 = arith.constant dense<0.000000e+00> : vector<4x12x12xf32>
    %212 = vector.multi_reduction <add>, %211, %cst_77 [0] : vector<9x4x12x12xf32> to vector<4x12x12xf32>
    %cst_78 = arith.constant dense<0.000000e+00> : vector<4x12xf32>
    %213 = vector.multi_reduction <add>, %212, %cst_78 [2] : vector<4x12x12xf32> to vector<4x12xf32>
    %214 = vector.shape_cast %213 : vector<4x12xf32> to vector<4x12x1xf32>
    %215 = arith.truncf %212 : vector<4x12x12xf32> to vector<4x12x12xbf16>
    %216 = arith.truncf %189 : vector<4x12x8xf32> to vector<4x12x8xbf16>
    %cst_79 = arith.constant dense<0.000000e+00> : vector<4x12x8xf32>
    %217 = tpu.matmul %215, %216, %cst_79 {dimension_numbers = #tpu.dot_dimension_numbers<[2], [1], [1], [2], [0, 0, 0, 1, 1, 2], [0], [0]>} : vector<4x12x12xbf16>, vector<4x12x8xbf16>, vector<4x12x8xf32> -> vector<4x12x8xf32>
    %218 = tpu.reciprocal %214 {approx = true} : vector<4x12x1xf32> -> vector<4x12x1xf32>
    %219 = vector.broadcast %218 : vector<4x12x1xf32> to vector<4x12x8xf32>
    %220 = arith.mulf %217, %219 : vector<4x12x8xf32>
    %c1_80 = arith.constant 1 : index
    %c0_81 = arith.constant 0 : index
    %c0_82 = arith.constant 0 : index
    %c0_83 = arith.constant 0 : index
    %221 = vector.load %arg4[%c1_80, %c0_81, %c0_82, %c0_83] : memref<2x2x8x16xbf16, #tpu.memory_space<vmem>>, vector<1x2x8x16xbf16>
    %222 = vector.shape_cast %221 : vector<1x2x8x16xbf16> to vector<2x8x16xbf16>
    %223 = vector.shape_cast %222 : vector<2x8x16xbf16> to vector<2x1x8x16xbf16>
    %224 = vector.shape_cast %223 : vector<2x1x8x16xbf16> to vector<2x1x8x16xbf16>
    %225 = vector.broadcast %224 : vector<2x1x8x16xbf16> to vector<2x2x8x16xbf16>
    %226 = vector.shape_cast %225 : vector<2x2x8x16xbf16> to vector<4x8x16xbf16>
    %227 = arith.truncf %220 : vector<4x12x8xf32> to vector<4x12x8xbf16>
    %cst_84 = arith.constant dense<0.000000e+00> : vector<4x12x16xf32>
    %228 = tpu.matmul %227, %226, %cst_84 {dimension_numbers = #tpu.dot_dimension_numbers<[2], [1], [1], [2], [0, 0, 0, 1, 1, 2], [0], [0]>} : vector<4x12x8xbf16>, vector<4x8x16xbf16>, vector<4x12x16xf32> -> vector<4x12x16xf32>
    %229 = vector.shape_cast %228 : vector<4x12x16xf32> to vector<2x2x12x16xf32>
    %cst_85 = arith.constant dense<0.000000e+00> : vector<2x12x16xf32>
    %230 = vector.multi_reduction <add>, %229, %cst_85 [0] : vector<2x2x12x16xf32> to vector<2x12x16xf32>
    %231 = vector.shape_cast %230 : vector<2x12x16xf32> to vector<24x16xf32>
    %232 = arith.addf %176, %231 : vector<24x16xf32>
    %c1_86 = arith.constant 1 : index
    %c0_87 = arith.constant 0 : index
    %c0_88 = arith.constant 0 : index
    %233 = vector.load %arg5[%c1_86, %c0_87, %c0_88] : memref<2x1x16xf32, #tpu.memory_space<vmem>>, vector<1x1x16xf32>
    %234 = vector.shape_cast %233 : vector<1x1x16xf32> to vector<1x16xf32>
    %c1_89 = arith.constant 1 : index
    %c0_90 = arith.constant 0 : index
    %c0_91 = arith.constant 0 : index
    %235 = vector.load %arg6[%c1_89, %c0_90, %c0_91] : memref<2x1x16xf32, #tpu.memory_space<vmem>>, vector<1x1x16xf32>
    %236 = vector.shape_cast %235 : vector<1x1x16xf32> to vector<1x16xf32>
    %cst_92 = arith.constant dense<0.000000e+00> : vector<16xf32>
    %237 = vector.multi_reduction <add>, %232, %cst_92 [0] : vector<24x16xf32> to vector<16xf32>
    %238 = vector.shape_cast %237 : vector<16xf32> to vector<1x16xf32>
    %cst_93 = arith.constant 2.400000e+01 : f32
    %239 = vector.broadcast %cst_93 : f32 to vector<1x16xf32>
    %240 = arith.divf %238, %239 : vector<1x16xf32>
    %241 = vector.broadcast %240 : vector<1x16xf32> to vector<24x16xf32>
    %242 = arith.subf %232, %241 : vector<24x16xf32>
    %243 = arith.mulf %242, %242 : vector<24x16xf32>
    %cst_94 = arith.constant dense<0.000000e+00> : vector<16xf32>
    %244 = vector.multi_reduction <add>, %243, %cst_94 [0] : vector<24x16xf32> to vector<16xf32>
    %245 = vector.shape_cast %244 : vector<16xf32> to vector<1x16xf32>
    %cst_95 = arith.constant 2.400000e+01 : f32
    %246 = vector.broadcast %cst_95 : f32 to vector<1x16xf32>
    %247 = arith.divf %245, %246 : vector<1x16xf32>
    %cst_96 = arith.constant 9.99999974E-6 : f32
    %248 = vector.broadcast %cst_96 : f32 to vector<1x16xf32>
    %249 = arith.addf %247, %248 : vector<1x16xf32>
    %250 = math.rsqrt %249 : vector<1x16xf32>
    %251 = vector.broadcast %250 : vector<1x16xf32> to vector<24x16xf32>
    %252 = arith.mulf %242, %251 : vector<24x16xf32>
    %253 = vector.broadcast %234 : vector<1x16xf32> to vector<24x16xf32>
    %254 = arith.mulf %252, %253 : vector<24x16xf32>
    %255 = vector.broadcast %236 : vector<1x16xf32> to vector<24x16xf32>
    %256 = arith.addf %254, %255 : vector<24x16xf32>
    %c1_97 = arith.constant 1 : index
    %c0_98 = arith.constant 0 : index
    %c0_99 = arith.constant 0 : index
    %257 = vector.load %arg7[%c1_97, %c0_98, %c0_99] : memref<2x16x64xbf16, #tpu.memory_space<vmem>>, vector<1x16x64xbf16>
    %258 = vector.shape_cast %257 : vector<1x16x64xbf16> to vector<16x64xbf16>
    %259 = arith.truncf %256 : vector<24x16xf32> to vector<24x16xbf16>
    %cst_100 = arith.constant dense<0.000000e+00> : vector<24x64xf32>
    %260 = tpu.matmul %259, %258, %cst_100 {dimension_numbers = #tpu.dot_dimension_numbers<[1], [0], [0], [1], [0, 0, 1, 1], [], []>} : vector<24x16xbf16>, vector<16x64xbf16>, vector<24x64xf32> -> vector<24x64xf32>
    %c1_101 = arith.constant 1 : index
    %c0_102 = arith.constant 0 : index
    %c0_103 = arith.constant 0 : index
    %261 = vector.load %arg8[%c1_101, %c0_102, %c0_103] : memref<2x1x64xf32, #tpu.memory_space<vmem>>, vector<1x1x64xf32>
    %262 = vector.shape_cast %261 : vector<1x1x64xf32> to vector<1x64xf32>
    %263 = vector.broadcast %262 : vector<1x64xf32> to vector<24x64xf32>
    %264 = arith.addf %260, %263 : vector<24x64xf32>
    %cst_104 = arith.constant 0.000000e+00 : f32
    %265 = vector.broadcast %cst_104 : f32 to vector<24x64xf32>
    %266 = arith.maximumf %264, %265 : vector<24x64xf32>
    %c1_105 = arith.constant 1 : index
    %c0_106 = arith.constant 0 : index
    %c0_107 = arith.constant 0 : index
    %267 = vector.load %arg9[%c1_105, %c0_106, %c0_107] : memref<2x64x16xbf16, #tpu.memory_space<vmem>>, vector<1x64x16xbf16>
    %268 = vector.shape_cast %267 : vector<1x64x16xbf16> to vector<64x16xbf16>
    %269 = arith.truncf %266 : vector<24x64xf32> to vector<24x64xbf16>
    %cst_108 = arith.constant dense<0.000000e+00> : vector<24x16xf32>
    %270 = tpu.matmul %269, %268, %cst_108 {dimension_numbers = #tpu.dot_dimension_numbers<[1], [0], [0], [1], [0, 0, 1, 1], [], []>} : vector<24x64xbf16>, vector<64x16xbf16>, vector<24x16xf32> -> vector<24x16xf32>
    %271 = arith.addf %256, %270 : vector<24x16xf32>
    %c1_109 = arith.constant 1 : index
    %c0_110 = arith.constant 0 : index
    %c0_111 = arith.constant 0 : index
    %272 = vector.load %arg10[%c1_109, %c0_110, %c0_111] : memref<2x1x16xf32, #tpu.memory_space<vmem>>, vector<1x1x16xf32>
    %273 = vector.shape_cast %272 : vector<1x1x16xf32> to vector<1x16xf32>
    %274 = vector.broadcast %273 : vector<1x16xf32> to vector<24x16xf32>
    %275 = arith.addf %271, %274 : vector<24x16xf32>
    %c1_112 = arith.constant 1 : index
    %c0_113 = arith.constant 0 : index
    %c0_114 = arith.constant 0 : index
    %276 = vector.load %arg11[%c1_112, %c0_113, %c0_114] : memref<2x1x16xf32, #tpu.memory_space<vmem>>, vector<1x1x16xf32>
    %277 = vector.shape_cast %276 : vector<1x1x16xf32> to vector<1x16xf32>
    %c1_115 = arith.constant 1 : index
    %c0_116 = arith.constant 0 : index
    %c0_117 = arith.constant 0 : index
    %278 = vector.load %arg12[%c1_115, %c0_116, %c0_117] : memref<2x1x16xf32, #tpu.memory_space<vmem>>, vector<1x1x16xf32>
    %279 = vector.shape_cast %278 : vector<1x1x16xf32> to vector<1x16xf32>
    %cst_118 = arith.constant dense<0.000000e+00> : vector<16xf32>
    %280 = vector.multi_reduction <add>, %275, %cst_118 [0] : vector<24x16xf32> to vector<16xf32>
    %281 = vector.shape_cast %280 : vector<16xf32> to vector<1x16xf32>
    %cst_119 = arith.constant 2.400000e+01 : f32
    %282 = vector.broadcast %cst_119 : f32 to vector<1x16xf32>
    %283 = arith.divf %281, %282 : vector<1x16xf32>
    %284 = vector.broadcast %283 : vector<1x16xf32> to vector<24x16xf32>
    %285 = arith.subf %275, %284 : vector<24x16xf32>
    %286 = arith.mulf %285, %285 : vector<24x16xf32>
    %cst_120 = arith.constant dense<0.000000e+00> : vector<16xf32>
    %287 = vector.multi_reduction <add>, %286, %cst_120 [0] : vector<24x16xf32> to vector<16xf32>
    %288 = vector.shape_cast %287 : vector<16xf32> to vector<1x16xf32>
    %cst_121 = arith.constant 2.400000e+01 : f32
    %289 = vector.broadcast %cst_121 : f32 to vector<1x16xf32>
    %290 = arith.divf %288, %289 : vector<1x16xf32>
    %cst_122 = arith.constant 9.99999974E-6 : f32
    %291 = vector.broadcast %cst_122 : f32 to vector<1x16xf32>
    %292 = arith.addf %290, %291 : vector<1x16xf32>
    %293 = math.rsqrt %292 : vector<1x16xf32>
    %294 = vector.broadcast %293 : vector<1x16xf32> to vector<24x16xf32>
    %295 = arith.mulf %285, %294 : vector<24x16xf32>
    %296 = vector.broadcast %277 : vector<1x16xf32> to vector<24x16xf32>
    %297 = arith.mulf %295, %296 : vector<24x16xf32>
    %298 = vector.broadcast %279 : vector<1x16xf32> to vector<24x16xf32>
    %299 = arith.addf %297, %298 : vector<24x16xf32>
    %c0_123 = arith.constant 0 : index
    %c0_124 = arith.constant 0 : index
    %300 = vector.load %arg13[%c0_123, %c0_124] : memref<24x16xf32, #tpu.memory_space<vmem>>, vector<24x16xf32>
    tpu.vector_store %arg13[%c0_123, %c0_124], %299 {strides = array<i32>} : memref<24x16xf32, #tpu.memory_space<vmem>>, vector<24x16xf32>,
    return
  }
}

</mosaic_0001>

<bundles_post_ra>
// kernel: tpu_custom_call.1
= control target key start
LH: loop header
LB: loop body
LE: loop exit
PB: predicated region body
PF: predicated region fallthrough
CT: control target
= control target key end

     0   :  { %vm62_vm0 = vcmask 1041408   ;;  %vm55_vm1 = vcmask 31744   ;;  %vm189_vm2 = vcmask 130048   ;;  %vm1518_vm3 = vcmask 64512   ;;  %s11637_s1 = inlined_call_operand.vmem [shape: bf16[4,16], index: 1, kind: input, shape index: {}]   ;;  %s11638_s0 = inlined_call_operand.vmem [shape: f32[24,4], index: 0, kind: input, shape index: {}]   ;;  %s11639_s2 = inlined_call_operand.vmem [shape: f32[1,16], index: 2, kind: input, shape index: {}]   ;;  %s11640_s5 = inlined_call_operand.vmem [shape: f32[2,1,16], index: 5, kind: input, shape index: {}]   ;;  %s11641_s6 = inlined_call_operand.vmem [shape: f32[2,1,16], index: 6, kind: input, shape index: {}]   ;;  %s11642_s3 = inlined_call_operand.vmem [shape: bf16[2,22,16,8], index: 3, kind: input, shape index: {}]   ;;  %s11643_s4 = inlined_call_operand.vmem [shape: bf16[2,2,8,16], index: 4, kind: input, shape index: {}]   ;;  %s11644_s8 = inlined_call_operand.vmem [shape: f32[2,1,64], index: 8, kind: input, shape index: {}]   ;;  %s11645_s7 = inlined_call_operand.vmem [shape: bf16[2,16,64], index: 7, kind: input, shape index: {}]   ;;  %s11646_s10 = inlined_call_operand.vmem [shape: f32[2,1,16], index: 10, kind: input, shape index: {}]   ;;  %s11647_s9 = inlined_call_operand.vmem [shape: bf16[2,64,16], index: 9, kind: input, shape index: {}]   ;;  %s11648_s11 = inlined_call_operand.vmem [shape: f32[2,1,16], index: 11, kind: input, shape index: {}]   ;;  %s11649_s12 = inlined_call_operand.vmem [shape: f32[2,1,16], index: 12, kind: input, shape index: {}]   ;;  %s11650_s13 = inlined_call_operand.vmem [shape: f32[24,16], index: 13, kind: output, shape index: {}]  }
   0x1   :  { %v48_v0 = vld [vmem:[%s11637_s1] sm:$0x3]  ;;  %v46_v2 = vld [vmem:[%s11638_s0 + $0x8] sm:$0xff]  ;;  %v47_v5 = vld [vmem:[%s11638_s0 + $0x10] sm:$0xff]  ;;  %vm2771_vm4 = vcmask 93184   ;;  %vm2767_vm5 = vcmask 97280  }
   0x2   :  { %v45_v1 = vld [vmem:[%s11638_s0] sm:$0xff]  ;;  %v64_v3 = vsel %vm62_vm0, %v48_v0, 0  ;;  %v50_v6 = vpack.c.bf16 %v47_v5, %v47_v5  ;;  %v8355_v8 = vld [vmem:[%s11642_s3 + $0x8] sm:$0xff]  ;;  %v8356_v9 = vld [vmem:[%s11642_s3 + $0x10] sm:$0xff]  ;;  %vm11675_vm8 = vcmask 1045504  }
   0x3   :  { %v49_v4 = vpack.c.bf16 %v46_v2, %v45_v1  ;;  %73 = vmatpush.bf16.msra.mxu0 %v64_v3  ;;  %v8354_v7 = vld [vmem:[%s11642_s3] sm:$0xff]  ;;  %v8357_v10 = vld [vmem:[%s11642_s3 + $0x18] sm:$0xff]  ;;  %227 = vmatpush.bf16.msra.mxu2 %v8355_v8  ;;  %v8359_v14 = vld [vmem:[%s11642_s3 + $0x28] sm:$0xff] }
   0x4   :  { %203 = vmatpush.bf16.msra.mxu1 %v8354_v7  ;;  %251 = vmatpush.bf16.msra.mxu3 %v8356_v9  ;;  %v8410_v12 = vld [vmem:[%s11639_s2] ss:$0 sm:$0xff]  ;;  %v8360_v15 = vld [vmem:[%s11642_s3 + $0x30] sm:$0xff]  ;;  %v8361_v16 = vld [vmem:[%s11642_s3 + $0x38] sm:$0xff] }
   0x5   :  { %v8358_v13 = vld [vmem:[%s11642_s3 + $0x20] sm:$0xff]  ;;  %v8363_v32 = vld [vmem:[%s11642_s3 + $0x48] sm:$0xff]  ;;  %v8364_v33 = vld [vmem:[%s11642_s3 + $0x50] sm:$0xff] }
   0x6   :  { %7888 = vmatmul.msk.bf16.vlgmr.msra.gmra.mxu0 %vm55_vm1, %v49_v4  ;;  %v8362_v31 = vld [vmem:[%s11642_s3 + $0x40] sm:$0xff]  ;;  %v8365_v34 = vld [vmem:[%s11642_s3 + $0x58] sm:$0xff]  ;;  %v8367_v36 = vld [vmem:[%s11642_s3 + $0x68] sm:$0xff] }
   0x7   :  { %275 = vmatpush.bf16.msrb.mxu0 %v8357_v10  ;;  %323 = vmatpush.bf16.msrb.mxu2 %v8359_v14  ;;  %v8366_v35 = vld [vmem:[%s11642_s3 + $0x60] sm:$0xff]  ;;  %v8368_v37 = vld [vmem:[%s11642_s3 + $0x70] sm:$0xff]  ;;  %v8369_v38 = vld [vmem:[%s11642_s3 + $0x78] sm:$0xff] }
   0x8   :  { %299 = vmatpush.bf16.msrb.mxu1 %v8358_v13  ;;  %347 = vmatpush.bf16.msrb.mxu3 %v8360_v15  ;;  %v8370_v39 = vld [vmem:[%s11642_s3 + $0x80] sm:$0xff]  ;;  %v8371_v40 = vld [vmem:[%s11642_s3 + $0x88] sm:$0xff]  ;;  %v8372_v41 = vld [vmem:[%s11642_s3 + $0x90] sm:$0xff] }
   0x9   :  { %v8373_v42 = vld [vmem:[%s11642_s3 + $0x98] sm:$0xff]  ;;  %v8374_v46 = vld [vmem:[%s11642_s3 + $0xa0] sm:$0xff]  ;;  %v8375_v47 = vld [vmem:[%s11642_s3 + $0xa8] sm:$0xff] }
   0xb   :  { %371 = vmatpush.bf16.msra.mxu0 %v8361_v16 }
  0x16   :  { %7889 = vmatmul.msk.bf16.gmra.mxu0 %vm55_vm1, %v50_v6 }
  0x83   :  { %v75_v11 = vpop.f32.mrf.mxu0 }
  0x84   :  { %v8752_v17 = vadd.f32 %v8410_v12, %v75_v11 }
  0x86   :  { %11724 = vst [vmem:[#allocation2_spill] sm:$0xff] %v8752_v17  ;;  %v128_v19 = vpack.c.bf16 %v8752_v17, %v8752_v17 }
  0x88   :  { %v178_v22 = vunpack.c.l.b16 %v128_v19 }
  0x8b   :  { %v77_v18 = vpop.f32.mrf.mxu0 }
  0x8c   :  { %v8756_v20 = vadd.f32 %v8410_v12, %v77_v18 }
  0x8e   :  { %11725 = vst [vmem:[#allocation3_spill] sm:$0xff] %v8756_v20  ;;  %v129_v21 = vpack.c.bf16 %v8756_v20, %v8756_v20 }
  0x90   :  { %v179_v23 = vunpack.c.l.b16 %v129_v21 }
  0x92   :  { %v8760_v24 = vpack.c.b16 %v179_v23, %v178_v22 }
  0x93   :  { %v80_v25 = vpop.f32.mrf.mxu0 }
  0x94   :  { %v8762_v26 = vadd.f32 %v8410_v12, %v80_v25  ;;  %7896 = vmatmul.msk.bf16.vlgmr.msra.gmra.mxu1 %vm189_vm2, %v8760_v24  ;;  %7902 = vmatmul.msk.bf16.vlgmr.msra.gmra.mxu2 %vm189_vm2, %v8760_v24 }
  0x95   :  { %7908 = vmatmul.msk.bf16.vlgmr.msra.gmra.mxu3 %vm189_vm2, %v8760_v24  ;;  %7914 = vmatmul.msk.bf16.vlgmr.msrb.gmra.mxu0 %vm189_vm2, %v8760_v24 }
  0x96   :  { %11726 = vst [vmem:[#allocation4_spill] sm:$0xff] %v8762_v26  ;;  %v130_v27 = vpack.c.bf16 %v8762_v26, %v8762_v26  ;;  %395 = vmatpush.bf16.msra.mxu1 %v8362_v31  ;;  %419 = vmatpush.bf16.msra.mxu2 %v8363_v32 }
  0x97   :  { %443 = vmatpush.bf16.msra.mxu3 %v8364_v33  ;;  %467 = vmatpush.bf16.msrb.mxu0 %v8365_v34 }
  0x98   :  { %v180_v29 = vunpack.c.l.b16 %v130_v27 }
  0x9a   :  { %v8774_v30 = vpack.c.b16 %v180_v29, %v180_v29 }
  0x9b   :  { %v82_v28 = vpop.f32.mrf.mxu0 }
  0xa4   :  { %7897 = vmatmul.msk.bf16.gmra.mxu1 %vm189_vm2, %v8774_v30  ;;  %7903 = vmatmul.msk.bf16.gmra.mxu2 %vm189_vm2, %v8774_v30 }
  0xa5   :  { %7909 = vmatmul.msk.bf16.gmra.mxu3 %vm189_vm2, %v8774_v30  ;;  %7915 = vmatmul.msk.bf16.gmra.mxu0 %vm189_vm2, %v8774_v30 }
  0xb4   :  { %7920 = vmatmul.msk.bf16.vlgmr.msrb.gmra.mxu1 %vm189_vm2, %v8760_v24  ;;  %7926 = vmatmul.msk.bf16.vlgmr.msrb.gmra.mxu2 %vm189_vm2, %v8760_v24 }
  0xb5   :  { %7932 = vmatmul.msk.bf16.vlgmr.msrb.gmra.mxu3 %vm189_vm2, %v8760_v24  ;;  %7938 = vmatmul.msk.bf16.vlgmr.msra.gmra.mxu0 %vm189_vm2, %v8760_v24 }
  0xb6   :  { %491 = vmatpush.bf16.msrb.mxu1 %v8366_v35  ;;  %515 = vmatpush.bf16.msrb.mxu2 %v8367_v36 }
  0xb7   :  { %539 = vmatpush.bf16.msrb.mxu3 %v8368_v37  ;;  %563 = vmatpush.bf16.msra.mxu0 %v8369_v38 }
  0xc4   :  { %7921 = vmatmul.msk.bf16.gmra.mxu1 %vm189_vm2, %v8774_v30  ;;  %7927 = vmatmul.msk.bf16.gmra.mxu2 %vm189_vm2, %v8774_v30 }
  0xc5   :  { %7933 = vmatmul.msk.bf16.gmra.mxu3 %vm189_vm2, %v8774_v30  ;;  %7939 = vmatmul.msk.bf16.gmra.mxu0 %vm189_vm2, %v8774_v30 }
  0xd4   :  { %7944 = vmatmul.msk.bf16.vlgmr.msra.gmra.mxu1 %vm189_vm2, %v8760_v24  ;;  %7950 = vmatmul.msk.bf16.vlgmr.msra.gmra.mxu2 %vm189_vm2, %v8760_v24 }
  0xd5   :  { %7956 = vmatmul.msk.bf16.vlgmr.msra.gmra.mxu3 %vm189_vm2, %v8760_v24  ;;  %7962 = vmatmul.msk.bf16.vlgmr.msrb.gmra.mxu0 %vm189_vm2, %v8760_v24 }
  0xd6   :  { %587 = vmatpush.bf16.msra.mxu1 %v8370_v39  ;;  %611 = vmatpush.bf16.msra.mxu2 %v8371_v40 }
  0xd7   :  { %635 = vmatpush.bf16.msra.mxu3 %v8372_v41  ;;  %659 = vmatpush.bf16.msrb.mxu0 %v8373_v42 }
  0xe4   :  { %7945 = vmatmul.msk.bf16.gmra.mxu1 %vm189_vm2, %v8774_v30  ;;  %7951 = vmatmul.msk.bf16.gmra.mxu2 %vm189_vm2, %v8774_v30 }
  0xe5   :  { %7957 = vmatmul.msk.bf16.gmra.mxu3 %vm189_vm2, %v8774_v30  ;;  %7963 = vmatmul.msk.bf16.gmra.mxu0 %vm189_vm2, %v8774_v30 }
  0xf4   :  { %7968 = vmatmul.msk.bf16.vlgmr.msrb.gmra.mxu1 %vm189_vm2, %v8760_v24  ;;  %7974 = vmatmul.msk.bf16.vlgmr.msrb.gmra.mxu2 %vm189_vm2, %v8760_v24 }
  0xf5   :  { %7980 = vmatmul.msk.bf16.vlgmr.msrb.gmra.mxu3 %vm189_vm2, %v8760_v24  ;;  %7986 = vmatmul.msk.bf16.vlgmr.msra.gmra.mxu0 %vm189_vm2, %v8760_v24 }
  0xf6   :  { %683 = vmatpush.bf16.msrb.mxu1 %v8374_v46  ;;  %707 = vmatpush.bf16.msrb.mxu2 %v8375_v47 }
 0x104   :  { %7969 = vmatmul.msk.bf16.gmra.mxu1 %vm189_vm2, %v8774_v30  ;;  %7975 = vmatmul.msk.bf16.gmra.mxu2 %vm189_vm2, %v8774_v30 }
 0x105   :  { %7981 = vmatmul.msk.bf16.gmra.mxu3 %vm189_vm2, %v8774_v30  ;;  %7987 = vmatmul.msk.bf16.gmra.mxu0 %vm189_vm2, %v8774_v30 }
 0x111   :  { %v205_v43 = vpop.f32.mrf.mxu1 }
 0x112   :  { %v784_v44 = vrot.slane %v205_v43, 4  ;;  %850 = vst [vmem:[#allocation1] ss:$2 sm:$0xff] %v205_v43  ;;  %v277_v45 = vpop.f32.mrf.mxu0 }
 0x113   :  { %v793_v8 = vrot.slane %v277_v45, 4 }
 0x114   :  { %852 = vst [vmem:[#allocation1 + $0x1] ss:$2 sm:$0xff] %v784_v44  ;;  %7992 = vmatmul.msk.bf16.vlgmr.msra.gmra.mxu1 %vm189_vm2, %v8760_v24  ;;  %7998 = vmatmul.msk.bf16.vlgmr.msra.gmra.mxu2 %vm189_vm2, %v8760_v24 }
 0x115   :  { %8004 = vmatmul.msk.bf16.vlgmr.msra.gmra.mxu3 %vm189_vm2, %v8760_v24  ;;  %8010 = vmatmul.msk.bf16.vlgmr.msrb.gmra.mxu0 %vm189_vm2, %v8760_v24 }
 0x117   :  { %v229_v48 = vpop.f32.mrf.mxu2 }
 0x118   :  { %v253_v49 = vpop.f32.mrf.mxu3  ;;  %v787_v54 = vrot.slane %v229_v48, 4 }
 0x119   :  { %v207_v50 = vpop.f32.mrf.mxu1  ;;  %v790_v62 = vrot.slane %v253_v49, 4 }
 0x11a   :  { %v785_v51 = vrot.slane %v207_v50, 4  ;;  %854 = vst [vmem:[#allocation1 + $0x10] ss:$2 sm:$0xff] %v207_v50  ;;  %v8882_v52 = vpop.f32.mrf.mxu0 }
 0x11b   :  { %v8884_v53 = vld.sshfl [vmem:[#allocation1] sm:$0xff pattern:$0x75316420]  ;;  %v794_v31 = vrot.slane %v8882_v52, 4 }
 0x11c   :  { %865 = vst [vmem:[#allocation1] ss:$2 sm:$0xff] %v229_v48 }
 0x11d   :  { %866 = vst [vmem:[#allocation1 + $0x1] ss:$2 sm:$0xff] %v787_v54 }
 0x11e   :  { %858 = vst [vmem:[#allocation1 + $0x20] ss:$2 sm:$0xff] %v785_v51 }
 0x11f   :  { %v231_v55 = vpop.f32.mrf.mxu2 }
 0x120   :  { %v255_v56 = vpop.f32.mrf.mxu3  ;;  %v788_v1 = vrot.slane %v231_v55, 4 }
 0x121   :  { %v8886_v57 = vld.sshfl [vmem:[#allocation1 + $0x10] sm:$0xff pattern:$0x75316420]  ;;  %v210_v58 = vpop.f32.mrf.mxu1  ;;  %v791_v14 = vrot.slane %v255_v56, 4 }
 0x122   :  { %867 = vst [vmem:[#allocation1 + $0x10] ss:$2 sm:$0xff] %v231_v55  ;;  %v786_v59 = vrot.slane %v210_v58, 4  ;;  %v282_v60 = vpop.f32.mrf.mxu0 }
 0x123   :  { %860 = vst [vmem:[#allocation1 + $0x21] ss:$2 sm:$0xff] %v210_v58  ;;  %v795_v33 = vrot.slane %v282_v60, 4 }
 0x124   :  { %v8888_v61 = vld.sshfl [vmem:[#allocation1] sm:$0xff pattern:$0x75316420]  ;;  %862 = vst [vmem:[#allocation1 + $0x30] ss:$2 sm:$0xff] %v786_v59  ;;  %7993 = vmatmul.msk.bf16.gmra.mxu1 %vm189_vm2, %v8774_v30  ;;  %7999 = vmatmul.msk.bf16.gmra.mxu2 %vm189_vm2, %v8774_v30 }
 0x125   :  { %875 = vst [vmem:[#allocation1] ss:$2 sm:$0xff] %v253_v49  ;;  %8005 = vmatmul.msk.bf16.gmra.mxu3 %vm189_vm2, %v8774_v30  ;;  %8011 = vmatmul.msk.bf16.gmra.mxu0 %vm189_vm2, %v8774_v30 }
 0x126   :  { %876 = vst [vmem:[#allocation1 + $0x1] ss:$2 sm:$0xff] %v790_v62 }
 0x127   :  { %v234_v63 = vpop.f32.mrf.mxu2 }
 0x128   :  { %v258_v0 = vpop.f32.mrf.mxu3  ;;  %v789_v7 = vrot.slane %v234_v63, 4 }
 0x129   :  { %v8898_v2 = vld.sshfl [vmem:[#allocation1 + $0x10] sm:$0xff pattern:$0x75316420]  ;;  %v212_v3 = vpop.f32.mrf.mxu1  ;;  %v792_v18 = vrot.slane %v258_v0, 4 }
 0x12a   :  { %877 = vst [vmem:[#allocation1 + $0x10] ss:$2 sm:$0xff] %v255_v56  ;;  %v8900_v4 = vld.sshfl [vmem:[#allocation1 + $0x20] sm:$0xff pattern:$0x75316420]  ;;  %v284_v5 = vpop.f32.mrf.mxu0 }
 0x12b   :  { %v8902_v6 = vld.sshfl [vmem:[#allocation1 + $0x30] sm:$0xff pattern:$0x75316420]  ;;  %870 = vst [vmem:[#allocation1 + $0x20] ss:$2 sm:$0xff] %v788_v1 }
 0x12c   :  { %871 = vst [vmem:[#allocation1 + $0x21] ss:$2 sm:$0xff] %v234_v63 }
 0x12d   :  { %v8904_v9 = vld.sshfl [vmem:[#allocation1] sm:$0xff pattern:$0x75316420]  ;;  %872 = vst [vmem:[#allocation1 + $0x30] ss:$2 sm:$0xff] %v789_v7 }
 0x12e   :  { %885 = vst [vmem:[#allocation1] ss:$2 sm:$0xff] %v277_v45 }
 0x12f   :  { %886 = vst [vmem:[#allocation1 + $0x1] ss:$2 sm:$0xff] %v793_v8  ;;  %v236_v10 = vpop.f32.mrf.mxu2 }
 0x130   :  { %v260_v11 = vpop.f32.mrf.mxu3 }
 0x131   :  { %v8906_v12 = vld.sshfl [vmem:[#allocation1 + $0x10] sm:$0xff pattern:$0x75316420]  ;;  %v301_v13 = vpop.f32.mrf.mxu1 }
 0x132   :  { %887 = vst [vmem:[#allocation1 + $0x10] ss:$2 sm:$0xff] %v8882_v52  ;;  %v8909_v15 = vpop.f32.mrf.mxu0  ;;  %v796_v21 = vrot.slane %v301_v13, 4 }
 0x133   :  { %v8911_v16 = vld.sshfl [vmem:[#allocation1 + $0x20] sm:$0xff pattern:$0x75316420]  ;;  %v805_v59 = vrot.slane %v8909_v15, 4 }
 0x134   :  { %v8913_v19 = vld.sshfl [vmem:[#allocation1 + $0x30] sm:$0xff pattern:$0x75316420]  ;;  %880 = vst [vmem:[#allocation1 + $0x20] ss:$2 sm:$0xff] %v791_v14  ;;  %8016 = vmatmul.msk.bf16.vlgmr.msrb.gmra.mxu1 %vm189_vm2, %v8760_v24  ;;  %8022 = vmatmul.msk.bf16.vlgmr.msrb.gmra.mxu2 %vm189_vm2, %v8760_v24 }
 0x135   :  { %881 = vst [vmem:[#allocation1 + $0x21] ss:$2 sm:$0xff] %v258_v0 }
 0x136   :  { %v8919_v22 = vld.sshfl [vmem:[#allocation1] sm:$0xff pattern:$0x75316420]  ;;  %882 = vst [vmem:[#allocation1 + $0x30] ss:$2 sm:$0xff] %v792_v18 }
 0x137   :  { %895 = vst [vmem:[#allocation1] ss:$2 sm:$0xff] %v301_v13  ;;  %v325_v23 = vpop.f32.mrf.mxu2 }
 0x138   :  { %896 = vst [vmem:[#allocation1 + $0x1] ss:$2 sm:$0xff] %v796_v21  ;;  %v349_v25 = vpop.f32.mrf.mxu3  ;;  %v799_v35 = vrot.slane %v325_v23, 4 }
 0x139   :  { %v8921_v27 = vld.sshfl [vmem:[#allocation1 + $0x10] sm:$0xff pattern:$0x75316420]  ;;  %v303_v28 = vpop.f32.mrf.mxu1  ;;  %v802_v47 = vrot.slane %v349_v25, 4 }
 0x13a   :  { %897 = vst [vmem:[#allocation1 + $0x10] ss:$2 sm:$0xff] %v303_v28  ;;  %v8923_v29 = vpop.f32.mrf.mxu0  ;;  %v797_v41 = vrot.slane %v303_v28, 4 }
 0x13b   :  { %v806_v21 = vrot.slane %v8923_v29, 4 }
 0x13c   :  { %v8926_v32 = vld.sshfl [vmem:[#allocation1 + $0x20] sm:$0xff pattern:$0x75316420] }
 0x13d   :  { %v8928_v24 = vld.sshfl [vmem:[#allocation1 + $0x30] sm:$0xff pattern:$0x75316420]  ;;  %890 = vst [vmem:[#allocation1 + $0x20] ss:$2 sm:$0xff] %v794_v31 }
 0x13e   :  { %891 = vst [vmem:[#allocation1 + $0x21] ss:$2 sm:$0xff] %v282_v60 }
 0x13f   :  { %892 = vst [vmem:[#allocation1 + $0x30] ss:$2 sm:$0xff] %v795_v33  ;;  %v8930_v34 = vld.sshfl [vmem:[#allocation1] sm:$0xff pattern:$0x75316420]  ;;  %v327_v36 = vpop.f32.mrf.mxu2 }
 0x140   :  { %905 = vst [vmem:[#allocation1] ss:$2 sm:$0xff] %v325_v23  ;;  %v351_v37 = vpop.f32.mrf.mxu3 }
 0x141   :  { %906 = vst [vmem:[#allocation1 + $0x1] ss:$2 sm:$0xff] %v799_v35  ;;  %v8932_v38 = vld.sshfl [vmem:[#allocation1 + $0x10] sm:$0xff pattern:$0x75316420]  ;;  %v306_v39 = vpop.f32.mrf.mxu1  ;;  %v803_v1 = vrot.slane %v351_v37, 4 }
 0x142   :  { %907 = vst [vmem:[#allocation1 + $0x10] ss:$2 sm:$0xff] %v327_v36  ;;  %v8934_v40 = vpop.f32.mrf.mxu0  ;;  %v798_v42 = vrot.slane %v306_v39, 4 }
 0x143   :  { %v807_v31 = vrot.slane %v8934_v40, 4 }
 0x144   :  { %8017 = vmatmul.msk.bf16.gmra.mxu1 %vm189_vm2, %v8774_v30  ;;  %8023 = vmatmul.msk.bf16.gmra.mxu2 %vm189_vm2, %v8774_v30  ;;  %v800_v30 = vrot.slane %v327_v36, 4 }
 0x145   :  { %v8940_v43 = vld.sshfl [vmem:[#allocation1 + $0x20] sm:$0xff pattern:$0x75316420] }
 0x146   :  { %v8942_v44 = vld.sshfl [vmem:[#allocation1 + $0x30] sm:$0xff pattern:$0x75316420]  ;;  %900 = vst [vmem:[#allocation1 + $0x20] ss:$2 sm:$0xff] %v797_v41 }
 0x147   :  { %901 = vst [vmem:[#allocation1 + $0x21] ss:$2 sm:$0xff] %v306_v39  ;;  %v330_v45 = vpop.f32.mrf.mxu2 }
 0x148   :  { %v8944_v46 = vld.sshfl [vmem:[#allocation1] sm:$0xff pattern:$0x75316420]  ;;  %902 = vst [vmem:[#allocation1 + $0x30] ss:$2 sm:$0xff] %v798_v42  ;;  %v354_v48 = vpop.f32.mrf.mxu3  ;;  %v801_v55 = vrot.slane %v330_v45, 4 }
 0x149   :  { %915 = vst [vmem:[#allocation1] ss:$2 sm:$0xff] %v349_v25  ;;  %v8946_v49 = vld.sshfl [vmem:[#allocation1 + $0x10] sm:$0xff pattern:$0x75316420]  ;;  %v308_v50 = vpop.f32.mrf.mxu1  ;;  %v804_v5 = vrot.slane %v354_v48, 4 }
 0x14a   :  { %916 = vst [vmem:[#allocation1 + $0x1] ss:$2 sm:$0xff] %v802_v47  ;;  %v380_v51 = vpop.f32.mrf.mxu0 }
 0x14b   :  { %917 = vst [vmem:[#allocation1 + $0x10] ss:$2 sm:$0xff] %v351_v37 }
 0x14e   :  { %v8948_v52 = vld.sshfl [vmem:[#allocation1 + $0x20] sm:$0xff pattern:$0x75316420] }
 0x14f   :  { %v8950_v54 = vld.sshfl [vmem:[#allocation1 + $0x30] sm:$0xff pattern:$0x75316420]  ;;  %910 = vst [vmem:[#allocation1 + $0x20] ss:$2 sm:$0xff] %v800_v30  ;;  %v332_v56 = vpop.f32.mrf.mxu2 }
 0x150   :  { %911 = vst [vmem:[#allocation1 + $0x21] ss:$2 sm:$0xff] %v330_v45  ;;  %v356_v58 = vpop.f32.mrf.mxu3 }
 0x151   :  { %v8953_v60 = vld.sshfl [vmem:[#allocation1] sm:$0xff pattern:$0x75316420]  ;;  %912 = vst [vmem:[#allocation1 + $0x30] ss:$2 sm:$0xff] %v801_v55  ;;  %v397_v62 = vpop.f32.mrf.mxu1 }
 0x152   :  { %925 = vst [vmem:[#allocation1] ss:$2 sm:$0xff] %v8909_v15  ;;  %v8956_v63 = vld.sshfl [vmem:[#allocation1 + $0x10] sm:$0xff pattern:$0x75316420]  ;;  %v8958_v0 = vpop.f32.mrf.mxu0  ;;  %v808_v10 = vrot.slane %v397_v62, 4 }
 0x153   :  { %926 = vst [vmem:[#allocation1 + $0x1] ss:$2 sm:$0xff] %v805_v59 }
 0x154   :  { %927 = vst [vmem:[#allocation1 + $0x10] ss:$2 sm:$0xff] %v8923_v29 }
 0x157   :  { %v8961_v3 = vld.sshfl [vmem:[#allocation1 + $0x20] sm:$0xff pattern:$0x75316420]  ;;  %v421_v7 = vpop.f32.mrf.mxu2 }
 0x158   :  { %v8963_v8 = vld.sshfl [vmem:[#allocation1 + $0x30] sm:$0xff pattern:$0x75316420]  ;;  %920 = vst [vmem:[#allocation1 + $0x20] ss:$2 sm:$0xff] %v803_v1  ;;  %v445_v11 = vpop.f32.mrf.mxu3  ;;  %v811_v39 = vrot.slane %v421_v7, 4 }
 0x159   :  { %921 = vst [vmem:[#allocation1 + $0x21] ss:$2 sm:$0xff] %v354_v48  ;;  %v399_v13 = vpop.f32.mrf.mxu1  ;;  %v814_v55 = vrot.slane %v445_v11, 4 }
 0x15a   :  { %v8965_v14 = vld.sshfl [vmem:[#allocation1] sm:$0xff pattern:$0x75316420]  ;;  %922 = vst [vmem:[#allocation1 + $0x30] ss:$2 sm:$0xff] %v804_v5  ;;  %v8967_v15 = vpop.f32.mrf.mxu0  ;;  %v809_v42 = vrot.slane %v399_v13, 4 }
 0x15b   :  { %v8969_v18 = vld.sshfl [vmem:[#allocation1 + $0x10] sm:$0xff pattern:$0x75316420]  ;;  %935 = vst [vmem:[#allocation1] ss:$2 sm:$0xff] %v397_v62 }
 0x15c   :  { %936 = vst [vmem:[#allocation1 + $0x1] ss:$2 sm:$0xff] %v808_v10 }
 0x15d   :  { %937 = vst [vmem:[#allocation1 + $0x10] ss:$2 sm:$0xff] %v399_v13 }
 0x15f   :  { %v423_v23 = vpop.f32.mrf.mxu2 }
 0x160   :  { %v8972_v25 = vld.sshfl [vmem:[#allocation1 + $0x20] sm:$0xff pattern:$0x75316420]  ;;  %v447_v28 = vpop.f32.mrf.mxu3  ;;  %v812_v62 = vrot.slane %v423_v23, 4 }
 0x161   :  { %v8975_v33 = vld.sshfl [vmem:[#allocation1 + $0x30] sm:$0xff pattern:$0x75316420]  ;;  %930 = vst [vmem:[#allocation1 + $0x20] ss:$2 sm:$0xff] %v806_v21  ;;  %v402_v35 = vpop.f32.mrf.mxu1  ;;  %v817_v21 = vrot.slane %v8958_v0, 4 }
 0x162   :  { %931 = vst [vmem:[#allocation1 + $0x21] ss:$2 sm:$0xff] %v8934_v40  ;;  %v8978_v36 = vpop.f32.mrf.mxu0  ;;  %v810_v45 = vrot.slane %v402_v35, 4 }
 0x163   :  { %932 = vst [vmem:[#allocation1 + $0x30] ss:$2 sm:$0xff] %v807_v31  ;;  %v8980_v37 = vld.sshfl [vmem:[#allocation1] sm:$0xff pattern:$0x75316420] }
 0x164   :  { %945 = vst [vmem:[#allocation1] ss:$2 sm:$0xff] %v421_v7  ;;  %v8982_v29 = vld.sshfl [vmem:[#allocation1 + $0x10] sm:$0xff pattern:$0x75316420] }
 0x165   :  { %946 = vst [vmem:[#allocation1 + $0x1] ss:$2 sm:$0xff] %v811_v39 }
 0x166   :  { %947 = vst [vmem:[#allocation1 + $0x10] ss:$2 sm:$0xff] %v423_v23 }
 0x167   :  { %v426_v41 = vpop.f32.mrf.mxu2 }
 0x168   :  { %v450_v47 = vpop.f32.mrf.mxu3  ;;  %v813_v13 = vrot.slane %v426_v41, 4 }
 0x169   :  { %v8984_v48 = vld.sshfl [vmem:[#allocation1 + $0x20] sm:$0xff pattern:$0x75316420]  ;;  %v404_v50 = vpop.f32.mrf.mxu1 }
 0x16a   :  { %v8986_v51 = vld.sshfl [vmem:[#allocation1 + $0x30] sm:$0xff pattern:$0x75316420]  ;;  %940 = vst [vmem:[#allocation1 + $0x20] ss:$2 sm:$0xff] %v809_v42  ;;  %v476_v40 = vpop.f32.mrf.mxu0  ;;  %v815_v42 = vrot.slane %v447_v28, 4 }
 0x16b   :  { %941 = vst [vmem:[#allocation1 + $0x21] ss:$2 sm:$0xff] %v402_v35 }
 0x16c   :  { %v8988_v30 = vld.sshfl [vmem:[#allocation1] sm:$0xff pattern:$0x75316420]  ;;  %942 = vst [vmem:[#allocation1 + $0x30] ss:$2 sm:$0xff] %v810_v45 }
 0x16d   :  { %955 = vst [vmem:[#allocation1] ss:$2 sm:$0xff] %v445_v11  ;;  %v8990_v56 = vld.sshfl [vmem:[#allocation1 + $0x10] sm:$0xff pattern:$0x75316420] }
 0x16e   :  { %956 = vst [vmem:[#allocation1 + $0x1] ss:$2 sm:$0xff] %v814_v55 }
 0x16f   :  { %957 = vst [vmem:[#allocation1 + $0x10] ss:$2 sm:$0xff] %v447_v28  ;;  %v428_v58 = vpop.f32.mrf.mxu2 }
 0x170   :  { %v452_v59 = vpop.f32.mrf.mxu3 }
 0x171   :  { %v493_v1 = vpop.f32.mrf.mxu1 }
 0x172   :  { %v8992_v5 = vld.sshfl [vmem:[#allocation1 + $0x20] sm:$0xff pattern:$0x75316420]  ;;  %v8994_v7 = vpop.f32.mrf.mxu0  ;;  %v820_v55 = vrot.slane %v493_v1, 4 }
 0x173   :  { %11727 = vst [vmem:[#allocation5_spill] sm:$0xff] %v8992_v5  ;;  %v8996_v10 = vld.sshfl [vmem:[#allocation1 + $0x30] sm:$0xff pattern:$0x75316420] }
 0x174   :  { %950 = vst [vmem:[#allocation1 + $0x20] ss:$2 sm:$0xff] %v812_v62 }
 0x175   :  { %951 = vst [vmem:[#allocation1 + $0x21] ss:$2 sm:$0xff] %v426_v41  ;;  %v8999_v11 = vld.sshfl [vmem:[#allocation1] sm:$0xff pattern:$0x75316420]  ;;  %v816_v41 = vrot.slane %v450_v47, 4 }
 0x176   :  { %11728 = vst [vmem:[#allocation6_spill] sm:$0xff] %v8999_v11  ;;  %v9002_v31 = vld.sshfl [vmem:[#allocation1 + $0x10] sm:$0xff pattern:$0x75316420]  ;;  %v1110_v11 = vpack.c.bf16 %v8902_v6, %v8902_v6 }
 0x177   :  { %952 = vst [vmem:[#allocation1 + $0x30] ss:$2 sm:$0xff] %v813_v13  ;;  %v517_v23 = vpop.f32.mrf.mxu2 }
 0x178   :  { %965 = vst [vmem:[#allocation1] ss:$2 sm:$0xff] %v8958_v0  ;;  %v541_v35 = vpop.f32.mrf.mxu3 }
 0x179   :  { %11729 = vst [vmem:[#allocation7_spill] sm:$0xff] %v9002_v31  ;;  %v495_v39 = vpop.f32.mrf.mxu1 }
 0x17a   :  { %966 = vst [vmem:[#allocation1 + $0x1] ss:$2 sm:$0xff] %v817_v21  ;;  %v9005_v45 = vpop.f32.mrf.mxu0  ;;  %v818_v21 = vrot.slane %v8967_v15, 4 }
 0x17b   :  { %967 = vst [vmem:[#allocation1 + $0x10] ss:$2 sm:$0xff] %v8967_v15 }
 0x17c   :  { %v9007_v50 = vld.sshfl [vmem:[#allocation1 + $0x20] sm:$0xff pattern:$0x75316420] }
 0x17d   :  { %11730 = vst [vmem:[#allocation8_spill] sm:$0xff] %v9007_v50 }
 0x17e   :  { %v9009_v40 = vld.sshfl [vmem:[#allocation1 + $0x30] sm:$0xff pattern:$0x75316420]  ;;  %960 = vst [vmem:[#allocation1 + $0x20] ss:$2 sm:$0xff] %v815_v42  ;;  %v819_v42 = vrot.slane %v8978_v36, 4 }
 0x17f   :  { %11731 = vst [vmem:[#allocation9_spill] sm:$0xff] %v9009_v40  ;;  %v519_v59 = vpop.f32.mrf.mxu2 }
 0x180   :  { %961 = vst [vmem:[#allocation1 + $0x21] ss:$2 sm:$0xff] %v450_v47  ;;  %v543_v62 = vpop.f32.mrf.mxu3 }
 0x181   :  { %v9011_v0 = vld.sshfl [vmem:[#allocation1] sm:$0xff pattern:$0x75316420]  ;;  %962 = vst [vmem:[#allocation1 + $0x30] ss:$2 sm:$0xff] %v816_v41  ;;  %v498_v28 = vpop.f32.mrf.mxu1  ;;  %v823_v41 = vrot.slane %v517_v23, 4 }
 0x182   :  { %11732 = vst [vmem:[#allocation10_spill] sm:$0xff] %v9011_v0  ;;  %v9013_v58 = vld.sshfl [vmem:[#allocation1 + $0x10] sm:$0xff pattern:$0x75316420]  ;;  %v9015_v13 = vpop.f32.mrf.mxu0  ;;  %v821_v0 = vrot.slane %v495_v39, 4 }
 0x183   :  { %11733 = vst [vmem:[#allocation11_spill] sm:$0xff] %v9013_v58  ;;  %v822_v58 = vrot.slane %v498_v28, 4 }
 0x184   :  { %975 = vst [vmem:[#allocation1] ss:$2 sm:$0xff] %v493_v1 }
 0x185   :  { %976 = vst [vmem:[#allocation1 + $0x1] ss:$2 sm:$0xff] %v820_v55 }
 0x186   :  { %977 = vst [vmem:[#allocation1 + $0x10] ss:$2 sm:$0xff] %v495_v39  ;;  %v824_v39 = vrot.slane %v519_v59, 4 }
 0x187   :  { %v9018_v26 = vld.sshfl [vmem:[#allocation1 + $0x20] sm:$0xff pattern:$0x75316420]  ;;  %v522_v55 = vpop.f32.mrf.mxu2 }
 0x188   :  { %11734 = vst [vmem:[#allocation12_spill] sm:$0xff] %v9018_v26  ;;  %v9021_v47 = vld.sshfl [vmem:[#allocation1 + $0x30] sm:$0xff pattern:$0x75316420]  ;;  %v546_v20 = vpop.f32.mrf.mxu3 }
 0x189   :  { %11735 = vst [vmem:[#allocation13_spill] sm:$0xff] %v9021_v47  ;;  %v500_v15 = vpop.f32.mrf.mxu1 }
 0x18a   :  { %970 = vst [vmem:[#allocation1 + $0x20] ss:$2 sm:$0xff] %v818_v21  ;;  %v572_v26 = vpop.f32.mrf.mxu0 }
 0x18b   :  { %971 = vst [vmem:[#allocation1 + $0x21] ss:$2 sm:$0xff] %v8978_v36 }
 0x18c   :  { %972 = vst [vmem:[#allocation1 + $0x30] ss:$2 sm:$0xff] %v819_v42  ;;  %v9024_v1 = vld.sshfl [vmem:[#allocation1] sm:$0xff pattern:$0x75316420] }
 0x18d   :  { %11736 = vst [vmem:[#allocation14_spill] sm:$0xff] %v9024_v1  ;;  %v9026_v17 = vld.sshfl [vmem:[#allocation1 + $0x10] sm:$0xff pattern:$0x75316420]  ;;  %v826_v1 = vrot.slane %v541_v35, 4 }
 0x18e   :  { %985 = vst [vmem:[#allocation1] ss:$2 sm:$0xff] %v517_v23 }
 0x18f   :  { %11737 = vst [vmem:[#allocation15_spill] sm:$0xff] %v9026_v17  ;;  %v524_v36 = vpop.f32.mrf.mxu2 }
 0x190   :  { %986 = vst [vmem:[#allocation1 + $0x1] ss:$2 sm:$0xff] %v823_v41  ;;  %v548_v23 = vpop.f32.mrf.mxu3 }
 0x191   :  { %987 = vst [vmem:[#allocation1 + $0x10] ss:$2 sm:$0xff] %v519_v59  ;;  %v589_v41 = vpop.f32.mrf.mxu1 }
 0x192   :  { %v9028_v50 = vld.sshfl [vmem:[#allocation1 + $0x20] sm:$0xff pattern:$0x75316420]  ;;  %v9036_v26 = vpop.f32.mrf.mxu0 }
 0x193   :  { %11738 = vst [vmem:[#allocation16_spill] sm:$0xff] %v9028_v50  ;;  %v9030_v21 = vld.sshfl [vmem:[#allocation1 + $0x30] sm:$0xff pattern:$0x75316420] }
 0x194   :  { %11739 = vst [vmem:[#allocation17_spill] sm:$0xff] %v9030_v21 }
 0x195   :  { %980 = vst [vmem:[#allocation1 + $0x20] ss:$2 sm:$0xff] %v821_v0  ;;  %v825_v0 = vrot.slane %v522_v55, 4 }
 0x196   :  { %981 = vst [vmem:[#allocation1 + $0x21] ss:$2 sm:$0xff] %v498_v28 }
 0x197   :  { %v9032_v42 = vld.sshfl [vmem:[#allocation1] sm:$0xff pattern:$0x75316420]  ;;  %982 = vst [vmem:[#allocation1 + $0x30] ss:$2 sm:$0xff] %v822_v58  ;;  %v613_v28 = vpop.f32.mrf.mxu2 }
 0x198   :  { %11740 = vst [vmem:[#allocation18_spill] sm:$0xff] %v9032_v42  ;;  %v9034_v17 = vld.sshfl [vmem:[#allocation1 + $0x10] sm:$0xff pattern:$0x75316420]  ;;  %v9042_v36 = vpop.f32.mrf.mxu3  ;;  %v832_v42 = vrot.slane %v589_v41, 4 }
 0x199   :  { %995 = vst [vmem:[#allocation1] ss:$2 sm:$0xff] %v541_v35  ;;  %v829_v35 = vrot.slane %v8994_v7, 4  ;;  %v591_v59 = vpop.f32.mrf.mxu1 }
 0x19a   :  { %11741 = vst [vmem:[#allocation19_spill] sm:$0xff] %v9034_v17  ;;  %v9051_v23 = vpop.f32.mrf.mxu0 }
 0x19b   :  { %996 = vst [vmem:[#allocation1 + $0x1] ss:$2 sm:$0xff] %v826_v1 }
 0x19c   :  { %997 = vst [vmem:[#allocation1 + $0x10] ss:$2 sm:$0xff] %v543_v62 }
 0x19d   :  { %v9038_v15 = vld.sshfl [vmem:[#allocation1 + $0x20] sm:$0xff pattern:$0x75316420] }
 0x19e   :  { %11742 = vst [vmem:[#allocation20_spill] sm:$0xff] %v9038_v15  ;;  %v9040_v50 = vld.sshfl [vmem:[#allocation1 + $0x30] sm:$0xff pattern:$0x75316420]  ;;  %v828_v15 = vrot.slane %v546_v20, 4 }
 0x19f   :  { %11743 = vst [vmem:[#allocation21_spill] sm:$0xff] %v9040_v50 }
 0x1a0   :  { %990 = vst [vmem:[#allocation1 + $0x20] ss:$2 sm:$0xff] %v824_v39  ;;  %v827_v39 = vrot.slane %v543_v62, 4 }
 0x1a1   :  { %991 = vst [vmem:[#allocation1 + $0x21] ss:$2 sm:$0xff] %v522_v55 }
 0x1a2   :  { %v9045_v58 = vld.sshfl [vmem:[#allocation1] sm:$0xff pattern:$0x75316420]  ;;  %992 = vst [vmem:[#allocation1 + $0x30] ss:$2 sm:$0xff] %v825_v0  ;;  %v9063_v62 = vpop.f32.mrf.mxu0 }
 0x1a3   :  { %11744 = vst [vmem:[#allocation22_spill] sm:$0xff] %v9045_v58  ;;  %v9048_v1 = vld.sshfl [vmem:[#allocation1 + $0x10] sm:$0xff pattern:$0x75316420]  ;;  %v9059_v58 = vpop.f32.mrf.mxu3 }
 0x1a4   :  { %1005 = vst [vmem:[#allocation1] ss:$2 sm:$0xff] %v8994_v7  ;;  %v615_v7 = vpop.f32.mrf.mxu2 }
 0x1a5   :  { %11745 = vst [vmem:[#allocation23_spill] sm:$0xff] %v9048_v1  ;;  %v594_v1 = vpop.f32.mrf.mxu1 }
 0x1a6   :  { %1006 = vst [vmem:[#allocation1 + $0x1] ss:$2 sm:$0xff] %v829_v35  ;;  %v834_v21 = vrot.slane %v594_v1, 4 }
 0x1a7   :  { %1007 = vst [vmem:[#allocation1 + $0x10] ss:$2 sm:$0xff] %v9005_v45 }
 0x1a8   :  { %v9053_v55 = vld.sshfl [vmem:[#allocation1 + $0x20] sm:$0xff pattern:$0x75316420] }
 0x1a9   :  { %11746 = vst [vmem:[#allocation24_spill] sm:$0xff] %v9053_v55  ;;  %v9055_v50 = vld.sshfl [vmem:[#allocation1 + $0x30] sm:$0xff pattern:$0x75316420]  ;;  %v830_v55 = vrot.slane %v9005_v45, 4 }
 0x1aa   :  { %11747 = vst [vmem:[#allocation25_spill] sm:$0xff] %v9055_v50  ;;  %v668_v17 = vpop.f32.mrf.mxu0 }
 0x1ab   :  { %1000 = vst [vmem:[#allocation1 + $0x20] ss:$2 sm:$0xff] %v827_v39 }
 0x1ac   :  { %1001 = vst [vmem:[#allocation1 + $0x21] ss:$2 sm:$0xff] %v546_v20  ;;  %v831_v20 = vrot.slane %v9015_v13, 4 }
 0x1ad   :  { %v9057_v0 = vld.sshfl [vmem:[#allocation1] sm:$0xff pattern:$0x75316420]  ;;  %1002 = vst [vmem:[#allocation1 + $0x30] ss:$2 sm:$0xff] %v828_v15  ;;  %v618_v15 = vpop.f32.mrf.mxu2  ;;  %v596_v45 = vpop.f32.mrf.mxu1 }
 0x1ae   :  { %11748 = vst [vmem:[#allocation26_spill] sm:$0xff] %v9057_v0  ;;  %v9061_v35 = vld.sshfl [vmem:[#allocation1 + $0x10] sm:$0xff pattern:$0x75316420]  ;;  %v9072_v0 = vpop.f32.mrf.mxu3 }
 0x1af   :  { %11749 = vst [vmem:[#allocation27_spill] sm:$0xff] %v9061_v35 }
 0x1b0   :  { %1015 = vst [vmem:[#allocation1] ss:$2 sm:$0xff] %v589_v41  ;;  %v835_v41 = vrot.slane %v613_v28, 4 }
 0x1b1   :  { %1016 = vst [vmem:[#allocation1 + $0x1] ss:$2 sm:$0xff] %v832_v42 }
 0x1b2   :  { %1017 = vst [vmem:[#allocation1 + $0x10] ss:$2 sm:$0xff] %v591_v59 }
 0x1b3   :  { %v9066_v50 = vld.sshfl [vmem:[#allocation1 + $0x20] sm:$0xff pattern:$0x75316420] }
 0x1b4   :  { %11750 = vst [vmem:[#allocation28_spill] sm:$0xff] %v9066_v50  ;;  %v9069_v39 = vld.sshfl [vmem:[#allocation1 + $0x30] sm:$0xff pattern:$0x75316420]  ;;  %v833_v50 = vrot.slane %v591_v59, 4 }
 0x1b5   :  { %11751 = vst [vmem:[#allocation29_spill] sm:$0xff] %v9069_v39  ;;  %v9090_v59 = vpop.f32.mrf.mxu1 }
 0x1b6   :  { %1010 = vst [vmem:[#allocation1 + $0x20] ss:$2 sm:$0xff] %v830_v55  ;;  %v644_v47 = vpop.f32.mrf.mxu3 }
 0x1b7   :  { %1011 = vst [vmem:[#allocation1 + $0x21] ss:$2 sm:$0xff] %v9015_v13  ;;  %v620_v13 = vpop.f32.mrf.mxu2 }
 0x1b8   :  { %1012 = vst [vmem:[#allocation1 + $0x30] ss:$2 sm:$0xff] %v831_v20  ;;  %v9074_v42 = vld.sshfl [vmem:[#allocation1] sm:$0xff pattern:$0x75316420] }
 0x1b9   :  { %11752 = vst [vmem:[#allocation30_spill] sm:$0xff] %v9074_v42  ;;  %v9076_v35 = vld.sshfl [vmem:[#allocation1 + $0x10] sm:$0xff pattern:$0x75316420] }
 0x1ba   :  { %1025 = vst [vmem:[#allocation1] ss:$2 sm:$0xff] %v613_v28  ;;  %v9085_v28 = vrot.slane %v9042_v36, 4 }
 0x1bb   :  { %11753 = vst [vmem:[#allocation31_spill] sm:$0xff] %v9076_v35 }
 0x1bc   :  { %1026 = vst [vmem:[#allocation1 + $0x1] ss:$2 sm:$0xff] %v835_v41 }
 0x1bd   :  { %1027 = vst [vmem:[#allocation1 + $0x10] ss:$2 sm:$0xff] %v615_v7 }
 0x1be   :  { %v9078_v39 = vld.sshfl [vmem:[#allocation1 + $0x20] sm:$0xff pattern:$0x75316420]  ;;  %11758 = vst [vmem:[#allocation36_spill] sm:$0xff] %v9090_v59 }
 0x1bf   :  { %11754 = vst [vmem:[#allocation32_spill] sm:$0xff] %v9078_v39  ;;  %v9080_v55 = vld.sshfl [vmem:[#allocation1 + $0x30] sm:$0xff pattern:$0x75316420]  ;;  %v9098_v45 = vpop.f32.mrf.mxu2  ;;  %v1108_v39 = vpack.c.bf16 %v8886_v57, %v8886_v57 }
 0x1c0   :  { %11755 = vst [vmem:[#allocation33_spill] sm:$0xff] %v9080_v55 }
 0x1c1   :  { %1020 = vst [vmem:[#allocation1 + $0x20] ss:$2 sm:$0xff] %v833_v50  ;;  %v836_v50 = vrot.slane %v615_v7, 4 }
 0x1c2   :  { %1021 = vst [vmem:[#allocation1 + $0x21] ss:$2 sm:$0xff] %v594_v1  ;;  %v837_v1 = vrot.slane %v618_v15, 4 }
 0x1c3   :  { %v9082_v20 = vld.sshfl [vmem:[#allocation1] sm:$0xff pattern:$0x75316420]  ;;  %1022 = vst [vmem:[#allocation1 + $0x30] ss:$2 sm:$0xff] %v834_v21  ;;  %v9101_v21 = vrot.slane %v9036_v26, 4 }
 0x1c4   :  { %11756 = vst [vmem:[#allocation34_spill] sm:$0xff] %v9082_v20  ;;  %v9088_v17 = vld.sshfl [vmem:[#allocation1 + $0x10] sm:$0xff pattern:$0x75316420] }
 0x1c5   :  { %1179 = vst [vmem:[#allocation1] ss:$2 sm:$0xff] %v9042_v36 }
 0x1c6   :  { %11757 = vst [vmem:[#allocation35_spill] sm:$0xff] %v9088_v17  ;;  %v9104_v17 = vpop.f32.mrf.mxu1 }
 0x1c7   :  { %1181 = vst [vmem:[#allocation1 + $0x1] ss:$2 sm:$0xff] %v9085_v28 }
 0x1c8   :  { %1183 = vst [vmem:[#allocation1 + $0x10] ss:$2 sm:$0xff] %v9059_v58 }
 0x1c9   :  { %v9094_v41 = vld.sshfl [vmem:[#allocation1 + $0x20] sm:$0xff pattern:$0x75316420]  ;;  %11761 = vst [vmem:[#allocation39_spill] sm:$0xff] %v9098_v45 }
 0x1ca   :  { %11759 = vst [vmem:[#allocation37_spill] sm:$0xff] %v9094_v41  ;;  %v9096_v47 = vld.sshfl [vmem:[#allocation1 + $0x30] sm:$0xff pattern:$0x75316420] }
 0x1cb   :  { %11760 = vst [vmem:[#allocation38_spill] sm:$0xff] %v9096_v47 }
 0x1cc   :  { %1030 = vst [vmem:[#allocation1 + $0x20] ss:$2 sm:$0xff] %v836_v50 }
 0x1cd   :  { %1031 = vst [vmem:[#allocation1 + $0x21] ss:$2 sm:$0xff] %v618_v15  ;;  %v9109_v15 = vrot.slane %v9059_v58, 4 }
 0x1ce   :  { %v1184_v13 = vld.sshfl [vmem:[#allocation1] sm:$0xff pattern:$0x75316420]  ;;  %1032 = vst [vmem:[#allocation1 + $0x30] ss:$2 sm:$0xff] %v837_v1  ;;  %v9128_v57 = vpop.f32.mrf.mxu1 }
 0x1cf   :  { %1194 = vst [vmem:[#allocation1] ss:$2 sm:$0xff] %v9036_v26  ;;  %v1185_v20 = vld.sshfl [vmem:[#allocation1 + $0x10] sm:$0xff pattern:$0x75316420]  ;;  %v1436_v7 = vpack.c.bf16 %v1184_v13, %v1184_v13  ;;  %v9121_v13 = vpop.f32.mrf.mxu2 }
 0x1d0   :  { %11762 = vst [vmem:[#allocation40_spill] sm:$0xff] %v9104_v17  ;;  %v1437_v41 = vpack.c.bf16 %v1185_v20, %v1185_v20  ;;  %v9119_v20 = vrot.slane %v9072_v0, 4 }
 0x1d1   :  { %1195 = vst [vmem:[#allocation1 + $0x1] ss:$2 sm:$0xff] %v9101_v21  ;;  %v1515_v50 = vunpack.c.l.b16 %v1436_v7  ;;  %v1107_v7 = vpack.c.bf16 %v8884_v53, %v8884_v53  ;;  %v9134_v53 = vrot.slane %v9051_v23, 4 }
 0x1d2   :  { %1196 = vst [vmem:[#allocation1 + $0x10] ss:$2 sm:$0xff] %v9051_v23  ;;  %v1516_v47 = vunpack.c.l.b16 %v1437_v41 }
 0x1d3   :  { %11765 = vst [vmem:[#allocation43_spill] sm:$0xff] %v9121_v13 }
 0x1d4   :  { %v9111_v45 = vld.sshfl [vmem:[#allocation1 + $0x20] sm:$0xff pattern:$0x75316420]  ;;  %v1517_v1 = vpack.c.b16 %v1516_v47, %v1515_v50  ;;  %11766 = vst [vmem:[#allocation44_spill] sm:$0xff] %v9128_v57 }
 0x1d5   :  { %11763 = vst [vmem:[#allocation41_spill] sm:$0xff] %v9111_v45  ;;  %v9115_v55 = vld.sshfl [vmem:[#allocation1 + $0x30] sm:$0xff pattern:$0x75316420]  ;;  %v1511_v45 = vunpack.c.l.b16 %v1108_v39  ;;  %v1112_v39 = vpack.c.bf16 %v8898_v2, %v8898_v2 }
 0x1d6   :  { %11764 = vst [vmem:[#allocation42_spill] sm:$0xff] %v9115_v55  ;;  %v1523_v41 = vsel %vm1518_vm3, %v1517_v1, 0  ;;  %v1510_v1 = vunpack.c.l.b16 %v1107_v7 }
 0x1d7   :  { %1187 = vst [vmem:[#allocation1 + $0x20] ss:$2 sm:$0xff] %v9109_v15  ;;  %1532 = vmatpush.bf16.xpose.msrb.mxu3 %v1523_v41  ;;  %v9136_v57 = vpop.f32.mrf.mxu2 }
 0x1d8   :  { %1189 = vst [vmem:[#allocation1 + $0x21] ss:$2 sm:$0xff] %v9072_v0  ;;  %v1197_v47 = vld.sshfl [vmem:[#allocation1] sm:$0xff pattern:$0x75316420]  ;;  %v1512_v42 = vpack.c.b16 %v1511_v45, %v1510_v1 }
 0x1d9   :  { %1191 = vst [vmem:[#allocation1 + $0x30] ss:$2 sm:$0xff] %v9119_v20  ;;  %v1198_v50 = vld.sshfl [vmem:[#allocation1 + $0x10] sm:$0xff pattern:$0x75316420]  ;;  %v1440_v55 = vpack.c.bf16 %v1197_v47, %v1197_v47  ;;  %v9141_v47 = vrot.slane %v9063_v62, 4 }
 0x1da   :  { %1204 = vst [vmem:[#allocation1] ss:$2 sm:$0xff] %v9042_v36  ;;  %v1441_v13 = vpack.c.bf16 %v1198_v50, %v1198_v50 }
 0x1db   :  { %1205 = vst [vmem:[#allocation1 + $0x1] ss:$2 sm:$0xff] %v9085_v28  ;;  %v1576_v17 = vunpack.c.l.b16 %v1440_v55 }
 0x1dc   :  { %1206 = vst [vmem:[#allocation1 + $0x10] ss:$2 sm:$0xff] %v9059_v58  ;;  %v1577_v59 = vunpack.c.l.b16 %v1441_v13 }
 0x1dd   :  { %11767 = vst [vmem:[#allocation45_spill] sm:$0xff] %v9136_v57 }
 0x1de   :  { %v1578_v35 = vpack.c.b16 %v1577_v59, %v1576_v17  ;;  %8024 = vmatmul.msk.bf16.vlgmr.msrb.gmra.mxu3 %vm1518_vm3, %v1512_v42  ;;  %v1111_v17 = vpack.c.bf16 %v8888_v61, %v8888_v61  ;;  %v692_v59 = vpop.f32.mrf.mxu1  ;;  %v1572_v42 = vunpack.c.l.b16 %v1112_v39  ;;  %v1109_v39 = vpack.c.bf16 %v8900_v4, %v8900_v4 }
 0x1df   :  { %v1192_v41 = vld.sshfl [vmem:[#allocation1 + $0x20] sm:$0xff pattern:$0x75316420]  ;;  %v716_v5 = vpop.f32.mrf.mxu2  ;;  %v1115_v4 = vpack.c.bf16 %v8904_v9, %v8904_v9 }
 0x1e0   :  { %v1193_v50 = vld.sshfl [vmem:[#allocation1 + $0x30] sm:$0xff pattern:$0x75316420]  ;;  %1199 = vst [vmem:[#allocation1 + $0x20] ss:$2 sm:$0xff] %v9134_v53  ;;  %v1438_v55 = vpack.c.bf16 %v1192_v41, %v1192_v41  ;;  %v1583_v45 = vsel %vm1518_vm3, %v1578_v35, 0 }
 0x1e1   :  { %1200 = vst [vmem:[#allocation1 + $0x21] ss:$2 sm:$0xff] %v9063_v62  ;;  %v1439_v13 = vpack.c.bf16 %v1193_v50, %v1193_v50  ;;  %1592 = vmatpush.bf16.xpose.msra.mxu0 %v1583_v45  ;;  %v1571_v50 = vunpack.c.l.b16 %v1111_v17  ;;  %v1542_v17 = vunpack.c.l.b16 %v1110_v11  ;;  %v1631_v9 = vunpack.c.l.b16 %v1115_v4 }
 0x1e2   :  { %v1207_v7 = vld.sshfl [vmem:[#allocation1] sm:$0xff pattern:$0x75316420]  ;;  %1201 = vst [vmem:[#allocation1 + $0x30] ss:$2 sm:$0xff] %v9141_v47  ;;  %v1546_v1 = vunpack.c.l.b16 %v1438_v55 }
 0x1e3   :  { %1214 = vst [vmem:[#allocation1] ss:$2 sm:$0xff] %v9036_v26  ;;  %v1208_v2 = vld.sshfl [vmem:[#allocation1 + $0x10] sm:$0xff pattern:$0x75316420]  ;;  %v1547_v57 = vunpack.c.l.b16 %v1439_v13  ;;  %v1444_v41 = vpack.c.bf16 %v1207_v7, %v1207_v7  ;;  %v1573_v31 = vpack.c.b16 %v1572_v42, %v1571_v50  ;;  %v1116_v7 = vpack.c.bf16 %v8906_v12, %v8906_v12 }
 0x1e4   :  { %1215 = vst [vmem:[#allocation1 + $0x1] ss:$2 sm:$0xff] %v9101_v21  ;;  %v1445_v40 = vpack.c.bf16 %v1208_v2, %v1208_v2  ;;  %v1541_v12 = vunpack.c.l.b16 %v1109_v39 }
 0x1e5   :  { %1216 = vst [vmem:[#allocation1 + $0x10] ss:$2 sm:$0xff] %v9051_v23  ;;  %v1548_v35 = vpack.c.b16 %v1547_v57, %v1546_v1  ;;  %v1636_v61 = vunpack.c.l.b16 %v1444_v41  ;;  %v1632_v41 = vunpack.c.l.b16 %v1116_v7  ;;  %v1113_v7 = vpack.c.bf16 %v8911_v16, %v8911_v16 }
 0x1e6   :  { %v1637_v59 = vunpack.c.l.b16 %v1445_v40  ;;  %v1119_v16 = vpack.c.bf16 %v8919_v22, %v8919_v22 }
 0x1e7   :  { %v1553_v45 = vsel %vm1518_vm3, %v1548_v35, 0 }
 0x1e8   :  { %v1202_v55 = vld.sshfl [vmem:[#allocation1 + $0x20] sm:$0xff pattern:$0x75316420]  ;;  %1562 = vmatpush.bf16.xpose.msra.mxu3 %v1553_v45  ;;  %v1638_v13 = vpack.c.b16 %v1637_v59, %v1636_v61  ;;  %8026 = vmatmul.msk.bf16.vlgmr.msra.gmra.mxu0 %vm1518_vm3, %v1573_v31  ;;  %v1543_v61 = vpack.c.b16 %v1542_v17, %v1541_v12  ;;  %v1114_v59 = vpack.c.bf16 %v8913_v19, %v8913_v19  ;;  %v1691_v22 = vunpack.c.l.b16 %v1119_v16 }
 0x1e9   :  { %v1203_v57 = vld.sshfl [vmem:[#allocation1 + $0x30] sm:$0xff pattern:$0x75316420]  ;;  %1209 = vst [vmem:[#allocation1 + $0x20] ss:$2 sm:$0xff] %v9109_v15  ;;  %v1442_v40 = vpack.c.bf16 %v1202_v55, %v1202_v55 }
 0x1ea   :  { %1210 = vst [vmem:[#allocation1 + $0x21] ss:$2 sm:$0xff] %v9072_v0  ;;  %v1643_v6 = vsel %vm1518_vm3, %v1638_v13, 0  ;;  %v1443_v5 = vpack.c.bf16 %v1203_v57, %v1203_v57  ;;  %v1633_v13 = vpack.c.b16 %v1632_v41, %v1631_v9  ;;  %v1602_v19 = vunpack.c.l.b16 %v1114_v59 }
 0x1eb   :  { %v1217_v2 = vld.sshfl [vmem:[#allocation1] sm:$0xff pattern:$0x75316420]  ;;  %1211 = vst [vmem:[#allocation1 + $0x30] ss:$2 sm:$0xff] %v9119_v20  ;;  %1652 = vmatpush.bf16.xpose.msra.mxu2 %v1643_v6  ;;  %v1606_v42 = vunpack.c.l.b16 %v1442_v40  ;;  %v1120_v6 = vpack.c.bf16 %v8921_v27, %v8921_v27  ;;  %v1601_v27 = vunpack.c.l.b16 %v1113_v7  ;;  %v1118_v9 = vpack.c.bf16 %v8928_v24, %v8928_v24 }
 0x1ec   :  { %1224 = vst [vmem:[#allocation1] ss:$2 sm:$0xff] %v9042_v36  ;;  %v1218_v1 = vld.sshfl [vmem:[#allocation1 + $0x10] sm:$0xff pattern:$0x75316420]  ;;  %v1607_v31 = vunpack.c.l.b16 %v1443_v5  ;;  %v1448_v35 = vpack.c.bf16 %v1217_v2, %v1217_v2 }
 0x1ed   :  { %1225 = vst [vmem:[#allocation1 + $0x1] ss:$2 sm:$0xff] %v9085_v28  ;;  %v1449_v50 = vpack.c.bf16 %v1218_v1, %v1218_v1  ;;  %v1692_v41 = vunpack.c.l.b16 %v1120_v6 }
 0x1ee   :  { %1226 = vst [vmem:[#allocation1 + $0x10] ss:$2 sm:$0xff] %v9059_v58  ;;  %v1608_v11 = vpack.c.b16 %v1607_v31, %v1606_v42  ;;  %v1696_v45 = vunpack.c.l.b16 %v1448_v35 }
 0x1ef   :  { %v1697_v39 = vunpack.c.l.b16 %v1449_v50  ;;  %8025 = vmatmul.msk.bf16.vlgmr.msra.gmra.mxu3 %vm1518_vm3, %v1543_v61  ;;  %v1603_v50 = vpack.c.b16 %v1602_v19, %v1601_v27 }
 0x1f0   :  { %v1613_v55 = vsel %vm1518_vm3, %v1608_v11, 0 }
 0x1f1   :  { %v1212_v57 = vld.sshfl [vmem:[#allocation1 + $0x20] sm:$0xff pattern:$0x75316420]  ;;  %1622 = vmatpush.bf16.xpose.msra.mxu1 %v1613_v55  ;;  %v1698_v40 = vpack.c.b16 %v1697_v39, %v1696_v45  ;;  %v1693_v55 = vpack.c.b16 %v1692_v41, %v1691_v22 }
 0x1f2   :  { %v1213_v5 = vld.sshfl [vmem:[#allocation1 + $0x30] sm:$0xff pattern:$0x75316420]  ;;  %1219 = vst [vmem:[#allocation1 + $0x20] ss:$2 sm:$0xff] %v9134_v53  ;;  %8028 = vmatmul.msk.bf16.vlgmr.msra.gmra.mxu2 %vm1518_vm3, %v1633_v13  ;;  %v1446_v17 = vpack.c.bf16 %v1212_v57, %v1212_v57  ;;  %v1117_v13 = vpack.c.bf16 %v8926_v32, %v8926_v32  ;;  %v1123_v32 = vpack.c.bf16 %v8930_v34, %v8930_v34 }
 0x1f3   :  { %1220 = vst [vmem:[#allocation1 + $0x21] ss:$2 sm:$0xff] %v9063_v62  ;;  %v1703_v4 = vsel %vm1518_vm3, %v1698_v40, 0  ;;  %v1447_v2 = vpack.c.bf16 %v1213_v5, %v1213_v5  ;;  %v1124_v40 = vpack.c.bf16 %v8932_v38, %v8932_v38  ;;  %v1662_v5 = vunpack.c.l.b16 %v1118_v9 }
 0x1f4   :  { %v1227_v12 = vld.sshfl [vmem:[#allocation1] sm:$0xff pattern:$0x75316420]  ;;  %1221 = vst [vmem:[#allocation1 + $0x30] ss:$2 sm:$0xff] %v9141_v47  ;;  %1712 = vmatpush.bf16.xpose.msrb.mxu0 %v1703_v4  ;;  %v1666_v42 = vunpack.c.l.b16 %v1446_v17  ;;  %v1661_v38 = vunpack.c.l.b16 %v1117_v13  ;;  %v1751_v34 = vunpack.c.l.b16 %v1123_v32  ;;  %v1121_v9 = vpack.c.bf16 %v8940_v43, %v8940_v43 }
 0x1f5   :  { %1234 = vst [vmem:[#allocation1] ss:$2 sm:$0xff] %v9036_v26  ;;  %v1228_v1 = vld.sshfl [vmem:[#allocation1 + $0x10] sm:$0xff pattern:$0x75316420]  ;;  %v1667_v31 = vunpack.c.l.b16 %v1447_v2  ;;  %v1452_v35 = vpack.c.bf16 %v1227_v12, %v1227_v12  ;;  %v1752_v27 = vunpack.c.l.b16 %v1124_v40  ;;  %v1127_v43 = vpack.c.bf16 %v8944_v46, %v8944_v46 }
 0x1f6   :  { %1235 = vst [vmem:[#allocation1 + $0x1] ss:$2 sm:$0xff] %v9101_v21  ;;  %v1453_v11 = vpack.c.bf16 %v1228_v1, %v1228_v1 }
 0x1f7   :  { %1236 = vst [vmem:[#allocation1 + $0x10] ss:$2 sm:$0xff] %v9051_v23  ;;  %v1668_v61 = vpack.c.b16 %v1667_v31, %v1666_v42  ;;  %v1756_v59 = vunpack.c.l.b16 %v1452_v35  ;;  %v1663_v42 = vpack.c.b16 %v1662_v5, %v1661_v38  ;;  %v1122_v35 = vpack.c.bf16 %v8942_v44, %v8942_v44 }
 0x1f8   :  { %8027 = vmatmul.msk.bf16.vlgmr.msra.gmra.mxu1 %vm1518_vm3, %v1603_v50  ;;  %v1757_v45 = vunpack.c.l.b16 %v1453_v11  ;;  %v1753_v22 = vpack.c.b16 %v1752_v27, %v1751_v34  ;;  %v1811_v46 = vunpack.c.l.b16 %v1127_v43  ;;  %v8641_v43 = vmov -inf  }
 0x1f9   :  { %v1673_v39 = vsel %vm1518_vm3, %v1668_v61, 0  ;;  %v1722_v44 = vunpack.c.l.b16 %v1122_v35 }
 0x1fa   :  { %v1222_v7 = vld.sshfl [vmem:[#allocation1 + $0x20] sm:$0xff pattern:$0x75316420]  ;;  %1682 = vmatpush.bf16.xpose.msrb.mxu3 %v1673_v39  ;;  %v1758_v57 = vpack.c.b16 %v1757_v45, %v1756_v59  ;;  %v1128_v39 = vpack.c.bf16 %v8946_v49, %v8946_v49  ;;  %v1721_v49 = vunpack.c.l.b16 %v1121_v9 }
 0x1fb   :  { %v1223_v6 = vld.sshfl [vmem:[#allocation1 + $0x30] sm:$0xff pattern:$0x75316420]  ;;  %1229 = vst [vmem:[#allocation1 + $0x20] ss:$2 sm:$0xff] %v9109_v15  ;;  %8030 = vmatmul.msk.bf16.vlgmr.msrb.gmra.mxu0 %vm1518_vm3, %v1693_v55  ;;  %v1450_v24 = vpack.c.bf16 %v1222_v7, %v1222_v7 }
 0x1fc   :  { %1230 = vst [vmem:[#allocation1 + $0x21] ss:$2 sm:$0xff] %v9072_v0  ;;  %v1763_v19 = vsel %vm1518_vm3, %v1758_v57, 0  ;;  %v1451_v17 = vpack.c.bf16 %v1223_v6, %v1223_v6  ;;  %v1723_v32 = vpack.c.b16 %v1722_v44, %v1721_v49 }
 0x1fd   :  { %v1237_v4 = vld.sshfl [vmem:[#allocation1] sm:$0xff pattern:$0x75316420]  ;;  %1231 = vst [vmem:[#allocation1 + $0x30] ss:$2 sm:$0xff] %v9119_v20  ;;  %1772 = vmatpush.bf16.xpose.msrb.mxu2 %v1763_v19  ;;  %v1726_v16 = vunpack.c.l.b16 %v1450_v24  ;;  %v1812_v19 = vunpack.c.l.b16 %v1128_v39 }
 0x1fe   :  { %1244 = vst [vmem:[#allocation1] ss:$2 sm:$0xff] %v9042_v36  ;;  %v1238_v2 = vld.sshfl [vmem:[#allocation1 + $0x10] sm:$0xff pattern:$0x75316420]  ;;  %v1727_v12 = vunpack.c.l.b16 %v1451_v17  ;;  %v1456_v1 = vpack.c.bf16 %v1237_v4, %v1237_v4 }
 0x1ff   :  { %1245 = vst [vmem:[#allocation1 + $0x1] ss:$2 sm:$0xff] %v9085_v28  ;;  %v1457_v31 = vpack.c.bf16 %v1238_v2, %v1238_v2  ;;  %v1126_v2 = vpack.c.bf16 %v8950_v54, %v8950_v54 }
 0x200   :  { %1246 = vst [vmem:[#allocation1 + $0x10] ss:$2 sm:$0xff] %v9059_v58  ;;  %v1728_v41 = vpack.c.b16 %v1727_v12, %v1726_v16  ;;  %v1816_v50 = vunpack.c.l.b16 %v1456_v1  ;;  %v1813_v1 = vpack.c.b16 %v1812_v19, %v1811_v46  ;;  %v1129_v19 = vpack.c.bf16 %v8961_v3, %v8961_v3 }
 0x201   :  { %8029 = vmatmul.msk.bf16.vlgmr.msrb.gmra.mxu3 %vm1518_vm3, %v1663_v42  ;;  %v1817_v11 = vunpack.c.l.b16 %v1457_v31  ;;  %v1125_v42 = vpack.c.bf16 %v8948_v52, %v8948_v52  ;;  %v1132_v31 = vpack.c.bf16 %v8956_v63, %v8956_v63  ;;  %v1131_v52 = vpack.c.bf16 %v8953_v60, %v8953_v60 }
 0x202   :  { %v1733_v61 = vsel %vm1518_vm3, %v1728_v41, 0 }
 0x203   :  { %v1232_v59 = vld.sshfl [vmem:[#allocation1 + $0x20] sm:$0xff pattern:$0x75316420]  ;;  %1742 = vmatpush.bf16.xpose.msrb.mxu1 %v1733_v61  ;;  %v1818_v45 = vpack.c.b16 %v1817_v11, %v1816_v50  ;;  %v1782_v50 = vunpack.c.l.b16 %v1126_v2  ;;  %v1781_v63 = vunpack.c.l.b16 %v1125_v42  ;;  %v1872_v9 = vunpack.c.l.b16 %v1132_v31 }
 0x204   :  { %v1233_v55 = vld.sshfl [vmem:[#allocation1 + $0x30] sm:$0xff pattern:$0x75316420]  ;;  %1239 = vst [vmem:[#allocation1 + $0x20] ss:$2 sm:$0xff] %v9134_v53  ;;  %8032 = vmatmul.msk.bf16.vlgmr.msrb.gmra.mxu2 %vm1518_vm3, %v1753_v22  ;;  %v1454_v13 = vpack.c.bf16 %v1232_v59, %v1232_v59 }
 0x205   :  { %1240 = vst [vmem:[#allocation1 + $0x21] ss:$2 sm:$0xff] %v9063_v62  ;;  %v1823_v7 = vsel %vm1518_vm3, %v1818_v45, 0  ;;  %v1455_v57 = vpack.c.bf16 %v1233_v55, %v1233_v55  ;;  %v1783_v44 = vpack.c.b16 %v1782_v50, %v1781_v63  ;;  %v1134_v50 = vpack.c.bf16 %v8975_v33, %v8975_v33 }
 0x206   :  { %v1247_v40 = vld.sshfl [vmem:[#allocation1] sm:$0xff pattern:$0x75316420]  ;;  %1241 = vst [vmem:[#allocation1 + $0x30] ss:$2 sm:$0xff] %v9141_v47  ;;  %1832 = vmatpush.bf16.xpose.msra.mxu0 %v1823_v7  ;;  %v1786_v24 = vunpack.c.l.b16 %v1454_v13  ;;  %v1871_v7 = vunpack.c.l.b16 %v1131_v52  ;;  %v1133_v63 = vpack.c.bf16 %v8972_v25, %v8972_v25  ;;  %v1140_v33 = vpack.c.bf16 %v8982_v29, %v8982_v29 }
 0x207   :  { %1254 = vst [vmem:[#allocation1] ss:$2 sm:$0xff] %v9036_v26  ;;  %v1248_v6 = vld.sshfl [vmem:[#allocation1 + $0x10] sm:$0xff pattern:$0x75316420]  ;;  %v1787_v5 = vunpack.c.l.b16 %v1455_v57  ;;  %v1460_v17 = vpack.c.bf16 %v1247_v40, %v1247_v40  ;;  %v1130_v57 = vpack.c.bf16 %v8963_v8, %v8963_v8 }
 0x208   :  { %1255 = vst [vmem:[#allocation1 + $0x1] ss:$2 sm:$0xff] %v9101_v21  ;;  %v1461_v4 = vpack.c.bf16 %v1248_v6, %v1248_v6  ;;  %v9245_v40 = vsel %vm2771_vm4, -1e+30, %v8641_v43  ;;  %v1901_v29 = vunpack.c.l.b16 %v1133_v63 }
 0x209   :  { %1256 = vst [vmem:[#allocation1 + $0x10] ss:$2 sm:$0xff] %v9051_v23  ;;  %v1788_v38 = vpack.c.b16 %v1787_v5, %v1786_v24  ;;  %v1876_v16 = vunpack.c.l.b16 %v1460_v17  ;;  %2803 = vmax.xlane.f32.xlu2 %v9245_v40  ;;  %v1873_v5 = vpack.c.b16 %v1872_v9, %v1871_v7  ;;  %2797 = vmax.xlane.f32.xlu0 %v9245_v40 }
 0x20a   :  { %8031 = vmatmul.msk.bf16.vlgmr.msrb.gmra.mxu1 %vm1518_vm3, %v1723_v32  ;;  %v1877_v12 = vunpack.c.l.b16 %v1461_v4  ;;  %11768 = vst [vmem:[#allocation46_spill] sm:$0xff] %v9245_v40  ;;  %2827 = vmax.xlane.f32.xlu1 %v9245_v40  ;;  %v1136_v32 = vpack.c.bf16 %v8969_v18, %v8969_v18  ;;  %v1841_v18 = vunpack.c.l.b16 %v1129_v19 }
 0x20b   :  { %v1793_v27 = vsel %vm1518_vm3, %v1788_v38, 0  ;;  %v1842_v38 = vunpack.c.l.b16 %v1130_v57 }
 0x20c   :  { %v1242_v41 = vld.sshfl [vmem:[#allocation1 + $0x20] sm:$0xff pattern:$0x75316420]  ;;  %1802 = vmatpush.bf16.xpose.msra.mxu3 %v1793_v27  ;;  %v1878_v34 = vpack.c.b16 %v1877_v12, %v1876_v16  ;;  %v1135_v16 = vpack.c.bf16 %v8965_v14, %v8965_v14  ;;  %v1932_v31 = vunpack.c.l.b16 %v1136_v32 }
 0x20d   :  { %v1243_v35 = vld.sshfl [vmem:[#allocation1 + $0x30] sm:$0xff pattern:$0x75316420]  ;;  %1249 = vst [vmem:[#allocation1 + $0x20] ss:$2 sm:$0xff] %v9109_v15  ;;  %8034 = vmatmul.msk.bf16.vlgmr.msra.gmra.mxu0 %vm1518_vm3, %v1813_v1  ;;  %v1458_v54 = vpack.c.bf16 %v1242_v41, %v1242_v41 }
 0x20e   :  { %1250 = vst [vmem:[#allocation1 + $0x21] ss:$2 sm:$0xff] %v9072_v0  ;;  %v1883_v11 = vsel %vm1518_vm3, %v1878_v34, 0  ;;  %v1459_v61 = vpack.c.bf16 %v1243_v35, %v1243_v35  ;;  %v1843_v34 = vpack.c.b16 %v1842_v38, %v1841_v18  ;;  %v1931_v14 = vunpack.c.l.b16 %v1135_v16 }
 0x20f   :  { %v1257_v22 = vld.sshfl [vmem:[#allocation1] sm:$0xff pattern:$0x75316420]  ;;  %1251 = vst [vmem:[#allocation1 + $0x30] ss:$2 sm:$0xff] %v9119_v20  ;;  %1892 = vmatpush.bf16.xpose.msra.mxu2 %v1883_v11  ;;  %v1846_v45 = vunpack.c.l.b16 %v1458_v54 }
 0x210   :  { %1264 = vst [vmem:[#allocation1] ss:$2 sm:$0xff] %v9042_v36  ;;  %v1258_v59 = vld.sshfl [vmem:[#allocation1 + $0x10] sm:$0xff pattern:$0x75316420]  ;;  %v1847_v39 = vunpack.c.l.b16 %v1459_v61  ;;  %v1464_v55 = vpack.c.bf16 %v1257_v22, %v1257_v22  ;;  %v1933_v22 = vpack.c.b16 %v1932_v31, %v1931_v14 }
 0x211   :  { %1265 = vst [vmem:[#allocation1 + $0x1] ss:$2 sm:$0xff] %v9085_v28  ;;  %v1465_v13 = vpack.c.bf16 %v1258_v59, %v1258_v59  ;;  %2845 = vmax.xlane.f32.xlu2 %v9245_v40  ;;  %2821 = vmax.xlane.f32.xlu0 %v9245_v40 }
 0x212   :  { %1266 = vst [vmem:[#allocation1 + $0x10] ss:$2 sm:$0xff] %v9059_v58  ;;  %v1848_v60 = vpack.c.b16 %v1847_v39, %v1846_v45  ;;  %v1936_v49 = vunpack.c.l.b16 %v1464_v55  ;;  %2893 = vmax.xlane.f32.xlu1 %v9245_v40  ;;  %v1902_v55 = vunpack.c.l.b16 %v1134_v50 }
 0x213   :  { %8033 = vmatmul.msk.bf16.vlgmr.msra.gmra.mxu3 %vm1518_vm3, %v1783_v44  ;;  %v1937_v6 = vunpack.c.l.b16 %v1465_v13  ;;  %v1139_v13 = vpack.c.bf16 %v8980_v37, %v8980_v37 }
 0x214   :  { %v1853_v24 = vsel %vm1518_vm3, %v1848_v60, 0 }
 0x215   :  { %v1252_v8 = vld.sshfl [vmem:[#allocation1 + $0x20] sm:$0xff pattern:$0x75316420]  ;;  %1862 = vmatpush.bf16.xpose.msra.mxu1 %v1853_v24  ;;  %v1938_v17 = vpack.c.b16 %v1937_v6, %v1936_v49  ;;  %v1992_v49 = vunpack.c.l.b16 %v1140_v33  ;;  %v1903_v24 = vpack.c.b16 %v1902_v55, %v1901_v29  ;;  %v1991_v19 = vunpack.c.l.b16 %v1139_v13  ;;  %v11770_v55 = vld [vmem:[#allocation7_spill] sm:$0xff] }
 0x216   :  { %v1253_v4 = vld.sshfl [vmem:[#allocation1 + $0x30] sm:$0xff pattern:$0x75316420]  ;;  %1259 = vst [vmem:[#allocation1 + $0x20] ss:$2 sm:$0xff] %v9134_v53  ;;  %8036 = vmatmul.msk.bf16.vlgmr.msra.gmra.mxu2 %vm1518_vm3, %v1873_v5  ;;  %v1462_v46 = vpack.c.bf16 %v1252_v8, %v1252_v8  ;;  %v1138_v8 = vpack.c.bf16 %v8986_v51, %v8986_v51  ;;  %v1144_v51 = vpack.c.bf16 %v8990_v56, %v8990_v56 }
 0x217   :  { %1260 = vst [vmem:[#allocation1 + $0x21] ss:$2 sm:$0xff] %v9063_v62  ;;  %v1943_v3 = vsel %vm1518_vm3, %v1938_v17, 0  ;;  %v1463_v2 = vpack.c.bf16 %v1253_v4, %v1253_v4  ;;  %v1993_v38 = vpack.c.b16 %v1992_v49, %v1991_v19 }
 0x218   :  { %v1267_v12 = vld.sshfl [vmem:[#allocation1] sm:$0xff pattern:$0x75316420]  ;;  %1261 = vst [vmem:[#allocation1 + $0x30] ss:$2 sm:$0xff] %v9141_v47  ;;  %1952 = vmatpush.bf16.xpose.msrb.mxu0 %v1943_v3  ;;  %v1906_v1 = vunpack.c.l.b16 %v1462_v46  ;;  %v1137_v46 = vpack.c.bf16 %v8984_v48, %v8984_v48  ;;  %v1143_v48 = vpack.c.bf16 %v8988_v30, %v8988_v30 }
 0x219   :  { %1274 = vst [vmem:[#allocation1] ss:$2 sm:$0xff] %v9036_v26  ;;  %v1268_v27 = vld.sshfl [vmem:[#allocation1 + $0x10] sm:$0xff pattern:$0x75316420]  ;;  %v1907_v42 = vunpack.c.l.b16 %v1463_v2  ;;  %v1468_v41 = vpack.c.bf16 %v1267_v12, %v1267_v12  ;;  %2851 = vmax.xlane.f32.xlu2 %v9245_v40  ;;  %2869 = vmax.xlane.f32.xlu0 %v9245_v40  ;;  %v1962_v12 = vunpack.c.l.b16 %v1138_v8 }
 0x21a   :  { %1275 = vst [vmem:[#allocation1 + $0x1] ss:$2 sm:$0xff] %v9101_v21  ;;  %v1469_v35 = vpack.c.bf16 %v1268_v27, %v1268_v27  ;;  %2899 = vmax.xlane.f32.xlu1 %v9245_v40  ;;  %v1961_v56 = vunpack.c.l.b16 %v1137_v46 }
 0x21b   :  { %1276 = vst [vmem:[#allocation1 + $0x10] ss:$2 sm:$0xff] %v9051_v23  ;;  %v1908_v54 = vpack.c.b16 %v1907_v42, %v1906_v1  ;;  %v1996_v11 = vunpack.c.l.b16 %v1468_v41 }
 0x21c   :  { %8035 = vmatmul.msk.bf16.vlgmr.msra.gmra.mxu1 %vm1518_vm3, %v1843_v34  ;;  %v1997_v61 = vunpack.c.l.b16 %v1469_v35  ;;  %v2052_v35 = vunpack.c.l.b16 %v1144_v51  ;;  %v1963_v14 = vpack.c.b16 %v1962_v12, %v1961_v56  ;;  %v11773_v12 = vld [vmem:[#allocation8_spill] sm:$0xff] }
 0x21d   :  { %v1913_v52 = vsel %vm1518_vm3, %v1908_v54, 0 }
 0x21e   :  { %v1262_v9 = vld.sshfl [vmem:[#allocation1 + $0x20] sm:$0xff pattern:$0x75316420]  ;;  %1922 = vmatpush.bf16.xpose.msrb.mxu3 %v1913_v52  ;;  %v1998_v59 = vpack.c.b16 %v1997_v61, %v1996_v11  ;;  %v2051_v11 = vunpack.c.l.b16 %v1143_v48  ;;  %v1142_v61 = vpack.c.bf16 %v8996_v10, %v8996_v10  ;;  %v11774_v48 = vld [vmem:[#allocation11_spill] sm:$0xff] }
 0x21f   :  { %v1263_v45 = vld.sshfl [vmem:[#allocation1 + $0x30] sm:$0xff pattern:$0x75316420]  ;;  %1269 = vst [vmem:[#allocation1 + $0x20] ss:$2 sm:$0xff] %v9109_v15  ;;  %8038 = vmatmul.msk.bf16.vlgmr.msrb.gmra.mxu0 %vm1518_vm3, %v1933_v22  ;;  %v1466_v39 = vpack.c.bf16 %v1262_v9, %v1262_v9 }
 0x220   :  { %1270 = vst [vmem:[#allocation1 + $0x21] ss:$2 sm:$0xff] %v9072_v0  ;;  %v2003_v44 = vsel %vm1518_vm3, %v1998_v59, 0  ;;  %v1467_v25 = vpack.c.bf16 %v1263_v45, %v1263_v45  ;;  %v2053_v9 = vpack.c.b16 %v2052_v35, %v2051_v11  ;;  %v11769_v59 = vld [vmem:[#allocation5_spill] sm:$0xff]  ;;  %v2022_v13 = vunpack.c.l.b16 %v1142_v61 }
 0x221   :  { %v1277_v60 = vld.sshfl [vmem:[#allocation1] sm:$0xff pattern:$0x75316420]  ;;  %1271 = vst [vmem:[#allocation1 + $0x30] ss:$2 sm:$0xff] %v9119_v20  ;;  %2012 = vmatpush.bf16.xpose.msrb.mxu2 %v2003_v44  ;;  %v1966_v57 = vunpack.c.l.b16 %v1466_v39  ;;  %2917 = vmax.xlane.f32.xlu2 %v9245_v40  ;;  %v1141_v33 = vpack.c.bf16 %v11769_v59, %v11769_v59  ;;  %v1148_v44 = vpack.c.bf16 %v11770_v55, %v11770_v55 }
 0x222   :  { %1284 = vst [vmem:[#allocation1] ss:$2 sm:$0xff] %v9042_v36  ;;  %v1278_v7 = vld.sshfl [vmem:[#allocation1 + $0x10] sm:$0xff pattern:$0x75316420]  ;;  %v1967_v43 = vunpack.c.l.b16 %v1467_v25  ;;  %v1472_v6 = vpack.c.bf16 %v1277_v60, %v1277_v60  ;;  %2875 = vmax.xlane.f32.xlu0 %v9245_v40  ;;  %2923 = vmax.xlane.f32.xlu1 %v9245_v40 }
 0x223   :  { %1285 = vst [vmem:[#allocation1 + $0x1] ss:$2 sm:$0xff] %v9085_v28  ;;  %v1473_v5 = vpack.c.bf16 %v1278_v7, %v1278_v7  ;;  %v11771_v7 = vld [vmem:[#allocation6_spill] sm:$0xff]  ;;  %v2021_v49 = vunpack.c.l.b16 %v1141_v33 }
 0x224   :  { %1286 = vst [vmem:[#allocation1 + $0x10] ss:$2 sm:$0xff] %v9059_v58  ;;  %v1968_v37 = vpack.c.b16 %v1967_v43, %v1966_v57  ;;  %v2056_v17 = vunpack.c.l.b16 %v1472_v6  ;;  %v1147_v57 = vpack.c.bf16 %v11771_v7, %v11771_v7 }
 0x225   :  { %8037 = vmatmul.msk.bf16.vlgmr.msrb.gmra.mxu3 %vm1518_vm3, %v1903_v24  ;;  %v2057_v32 = vunpack.c.l.b16 %v1473_v5  ;;  %v2023_v8 = vpack.c.b16 %v2022_v13, %v2021_v49 }
 0x226   :  { %v1973_v4 = vsel %vm1518_vm3, %v1968_v37, 0  ;;  %v2112_v37 = vunpack.c.l.b16 %v1148_v44 }
 0x227   :  { %v1272_v3 = vld.sshfl [vmem:[#allocation1 + $0x20] sm:$0xff pattern:$0x75316420]  ;;  %1982 = vmatpush.bf16.xpose.msrb.mxu1 %v1973_v4  ;;  %v2058_v2 = vpack.c.b16 %v2057_v32, %v2056_v17  ;;  %v2111_v4 = vunpack.c.l.b16 %v1147_v57 }
 0x228   :  { %v1273_v16 = vld.sshfl [vmem:[#allocation1 + $0x30] sm:$0xff pattern:$0x75316420]  ;;  %1279 = vst [vmem:[#allocation1 + $0x20] ss:$2 sm:$0xff] %v9134_v53  ;;  %8040 = vmatmul.msk.bf16.vlgmr.msrb.gmra.mxu2 %vm1518_vm3, %v1993_v38  ;;  %v1470_v18 = vpack.c.bf16 %v1272_v3, %v1272_v3  ;;  %v11772_v38 = vld [vmem:[#allocation9_spill] sm:$0xff] }
 0x229   :  { %1280 = vst [vmem:[#allocation1 + $0x21] ss:$2 sm:$0xff] %v9063_v62  ;;  %v2063_v27 = vsel %vm1518_vm3, %v2058_v2, 0  ;;  %v1471_v1 = vpack.c.bf16 %v1273_v16, %v1273_v16  ;;  %2941 = vmax.xlane.f32.xlu2 %v9245_v40  ;;  %v1146_v46 = vpack.c.bf16 %v11772_v38, %v11772_v38  ;;  %v2113_v16 = vpack.c.b16 %v2112_v37, %v2111_v4 }
 0x22a   :  { %v1287_v42 = vld.sshfl [vmem:[#allocation1] sm:$0xff pattern:$0x75316420]  ;;  %1281 = vst [vmem:[#allocation1 + $0x30] ss:$2 sm:$0xff] %v9141_v47  ;;  %2072 = vmatpush.bf16.xpose.msra.mxu0 %v2063_v27  ;;  %v2026_v41 = vunpack.c.l.b16 %v1470_v18  ;;  %2809 = vmax.xlane.f32.xlu0 %v9245_v40  ;;  %v1145_v18 = vpack.c.bf16 %v11773_v12, %v11773_v12 }
 0x22b   :  { %1294 = vst [vmem:[#allocation1] ss:$2 sm:$0xff] %v9036_v26  ;;  %v1288_v31 = vld.sshfl [vmem:[#allocation1 + $0x10] sm:$0xff pattern:$0x75316420]  ;;  %v2027_v34 = vunpack.c.l.b16 %v1471_v1  ;;  %v1476_v54 = vpack.c.bf16 %v1287_v42, %v1287_v42  ;;  %2947 = vmax.xlane.f32.xlu1 %v9245_v40  ;;  %v1152_v42 = vpack.c.bf16 %v11774_v48, %v11774_v48 }
 0x22c   :  { %1295 = vst [vmem:[#allocation1 + $0x1] ss:$2 sm:$0xff] %v9101_v21  ;;  %v1477_v50 = vpack.c.bf16 %v1288_v31, %v1288_v31  ;;  %v2082_v31 = vunpack.c.l.b16 %v1146_v46 }
 0x22d   :  { %1296 = vst [vmem:[#allocation1 + $0x10] ss:$2 sm:$0xff] %v9051_v23  ;;  %v2028_v30 = vpack.c.b16 %v2027_v34, %v2026_v41  ;;  %v2116_v52 = vunpack.c.l.b16 %v1476_v54  ;;  %v11775_v54 = vld [vmem:[#allocation10_spill] sm:$0xff] }
 0x22e   :  { %8039 = vmatmul.msk.bf16.vlgmr.msrb.gmra.mxu1 %vm1518_vm3, %v1963_v14  ;;  %v2117_v22 = vunpack.c.l.b16 %v1477_v50  ;;  %v1151_v14 = vpack.c.bf16 %v11775_v54, %v11775_v54 }
 0x22f   :  { %v2033_v63 = vsel %vm1518_vm3, %v2028_v30, 0  ;;  %v2081_v30 = vunpack.c.l.b16 %v1145_v18 }
 0x230   :  { %v1282_v45 = vld.sshfl [vmem:[#allocation1 + $0x20] sm:$0xff pattern:$0x75316420]  ;;  %2042 = vmatpush.bf16.xpose.msra.mxu3 %v2033_v63  ;;  %v2118_v39 = vpack.c.b16 %v2117_v22, %v2116_v52  ;;  %v2172_v22 = vunpack.c.l.b16 %v1152_v42 }
 0x231   :  { %v1283_v25 = vld.sshfl [vmem:[#allocation1 + $0x30] sm:$0xff pattern:$0x75316420]  ;;  %1289 = vst [vmem:[#allocation1 + $0x20] ss:$2 sm:$0xff] %v9109_v15  ;;  %8042 = vmatmul.msk.bf16.vlgmr.msra.gmra.mxu0 %vm1518_vm3, %v2053_v9  ;;  %v1474_v10 = vpack.c.bf16 %v1282_v45, %v1282_v45  ;;  %2815 = vmax.xlane.f32.xlu2 %v9245_v40  ;;  %v2083_v9 = vpack.c.b16 %v2082_v31, %v2081_v30  ;;  %v2171_v45 = vunpack.c.l.b16 %v1151_v14 }
 0x232   :  { %1290 = vst [vmem:[#allocation1 + $0x21] ss:$2 sm:$0xff] %v9072_v0  ;;  %v2123_v60 = vsel %vm1518_vm3, %v2118_v39, 0  ;;  %v1475_v29 = vpack.c.bf16 %v1283_v25, %v1283_v25  ;;  %2833 = vmax.xlane.f32.xlu0 %v9245_v40  ;;  %v11776_v39 = vld [vmem:[#allocation13_spill] sm:$0xff] }
 0x233   :  { %v1297_v43 = vld.sshfl [vmem:[#allocation1] sm:$0xff pattern:$0x75316420]  ;;  %1291 = vst [vmem:[#allocation1 + $0x30] ss:$2 sm:$0xff] %v9119_v20  ;;  %2132 = vmatpush.bf16.xpose.msra.mxu2 %v2123_v60  ;;  %v2086_v24 = vunpack.c.l.b16 %v1474_v10  ;;  %2971 = vmax.xlane.f32.xlu1 %v9245_v40  ;;  %v1150_v55 = vpack.c.bf16 %v11776_v39, %v11776_v39  ;;  %v2173_v13 = vpack.c.b16 %v2172_v22, %v2171_v45  ;;  %v11777_v60 = vld [vmem:[#allocation12_spill] sm:$0xff] }
 0x234   :  { %1304 = vst [vmem:[#allocation1] ss:$2 sm:$0xff] %v9042_v36  ;;  %v1298_v6 = vld.sshfl [vmem:[#allocation1 + $0x10] sm:$0xff pattern:$0x75316420]  ;;  %v2087_v5 = vunpack.c.l.b16 %v1475_v29  ;;  %v1480_v19 = vpack.c.bf16 %v1297_v43, %v1297_v43  ;;  %v1149_v29 = vpack.c.bf16 %v11777_v60, %v11777_v60 }
 0x235   :  { %1305 = vst [vmem:[#allocation1 + $0x1] ss:$2 sm:$0xff] %v9085_v28  ;;  %v1481_v17 = vpack.c.bf16 %v1298_v6, %v1298_v6  ;;  %v11778_v43 = vld [vmem:[#allocation15_spill] sm:$0xff] }
 0x236   :  { %1306 = vst [vmem:[#allocation1 + $0x10] ss:$2 sm:$0xff] %v9059_v58  ;;  %v2088_v32 = vpack.c.b16 %v2087_v5, %v2086_v24  ;;  %v2176_v3 = vunpack.c.l.b16 %v1480_v19  ;;  %v1156_v49 = vpack.c.bf16 %v11778_v43, %v11778_v43  ;;  %v2142_v5 = vunpack.c.l.b16 %v1150_v55 }
 0x237   :  { %8041 = vmatmul.msk.bf16.vlgmr.msra.gmra.mxu3 %vm1518_vm3, %v2023_v8  ;;  %v2177_v2 = vunpack.c.l.b16 %v1481_v17  ;;  %v11779_v8 = vld [vmem:[#allocation14_spill] sm:$0xff]  ;;  %v2141_v4 = vunpack.c.l.b16 %v1149_v29 }
 0x238   :  { %v2093_v51 = vsel %vm1518_vm3, %v2088_v32, 0  ;;  %v1155_v17 = vpack.c.bf16 %v11779_v8, %v11779_v8 }
 0x239   :  { %v1292_v27 = vld.sshfl [vmem:[#allocation1 + $0x20] sm:$0xff pattern:$0x75316420]  ;;  %2102 = vmatpush.bf16.xpose.msra.mxu1 %v2093_v51  ;;  %v2178_v1 = vpack.c.b16 %v2177_v2, %v2176_v3  ;;  %2965 = vmax.xlane.f32.xlu2 %v9245_v40  ;;  %v2232_v2 = vunpack.c.l.b16 %v1156_v49 }
 0x23a   :  { %v1293_v56 = vld.sshfl [vmem:[#allocation1 + $0x30] sm:$0xff pattern:$0x75316420]  ;;  %1299 = vst [vmem:[#allocation1 + $0x20] ss:$2 sm:$0xff] %v9134_v53  ;;  %8044 = vmatmul.msk.bf16.vlgmr.msra.gmra.mxu2 %vm1518_vm3, %v2113_v16  ;;  %v1478_v41 = vpack.c.bf16 %v1292_v27, %v1292_v27  ;;  %2857 = vmax.xlane.f32.xlu0 %v9245_v40  ;;  %v2143_v16 = vpack.c.b16 %v2142_v5, %v2141_v4  ;;  %v2231_v27 = vunpack.c.l.b16 %v1155_v17 }
 0x23b   :  { %1300 = vst [vmem:[#allocation1 + $0x21] ss:$2 sm:$0xff] %v9063_v62  ;;  %v2183_v34 = vsel %vm1518_vm3, %v2178_v1, 0  ;;  %v1479_v35 = vpack.c.bf16 %v1293_v56, %v1293_v56  ;;  %2905 = vmax.xlane.f32.xlu1 %v9245_v40  ;;  %v11780_v1 = vld [vmem:[#allocation17_spill] sm:$0xff] }
 0x23c   :  { %v1307_v50 = vld.sshfl [vmem:[#allocation1] sm:$0xff pattern:$0x75316420]  ;;  %1301 = vst [vmem:[#allocation1 + $0x30] ss:$2 sm:$0xff] %v9141_v47  ;;  %2192 = vmatpush.bf16.xpose.msrb.mxu0 %v2183_v34  ;;  %v2146_v61 = vunpack.c.l.b16 %v1478_v41  ;;  %v1154_v48 = vpack.c.bf16 %v11780_v1, %v11780_v1  ;;  %v2233_v41 = vpack.c.b16 %v2232_v2, %v2231_v27  ;;  %v11781_v34 = vld [vmem:[#allocation16_spill] sm:$0xff] }
 0x23d   :  { %1314 = vst [vmem:[#allocation1] ss:$2 sm:$0xff] %v9036_v26  ;;  %v1308_v11 = vld.sshfl [vmem:[#allocation1 + $0x10] sm:$0xff pattern:$0x75316420]  ;;  %v2147_v52 = vunpack.c.l.b16 %v1479_v35  ;;  %v1484_v63 = vpack.c.bf16 %v1307_v50, %v1307_v50  ;;  %v1153_v35 = vpack.c.bf16 %v11781_v34, %v11781_v34 }
 0x23e   :  { %1315 = vst [vmem:[#allocation1 + $0x1] ss:$2 sm:$0xff] %v9101_v21  ;;  %v1485_v59 = vpack.c.bf16 %v1308_v11, %v1308_v11  ;;  %v11782_v50 = vld [vmem:[#allocation19_spill] sm:$0xff]  ;;  %v2202_v11 = vunpack.c.l.b16 %v1154_v48 }
 0x23f   :  { %1316 = vst [vmem:[#allocation1 + $0x10] ss:$2 sm:$0xff] %v9051_v23  ;;  %v2148_v33 = vpack.c.b16 %v2147_v52, %v2146_v61  ;;  %v2236_v44 = vunpack.c.l.b16 %v1484_v63  ;;  %v1160_v30 = vpack.c.bf16 %v11782_v50, %v11782_v50  ;;  %v2201_v45 = vunpack.c.l.b16 %v1153_v35 }
 0x240   :  { %8043 = vmatmul.msk.bf16.vlgmr.msra.gmra.mxu1 %vm1518_vm3, %v2083_v9  ;;  %v2237_v25 = vunpack.c.l.b16 %v1485_v59  ;;  %v11783_v9 = vld [vmem:[#allocation18_spill] sm:$0xff] }
 0x241   :  { %v2153_v10 = vsel %vm1518_vm3, %v2148_v33, 0  ;;  %2839 = vmax.xlane.f32.xlu2 %v9245_v40  ;;  %v1159_v59 = vpack.c.bf16 %v11783_v9, %v11783_v9 }
 0x242   :  { %v1302_v7 = vld.sshfl [vmem:[#allocation1 + $0x20] sm:$0xff pattern:$0x75316420]  ;;  %2162 = vmatpush.bf16.xpose.msrb.mxu3 %v2153_v10  ;;  %v2238_v57 = vpack.c.b16 %v2237_v25, %v2236_v44  ;;  %2881 = vmax.xlane.f32.xlu0 %v9245_v40  ;;  %v2292_v25 = vunpack.c.l.b16 %v1160_v30 }
 0x243   :  { %v1303_v6 = vld.sshfl [vmem:[#allocation1 + $0x30] sm:$0xff pattern:$0x75316420]  ;;  %1309 = vst [vmem:[#allocation1 + $0x20] ss:$2 sm:$0xff] %v9109_v15  ;;  %8046 = vmatmul.msk.bf16.vlgmr.msrb.gmra.mxu0 %vm1518_vm3, %v2173_v13  ;;  %v1482_v24 = vpack.c.bf16 %v1302_v7, %v1302_v7  ;;  %2911 = vmax.xlane.f32.xlu1 %v9245_v40  ;;  %v2203_v13 = vpack.c.b16 %v2202_v11, %v2201_v45  ;;  %v2291_v7 = vunpack.c.l.b16 %v1159_v59 }
 0x244   :  { %1310 = vst [vmem:[#allocation1 + $0x21] ss:$2 sm:$0xff] %v9072_v0  ;;  %v2243_v37 = vsel %vm1518_vm3, %v2238_v57, 0  ;;  %v1483_v19 = vpack.c.bf16 %v1303_v6, %v1303_v6  ;;  %v11784_v57 = vld [vmem:[#allocation21_spill] sm:$0xff] }
 0x245   :  { %v1317_v32 = vld.sshfl [vmem:[#allocation1] sm:$0xff pattern:$0x75316420]  ;;  %1311 = vst [vmem:[#allocation1 + $0x30] ss:$2 sm:$0xff] %v9119_v20  ;;  %2252 = vmatpush.bf16.xpose.msrb.mxu2 %v2243_v37  ;;  %v2206_v46 = vunpack.c.l.b16 %v1482_v24  ;;  %v1158_v43 = vpack.c.bf16 %v11784_v57, %v11784_v57  ;;  %v2293_v5 = vpack.c.b16 %v2292_v25, %v2291_v7  ;;  %v11785_v37 = vld [vmem:[#allocation20_spill] sm:$0xff] }
 0x246   :  { %1324 = vst [vmem:[#allocation1] ss:$2 sm:$0xff] %v9042_v36  ;;  %v1318_v38 = vld.sshfl [vmem:[#allocation1 + $0x10] sm:$0xff pattern:$0x75316420]  ;;  %v2207_v3 = vunpack.c.l.b16 %v1483_v19  ;;  %v1488_v51 = vpack.c.bf16 %v1317_v32, %v1317_v32  ;;  %v1157_v19 = vpack.c.bf16 %v11785_v37, %v11785_v37  ;;  %v11792_v37 = vld [vmem:[#allocation29_spill] sm:$0xff] }
 0x247   :  { %1325 = vst [vmem:[#allocation1 + $0x1] ss:$2 sm:$0xff] %v9085_v28  ;;  %v1489_v12 = vpack.c.bf16 %v1318_v38, %v1318_v38  ;;  %v11786_v32 = vld [vmem:[#allocation23_spill] sm:$0xff] }
 0x248   :  { %1326 = vst [vmem:[#allocation1 + $0x10] ss:$2 sm:$0xff] %v9059_v58  ;;  %v2208_v18 = vpack.c.b16 %v2207_v3, %v2206_v46  ;;  %v2296_v42 = vunpack.c.l.b16 %v1488_v51  ;;  %v1164_v4 = vpack.c.bf16 %v11786_v32, %v11786_v32  ;;  %v2262_v3 = vunpack.c.l.b16 %v1158_v43 }
 0x249   :  { %8045 = vmatmul.msk.bf16.vlgmr.msrb.gmra.mxu3 %vm1518_vm3, %v2143_v16  ;;  %v2297_v56 = vunpack.c.l.b16 %v1489_v12  ;;  %2863 = vmax.xlane.f32.xlu2 %v9245_v40  ;;  %v11787_v16 = vld [vmem:[#allocation22_spill] sm:$0xff]  ;;  %v2261_v27 = vunpack.c.l.b16 %v1157_v19  ;;  %v1166_v19 = vpack.c.bf16 %v11792_v37, %v11792_v37 }
 0x24a   :  { %v2213_v31 = vsel %vm1518_vm3, %v2208_v18, 0  ;;  %2887 = vmax.xlane.f32.xlu0 %v9245_v40  ;;  %v1163_v12 = vpack.c.bf16 %v11787_v16, %v11787_v16 }
 0x24b   :  { %v1312_v54 = vld.sshfl [vmem:[#allocation1 + $0x20] sm:$0xff pattern:$0x75316420]  ;;  %2222 = vmatpush.bf16.xpose.msrb.mxu1 %v2213_v31  ;;  %v2298_v14 = vpack.c.b16 %v2297_v56, %v2296_v42  ;;  %v2352_v56 = vunpack.c.l.b16 %v1164_v4 }
 0x24c   :  { %1319 = vst [vmem:[#allocation1 + $0x20] ss:$2 sm:$0xff] %v9134_v53  ;;  %8048 = vmatmul.msk.bf16.vlgmr.msrb.gmra.mxu2 %vm1518_vm3, %v2233_v41  ;;  %v1313_v61 = vld.sshfl [vmem:[#allocation1 + $0x30] sm:$0xff pattern:$0x75316420]  ;;  %v1486_v52 = vpack.c.bf16 %v1312_v54, %v1312_v54  ;;  %v2263_v41 = vpack.c.b16 %v2262_v3, %v2261_v27  ;;  %v2351_v54 = vunpack.c.l.b16 %v1163_v12 }
 0x24d   :  { %1320 = vst [vmem:[#allocation1 + $0x21] ss:$2 sm:$0xff] %v9063_v62  ;;  %v2303_v22 = vsel %vm1518_vm3, %v2298_v14, 0  ;;  %v1487_v63 = vpack.c.bf16 %v1313_v61, %v1313_v61  ;;  %v11788_v14 = vld [vmem:[#allocation25_spill] sm:$0xff] }
 0x24e   :  { %v1327_v33 = vld.sshfl [vmem:[#allocation1] sm:$0xff pattern:$0x75316420]  ;;  %2312 = vmatpush.bf16.xpose.msra.mxu0 %v2303_v22  ;;  %1321 = vst [vmem:[#allocation1 + $0x30] ss:$2 sm:$0xff] %v9141_v47  ;;  %v2266_v55 = vunpack.c.l.b16 %v1486_v52  ;;  %v1162_v50 = vpack.c.bf16 %v11788_v14, %v11788_v14  ;;  %v2353_v61 = vpack.c.b16 %v2352_v56, %v2351_v54  ;;  %v11789_v52 = vld [vmem:[#allocation24_spill] sm:$0xff] }
 0x24f   :  { %1334 = vst [vmem:[#allocation1] ss:$2 sm:$0xff] %v9036_v26  ;;  %v1328_v39 = vld.sshfl [vmem:[#allocation1 + $0x10] sm:$0xff pattern:$0x75316420]  ;;  %v2267_v44 = vunpack.c.l.b16 %v1487_v63  ;;  %v1492_v10 = vpack.c.bf16 %v1327_v33, %v1327_v33  ;;  %v11796_v54 = vld [vmem:[#allocation36_spill] sm:$0xff] }
 0x250   :  { %1335 = vst [vmem:[#allocation1 + $0x1] ss:$2 sm:$0xff] %v9101_v21  ;;  %v1493_v60 = vpack.c.bf16 %v1328_v39, %v1328_v39  ;;  %v11790_v63 = vld [vmem:[#allocation27_spill] sm:$0xff]  ;;  %v2322_v59 = vunpack.c.l.b16 %v1162_v50 }
 0x251   :  { %1336 = vst [vmem:[#allocation1 + $0x10] ss:$2 sm:$0xff] %v9051_v23  ;;  %v2268_v29 = vpack.c.b16 %v2267_v44, %v2266_v55  ;;  %v2356_v49 = vunpack.c.l.b16 %v1492_v10  ;;  %2929 = vmax.xlane.f32.xlu2 %v9245_v40  ;;  %v1168_v9 = vpack.c.bf16 %v11790_v63, %v11790_v63  ;;  %v11791_v44 = vld [vmem:[#allocation26_spill] sm:$0xff] }
 0x252   :  { %8047 = vmatmul.msk.bf16.vlgmr.msrb.gmra.mxu1 %vm1518_vm3, %v2203_v13  ;;  %v2357_v6 = vunpack.c.l.b16 %v1493_v60  ;;  %2953 = vmax.xlane.f32.xlu0 %v9245_v40  ;;  %v1167_v25 = vpack.c.bf16 %v11791_v44, %v11791_v44 }
 0x253   :  { %v2273_v24 = vsel %vm1518_vm3, %v2268_v29, 0  ;;  %v2412_v57 = vunpack.c.l.b16 %v1168_v9  ;;  %v11798_v9 = vld [vmem:[#allocation40_spill] sm:$0xff] }
 0x254   :  { %v1322_v8 = vld.sshfl [vmem:[#allocation1 + $0x20] sm:$0xff pattern:$0x75316420]  ;;  %2282 = vmatpush.bf16.xpose.msra.mxu3 %v2273_v24  ;;  %v2358_v17 = vpack.c.b16 %v2357_v6, %v2356_v49 }
 0x255   :  { %1329 = vst [vmem:[#allocation1 + $0x20] ss:$2 sm:$0xff] %v9109_v15  ;;  %8050 = vmatmul.msk.bf16.vlgmr.msra.gmra.mxu0 %vm1518_vm3, %v2293_v5  ;;  %v1323_v38 = vld.sshfl [vmem:[#allocation1 + $0x30] sm:$0xff pattern:$0x75316420]  ;;  %v1490_v46 = vpack.c.bf16 %v1322_v8, %v1322_v8  ;;  %v2411_v5 = vunpack.c.l.b16 %v1167_v25 }
 0x256   :  { %1330 = vst [vmem:[#allocation1 + $0x21] ss:$2 sm:$0xff] %v9072_v0  ;;  %v2363_v2 = vsel %vm1518_vm3, %v2358_v17, 0  ;;  %v1491_v51 = vpack.c.bf16 %v1323_v38, %v1323_v38  ;;  %v11793_v38 = vld [vmem:[#allocation28_spill] sm:$0xff] }
 0x257   :  { %v1337_v18 = vld.sshfl [vmem:[#allocation1] sm:$0xff pattern:$0x75316420]  ;;  %2372 = vmatpush.bf16.xpose.msra.mxu2 %v2363_v2  ;;  %1331 = vst [vmem:[#allocation1 + $0x30] ss:$2 sm:$0xff] %v9119_v20  ;;  %v2326_v48 = vunpack.c.l.b16 %v1490_v46  ;;  %v2413_v4 = vpack.c.b16 %v2412_v57, %v2411_v5  ;;  %v11794_v46 = vld [vmem:[#allocation31_spill] sm:$0xff] }
 0x258   :  { %1344 = vst [vmem:[#allocation1] ss:$2 sm:$0xff] %v9042_v36  ;;  %v1338_v1 = vld.sshfl [vmem:[#allocation1 + $0x10] sm:$0xff pattern:$0x75316420]  ;;  %v2327_v42 = vunpack.c.l.b16 %v1491_v51  ;;  %v1496_v31 = vpack.c.bf16 %v1337_v18, %v1337_v18  ;;  %v1172_v3 = vpack.c.bf16 %v11794_v46, %v11794_v46 }
 0x259   :  { %1345 = vst [vmem:[#allocation1 + $0x1] ss:$2 sm:$0xff] %v9085_v28  ;;  %v1497_v34 = vpack.c.bf16 %v1338_v1, %v1338_v1  ;;  %v1161_v28 = vpack.c.bf16 %v11789_v52, %v11789_v52  ;;  %2935 = vmax.xlane.f32.xlu2 %v9245_v40  ;;  %v2382_v1 = vunpack.c.l.b16 %v1166_v19 }
 0x25a   :  { %1346 = vst [vmem:[#allocation1 + $0x10] ss:$2 sm:$0xff] %v9059_v58  ;;  %v2328_v35 = vpack.c.b16 %v2327_v42, %v2326_v48  ;;  %v2416_v30 = vunpack.c.l.b16 %v1496_v31  ;;  %v11795_v48 = vld [vmem:[#allocation30_spill] sm:$0xff]  ;;  %v2472_v50 = vunpack.c.l.b16 %v1172_v3 }
 0x25b   :  { %8049 = vmatmul.msk.bf16.vlgmr.msra.gmra.mxu3 %vm1518_vm3, %v2263_v41  ;;  %v2417_v36 = vunpack.c.l.b16 %v1497_v34  ;;  %v2321_v13 = vunpack.c.l.b16 %v1161_v28  ;;  %v1171_v42 = vpack.c.bf16 %v11795_v48, %v11795_v48  ;;  %v84_v34 = vlaneseq }
 0x25c   :  { %v2333_v11 = vsel %vm1518_vm3, %v2328_v35, 0 }
 0x25d   :  { %v1332_v58 = vld.sshfl [vmem:[#allocation1 + $0x20] sm:$0xff pattern:$0x75316420]  ;;  %2342 = vmatpush.bf16.xpose.msra.mxu1 %v2333_v11  ;;  %v2418_v22 = vpack.c.b16 %v2417_v36, %v2416_v30  ;;  %v2323_v49 = vpack.c.b16 %v2322_v59, %v2321_v13  ;;  %v9468_v44 = vshrl.u32 %v84_v34, 7  ;;  %v9478_v37 = vand.u32 127, %v84_v34 }
 0x25e   :  { %1339 = vst [vmem:[#allocation1 + $0x20] ss:$2 sm:$0xff] %v9134_v53  ;;  %8052 = vmatmul.msk.bf16.vlgmr.msra.gmra.mxu2 %vm1518_vm3, %v2353_v61  ;;  %v1333_v33 = vld.sshfl [vmem:[#allocation1 + $0x30] sm:$0xff pattern:$0x75316420]  ;;  %v1494_v45 = vpack.c.bf16 %v1332_v58, %v1332_v58  ;;  %v11797_v30 = vld [vmem:[#allocation33_spill] sm:$0xff] }
 0x25f   :  { %1340 = vst [vmem:[#allocation1 + $0x21] ss:$2 sm:$0xff] %v9063_v62  ;;  %v2423_v39 = vsel %vm1518_vm3, %v2418_v22, 0  ;;  %v1495_v55 = vpack.c.bf16 %v1333_v33, %v1333_v33  ;;  %v1170_v36 = vpack.c.bf16 %v11797_v30, %v11797_v30  ;;  %v2471_v22 = vunpack.c.l.b16 %v1171_v42  ;;  %v11799_v33 = vld [vmem:[#allocation32_spill] sm:$0xff] }
 0x260   :  { %v1347_v10 = vld.sshfl [vmem:[#allocation1] sm:$0xff pattern:$0x75316420]  ;;  %2432 = vmatpush.bf16.xpose.msrb.mxu0 %v2423_v39  ;;  %1341 = vst [vmem:[#allocation1 + $0x30] ss:$2 sm:$0xff] %v9141_v47  ;;  %v2386_v29 = vunpack.c.l.b16 %v1494_v45  ;;  %v1169_v45 = vpack.c.bf16 %v11799_v33, %v11799_v33  ;;  %v11800_v39 = vld [vmem:[#allocation35_spill] sm:$0xff] }
 0x261   :  { %1354 = vst [vmem:[#allocation1] ss:$2 sm:$0xff] %v9036_v26  ;;  %v1348_v60 = vld.sshfl [vmem:[#allocation1 + $0x10] sm:$0xff pattern:$0x75316420]  ;;  %v2387_v7 = vunpack.c.l.b16 %v1495_v55  ;;  %v1500_v43 = vpack.c.bf16 %v1347_v10, %v1347_v10  ;;  %v1534_v8 = vpop.f32.mrf.mxu3  ;;  %v1176_v55 = vpack.c.bf16 %v11800_v39, %v11800_v39  ;;  %vm89_vm6 = vcmp.lt.s32.totalorder %v9468_v44, 4 }
 0x262   :  { %1355 = vst [vmem:[#allocation1 + $0x1] ss:$2 sm:$0xff] %v9101_v21  ;;  %v1501_v6 = vpack.c.bf16 %v1348_v60, %v1348_v60  ;;  %v9439_v32 = vmul.f32 0.35355338, %v1534_v8  ;;  %v2473_v60 = vpack.c.b16 %v2472_v50, %v2471_v22  ;;  %v2441_v19 = vunpack.c.l.b16 %v1169_v45 }
 0x263   :  { %1356 = vst [vmem:[#allocation1 + $0x10] ss:$2 sm:$0xff] %v9051_v23  ;;  %v2388_v24 = vpack.c.b16 %v2387_v7, %v2386_v29  ;;  %v2476_v26 = vunpack.c.l.b16 %v1500_v43  ;;  %v1165_v23 = vpack.c.bf16 %v11793_v38, %v11793_v38  ;;  %v2442_v29 = vunpack.c.l.b16 %v1170_v36 }
 0x264   :  { %8051 = vmatmul.msk.bf16.vlgmr.msra.gmra.mxu1 %vm1518_vm3, %v2323_v49  ;;  %v2477_v17 = vunpack.c.l.b16 %v1501_v6  ;;  %v2768_v12 = vsel %vm2767_vm5, %v9439_v32, -inf  ;;  %v11801_v6 = vld [vmem:[#allocation34_spill] sm:$0xff]  ;;  %vm97_vm10 = vcmp.lt.s32.totalorder %v9478_v37, 4  ;;  %vm98_vm12 = vcmp.ge.s32.totalorder %v9478_v37, 4 }
 0x265   :  { %v2393_v21 = vsel %vm1518_vm3, %v2388_v24, 0  ;;  %v1594_v16 = vpop.f32.mrf.mxu0  ;;  %2769 = vmax.xlane.f32.xlu1 %v2768_v12  ;;  %v2381_v14 = vunpack.c.l.b16 %v1165_v23  ;;  %v1175_v24 = vpack.c.bf16 %v11801_v6, %v11801_v6  ;;  %vm9559_vm11 = vmand %vm89_vm6, %vm97_vm10  ;;  %vm99_vm13 = vcmp.lt.s32.totalorder %v9478_v37, 8 }
 0x266   :  { %v1342_v2 = vld.sshfl [vmem:[#allocation1 + $0x20] sm:$0xff pattern:$0x75316420]  ;;  %2402 = vmatpush.bf16.xpose.msrb.mxu3 %v2393_v21  ;;  %v2478_v51 = vpack.c.b16 %v2477_v17, %v2476_v26  ;;  %v9454_v41 = vmul.f32 0.35355338, %v1594_v16  ;;  %v2532_v17 = vunpack.c.l.b16 %v1176_v55  ;;  %v104_v21 = vadd.s32 4, %v9468_v44  ;;  %vm9602_vm14 = vmand %vm98_vm12, %vm99_vm13 }
 0x267   :  { %1349 = vst [vmem:[#allocation1 + $0x20] ss:$2 sm:$0xff] %v9109_v15  ;;  %8054 = vmatmul.msk.bf16.vlgmr.msrb.gmra.mxu0 %vm1518_vm3, %v2413_v4  ;;  %v1343_v18 = vld.sshfl [vmem:[#allocation1 + $0x30] sm:$0xff pattern:$0x75316420]  ;;  %v1498_v27 = vpack.c.bf16 %v1342_v2, %v1342_v2  ;;  %v844_v15 = vrot.slane %v11796_v54, 4  ;;  %v2383_v58 = vpack.c.b16 %v2382_v1, %v2381_v14  ;;  %vm9616_vm15 = vmand %vm89_vm6, %vm9602_vm14 }
 0x268   :  { %1350 = vst [vmem:[#allocation1 + $0x21] ss:$2 sm:$0xff] %v9072_v0  ;;  %v2483_v56 = vsel %vm1518_vm3, %v2478_v51, 0  ;;  %v1499_v31 = vpack.c.bf16 %v1343_v18, %v1343_v18  ;;  %v2781_v28 = vsel %vm2767_vm5, %v9454_v41, -inf  ;;  %v11802_v4 = vld [vmem:[#allocation39_spill] sm:$0xff]  ;;  %v2531_v18 = vunpack.c.l.b16 %v1175_v24 }
 0x269   :  { %v1357_v35 = vld.sshfl [vmem:[#allocation1] sm:$0xff pattern:$0x75316420]  ;;  %2492 = vmatpush.bf16.xpose.msrb.mxu2 %v2483_v56  ;;  %1351 = vst [vmem:[#allocation1 + $0x30] ss:$2 sm:$0xff] %v9119_v20  ;;  %v2446_v0 = vunpack.c.l.b16 %v1498_v27  ;;  %2782 = vmax.xlane.f32.xlu0 %v2781_v28  ;;  %v1536_v20 = vpop.f32.mrf.mxu3  ;;  %v847_v38 = vrot.slane %v11802_v4, 4  ;;  %vm106_vm7 = vcmp.eq.s32.totalorder %v9478_v37, %v104_v21 }
 0x26a   :  { %v1358_v11 = vld.sshfl [vmem:[#allocation1 + $0x10] sm:$0xff pattern:$0x75316420]  ;;  %3470 = vst [vmem:[#allocation1] ss:$2 sm:$0xff] %v11796_v54  ;;  %v2447_v61 = vunpack.c.l.b16 %v1499_v31  ;;  %v1504_v52 = vpack.c.bf16 %v1357_v35, %v1357_v35  ;;  %v2533_v31 = vpack.c.b16 %v2532_v17, %v2531_v18  ;;  %v11805_v54 = vld [vmem:[#allocation38_spill] sm:$0xff]  ;;  %vm9512_vm9 = vmand %vm89_vm6, %vm106_vm7 }
 0x26b   :  { %3472 = vst [vmem:[#allocation1 + $0x1] ss:$2 sm:$0xff] %v844_v15  ;;  %v1505_v63 = vpack.c.bf16 %v1358_v11, %v1358_v11  ;;  %v9472_v7 = vmul.f32 0.35355338, %v1536_v20  ;;  %v1174_v15 = vpack.c.bf16 %v11805_v54, %v11805_v54  ;;  %vm91_vm0 = vcmp.ge.s32.totalorder %v9468_v44, 4 }
 0x26c   :  { %3474 = vst [vmem:[#allocation1 + $0x10] ss:$2 sm:$0xff] %v11798_v9  ;;  %v2448_v59 = vpack.c.b16 %v2447_v61, %v2446_v0  ;;  %v2536_v25 = vunpack.c.l.b16 %v1504_v52  ;;  %v845_v0 = vrot.slane %v11798_v9, 4  ;;  %v11806_v52 = vld [vmem:[#allocation37_spill] sm:$0xff]  ;;  %v11810_v9 = vld [vmem:[#allocation44_spill] sm:$0xff]  ;;  %vm9701_vm12 = vmand %vm91_vm0, %vm9602_vm14  ;;  %vm2993_vm13 = vcmask 1043456  }
 0x26d   :  { %8053 = vmatmul.msk.bf16.vlgmr.msrb.gmra.mxu3 %vm1518_vm3, %v2383_v58  ;;  %v2537_v10 = vunpack.c.l.b16 %v1505_v63  ;;  %v1596_v57 = vpop.f32.mrf.mxu0  ;;  %v2772_v51 = vsel %vm2771_vm4, %v9472_v7, -inf  ;;  %v1173_v28 = vpack.c.bf16 %v11806_v52, %v11806_v52  ;;  %v11807_v58 = vmov 0  ;;  %vm9751_vm14 = vmand %vm91_vm0, %vm97_vm10 }
 0x26e   :  { %v2453_v13 = vsel %vm1518_vm3, %v2448_v59, 0  ;;  %v9476_v5 = vmul.f32 0.35355338, %v1596_v57  ;;  %v11808_v58 = vsel %vm9512_vm9, 4294967295, %v11807_v58  ;;  %v846_v59 = vrot.slane %v11810_v9, 4 }
 0x26f   :  { %v1352_v43 = vld.sshfl [vmem:[#allocation1 + $0x20] sm:$0xff pattern:$0x75316420]  ;;  %2462 = vmatpush.bf16.xpose.msrb.mxu1 %v2453_v13  ;;  %v2538_v49 = vpack.c.b16 %v2537_v10, %v2536_v25  ;;  %11809 = vst [vmem:[#allocation7_spill] sm:$0xff] %v11808_v58  ;;  %v2502_v39 = vunpack.c.l.b16 %v1174_v15  ;;  %vm101_vm10 = vcmp.ge.s32.totalorder %v9478_v37, 8 }
 0x270   :  { %1359 = vst [vmem:[#allocation1 + $0x20] ss:$2 sm:$0xff] %v9134_v53  ;;  %8056 = vmatmul.msk.bf16.vlgmr.msrb.gmra.mxu2 %vm1518_vm3, %v2473_v60  ;;  %v1353_v8 = vld.sshfl [vmem:[#allocation1 + $0x30] sm:$0xff pattern:$0x75316420]  ;;  %v1502_v26 = vpack.c.bf16 %v1352_v43, %v1352_v43  ;;  %v2784_v3 = vsel %vm2771_vm4, %v9476_v5, -inf  ;;  %v2443_v53 = vpack.c.b16 %v2442_v29, %v2441_v19  ;;  %v2501_v29 = vunpack.c.l.b16 %v1173_v28 }
 0x271   :  { %1360 = vst [vmem:[#allocation1 + $0x21] ss:$2 sm:$0xff] %v9063_v62  ;;  %v2543_v23 = vsel %vm1518_vm3, %v2538_v49, 0  ;;  %v1503_v46 = vpack.c.bf16 %v1353_v8, %v1353_v8  ;;  %2785 = vmax.xlane.f32.xlu2 %v2784_v3  ;;  %2773 = vmax.xlane.f32.xlu0 %v2772_v51 }
 0x272   :  { %v3475_v2 = vld.sshfl [vmem:[#allocation1] sm:$0xff pattern:$0x75316420]  ;;  %2552 = vmatpush.bf16.xpose.msra.mxu0 %v2543_v23  ;;  %1361 = vst [vmem:[#allocation1 + $0x30] ss:$2 sm:$0xff] %v9141_v47  ;;  %v2506_v16 = vunpack.c.l.b16 %v1502_v26  ;;  %v1564_v1 = vpop.f32.mrf.mxu3  ;;  %v11804_v47 = vld [vmem:[#allocation43_spill] sm:$0xff]  ;;  %v2503_v8 = vpack.c.b16 %v2502_v39, %v2501_v29 }
 0x273   :  { %3485 = vst [vmem:[#allocation1] ss:$2 sm:$0xff] %v11802_v4  ;;  %v3476_v62 = vld.sshfl [vmem:[#allocation1 + $0x10] sm:$0xff pattern:$0x75316420]  ;;  %v2507_v12 = vunpack.c.l.b16 %v1503_v46  ;;  %v3503_v27 = vpack.c.bf16 %v3475_v2, %v3475_v2 }
 0x274   :  { %3486 = vst [vmem:[#allocation1 + $0x1] ss:$2 sm:$0xff] %v847_v38  ;;  %v3504_v48 = vpack.c.bf16 %v3476_v62, %v3476_v62  ;;  %v9492_v42 = vmul.f32 0.35355338, %v1564_v1  ;;  %v11811_v38 = vld [vmem:[#allocation42_spill] sm:$0xff]  ;;  %v848_v62 = vrot.slane %v11804_v47, 4 }
 0x275   :  { %3487 = vst [vmem:[#allocation1 + $0x10] ss:$2 sm:$0xff] %v11804_v47  ;;  %v2508_v56 = vpack.c.b16 %v2507_v12, %v2506_v16  ;;  %v3518_v34 = vunpack.c.l.b16 %v3503_v27  ;;  %v1624_v35 = vpop.f32.mrf.mxu1  ;;  %v1654_v14 = vpop.f32.mrf.mxu2  ;;  %v1178_v23 = vpack.c.bf16 %v11811_v38, %v11811_v38  ;;  %v11812_v12 = vld [vmem:[#allocation41_spill] sm:$0xff] }
 0x276   :  { %11803 = vst [vmem:[#allocation5_spill] sm:$0xff] %v9492_v42  ;;  %8055 = vmatmul.msk.bf16.vlgmr.msrb.gmra.mxu1 %vm1518_vm3, %v2443_v53  ;;  %v3519_v50 = vunpack.c.l.b16 %v3504_v48  ;;  %v9500_v30 = vmul.f32 0.35355338, %v1624_v35  ;;  %v2597_v36 = vmul.f32 0.35355338, %v1654_v14  ;;  %v2775_v11 = vsel %vm2767_vm5, %v9492_v42, -inf }
 0x277   :  { %v2513_v61 = vsel %vm1518_vm3, %v2508_v56, 0  ;;  %2776 = vmax.xlane.f32.xlu1 %v2775_v11  ;;  %v1177_v18 = vpack.c.bf16 %v11812_v12, %v11812_v12  ;;  %v11813_v56 = vld [vmem:[#allocation45_spill] sm:$0xff] }
 0x278   :  { %v1362_v22 = vld.sshfl [vmem:[#allocation1 + $0x20] sm:$0xff pattern:$0x75316420]  ;;  %2522 = vmatpush.bf16.xpose.msra.mxu3 %v2513_v61  ;;  %v3520_v63 = vpack.c.b16 %v3519_v50, %v3518_v34  ;;  %v1714_v20 = vpop.f32.mrf.mxu0  ;;  %v2787_v10 = vsel %vm2767_vm5, %v9500_v30, -inf  ;;  %v9524_v13 = vsel %vm9512_vm9, %v2597_v36, -1e+30  ;;  %v2562_v34 = vunpack.c.l.b16 %v1178_v23 }
 0x279   :  { %3478 = vst [vmem:[#allocation1 + $0x20] ss:$2 sm:$0xff] %v845_v0  ;;  %8058 = vmatmul.msk.bf16.vlgmr.msra.gmra.mxu0 %vm1518_vm3, %v2533_v31  ;;  %v1363_v33 = vld.sshfl [vmem:[#allocation1 + $0x30] sm:$0xff pattern:$0x75316420]  ;;  %v1506_v45 = vpack.c.bf16 %v1362_v22, %v1362_v22  ;;  %2788 = vmax.xlane.f32.xlu0 %v2787_v10  ;;  %v2793_v46 = vsel %vm2767_vm5, %v9524_v13, -inf  ;;  %v2561_v50 = vunpack.c.l.b16 %v1177_v18 }
 0x27a   :  { %3480 = vst [vmem:[#allocation1 + $0x21] ss:$2 sm:$0xff] %v11810_v9  ;;  %v3526_v55 = vsel %vm11675_vm8, %v3520_v63, 0  ;;  %v1507_v25 = vpack.c.bf16 %v1363_v33, %v1363_v33  ;;  %v1566_v57 = vpop.f32.mrf.mxu3  ;;  %v2601_v51 = vmul.f32 0.35355338, %v1714_v20  ;;  %v849_v31 = vrot.slane %v11813_v56, 4 }
 0x27b   :  { %v3488_v60 = vld.sshfl [vmem:[#allocation1] sm:$0xff pattern:$0x75316420]  ;;  %3535 = vmatpush.bf16.msra.mxu2 %v3526_v55  ;;  %3482 = vst [vmem:[#allocation1 + $0x30] ss:$2 sm:$0xff] %v846_v59  ;;  %v2566_v49 = vunpack.c.l.b16 %v1506_v45  ;;  %v2563_v52 = vpack.c.b16 %v2562_v34, %v2561_v50  ;;  %v11815_v33 = vmov 0 }
 0x27c   :  { %v3489_v43 = vld.sshfl [vmem:[#allocation1 + $0x10] sm:$0xff pattern:$0x75316420]  ;;  %v2567_v6 = vunpack.c.l.b16 %v1507_v25  ;;  %v3507_v24 = vpack.c.bf16 %v3488_v60, %v3488_v60  ;;  %v9526_v19 = vmul.f32 0.35355338, %v1566_v57  ;;  %v9549_v22 = vpop.xlane.xlu2 %2803  ;;  %v11816_v33 = vsel %vm9559_vm11, 4294967295, %v11815_v33  ;;  %v9566_v55 = vpop.xlane.xlu0 %2797 }
 0x27d   :  { %v3508_v26 = vpack.c.bf16 %v3489_v43, %v3489_v43  ;;  %v1626_v17 = vpop.f32.mrf.mxu1  ;;  %v1656_v21 = vpop.f32.mrf.mxu2  ;;  %v9544_v14 = vsel %vm9512_vm9, %v2601_v51, -1e+30  ;;  %11817 = vst [vmem:[#allocation9_spill] sm:$0xff] %v11816_v33  ;;  %v11822_v50 = vmov 0 }
 0x27e   :  { %v2568_v4 = vpack.c.b16 %v2567_v6, %v2566_v49  ;;  %v2778_v3 = vsel %vm2771_vm4, %v9526_v19, -inf  ;;  %v3579_v2 = vunpack.c.l.b16 %v3507_v24  ;;  %v2805_v28 = vsel %vm2767_vm5, %v9544_v14, -inf }
 0x27f   :  { %8057 = vmatmul.msk.bf16.vlgmr.msra.gmra.mxu3 %vm1518_vm3, %v2503_v8  ;;  %v3580_v53 = vunpack.c.l.b16 %v3508_v26  ;;  %2794 = vmax.xlane.f32.xlu1 %v2793_v46  ;;  %v9569_v10 = vmul.f32 0.35355338, %v1626_v17  ;;  %v11823_v50 = vsel %vm9616_vm15, 4294967295, %v11822_v50 }
 0x280   :  { %v2573_v16 = vsel %vm1518_vm3, %v2568_v4, 0  ;;  %v1716_v27 = vpop.f32.mrf.mxu0  ;;  %2779 = vmax.xlane.f32.xlu2 %v2778_v3  ;;  %11824 = vst [vmem:[#allocation10_spill] sm:$0xff] %v11823_v50 }
 0x281   :  { %v3483_v1 = vld.sshfl [vmem:[#allocation1 + $0x20] sm:$0xff pattern:$0x75316420]  ;;  %2582 = vmatpush.bf16.xpose.msra.mxu1 %v2573_v16  ;;  %v3581_v48 = vpack.c.b16 %v3580_v53, %v3579_v2  ;;  %11818 = vst [vmem:[#allocation8_spill] sm:$0xff] %v9569_v10  ;;  %v2790_v38 = vsel %vm2771_vm4, %v9569_v10, -inf  ;;  %v9589_v16 = vpop.xlane.xlu1 %2827 }
 0x282   :  { %3490 = vst [vmem:[#allocation1 + $0x20] ss:$2 sm:$0xff] %v848_v62  ;;  %v3484_v35 = vld.sshfl [vmem:[#allocation1 + $0x30] sm:$0xff pattern:$0x75316420]  ;;  %v3505_v54 = vpack.c.bf16 %v3483_v1, %v3483_v1 }
 0x283   :  { %3491 = vst [vmem:[#allocation1 + $0x21] ss:$2 sm:$0xff] %v11813_v56  ;;  %v3586_v47 = vsel %vm11675_vm8, %v3581_v48, 0  ;;  %v3506_v15 = vpack.c.bf16 %v3484_v35, %v3484_v35 }
 0x284   :  { %3595 = vmatpush.bf16.msrb.mxu0 %v3586_v47  ;;  %3492 = vst [vmem:[#allocation1 + $0x30] ss:$2 sm:$0xff] %v849_v31  ;;  %v1684_v36 = vpop.f32.mrf.mxu3  ;;  %v3549_v11 = vunpack.c.l.b16 %v3505_v54  ;;  %v9583_v23 = vpop.xlane.xlu2 %2845 }
 0x285   :  { %v3550_v0 = vunpack.c.l.b16 %v3506_v15  ;;  %v2599_v61 = vmul.f32 0.35355338, %v1684_v36  ;;  %v9587_v62 = vpop.xlane.xlu0 %2821 }
 0x287   :  { %v3551_v63 = vpack.c.b16 %v3550_v0, %v3549_v11  ;;  %v1744_v20 = vpop.f32.mrf.mxu1  ;;  %v1774_v9 = vpop.f32.mrf.mxu2  ;;  %2806 = vmax.xlane.f32.xlu1 %v2805_v28  ;;  %v9553_v59 = vsel %vm9512_vm9, %v2599_v61, -1e+30 }
 0x288   :  { %11814 = vst [vmem:[#allocation6_spill] sm:$0xff] %v9553_v59  ;;  %8059 = vmatmul.msk.bf16.vlgmr.msra.gmra.mxu1 %vm1518_vm3, %v2563_v52  ;;  %v2605_v45 = vmul.f32 0.35355338, %v1774_v9  ;;  %v2799_v39 = vsel %vm2767_vm5, %v9553_v59, -inf  ;;  %v2603_v46 = vmul.f32 0.35355338, %v1744_v20 }
 0x289   :  { %v3556_v25 = vsel %vm11675_vm8, %v3551_v63, 0  ;;  %2800 = vmax.xlane.f32.xlu2 %v2799_v39  ;;  %v9622_v61 = vpop.xlane.xlu1 %2893 }
 0x28a   :  { %v3493_v60 = vld.sshfl [vmem:[#allocation1 + $0x20] sm:$0xff pattern:$0x75316420]  ;;  %3565 = vmatpush.bf16.msrb.mxu3 %v3556_v25  ;;  %v1834_v29 = vpop.f32.mrf.mxu0  ;;  %v9573_v57 = vsel %vm9559_vm11, %v2605_v45, -1e+30 }
 0x28b   :  { %v3494_v43 = vld.sshfl [vmem:[#allocation1 + $0x30] sm:$0xff pattern:$0x75316420]  ;;  %v3509_v49 = vpack.c.bf16 %v3493_v60, %v3493_v60  ;;  %v2609_v6 = vmul.f32 0.35355338, %v1834_v29  ;;  %v2817_v24 = vsel %vm2767_vm5, %v9573_v57, -inf }
 0x28c   :  { %v3510_v8 = vpack.c.bf16 %v3494_v43, %v3494_v43  ;;  %2818 = vmax.xlane.f32.xlu0 %v2817_v24  ;;  %v1686_v26 = vpop.f32.mrf.mxu3  ;;  %v9594_v27 = vsel %vm9512_vm9, %v2603_v46, -1e+30  ;;  %v9600_v56 = vpop.xlane.xlu2 %2851 }
 0x28d   :  { %v9579_v17 = vsel %vm9559_vm11, %v2609_v6, -1e+30  ;;  %v3609_v21 = vunpack.c.l.b16 %v3509_v49  ;;  %v2811_v48 = vsel %vm2767_vm5, %v9594_v27, -inf  ;;  %v9606_v35 = vpop.xlane.xlu0 %2869 }
 0x28e   :  { %v3610_v4 = vunpack.c.l.b16 %v3510_v8  ;;  %v2829_v51 = vsel %vm2767_vm5, %v9579_v17, -inf  ;;  %v7890_v8 = vadd.s32 4294967292, %v9468_v44 }
 0x28f   :  { %v1746_v3 = vpop.f32.mrf.mxu1  ;;  %v1776_v2 = vpop.f32.mrf.mxu2  ;;  %2791 = vmax.xlane.f32.xlu1 %v2790_v38 }
 0x290   :  { %v3611_v53 = vpack.c.b16 %v3610_v4, %v3609_v21  ;;  %vm116_vm1 = vcmp.eq.s32.totalorder %v9478_v37, %v7890_v8  ;;  %v11825_v2 = vmov 0 }
 0x291   :  { %2830 = vmax.xlane.f32.xlu2 %v2829_v51  ;;  %v9647_v26 = vpop.xlane.xlu1 %2899  ;;  %vm9657_vm7 = vmand %vm91_vm0, %vm116_vm1  ;;  %vm102_vm1 = vcmp.lt.s32.totalorder %v9478_v37, 11 }
 0x292   :  { %v3616_v12 = vsel %vm11675_vm8, %v3611_v53, 0  ;;  %v1836_v18 = vpop.f32.mrf.mxu0  ;;  %v11826_v2 = vsel %vm9657_vm7, 4294967295, %v11825_v2  ;;  %vm9801_vm8 = vmand %vm101_vm10, %vm102_vm1 }
 0x293   :  { %3625 = vmatpush.bf16.msrb.mxu1 %v3616_v12  ;;  %11827 = vst [vmem:[#allocation13_spill] sm:$0xff] %v11826_v2  ;;  %vm9819_vm10 = vmand %vm89_vm6, %vm9801_vm8 }
 0x294   :  { %v9636_v25 = vpop.xlane.xlu2 %2917  ;;  %vm9888_vm6 = vmand %vm91_vm0, %vm9801_vm8  ;;  %vm11694_vm8 = vcmask 125952  }
 0x295   :  { %v9642_v29 = vpop.xlane.xlu0 %2875 }
 0x296   :  { %v1804_v1 = vpop.f32.mrf.mxu3 }
 0x297   :  { %v2607_v34 = vmul.f32 0.35355338, %v1804_v1  ;;  %2812 = vmax.xlane.f32.xlu1 %v2811_v48 }
 0x299   :  { %v1864_v54 = vpop.f32.mrf.mxu1  ;;  %v1894_v47 = vpop.f32.mrf.mxu2  ;;  %v9610_v15 = vsel %vm9559_vm11, %v2607_v34, -1e+30 }
 0x29a   :  { %11821 = vst [vmem:[#allocation11_spill] sm:$0xff] %v9610_v15  ;;  %v2611_v36 = vmul.f32 0.35355338, %v1864_v54  ;;  %v2613_v11 = vmul.f32 0.35355338, %v1894_v47  ;;  %v2823_v0 = vsel %vm2767_vm5, %v9610_v15, -inf  ;;  %v9675_v47 = vpop.xlane.xlu1 %2923 }
 0x29b   :  { %2824 = vmax.xlane.f32.xlu0 %v2823_v0 }
 0x29c   :  { %v1954_v52 = vpop.f32.mrf.mxu0  ;;  %v9626_v28 = vsel %vm9559_vm11, %v2611_v36, -1e+30  ;;  %v9630_v63 = vsel %vm9616_vm15, %v2613_v11, -1e+30  ;;  %v9649_v21 = vpop.xlane.xlu2 %2941 }
 0x29d   :  { %v2617_v20 = vmul.f32 0.35355338, %v1954_v52  ;;  %v2835_v9 = vsel %vm2767_vm5, %v9626_v28, -inf  ;;  %v2841_v39 = vsel %vm2767_vm5, %v9630_v63, -inf  ;;  %v9653_v38 = vpop.xlane.xlu0 %2809 }
 0x29e   :  { %2836 = vmax.xlane.f32.xlu2 %v2835_v9  ;;  %v1806_v45 = vpop.f32.mrf.mxu3 }
 0x29f   :  { %2842 = vmax.xlane.f32.xlu1 %v2841_v39  ;;  %v9640_v60 = vsel %vm9616_vm15, %v2617_v20, -1e+30 }
 0x2a0   :  { %v2853_v6 = vsel %vm2767_vm5, %v9640_v60, -inf }
 0x2a1   :  { %v1866_v43 = vpop.f32.mrf.mxu1  ;;  %v1896_v49 = vpop.f32.mrf.mxu2 }
 0x2a3   :  { %2854 = vmax.xlane.f32.xlu0 %v2853_v6 }
 0x2a4   :  { %v1956_v24 = vpop.f32.mrf.mxu0  ;;  %v9669_v48 = vpop.xlane.xlu2 %2815 }
 0x2a5   :  { %v9677_v52 = vpop.xlane.xlu0 %2833 }
 0x2a8   :  { %v1924_v4 = vpop.f32.mrf.mxu3 }
 0x2a9   :  { %v2615_v36 = vmul.f32 0.35355338, %v1924_v4 }
 0x2ab   :  { %v1984_v46 = vpop.f32.mrf.mxu1  ;;  %v2014_v3 = vpop.f32.mrf.mxu2  ;;  %v9681_v45 = vsel %vm9616_vm15, %v2615_v36, -1e+30 }
 0x2ac   :  { %v2619_v53 = vmul.f32 0.35355338, %v1984_v46  ;;  %v2621_v51 = vmul.f32 0.35355338, %v2014_v3  ;;  %11828 = vst [vmem:[#allocation12_spill] sm:$0xff] %v9681_v45  ;;  %v9687_v49 = vpop.xlane.xlu2 %2965  ;;  %v2847_v6 = vsel %vm2767_vm5, %v9681_v45, -inf  ;;  %v9695_v46 = vpop.xlane.xlu1 %2947 }
 0x2ad   :  { %v9693_v8 = vpop.xlane.xlu0 %2857  ;;  %v3001_v45 = vsel %vm2993_vm13, %v9606_v35, -inf }
 0x2ae   :  { %v2074_v12 = vpop.f32.mrf.mxu0  ;;  %v9663_v18 = vsel %vm9616_vm15, %v2619_v53, -1e+30  ;;  %v9667_v1 = vsel %vm9657_vm7, %v2621_v51, -1e+30  ;;  %v11829_v51 = vmov 0 }
 0x2af   :  { %v2859_v34 = vsel %vm2767_vm5, %v9663_v18, -inf  ;;  %v2865_v54 = vsel %vm2767_vm5, %v9667_v1, -inf  ;;  %v2625_v11 = vmul.f32 0.35355338, %v2074_v12  ;;  %v11830_v51 = vsel %vm9701_vm12, 4294967295, %v11829_v51 }
 0x2b0   :  { %2860 = vmax.xlane.f32.xlu1 %v2859_v34  ;;  %2866 = vmax.xlane.f32.xlu2 %v2865_v54  ;;  %v1926_v0 = vpop.f32.mrf.mxu3  ;;  %11831 = vst [vmem:[#allocation15_spill] sm:$0xff] %v11830_v51 }
 0x2b1   :  { %v9685_v39 = vsel %vm9657_vm7, %v2625_v11, -1e+30 }
 0x2b2   :  { %v2877_v24 = vsel %vm2767_vm5, %v9685_v39, -inf }
 0x2b3   :  { %v1986_v20 = vpop.f32.mrf.mxu1  ;;  %v2016_v9 = vpop.f32.mrf.mxu2 }
 0x2b4   :  { %v9705_v54 = vpop.xlane.xlu2 %2839 }
 0x2b5   :  { %v9715_v31 = vpop.xlane.xlu0 %2881 }
 0x2b6   :  { %v2076_v43 = vpop.f32.mrf.mxu0 }
 0x2b8   :  { %2848 = vmax.xlane.f32.xlu1 %v2847_v6  ;;  %2878 = vmax.xlane.f32.xlu2 %v2877_v24 }
 0x2ba   :  { %v2044_v4 = vpop.f32.mrf.mxu3 }
 0x2bb   :  { %v2623_v43 = vmul.f32 0.35355338, %v2044_v4 }
 0x2bc   :  { %v9731_v33 = vpop.xlane.xlu2 %2863 }
 0x2bd   :  { %v2104_v3 = vpop.f32.mrf.mxu1  ;;  %v2134_v53 = vpop.f32.mrf.mxu2  ;;  %v9729_v50 = vsel %vm9657_vm7, %v2623_v43, -1e+30  ;;  %v2999_v43 = vsel %vm2993_vm13, %v9583_v23, -inf }
 0x2be   :  { %v2627_v12 = vmul.f32 0.35355338, %v2104_v3  ;;  %v2629_v34 = vmul.f32 0.35355338, %v2134_v53  ;;  %v9721_v3 = vpop.xlane.xlu1 %2971  ;;  %11833 = vst [vmem:[#allocation17_spill] sm:$0xff] %v9729_v50 }
 0x2c0   :  { %v2194_v36 = vpop.f32.mrf.mxu0  ;;  %v9709_v11 = vsel %vm9701_vm12, %v2629_v34, -1e+30  ;;  %v9713_v0 = vsel %vm9657_vm7, %v2627_v12, -1e+30 }
 0x2c1   :  { %v2889_v20 = vsel %vm2767_vm5, %v9709_v11, -inf  ;;  %v2883_v9 = vsel %vm2767_vm5, %v9713_v0, -inf  ;;  %v2633_v6 = vmul.f32 0.35355338, %v2194_v36 }
 0x2c2   :  { %2890 = vmax.xlane.f32.xlu0 %v2889_v20  ;;  %2884 = vmax.xlane.f32.xlu2 %v2883_v9  ;;  %v2046_v24 = vpop.f32.mrf.mxu3  ;;  %v2871_v20 = vsel %vm2767_vm5, %v9729_v50, -inf  ;;  %v9737_v9 = vpop.xlane.xlu0 %2887 }
 0x2c3   :  { %v9725_v12 = vsel %vm9701_vm12, %v2633_v6, -1e+30  ;;  %v2995_v6 = vsel %vm2993_vm13, %v9566_v55, -inf }
 0x2c4   :  { %11832 = vst [vmem:[#allocation14_spill] sm:$0xff] %v9725_v12  ;;  %v2901_v36 = vsel %vm2767_vm5, %v9725_v12, -inf  ;;  %v9755_v23 = vpop.xlane.xlu2 %2929 }
 0x2c5   :  { %v2106_v53 = vpop.f32.mrf.mxu1  ;;  %v2136_v34 = vpop.f32.mrf.mxu2 }
 0x2c6   :  { %v2996_v53 = vmax.f32 %v2999_v43, %v2995_v6  ;;  %v9743_v34 = vpop.xlane.xlu1 %2905 }
 0x2c8   :  { %v2196_v4 = vpop.f32.mrf.mxu0 }
 0x2c9   :  { %v2997_v4 = vsel %vm2993_vm13, %v9587_v62, -inf }
 0x2ca   :  { %2902 = vmax.xlane.f32.xlu0 %v2901_v36  ;;  %2872 = vmax.xlane.f32.xlu2 %v2871_v20  ;;  %v11834_v36 = vmov 0  ;;  %v2998_v6 = vmax.f32 %v2996_v53, %v2997_v4 }
 0x2cb   :  { %v11835_v36 = vsel %vm9751_vm14, 4294967295, %v11834_v36 }
 0x2cc   :  { %v2164_v24 = vpop.f32.mrf.mxu3  ;;  %11836 = vst [vmem:[#allocation16_spill] sm:$0xff] %v11835_v36  ;;  %v3000_v59 = vmax.f32 %v2998_v6, %v3001_v45  ;;  %v3022_v45 = vsel %vm2993_vm13, %v9589_v16, -inf }
 0x2cf   :  { %v2224_v2 = vpop.f32.mrf.mxu1  ;;  %v2254_v58 = vpop.f32.mrf.mxu2 }
 0x2d0   :  { %v2635_v55 = vmul.f32 0.35355338, %v2224_v2  ;;  %v2637_v20 = vmul.f32 0.35355338, %v2254_v58  ;;  %v2631_v2 = vmul.f32 0.35355338, %v2164_v24  ;;  %v9783_v24 = vpop.xlane.xlu1 %2911 }
 0x2d2   :  { %v2314_v43 = vpop.f32.mrf.mxu0  ;;  %v9759_v50 = vsel %vm9751_vm14, %v2637_v20, -1e+30  ;;  %v9763_v62 = vsel %vm9701_vm12, %v2635_v55, -1e+30  ;;  %v9771_v20 = vpop.xlane.xlu0 %2953  ;;  %v3003_v55 = vsel %vm2993_vm13, %v9622_v61, -inf }
 0x2d3   :  { %v2913_v15 = vsel %vm2767_vm5, %v9759_v50, -inf  ;;  %v2907_v58 = vsel %vm2767_vm5, %v9763_v62, -inf  ;;  %v2641_v53 = vmul.f32 0.35355338, %v2314_v43  ;;  %v9781_v12 = vsel %vm9701_vm12, %v2631_v2, -1e+30 }
 0x2d4   :  { %2914 = vmax.xlane.f32.xlu1 %v2913_v15  ;;  %2908 = vmax.xlane.f32.xlu0 %v2907_v58  ;;  %v2166_v4 = vpop.f32.mrf.mxu3  ;;  %11838 = vst [vmem:[#allocation18_spill] sm:$0xff] %v9781_v12  ;;  %v3020_v15 = vsel %vm2993_vm13, %v9549_v22, -inf  ;;  %v3002_v6 = vmax.f32 %v3000_v59, %v3003_v55  ;;  %v2895_v43 = vsel %vm2767_vm5, %v9781_v12, -inf  ;;  %v9797_v58 = vpop.xlane.xlu2 %2935  ;;  %v3024_v59 = vsel %vm2993_vm13, %v9600_v56, -inf }
 0x2d5   :  { %v9777_v35 = vsel %vm9751_vm14, %v2641_v53, -1e+30  ;;  %v3021_v22 = vmax.f32 %v3022_v45, %v3020_v15  ;;  %v3007_v4 = vsel %vm2993_vm13, %v9649_v21, -inf  ;;  %v3026_v15 = vsel %vm2993_vm13, %v9642_v29, -inf }
 0x2d6   :  { %11837 = vst [vmem:[#allocation19_spill] sm:$0xff] %v9777_v35  ;;  %v2925_v61 = vsel %vm2767_vm5, %v9777_v35, -inf }
 0x2d7   :  { %v2226_v42 = vpop.f32.mrf.mxu1  ;;  %v2256_v10 = vpop.f32.mrf.mxu2  ;;  %v3023_v55 = vmax.f32 %v3021_v22, %v3024_v59  ;;  %v3009_v22 = vsel %vm2993_vm13, %v9687_v49, -inf }
 0x2d8   :  { %v3005_v42 = vsel %vm2993_vm13, %v9636_v25, -inf }
 0x2d9   :  { %v3004_v16 = vmax.f32 %v3002_v6, %v3005_v42  ;;  %v11842_v6 = vmov 0  ;;  %v3025_v59 = vmax.f32 %v3023_v55, %v3026_v15  ;;  %v3045_v15 = vsel %vm2993_vm13, %v9653_v38, -inf }
 0x2da   :  { %v2316_v10 = vpop.f32.mrf.mxu0  ;;  %v11843_v6 = vsel %vm9819_vm10, 4294967295, %v11842_v6  ;;  %v3049_v38 = vsel %vm2993_vm13, %v9693_v8, -inf }
 0x2db   :  { %11844 = vst [vmem:[#allocation20_spill] sm:$0xff] %v11843_v6  ;;  %v3006_v21 = vmax.f32 %v3004_v16, %v3007_v4  ;;  %v3028_v4 = vsel %vm2993_vm13, %v9647_v26, -inf }
 0x2dc   :  { %2926 = vmax.xlane.f32.xlu1 %v2925_v61  ;;  %2896 = vmax.xlane.f32.xlu0 %v2895_v43  ;;  %v9805_v53 = vpop.xlane.xlu0 %2782  ;;  %v9825_v43 = vpop.xlane.xlu1 %2769  ;;  %v3027_v12 = vmax.f32 %v3025_v59, %v3028_v4 }
 0x2de   :  { %v2284_v25 = vpop.f32.mrf.mxu3 }
 0x2df   :  { %v2639_v37 = vmul.f32 0.35355338, %v2284_v25 }
 0x2e1   :  { %v2344_v45 = vpop.f32.mrf.mxu1  ;;  %v2374_v10 = vpop.f32.mrf.mxu2  ;;  %v9813_v56 = vsel %vm9751_vm14, %v2639_v37, -1e+30 }
 0x2e2   :  { %11841 = vst [vmem:[#allocation21_spill] sm:$0xff] %v9813_v56  ;;  %v2643_v42 = vmul.f32 0.35355338, %v2344_v45  ;;  %v2645_v61 = vmul.f32 0.35355338, %v2374_v10  ;;  %v2919_v29 = vsel %vm2767_vm5, %v9813_v56, -inf }
 0x2e3   :  { %2920 = vmax.xlane.f32.xlu2 %v2919_v29  ;;  %v3008_v29 = vmax.f32 %v3006_v21, %v3009_v22 }
 0x2e4   :  { %v2434_v25 = vpop.f32.mrf.mxu0  ;;  %v9831_v37 = vsel %vm9819_vm10, %v2645_v61, -1e+30  ;;  %v9835_v16 = vsel %vm9751_vm14, %v2643_v42, -1e+30  ;;  %v2786_v55 = vpop.xlane.xlu2 %2785  ;;  %v3047_v61 = vsel %vm2993_vm13, %v9677_v52, -inf  ;;  %v3030_v52 = vsel %vm2993_vm13, %v9675_v47, -inf }
 0x2e5   :  { %v2649_v45 = vmul.f32 0.35355338, %v2434_v25  ;;  %v2937_v10 = vsel %vm2767_vm5, %v9831_v37, -inf  ;;  %v2931_v49 = vsel %vm2767_vm5, %v9835_v16, -inf  ;;  %v2774_v36 = vpop.xlane.xlu0 %2773  ;;  %v3044_v26 = vsel %vm2993_vm13, %v2786_v55, -inf }
 0x2e6   :  { %2938 = vmax.xlane.f32.xlu0 %v2937_v10  ;;  %2932 = vmax.xlane.f32.xlu1 %v2931_v49  ;;  %v2286_v42 = vpop.f32.mrf.mxu3  ;;  %v2994_v51 = vsel %vm2993_vm13, %v2774_v36, -inf  ;;  %v3046_v56 = vmax.f32 %v3044_v26, %v3045_v15  ;;  %v3051_v49 = vsel %vm2993_vm13, %v9715_v31, -inf  ;;  %v3053_v47 = vsel %vm2993_vm13, %v9743_v34, -inf }
 0x2e7   :  { %v9850_v25 = vsel %vm9819_vm10, %v2649_v45, -1e+30  ;;  %v3010_v35 = vmax.f32 %v3008_v29, %v2994_v51  ;;  %v3029_v51 = vmax.f32 %v3027_v12, %v3030_v52  ;;  %v9872_v42 = vsel %vm2993_vm13, %v9771_v20, -inf }
 0x2e8   :  { %11845 = vst [vmem:[#allocation23_spill] sm:$0xff] %v9850_v25  ;;  %v3048_v10 = vmax.f32 %v3046_v56, %v3047_v61  ;;  %v2949_v45 = vsel %vm2767_vm5, %v9850_v25, -inf  ;;  %v3032_v56 = vsel %vm2993_vm13, %v9695_v46, -inf  ;;  %v3055_v61 = vsel %vm2993_vm13, %v9755_v23, -inf }
 0x2e9   :  { %v2346_v21 = vpop.f32.mrf.mxu1  ;;  %v2376_v22 = vpop.f32.mrf.mxu2  ;;  %v3087_v36 = vsub.f32 %v9472_v7, %v3010_v35  ;;  %v3095_v55 = vsub.f32 -1e+30, %v3010_v35  ;;  %v3031_v35 = vmax.f32 %v3029_v51, %v3032_v56  ;;  %v3034_v34 = vsel %vm2993_vm13, %v9721_v3, -inf }
 0x2ea   :  { %v9862_v59 = vpop.xlane.xlu1 %2776  ;;  %v3050_v8 = vmax.f32 %v3048_v10, %v3049_v38  ;;  %v11847_v20 = vmov 0 }
 0x2eb   :  { %2950 = vmax.xlane.f32.xlu2 %v2949_v45  ;;  %v3160_v15 = vmul.f32 1.442695, %v3087_v36  ;;  %v3176_v29 = vmul.f32 1.442695, %v3095_v55  ;;  %v11848_v20 = vsel %vm9888_vm6, 4294967295, %v11847_v20  ;;  %v3033_v10 = vmax.f32 %v3031_v35, %v3034_v34 }
 0x2ec   :  { %v2436_v4 = vpop.f32.mrf.mxu0  ;;  %v3052_v31 = vmax.f32 %v3050_v8, %v3051_v49  ;;  %11849 = vst [vmem:[#allocation25_spill] sm:$0xff] %v11848_v20 }
 0x2ed   :  { %8423 = vpow2.f32 %v3160_v15 }
 0x2ee   :  { %v3054_v7 = vmax.f32 %v3052_v31, %v3053_v47  ;;  %8425 = vpow2.f32 %v3176_v29 }
 0x2f0   :  { %v2404_v12 = vpop.f32.mrf.mxu3  ;;  %v9876_v38 = vmax.f32 %v3054_v7, %v3055_v61 }
 0x2f1   :  { %v2647_v26 = vmul.f32 0.35355338, %v2404_v12 }
 0x2f2   :  { %v9878_v46 = vpop.xlane.xlu1 %2794 }
 0x2f3   :  { %v2464_v52 = vpop.f32.mrf.mxu1  ;;  %v2494_v23 = vpop.f32.mrf.mxu2  ;;  %v9882_v21 = vsel %vm9819_vm10, %v2647_v26, -1e+30  ;;  %v2985_v3 = vmax.f32 %v9825_v43, %v9878_v46 }
 0x2f4   :  { %11846 = vst [vmem:[#allocation22_spill] sm:$0xff] %v9882_v21  ;;  %v2651_v49 = vmul.f32 0.35355338, %v2464_v52  ;;  %v2653_v45 = vmul.f32 0.35355338, %v2494_v23  ;;  %v2943_v36 = vsel %vm2767_vm5, %v9882_v21, -inf  ;;  %v2780_v55 = vpop.xlane.xlu2 %2779  ;;  %v8424_v4 = vpop.eup %8423 }
 0x2f5   :  { %2944 = vmax.xlane.f32.xlu0 %v2943_v36  ;;  %v3019_v44 = vsel %vm2993_vm13, %v2780_v55, -inf  ;;  %v8426_v31 = vpop.eup %8425  ;;  %v9919_v55 = vpop.xlane.xlu0 %2788 }
 0x2f6   :  { %v2554_v2 = vpop.f32.mrf.mxu0  ;;  %v9901_v8 = vsel %vm9888_vm6, %v2653_v45, -1e+30  ;;  %v9905_v51 = vsel %vm9819_vm10, %v2651_v49, -1e+30  ;;  %v3035_v47 = vmax.f32 %v3033_v10, %v3019_v44  ;;  %v3319_v10 = vsel %vm2771_vm4, %v8424_v4, 0.0 }
 0x2f7   :  { %v2961_v56 = vsel %vm2767_vm5, %v9901_v8, -inf  ;;  %v2955_v15 = vsel %vm2767_vm5, %v9905_v51, -inf  ;;  %v9915_v49 = vsel %vm2771_vm4, %v8426_v31, 0.0  ;;  %v2657_v36 = vmul.f32 0.35355338, %v2554_v2 }
 0x2f8   :  { %2962 = vmax.xlane.f32.xlu1 %v2961_v56  ;;  %2956 = vmax.xlane.f32.xlu2 %v2955_v15  ;;  %v2406_v61 = vpop.f32.mrf.mxu3  ;;  %v3089_v29 = vsub.f32 %v9526_v19, %v3035_v47  ;;  %v3097_v7 = vsub.f32 -1e+30, %v3035_v47  ;;  %v3321_v47 = vadd.f32 %v9915_v49, %v3319_v10 }
 0x2f9   :  { %v3070_v61 = vsel %vm2993_vm13, %v9669_v48, -inf }
 0x2fa   :  { %v3164_v35 = vmul.f32 1.442695, %v3089_v29  ;;  %v3180_v12 = vmul.f32 1.442695, %v3097_v7  ;;  %v2807_v34 = vpop.xlane.xlu1 %2806  ;;  %v3323_v31 = vadd.f32 %v3321_v47, %v9915_v49 }
 0x2fb   :  { %v2466_v26 = vpop.f32.mrf.mxu1  ;;  %v2496_v52 = vpop.f32.mrf.mxu2  ;;  %v3036_v23 = vmax.f32 %v9805_v53, %v2807_v34  ;;  %v9924_v53 = vsel %vm9888_vm6, %v2657_v36, -1e+30 }
 0x2fc   :  { %8427 = vpow2.f32 %v3164_v35  ;;  %v2801_v45 = vpop.xlane.xlu2 %2800  ;;  %11850 = vst [vmem:[#allocation24_spill] sm:$0xff] %v9924_v53  ;;  %v2973_v35 = vsel %vm2767_vm5, %v9924_v53, -inf  ;;  %v3072_v52 = vsel %vm2993_vm13, %v9705_v54, -inf  ;;  %v3074_v54 = vsel %vm2993_vm13, %v9731_v33, -inf }
 0x2fd   :  { %2959 = vmax.xlane.f32.xlu0 %v9245_v40  ;;  %8429 = vpow2.f32 %v3180_v12  ;;  %v3011_v19 = vmax.f32 %v9862_v59, %v2801_v45  ;;  %v3078_v33 = vsel %vm2993_vm13, %v9783_v24, -inf }
 0x2fe   :  { %v2556_v44 = vpop.f32.mrf.mxu0 }
 0x302   :  { %v8428_v4 = vpop.eup %8427  ;;  %v2524_v56 = vpop.f32.mrf.mxu3 }
 0x303   :  { %v2792_v15 = vpop.xlane.xlu1 %2791  ;;  %v8430_v2 = vpop.eup %8429  ;;  %v2655_v29 = vmul.f32 0.35355338, %v2524_v56  ;;  %v3353_v7 = vsel %vm2771_vm4, %v8428_v4, 0.0 }
 0x304   :  { %v3069_v59 = vsel %vm2993_vm13, %v2792_v15, -inf  ;;  %v2831_v34 = vpop.xlane.xlu2 %2830  ;;  %v3354_v26 = vsel %vm2771_vm4, %v8430_v2, 0.0  ;;  %v2819_v4 = vpop.xlane.xlu0 %2818  ;;  %v3325_v15 = vadd.f32 %v3323_v31, %v9915_v49 }
 0x305   :  { %v3071_v12 = vmax.f32 %v3069_v59, %v3070_v61  ;;  %v2584_v10 = vpop.f32.mrf.mxu1  ;;  %2974 = vmax.xlane.f32.xlu0 %v2973_v35  ;;  %v9938_v48 = vsel %vm9888_vm6, %v2655_v29, -1e+30  ;;  %v9940_v45 = vmax.f32 %v3036_v23, %v2831_v34  ;;  %v3355_v36 = vadd.f32 %v3354_v26, %v3353_v7 }
 0x306   :  { %11851 = vst [vmem:[#allocation27_spill] sm:$0xff] %v9938_v48  ;;  %v2659_v44 = vmul.f32 0.35355338, %v2584_v10  ;;  %v2967_v47 = vsel %vm2767_vm5, %v9938_v48, -inf  ;;  %v3076_v29 = vsel %vm2993_vm13, %v9737_v9, -inf  ;;  %v3327_v31 = vadd.f32 %v3325_v15, %v9915_v49 }
 0x307   :  { %v3073_v56 = vmax.f32 %v3071_v12, %v3072_v52  ;;  %2968 = vmax.xlane.f32.xlu1 %v2967_v47  ;;  %v3357_v2 = vadd.f32 %v3355_v36, %v3354_v26  ;;  %v3080_v34 = vsel %vm2993_vm13, %v9797_v58, -inf }
 0x308   :  { %v9949_v61 = vsel %vm9888_vm6, %v2659_v44, -1e+30  ;;  %v3329_v47 = vadd.f32 %v3327_v31, %v9915_v49 }
 0x309   :  { %v3075_v23 = vmax.f32 %v3073_v56, %v3074_v54  ;;  %v2979_v59 = vsel %vm2767_vm5, %v9949_v61, -inf  ;;  %v3359_v7 = vadd.f32 %v3357_v2, %v3354_v26 }
 0x30a   :  { %2980 = vmax.xlane.f32.xlu2 %v2979_v59  ;;  %v2526_v35 = vpop.f32.mrf.mxu3  ;;  %v3331_v24 = vadd.f32 %v3329_v47, %v9915_v49 }
 0x30b   :  { %v3077_v12 = vmax.f32 %v3075_v23, %v3076_v29  ;;  %v3361_v52 = vadd.f32 %v3359_v7, %v3354_v26  ;;  %v2813_v54 = vpop.xlane.xlu1 %2812 }
 0x30c   :  { %v3333_v7 = vadd.f32 %v3331_v24, %v9915_v49  ;;  %v3061_v53 = vmax.f32 %v9919_v55, %v2813_v54 }
 0x30d   :  { %v3079_v10 = vmax.f32 %v3077_v12, %v3078_v33  ;;  %v2586_v36 = vpop.f32.mrf.mxu1  ;;  %v3363_v44 = vadd.f32 %v3361_v52, %v3354_v26 }
 0x30e   :  { %v2825_v9 = vpop.xlane.xlu0 %2824 }
 0x30f   :  { %v9961_v56 = vmax.f32 %v3079_v10, %v3080_v34  ;;  %2977 = vmax.xlane.f32.xlu1 %v9245_v40  ;;  %v9964_v15 = vmax.f32 %v3011_v19, %v2825_v9  ;;  %v3365_v2 = vadd.f32 %v3363_v44, %v3354_v26  ;;  %v9975_v19 = vadd.f32 %v3333_v7, %v9915_v49 }
 0x311   :  { %v3367_v23 = vadd.f32 %v3365_v2, %v3354_v26  ;;  %v3441_v12 = vsel %vm2771_vm4, %v9975_v19, 0.0  ;;  %v2837_v52 = vpop.xlane.xlu2 %2836 }
 0x313   :  { %v9967_v29 = vadd.f32 %v3367_v23, %v3354_v26  ;;  %v2843_v31 = vpop.xlane.xlu1 %2842 }
 0x315   :  { %11852 = vst [vmem:[#allocation26_spill] sm:$0xff] %v9967_v29  ;;  %v3447_v58 = vsel %vm2771_vm4, %v9967_v29, 0.0 }
 0x316   :  { %v2855_v59 = vpop.xlane.xlu0 %2854  ;;  %3448 = vadd.xlane.f32.xlu0 %v3447_v58  ;;  %v2986_v58 = vmax.f32 %v2985_v3, %v2819_v4 }
 0x317   :  { %2983 = vmax.xlane.f32.xlu1 %v9245_v40  ;;  %v3038_v35 = vmax.f32 %v9940_v45, %v2855_v59 }
 0x31f   :  { %3442 = vadd.xlane.f32.xlu1 %v3441_v12 }
 0x323   :  { %v2861_v26 = vpop.xlane.xlu1 %2860  ;;  %v2867_v36 = vpop.xlane.xlu2 %2866 }
 0x32b   :  { %v2849_v33 = vpop.xlane.xlu1 %2848  ;;  %v2879_v9 = vpop.xlane.xlu2 %2878 }
 0x32c   :  { %v3013_v34 = vmax.f32 %v9964_v15, %v2849_v33  ;;  %v2987_v15 = vmax.f32 %v2986_v58, %v2843_v31 }
 0x32e   :  { %v2988_v33 = vmax.f32 %v2987_v15, %v2867_v36 }
 0x335   :  { %v2891_v10 = vpop.xlane.xlu0 %2890  ;;  %v2885_v45 = vpop.xlane.xlu2 %2884 }
 0x336   :  { %v2989_v22 = vmax.f32 %v2988_v33, %v2891_v10 }
 0x33d   :  { %v2903_v44 = vpop.xlane.xlu0 %2902  ;;  %v2873_v49 = vpop.xlane.xlu2 %2872 }
 0x347   :  { %v9980_v47 = vpop.xlane.xlu0 %2908  ;;  %v2915_v2 = vpop.xlane.xlu1 %2914 }
 0x348   :  { %v2990_v20 = vmax.f32 %v2989_v22, %v2915_v2 }
 0x34f   :  { %v9982_v23 = vpop.xlane.xlu0 %2896  ;;  %v2927_v24 = vpop.xlane.xlu1 %2926 }
 0x356   :  { %v2921_v7 = vpop.xlane.xlu2 %2920 }
 0x359   :  { %v2939_v59 = vpop.xlane.xlu0 %2938  ;;  %v2933_v12 = vpop.xlane.xlu1 %2932 }
 0x35a   :  { %v2991_v29 = vmax.f32 %v2990_v20, %v2939_v59  ;;  %v3014_v59 = vmax.f32 %v3013_v34, %v2873_v49 }
 0x35e   :  { %v2951_v40 = vpop.xlane.xlu2 %2950 }
 0x368   :  { %v9987_v6 = vpop.xlane.xlu0 %2944 }
 0x36b   :  { %v2963_v48 = vpop.xlane.xlu1 %2962 }
 0x36c   :  { %v2992_v21 = vmax.f32 %v2991_v29, %v2963_v48  ;;  %v3039_v29 = vmax.f32 %v3038_v35, %v2879_v9  ;;  %v3463_v35 = vpack.c.bf16 %v9975_v19, %v9975_v19 }
 0x36e   :  { %v3086_v25 = vsub.f32 %v9439_v32, %v2992_v21  ;;  %v3094_v43 = vsub.f32 %v9524_v13, %v2992_v21  ;;  %v3102_v46 = vsub.f32 %v9573_v57, %v2992_v21  ;;  %v3110_v3 = vsub.f32 %v9630_v63, %v2992_v21 }
 0x36f   :  { %v3118_v4 = vsub.f32 %v9667_v1, %v2992_v21  ;;  %v3126_v22 = vsub.f32 %v9709_v11, %v2992_v21  ;;  %v3134_v20 = vsub.f32 %v9759_v50, %v2992_v21  ;;  %v3142_v55 = vsub.f32 %v9831_v37, %v2992_v21  ;;  %v2957_v11 = vpop.xlane.xlu2 %2956 }
 0x370   :  { %v2960_v31 = vpop.xlane.xlu0 %2959  ;;  %v3158_v10 = vmul.f32 1.442695, %v3086_v25  ;;  %v3174_v36 = vmul.f32 1.442695, %v3094_v43  ;;  %v3190_v48 = vmul.f32 1.442695, %v3102_v46  ;;  %v3062_v32 = vmax.f32 %v3061_v53, %v2837_v52 }
 0x371   :  { %v3206_v54 = vmul.f32 1.442695, %v3110_v3  ;;  %v3222_v13 = vmul.f32 1.442695, %v3118_v4  ;;  %v3238_v57 = vmul.f32 1.442695, %v3126_v22  ;;  %v3040_v2 = vmax.f32 %v3039_v29, %v2903_v44 }
 0x372   :  { %8431 = vpow2.f32 %v3158_v10  ;;  %v3063_v63 = vmax.f32 %v3062_v32, %v2861_v26  ;;  %v3254_v1 = vmul.f32 1.442695, %v3134_v20  ;;  %v3270_v58 = vmul.f32 1.442695, %v3142_v55 }
 0x373   :  { %8433 = vpow2.f32 %v3174_v36  ;;  %v3150_v25 = vsub.f32 %v9901_v8, %v2992_v21  ;;  %v3041_v37 = vmax.f32 %v3040_v2, %v2927_v24  ;;  %v3015_v44 = vmax.f32 %v3014_v59, %v9982_v23 }
 0x374   :  { %8435 = vpow2.f32 %v3190_v48  ;;  %v3064_v50 = vmax.f32 %v3063_v63, %v2885_v45  ;;  %v10006_v19 = vsel %vm2993_vm13, %v2960_v31, -inf  ;;  %v10011_v22 = vunpack.c.l.b16 %v3463_v35 }
 0x375   :  { %8437 = vpow2.f32 %v3206_v54  ;;  %v3042_v15 = vmax.f32 %v3041_v37, %v2951_v40  ;;  %v3286_v49 = vmul.f32 1.442695, %v3150_v25  ;;  %v3016_v43 = vmax.f32 %v3015_v44, %v2921_v7 }
 0x376   :  { %8439 = vpow2.f32 %v3222_v13  ;;  %v3065_v52 = vmax.f32 %v3064_v50, %v9980_v47  ;;  %v3083_v7 = vmax.f32 %v9961_v56, %v10006_v19 }
 0x377   :  { %8441 = vpow2.f32 %v3238_v57 }
 0x378   :  { %v8432_v53 = vpop.eup %8431  ;;  %v2975_v26 = vpop.xlane.xlu0 %2974  ;;  %8443 = vpow2.f32 %v3254_v1  ;;  %v3066_v8 = vmax.f32 %v3065_v52, %v2933_v12  ;;  %v3017_v12 = vmax.f32 %v3016_v43, %v9987_v6 }
 0x379   :  { %v8434_v9 = vpop.eup %8433  ;;  %8445 = vpow2.f32 %v3270_v58  ;;  %v3302_v45 = vsel %vm2767_vm5, %v8432_v53, 0.0  ;;  %v10008_v47 = vmax.f32 %v3042_v15, %v2975_v26 }
 0x37a   :  { %v8436_v21 = vpop.eup %8435  ;;  %v2969_v34 = vpop.xlane.xlu1 %2968  ;;  %v3303_v24 = vsel %vm2767_vm5, %v8434_v9, 0.0  ;;  %v3067_v23 = vmax.f32 %v3066_v8, %v2957_v11  ;;  %8447 = vpow2.f32 %v3286_v49 }
 0x37b   :  { %v8438_v33 = vpop.eup %8437  ;;  %v3304_v46 = vadd.f32 %v3303_v24, %v3302_v45  ;;  %v3305_v40 = vsel %vm2767_vm5, %v8436_v21, 0.0  ;;  %v10017_v54 = vmax.f32 %v3017_v12, %v2969_v34  ;;  %v3090_v13 = vsub.f32 %v9454_v41, %v10008_v47 }
 0x37c   :  { %v8440_v3 = vpop.eup %8439  ;;  %v3307_v48 = vsel %vm2767_vm5, %v8438_v33, 0.0  ;;  %v3098_v6 = vsub.f32 %v9544_v14, %v10008_v47  ;;  %v3106_v50 = vsub.f32 %v9579_v17, %v10008_v47 }
 0x37d   :  { %v8442_v4 = vpop.eup %8441  ;;  %v2981_v20 = vpop.xlane.xlu2 %2980  ;;  %v3306_v10 = vadd.f32 %v3305_v40, %v3304_v46  ;;  %v3309_v29 = vsel %vm2767_vm5, %v8440_v3, 0.0  ;;  %v11854_v40 = vld [vmem:[#allocation14_spill] sm:$0xff] }
 0x37e   :  { %v8444_v36 = vpop.eup %8443  ;;  %v3068_v31 = vmax.f32 %v3067_v23, %v2981_v20  ;;  %v3311_v59 = vsel %vm2767_vm5, %v8442_v4, 0.0  ;;  %v3130_v4 = vsub.f32 %v11854_v40, %v10008_v47 }
 0x37f   :  { %v8446_v55 = vpop.eup %8445  ;;  %v3308_v32 = vadd.f32 %v3307_v48, %v3306_v10  ;;  %v3313_v37 = vsel %vm2767_vm5, %v8444_v36, 0.0  ;;  %v11855_v48 = vld [vmem:[#allocation19_spill] sm:$0xff] }
 0x380   :  { %v3092_v57 = vsub.f32 %v9500_v30, %v3068_v31  ;;  %v3100_v63 = vsub.f32 %v9594_v27, %v3068_v31  ;;  %v3108_v1 = vsub.f32 %v9626_v28, %v3068_v31  ;;  %v3116_v11 = vsub.f32 %v9663_v18, %v3068_v31  ;;  %v8448_v18 = vpop.eup %8447 }
 0x381   :  { %v3310_v2 = vadd.f32 %v3309_v29, %v3308_v32  ;;  %v3124_v58 = vsub.f32 %v9713_v0, %v3068_v31  ;;  %v3315_v53 = vsel %vm2767_vm5, %v8446_v55, 0.0  ;;  %v3132_v30 = vsub.f32 %v9763_v62, %v3068_v31 }
 0x382   :  { %v2978_v25 = vpop.xlane.xlu1 %2977  ;;  %v3170_v35 = vmul.f32 1.442695, %v3092_v57  ;;  %v3186_v52 = vmul.f32 1.442695, %v3100_v63  ;;  %v11853_v0 = vmax.f32 %v9876_v38, %v9872_v42  ;;  %v3140_v9 = vsub.f32 %v9835_v16, %v3068_v31 }
 0x383   :  { %v3059_v27 = vsel %vm2993_vm13, %v2978_v25, -inf  ;;  %v3312_v28 = vadd.f32 %v3311_v59, %v3310_v2  ;;  %v3202_v44 = vmul.f32 1.442695, %v3108_v1  ;;  %v3218_v15 = vmul.f32 1.442695, %v3116_v11  ;;  %v11856_v2 = vld [vmem:[#allocation8_spill] sm:$0xff] }
 0x384   :  { %v3060_v26 = vmax.f32 %v11853_v0, %v3059_v27  ;;  %v3148_v21 = vsub.f32 %v9905_v51, %v3068_v31  ;;  %8449 = vpow2.f32 %v3170_v35  ;;  %v3234_v8 = vmul.f32 1.442695, %v3124_v58  ;;  %v11857_v59 = vld [vmem:[#allocation23_spill] sm:$0xff] }
 0x385   :  { %v3314_v45 = vadd.f32 %v3313_v37, %v3312_v28  ;;  %v3156_v49 = vsub.f32 %v9949_v61, %v3068_v31  ;;  %8451 = vpow2.f32 %v3186_v52  ;;  %v3317_v33 = vsel %vm2767_vm5, %v8448_v18, 0.0 }
 0x386   :  { %v3091_v62 = vsub.f32 %v9476_v5, %v3060_v26  ;;  %v3099_v34 = vsub.f32 -1e+30, %v3060_v26  ;;  %8453 = vpow2.f32 %v3202_v44  ;;  %v3114_v16 = vsub.f32 %v9640_v60, %v10008_v47 }
 0x387   :  { %v3316_v24 = vadd.f32 %v3315_v53, %v3314_v45  ;;  %8455 = vpow2.f32 %v3218_v15  ;;  %v3250_v43 = vmul.f32 1.442695, %v3132_v30  ;;  %v3266_v46 = vmul.f32 1.442695, %v3140_v9 }
 0x388   :  { %v3168_v42 = vmul.f32 1.442695, %v3091_v62  ;;  %v3184_v38 = vmul.f32 1.442695, %v3099_v34  ;;  %8457 = vpow2.f32 %v3234_v8  ;;  %v3122_v5 = vsub.f32 %v9685_v39, %v10008_v47 }
 0x389   :  { %v3318_v51 = vadd.f32 %v3317_v33, %v3316_v24  ;;  %v3282_v3 = vmul.f32 1.442695, %v3148_v21  ;;  %v3298_v23 = vmul.f32 1.442695, %v3156_v49  ;;  %v3138_v55 = vsub.f32 %v11855_v48, %v10008_v47  ;;  %v11859_v49 = vld [vmem:[#allocation5_spill] sm:$0xff]  ;;  %v11860_v33 = vld [vmem:[#allocation6_spill] sm:$0xff] }
 0x38a   :  { %8459 = vpow2.f32 %v3168_v42  ;;  %v2984_v61 = vpop.xlane.xlu1 %2983  ;;  %v8450_v12 = vpop.eup %8449  ;;  %v3166_v63 = vmul.f32 1.442695, %v3090_v13  ;;  %v3146_v37 = vsub.f32 %v11857_v59, %v10008_v47  ;;  %v11858_v13 = vld [vmem:[#allocation24_spill] sm:$0xff]  ;;  %v3198_v18 = vmul.f32 1.442695, %v3106_v50 }
 0x38b   :  { %8461 = vpow2.f32 %v3184_v38  ;;  %v3438_v60 = vsel %vm2767_vm5, %v3318_v51, 0.0  ;;  %v3462_v20 = vpack.c.bf16 %v3318_v51, %v3318_v51  ;;  %v3084_v10 = vsel %vm2993_vm13, %v2984_v61, -inf  ;;  %v8452_v36 = vpop.eup %8451  ;;  %v11861_v38 = vld [vmem:[#allocation11_spill] sm:$0xff]  ;;  %v11862_v51 = vld [vmem:[#allocation12_spill] sm:$0xff] }
 0x38c   :  { %3439 = vadd.xlane.f32.xlu0 %v3438_v60  ;;  %v3085_v39 = vmax.f32 %v3083_v7, %v3084_v10  ;;  %8463 = vpow2.f32 %v3250_v43  ;;  %v3404_v31 = vsel %vm2767_vm5, %v8450_v12, 0.0  ;;  %v8454_v32 = vpop.eup %8453  ;;  %v3405_v57 = vsel %vm2767_vm5, %v8452_v36, 0.0  ;;  %v11864_v10 = vld [vmem:[#allocation18_spill] sm:$0xff] }
 0x38d   :  { %v3513_v29 = vunpack.c.l.b16 %v3462_v20  ;;  %8465 = vpow2.f32 %v3266_v46  ;;  %v8456_v1 = vpop.eup %8455  ;;  %v3406_v19 = vadd.f32 %v3405_v57, %v3404_v31  ;;  %v3407_v25 = vsel %vm2767_vm5, %v8454_v32, 0.0 }
 0x38e   :  { %v3093_v11 = vsub.f32 %v11856_v2, %v3085_v39  ;;  %v3101_v56 = vsub.f32 -1e+30, %v3085_v39  ;;  %8467 = vpow2.f32 %v3282_v3  ;;  %v8458_v7 = vpop.eup %8457  ;;  %v3154_v28 = vsub.f32 %v11858_v13, %v10008_v47 }
 0x38f   :  { %v3515_v58 = vpack.c.b16 %v10011_v22, %v3513_v29  ;;  %8469 = vpow2.f32 %v3298_v23  ;;  %v3408_v41 = vadd.f32 %v3407_v25, %v3406_v19  ;;  %v3409_v52 = vsel %vm2767_vm5, %v8456_v1, 0.0  ;;  %v11863_v23 = vld [vmem:[#allocation17_spill] sm:$0xff] }
 0x390   :  { %v8460_v53 = vpop.eup %8459  ;;  %v3172_v30 = vmul.f32 1.442695, %v3093_v11  ;;  %v3188_v27 = vmul.f32 1.442695, %v3101_v56  ;;  %8471 = vpow2.f32 %v3166_v63  ;;  %v3182_v22 = vmul.f32 1.442695, %v3098_v6 }
 0x391   :  { %v8462_v35 = vpop.eup %8461  ;;  %8060 = vmatmul.msk.bf16.vlgmr.msra.gmra.mxu2 %vm2767_vm5, %v3515_v58  ;;  %v3410_v26 = vadd.f32 %v3409_v52, %v3408_v41  ;;  %v3214_v9 = vmul.f32 1.442695, %v3114_v16  ;;  %v3230_v44 = vmul.f32 1.442695, %v3122_v5  ;;  %v3411_v45 = vsel %vm2767_vm5, %v8458_v7, 0.0 }
 0x392   :  { %v8464_v0 = vpop.eup %8463  ;;  %8473 = vpow2.f32 %v3172_v30  ;;  %v3246_v21 = vmul.f32 1.442695, %v3130_v4  ;;  %v3262_v8 = vmul.f32 1.442695, %v3138_v55  ;;  %v3387_v34 = vsel %vm2771_vm4, %v8460_v53, 0.0  ;;  %v11865_v53 = vld [vmem:[#allocation21_spill] sm:$0xff] }
 0x393   :  { %v8466_v15 = vpop.eup %8465  ;;  %8475 = vpow2.f32 %v3188_v27  ;;  %v10080_v14 = vsel %vm2771_vm4, %v8462_v35, 0.0  ;;  %v3412_v6 = vadd.f32 %v3411_v45, %v3410_v26  ;;  %v3278_v17 = vmul.f32 1.442695, %v3146_v37 }
 0x394   :  { %v8468_v62 = vpop.eup %8467  ;;  %v3413_v50 = vsel %vm2767_vm5, %v8464_v0, 0.0  ;;  %8477 = vpow2.f32 %v3182_v22  ;;  %v3088_v24 = vsub.f32 %v11859_v49, %v10017_v54  ;;  %v3096_v16 = vsub.f32 %v11860_v33, %v10017_v54  ;;  %v11866_v22 = vld [vmem:[#allocation22_spill] sm:$0xff] }
 0x395   :  { %v8470_v47 = vpop.eup %8469  ;;  %v3414_v42 = vadd.f32 %v3413_v50, %v3412_v6  ;;  %8479 = vpow2.f32 %v3198_v18  ;;  %v3104_v43 = vsub.f32 %v11861_v38, %v10017_v54  ;;  %v3112_v46 = vsub.f32 %v11862_v51, %v10017_v54 }
 0x396   :  { %v8472_v5 = vpop.eup %8471  ;;  %v3389_v61 = vadd.f32 %v10080_v14, %v3387_v34  ;;  %v3415_v3 = vsel %vm2767_vm5, %v8466_v15, 0.0  ;;  %8481 = vpow2.f32 %v3214_v9  ;;  %v3120_v40 = vsub.f32 %v11863_v23, %v10017_v54 }
 0x397   :  { %v3416_v12 = vadd.f32 %v3415_v3, %v3414_v42  ;;  %v3417_v60 = vsel %vm2767_vm5, %v8468_v62, 0.0  ;;  %v3419_v20 = vsel %vm2767_vm5, %v8470_v47, 0.0  ;;  %v3128_v36 = vsub.f32 %v11864_v10, %v10017_v54 }
 0x398   :  { %v8474_v4 = vpop.eup %8473  ;;  %8483 = vpow2.f32 %v3230_v44  ;;  %v3162_v48 = vmul.f32 1.442695, %v3088_v24  ;;  %v3178_v55 = vmul.f32 1.442695, %v3096_v16  ;;  %v3370_v57 = vsel %vm2767_vm5, %v8472_v5, 0.0 }
 0x399   :  { %v8476_v39 = vpop.eup %8475  ;;  %v3421_v31 = vsel %vm2771_vm4, %v8474_v4, 0.0  ;;  %v3418_v29 = vadd.f32 %v3417_v60, %v3416_v12  ;;  %8485 = vpow2.f32 %v3246_v21  ;;  %v3194_v2 = vmul.f32 1.442695, %v3104_v43  ;;  %v11867_v21 = vld [vmem:[#allocation27_spill] sm:$0xff] }
 0x39a   :  { %v10101_v32 = vsel %vm2771_vm4, %v8476_v39, 0.0  ;;  %v8478_v63 = vpop.eup %8477  ;;  %8487 = vpow2.f32 %v3262_v8  ;;  %v3210_v11 = vmul.f32 1.442695, %v3112_v46  ;;  %v3391_v58 = vadd.f32 %v3389_v61, %v10080_v14 }
 0x39b   :  { %v3423_v1 = vadd.f32 %v10101_v32, %v3421_v31  ;;  %v8480_v56 = vpop.eup %8479  ;;  %v10105_v19 = vadd.f32 %v3419_v20, %v3418_v29  ;;  %8489 = vpow2.f32 %v3278_v17  ;;  %v3371_v7 = vsel %vm2767_vm5, %v8478_v63, 0.0 }
 0x39c   :  { %v8482_v25 = vpop.eup %8481  ;;  %v3294_v59 = vmul.f32 1.442695, %v3154_v28  ;;  %v3372_v37 = vadd.f32 %v3371_v7, %v3370_v57  ;;  %v3136_v30 = vsub.f32 %v11865_v53, %v10017_v54  ;;  %8491 = vpow2.f32 %v3162_v48 }
 0x39d   :  { %v3456_v27 = vsel %vm2767_vm5, %v10105_v19, 0.0  ;;  %v3373_v41 = vsel %vm2767_vm5, %v8480_v56, 0.0  ;;  %8493 = vpow2.f32 %v3178_v55  ;;  %v3226_v13 = vmul.f32 1.442695, %v3120_v40 }
 0x39e   :  { %v8484_v35 = vpop.eup %8483  ;;  %3457 = vadd.xlane.f32.xlu0 %v3456_v27  ;;  %v3374_v52 = vadd.f32 %v3373_v41, %v3372_v37  ;;  %v3144_v18 = vsub.f32 %v11866_v22, %v10017_v54  ;;  %8495 = vpow2.f32 %v3194_v2  ;;  %v3393_v28 = vadd.f32 %v3391_v58, %v10080_v14 }
 0x39f   :  { %v8486_v0 = vpop.eup %8485  ;;  %v3375_v26 = vsel %vm2767_vm5, %v8482_v25, 0.0  ;;  %8497 = vpow2.f32 %v3210_v11  ;;  %v3242_v9 = vmul.f32 1.442695, %v3128_v36  ;;  %v3425_v44 = vadd.f32 %v3423_v1, %v10101_v32  ;;  %v11868_v36 = vld [vmem:[#allocation46_spill] sm:$0xff] }
 0x3a0   :  { %v8488_v15 = vpop.eup %8487  ;;  %8499 = vpow2.f32 %v3294_v59  ;;  %v3376_v45 = vadd.f32 %v3375_v26, %v3374_v52  ;;  %v3152_v8 = vsub.f32 %v11867_v21, %v10017_v54  ;;  %v3395_v62 = vadd.f32 %v3393_v28, %v10080_v14 }
 0x3a1   :  { %v8490_v34 = vpop.eup %8489  ;;  %v3377_v6 = vsel %vm2767_vm5, %v8484_v35, 0.0  ;;  %8501 = vpow2.f32 %v3226_v13  ;;  %v3258_v17 = vmul.f32 1.442695, %v3136_v30  ;;  %v3427_v47 = vadd.f32 %v3425_v44, %v10101_v32 }
 0x3a2   :  { %v8492_v50 = vpop.eup %8491  ;;  %v3378_v49 = vadd.f32 %v3377_v6, %v3376_v45  ;;  %v3274_v24 = vmul.f32 1.442695, %v3144_v18  ;;  %v3397_v33 = vadd.f32 %v3395_v62, %v10080_v14  ;;  %v3379_v42 = vsel %vm2767_vm5, %v8486_v0, 0.0  ;;  %v11869_v62 = vld [vmem:[#allocation26_spill] sm:$0xff] }
 0x3a3   :  { %v8494_v16 = vpop.eup %8493  ;;  %8503 = vpow2.f32 %v3242_v9  ;;  %v3336_v54 = vsel %vm2767_vm5, %v8492_v50, 0.0  ;;  %v3429_v38 = vadd.f32 %v3427_v47, %v10101_v32  ;;  %v3290_v46 = vmul.f32 1.442695, %v3152_v8 }
 0x3a4   :  { %v8496_v43 = vpop.eup %8495  ;;  %v3380_v51 = vadd.f32 %v3379_v42, %v3378_v49  ;;  %v3337_v5 = vsel %vm2767_vm5, %v8494_v16, 0.0  ;;  %v3399_v61 = vadd.f32 %v3397_v33, %v10080_v14  ;;  %v3381_v23 = vsel %vm2767_vm5, %v8488_v15, 0.0  ;;  %v3449_v16 = vpop.xlane.xlu0 %3448 }
 0x3a5   :  { %v8498_v3 = vpop.eup %8497  ;;  %8505 = vpow2.f32 %v3258_v17  ;;  %v3338_v40 = vadd.f32 %v3337_v5, %v3336_v54  ;;  %v3431_v4 = vadd.f32 %v3429_v38, %v10101_v32  ;;  %v3339_v20 = vsel %vm2767_vm5, %v8496_v43, 0.0  ;;  %v3443_v54 = vpop.xlane.xlu1 %3442  ;;  %v3648_v38 = vld [vmem:[%s11643_s4] sm:$0xf] }
 0x3a6   :  { %v8500_v12 = vpop.eup %8499  ;;  %v3382_v60 = vadd.f32 %v3381_v23, %v3380_v51  ;;  %v3401_v10 = vadd.f32 %v3399_v61, %v10080_v14  ;;  %6656 = vmax.xlane.f32.xlu0 %v11868_v36  ;;  %v3383_v31 = vsel %vm2767_vm5, %v8490_v34, 0.0  ;;  %8507 = vpow2.f32 %v3274_v24 }
 0x3a7   :  { %v8502_v39 = vpop.eup %8501  ;;  %v3340_v48 = vadd.f32 %v3339_v20, %v3338_v40  ;;  %v3433_v55 = vadd.f32 %v3431_v4, %v10101_v32  ;;  %v3341_v57 = vsel %vm2767_vm5, %v8498_v3, 0.0  ;;  %v3385_v2 = vsel %vm2767_vm5, %v8500_v12, 0.0 }
 0x3a8   :  { %v3384_v29 = vadd.f32 %v3383_v31, %v3382_v60  ;;  %v3403_v63 = vadd.f32 %v3401_v10, %v10080_v14  ;;  %8509 = vpow2.f32 %v3290_v46  ;;  %v3343_v58 = vsel %vm2767_vm5, %v8502_v39, 0.0 }
 0x3a9   :  { %v8504_v1 = vpop.eup %8503  ;;  %v3342_v11 = vadd.f32 %v3341_v57, %v3340_v48  ;;  %v3435_v56 = vadd.f32 %v3433_v55, %v10101_v32  ;;  %v3468_v37 = vpack.c.bf16 %v10105_v19, %v10105_v19  ;;  %v3465_v34 = vpack.c.bf16 %v11869_v62, %v11869_v62 }
 0x3aa   :  { %v3386_v7 = vadd.f32 %v3385_v2, %v3384_v29  ;;  %v3467_v25 = vpack.c.bf16 %v3403_v63, %v3403_v63  ;;  %v3345_v41 = vsel %vm2767_vm5, %v8504_v1, 0.0  ;;  %v3453_v33 = vsel %vm2771_vm4, %v3403_v63, 0.0  ;;  %v3649_v29 = vld [vmem:[%s11643_s4 + $0x4] sm:$0xf] }
 0x3ab   :  { %v8506_v59 = vpop.eup %8505  ;;  %v3344_v53 = vadd.f32 %v3343_v58, %v3342_v11  ;;  %v3437_v30 = vadd.f32 %v3435_v56, %v10101_v32  ;;  %v3604_v19 = vunpack.c.l.b16 %v3468_v37  ;;  %v3545_v50 = vunpack.c.l.b16 %v3465_v34 }
 0x3ac   :  { %v3450_v14 = vsel %vm2767_vm5, %v3386_v7, 0.0  ;;  %v3466_v27 = vpack.c.bf16 %v3386_v7, %v3386_v7  ;;  %v3575_v13 = vunpack.c.l.b16 %v3467_v25  ;;  %v8508_v35 = vpop.eup %8507  ;;  %v3347_v28 = vsel %vm2767_vm5, %v8506_v59, 0.0 }
 0x3ad   :  { %3451 = vadd.xlane.f32.xlu1 %v3450_v14  ;;  %v3346_v52 = vadd.f32 %v3345_v41, %v3344_v53  ;;  %v3469_v22 = vpack.c.bf16 %v3437_v30, %v3437_v30  ;;  %v3349_v32 = vsel %vm2767_vm5, %v8508_v35, 0.0  ;;  %v3459_v8 = vsel %vm2771_vm4, %v3437_v30, 0.0 }
 0x3ae   :  { %v3574_v18 = vunpack.c.l.b16 %v3466_v27  ;;  %6686 = vmax.xlane.f32.xlu0 %v11868_v36  ;;  %v8510_v0 = vpop.eup %8509  ;;  %v3667_v51 = vsel %vm2993_vm13, %v3648_v38, 0  ;;  %v3714_v63 = vsel %vm2993_vm13, %v3649_v29, 0  ;;  %v11871_v29 = vld [vmem:[#allocation2_spill] sm:$0xff] }
 0x3af   :  { %v3348_v26 = vadd.f32 %v3347_v28, %v3346_v52  ;;  %v3605_v9 = vunpack.c.l.b16 %v3469_v22  ;;  %v3351_v21 = vsel %vm2767_vm5, %v8510_v0, 0.0  ;;  %3676 = vmatpush.bf16.msrb.mxu2 %v3667_v51  ;;  %3698 = vmatpush.bf16.msra.mxu3 %v3667_v51 }
 0x3b0   :  { %v3576_v44 = vpack.c.b16 %v3575_v13, %v3574_v18  ;;  %3723 = vmatpush.bf16.msra.mxu0 %v3714_v63  ;;  %3745 = vmatpush.bf16.msra.mxu1 %v3714_v63 }
 0x3b1   :  { %v3350_v15 = vadd.f32 %v3349_v32, %v3348_v26  ;;  %v3606_v45 = vpack.c.b16 %v3605_v9, %v3604_v19 }
 0x3b2   :  { %8062 = vmatmul.msk.bf16.vlgmr.msrb.gmra.mxu0 %vm2767_vm5, %v3576_v44 }
 0x3b3   :  { %v3352_v6 = vadd.f32 %v3351_v21, %v3350_v15  ;;  %8063 = vmatmul.msk.bf16.vlgmr.msrb.gmra.mxu1 %vm2767_vm5, %v3606_v45 }
 0x3b5   :  { %v3444_v17 = vsel %vm2767_vm5, %v3352_v6, 0.0  ;;  %v3464_v47 = vpack.c.bf16 %v3352_v6, %v3352_v6  ;;  %3460 = vadd.xlane.f32.xlu1 %v3459_v8 }
 0x3b6   :  { %3445 = vadd.xlane.f32.xlu2 %v3444_v17  ;;  %6752 = vmax.xlane.f32.xlu0 %v11868_v36 }
 0x3b7   :  { %v3544_v49 = vunpack.c.l.b16 %v3464_v47 }
 0x3b9   :  { %v3546_v24 = vpack.c.b16 %v3545_v50, %v3544_v49 }
 0x3bb   :  { %8061 = vmatmul.msk.bf16.vlgmr.msrb.gmra.mxu3 %vm2767_vm5, %v3546_v24 }
 0x3bd   :  { %6662 = vmax.xlane.f32.xlu1 %v11868_v36 }
 0x3be   :  { %3454 = vadd.xlane.f32.xlu2 %v3453_v33  ;;  %6758 = vmax.xlane.f32.xlu0 %v11868_v36 }
 0x3c5   :  { %6704 = vmax.xlane.f32.xlu1 %v11868_v36 }
 0x3c6   :  { %6680 = vmax.xlane.f32.xlu2 %v11868_v36  ;;  %6782 = vmax.xlane.f32.xlu0 %v11868_v36 }
 0x3cd   :  { %6710 = vmax.xlane.f32.xlu1 %v11868_v36 }
 0x3ce   :  { %6728 = vmax.xlane.f32.xlu2 %v11868_v36  ;;  %6806 = vmax.xlane.f32.xlu0 %v11868_v36 }
 0x3d5   :  { %6776 = vmax.xlane.f32.xlu1 %v11868_v36 }
 0x3d6   :  { %6734 = vmax.xlane.f32.xlu2 %v11868_v36  ;;  %6830 = vmax.xlane.f32.xlu0 %v11868_v36 }
 0x3dd   :  { %6800 = vmax.xlane.f32.xlu1 %v11868_v36 }
 0x3de   :  { %6668 = vmax.xlane.f32.xlu2 %v11868_v36  ;;  %6764 = vmax.xlane.f32.xlu0 %v11868_v36 }
 0x3e5   :  { %6674 = vmax.xlane.f32.xlu1 %v11868_v36 }
 0x3e6   :  { %6692 = vmax.xlane.f32.xlu2 %v11868_v36  ;;  %6770 = vmax.xlane.f32.xlu0 %v11868_v36 }
 0x3ed   :  { %6824 = vmax.xlane.f32.xlu1 %v11868_v36 }
 0x3ee   :  { %6716 = vmax.xlane.f32.xlu2 %v11868_v36 }
 0x3f5   :  { %6698 = vmax.xlane.f32.xlu1 %v11868_v36 }
 0x3f6   :  { %6740 = vmax.xlane.f32.xlu2 %v11868_v36 }
 0x3fd   :  { %6722 = vmax.xlane.f32.xlu1 %v11868_v36 }
 0x3fe   :  { %6746 = vmax.xlane.f32.xlu2 %v11868_v36 }
 0x3ff   :  { %v3440_v42 = vpop.xlane.xlu0 %3439 }
 0x400   :  { %8511 = vrcp.f32 %v3440_v42 }
 0x401   :  { %8513 = vrcp.f32 %v3443_v54 }
 0x405   :  { %6788 = vmax.xlane.f32.xlu1 %v11868_v36 }
 0x406   :  { %6812 = vmax.xlane.f32.xlu2 %v11868_v36  ;;  %v8512_v46 = vpop.eup %8511 }
 0x407   :  { %v8514_v61 = vpop.eup %8513 }
 0x40d   :  { %6794 = vmax.xlane.f32.xlu1 %v11868_v36 }
 0x411   :  { %v3458_v31 = vpop.xlane.xlu0 %3457 }
 0x412   :  { %8515 = vrcp.f32 %v3458_v31  ;;  %v11870_v31 = vld [vmem:[#allocation3_spill] sm:$0xff] }
 0x414   :  { %v3537_v43 = vpop.f32.mrf.mxu2 }
 0x415   :  { %v3640_v5 = vmul.f32 %v8512_v46, %v3537_v43 }
 0x417   :  { %v3650_v23 = vpack.c.bf16 %v3640_v5, %v3640_v5 }
 0x418   :  { %v8516_v2 = vpop.eup %8515 }
 0x419   :  { %v3660_v12 = vunpack.c.l.b16 %v3650_v23 }
 0x41c   :  { %v3539_v3 = vpop.f32.mrf.mxu2 }
 0x41d   :  { %v3641_v40 = vmul.f32 %v8514_v61, %v3539_v3 }
 0x41f   :  { %v3651_v4 = vpack.c.bf16 %v3641_v40, %v3641_v40 }
 0x420   :  { %v3452_v10 = vpop.xlane.xlu1 %3451 }
 0x421   :  { %v3661_v60 = vunpack.c.l.b16 %v3651_v4  ;;  %8517 = vrcp.f32 %v3452_v10 }
 0x423   :  { %v3662_v20 = vpack.c.b16 %v3661_v60, %v3660_v12  ;;  %v8642_v12 = vmov 24.0  }
 0x425   :  { %8064 = vmatmul.msk.bf16.vlgmr.msrb.gmra.mxu2 %vm1518_vm3, %v3662_v20 }
 0x427   :  { %v8518_v11 = vpop.eup %8517 }
 0x428   :  { %v3461_v48 = vpop.xlane.xlu1 %3460 }
 0x429   :  { %v3446_v39 = vpop.xlane.xlu2 %3445  ;;  %8519 = vrcp.f32 %v3461_v48 }
 0x42f   :  { %v3597_v55 = vpop.f32.mrf.mxu0  ;;  %v8520_v58 = vpop.eup %8519 }
 0x430   :  { %v3627_v57 = vpop.f32.mrf.mxu1  ;;  %v3644_v56 = vmul.f32 %v8518_v11, %v3597_v55 }
 0x431   :  { %v3455_v1 = vpop.xlane.xlu2 %3454  ;;  %v3646_v7 = vmul.f32 %v8516_v2, %v3627_v57 }
 0x432   :  { %8521 = vrcp.f32 %v3455_v1  ;;  %v3654_v53 = vpack.c.bf16 %v3644_v56, %v3644_v56  ;;  %v11872_v56 = vld [vmem:[#allocation4_spill] sm:$0xff] }
 0x433   :  { %v3656_v14 = vpack.c.bf16 %v3646_v7, %v3646_v7  ;;  %8523 = vrcp.f32 %v3446_v39 }
 0x434   :  { %v3707_v35 = vunpack.c.l.b16 %v3654_v53  ;;  %8525 = vrcp.f32 %v3449_v16 }
 0x435   :  { %v3732_v22 = vunpack.c.l.b16 %v3656_v14  ;;  %8527 = vrcp.f32 %v8642_v12 }
 0x437   :  { %v3599_v25 = vpop.f32.mrf.mxu0 }
 0x438   :  { %v8522_v59 = vpop.eup %8521  ;;  %v3629_v37 = vpop.f32.mrf.mxu1 }
 0x439   :  { %v3645_v30 = vmul.f32 %v8522_v59, %v3599_v25  ;;  %v3647_v27 = vmul.f32 %v8520_v58, %v3629_v37  ;;  %v8524_v26 = vpop.eup %8523 }
 0x43a   :  { %v8526_v32 = vpop.eup %8525 }
 0x43b   :  { %v3655_v41 = vpack.c.bf16 %v3645_v30, %v3645_v30  ;;  %v3657_v13 = vpack.c.bf16 %v3647_v27, %v3647_v27  ;;  %v8528_v55 = vpop.eup %8527 }
 0x43c   :  { %v3805_v63 = vmul.f32 24.0, %v8528_v55  ;;  %vm3809_vm0 = vweird.f32 %v8528_v55 }
 0x43d   :  { %v3708_v52 = vunpack.c.l.b16 %v3655_v41  ;;  %v3733_v18 = vunpack.c.l.b16 %v3657_v13 }
 0x43e   :  { %v3567_v28 = vpop.f32.mrf.mxu3  ;;  %v3806_v25 = vsub.f32 1.0, %v3805_v63  ;;  %v8377_v63 = vld [vmem:[%s11647_s9] sm:$0xff] }
 0x43f   :  { %v3709_v0 = vpack.c.b16 %v3708_v52, %v3707_v35  ;;  %v3734_v19 = vpack.c.b16 %v3733_v18, %v3732_v22  ;;  %v3642_v9 = vmul.f32 %v8524_v26, %v3567_v28 }
 0x440   :  { %v3807_v30 = vmul.f32 %v8528_v55, %v3806_v25 }
 0x441   :  { %8066 = vmatmul.msk.bf16.vlgmr.msra.gmra.mxu0 %vm1518_vm3, %v3709_v0  ;;  %8067 = vmatmul.msk.bf16.vlgmr.msra.gmra.mxu1 %vm1518_vm3, %v3734_v19  ;;  %v3652_v15 = vpack.c.bf16 %v3642_v9, %v3642_v9 }
 0x442   :  { %v3808_v41 = vadd.f32 %v8528_v55, %v3807_v30 }
 0x443   :  { %v3685_v8 = vunpack.c.l.b16 %v3652_v15 }
 0x444   :  { %v10212_v52 = vsel %vm3809_vm0, %v8528_v55, %v3808_v41  ;;  %v8380_v55 = vld [vmem:[%s11647_s9 + $0x18] sm:$0xff] }
 0x445   :  { %11873 = vst [vmem:[#allocation29_spill] sm:$0xff] %v10212_v52  ;;  %3942 = vmatpush.bf16.msrb.mxu3 %v8380_v55 }
 0x446   :  { %v3569_v44 = vpop.f32.mrf.mxu3 }
 0x447   :  { %v3643_v45 = vmul.f32 %v8526_v32, %v3569_v44 }
 0x449   :  { %v3653_v21 = vpack.c.bf16 %v3643_v45, %v3643_v45 }
 0x44b   :  { %v3686_v62 = vunpack.c.l.b16 %v3653_v21 }
 0x44d   :  { %v3687_v34 = vpack.c.b16 %v3686_v62, %v3685_v8 }
 0x44f   :  { %8065 = vmatmul.msk.bf16.vlgmr.msra.gmra.mxu3 %vm1518_vm3, %v3687_v34 }
 0x4a8   :  { %v3678_v6 = vpop.f32.mrf.mxu2 }
 0x4a9   :  { %v3752_v47 = vsel %vm189_vm2, %v3678_v6, 0.0 }
 0x4b0   :  { %v3680_v33 = vpop.f32.mrf.mxu2 }
 0x4b1   :  { %v3756_v42 = vsel %vm11694_vm8, %v3680_v33, 0.0 }
 0x4be   :  { %v3725_v17 = vpop.f32.mrf.mxu0  ;;  %v3747_v43 = vpop.f32.mrf.mxu1 }
 0x4bf   :  { %v3753_v50 = vsel %vm189_vm2, %v3725_v17, 0.0  ;;  %v3760_v51 = vsel %vm189_vm2, %v3747_v43, 0.0 }
 0x4c0   :  { %v3754_v49 = vadd.f32 %v3753_v50, %v3752_v47  ;;  %v8376_v47 = vld [vmem:[%s11645_s7] sm:$0xff] }
 0x4c1   :  { %3883 = vmatpush.bf16.msra.mxu2 %v8376_v47 }
 0x4c2   :  { %v3769_v24 = vrot.slane %v3754_v49, 4  ;;  %3771 = vst [vmem:[#allocation1] ss:$2 sm:$0xff] %v3754_v49 }
 0x4c4   :  { %3773 = vst [vmem:[#allocation1 + $0x1] ss:$2 sm:$0xff] %v3769_v24 }
 0x4c6   :  { %v3727_v16 = vpop.f32.mrf.mxu0  ;;  %v3749_v23 = vpop.f32.mrf.mxu1 }
 0x4c7   :  { %v3757_v54 = vsel %vm11694_vm8, %v3727_v16, 0.0  ;;  %v3763_v40 = vsel %vm11694_vm8, %v3749_v23, 0.0 }
 0x4c8   :  { %v3758_v38 = vadd.f32 %v3757_v54, %v3756_v42 }
 0x4ca   :  { %3775 = vst [vmem:[#allocation1 + $0x10] ss:$2 sm:$0xff] %v3758_v38 }
 0x4cb   :  { %v3782_v39 = vld.sshfl [vmem:[#allocation1] sm:$0xff pattern:$0x75316420] }
 0x4cc   :  { %v3788_v57 = vadd.f32 %v3782_v39, %v11871_v29  ;;  %v8379_v29 = vld [vmem:[%s11647_s9 + $0x10] sm:$0xff] }
 0x4cd   :  { %3943 = vmatpush.bf16.msrb.mxu3 %v8379_v29 }
 0x4ce   :  { %v3793_v11 = vsel %vm189_vm2, %v3788_v57, 0.0 }
 0x4d2   :  { %v3700_v46 = vpop.f32.mrf.mxu3 }
 0x4d3   :  { %v3759_v5 = vsel %vm189_vm2, %v3700_v46, 0.0  ;;  %v8411_v46 = vld [vmem:[%s11640_s5] ss:$0 sm:$0xff] }
 0x4d4   :  { %v3761_v61 = vadd.f32 %v3760_v51, %v3759_v5 }
 0x4d6   :  { %v3770_v3 = vrot.slane %v3761_v61, 4  ;;  %3777 = vst [vmem:[#allocation1 + $0x11] ss:$2 sm:$0xff] %v3761_v61  ;;  %v8412_v61 = vld [vmem:[%s11641_s6] ss:$0 sm:$0xff] }
 0x4d8   :  { %3779 = vst [vmem:[#allocation1 + $0x20] ss:$2 sm:$0xff] %v3770_v3 }
 0x4da   :  { %v3702_v4 = vpop.f32.mrf.mxu3 }
 0x4db   :  { %v3762_v60 = vsel %vm11694_vm8, %v3702_v4, 0.0 }
 0x4dc   :  { %v3764_v20 = vadd.f32 %v3763_v40, %v3762_v60 }
 0x4dd   :  { %v3783_v10 = vld.sshfl [vmem:[#allocation1 + $0x10] sm:$0xff pattern:$0x75316420] }
 0x4de   :  { %3781 = vst [vmem:[#allocation1 + $0x21] ss:$2 sm:$0xff] %v3764_v20  ;;  %v3789_v48 = vadd.f32 %v3783_v10, %v11870_v31 }
 0x4e0   :  { %v3794_v1 = vsel %vm189_vm2, %v3789_v48, 0.0 }
 0x4e1   :  { %v3795_v58 = vadd.f32 %v3794_v1, %v3793_v11 }
 0x4e5   :  { %v3784_v2 = vld.sshfl [vmem:[#allocation1 + $0x20] sm:$0xff pattern:$0x75316420] }
 0x4e6   :  { %v3790_v7 = vadd.f32 %v3784_v2, %v11872_v56  ;;  %v8415_v2 = vld [vmem:[%s11644_s8] ss:$0 sm:$0xff] }
 0x4e8   :  { %v3796_v59 = vsel %vm189_vm2, %v3790_v7, 0.0 }
 0x4e9   :  { %v3797_v37 = vadd.f32 %v3796_v59, %v3795_v58 }
 0x4eb   :  { %v3798_v53 = vrot.slane %v3797_v37, 4 }
 0x4ed   :  { %v3799_v14 = vadd.f32 %v3798_v53, %v3797_v37 }
 0x4ef   :  { %v3800_v27 = vrot.slane %v3799_v14, 2 }
 0x4f1   :  { %v3801_v13 = vadd.f32 %v3800_v27, %v3799_v14 }
 0x4f3   :  { %v3802_v35 = vrot.slane %v3801_v13, 1 }
 0x4f5   :  { %v3803_v22 = vadd.f32 %v3802_v35, %v3801_v13 }
 0x4f7   :  { %v3811_v18 = vmul.f32 %v10212_v52, %v3803_v22 }
 0x4f9   :  { %v3812_v28 = vsub.f32 %v3788_v57, %v3811_v18  ;;  %v3813_v0 = vsub.f32 %v3789_v48, %v3811_v18  ;;  %v3814_v19 = vsub.f32 %v3790_v7, %v3811_v18  ;;  %v8378_v57 = vld [vmem:[%s11647_s9 + $0x8] sm:$0xff]  ;;  %v8416_v18 = vld [vmem:[%s11646_s10] ss:$0 sm:$0xff] }
 0x4fa   :  { %3944 = vmatpush.bf16.msrb.mxu3 %v8378_v57 }
 0x4fb   :  { %v3815_v26 = vmul.f32 %v3812_v28, %v3812_v28  ;;  %v3816_v9 = vmul.f32 %v3813_v0, %v3813_v0  ;;  %v3817_v32 = vmul.f32 %v3814_v19, %v3814_v19 }
 0x4fd   :  { %v3818_v44 = vsel %vm189_vm2, %v3815_v26, 0.0  ;;  %v3819_v15 = vsel %vm189_vm2, %v3816_v9, 0.0  ;;  %v3821_v21 = vsel %vm189_vm2, %v3817_v32, 0.0 }
 0x4fe   :  { %v3820_v45 = vadd.f32 %v3819_v15, %v3818_v44  ;;  %3945 = vmatpush.bf16.msrb.mxu3 %v8377_v63 }
 0x500   :  { %v3822_v8 = vadd.f32 %v3821_v21, %v3820_v45 }
 0x502   :  { %v3823_v62 = vrot.slane %v3822_v8, 4 }
 0x504   :  { %v3824_v34 = vadd.f32 %v3823_v62, %v3822_v8 }
 0x506   :  { %v3825_v6 = vrot.slane %v3824_v34, 2 }
 0x508   :  { %v3826_v17 = vadd.f32 %v3825_v6, %v3824_v34 }
 0x50a   :  { %v3827_v50 = vrot.slane %v3826_v17, 1 }
 0x50c   :  { %v3828_v49 = vadd.f32 %v3827_v50, %v3826_v17 }
 0x50e   :  { %v3829_v24 = vmul.f32 %v3828_v49, %v10212_v52 }
 0x510   :  { %v3830_v33 = vadd.f32 1e-05, %v3829_v24 }
 0x512   :  { %8529 = vrsqrt.f32 %v3830_v33  ;;  %vm3837_vm0 = vweird.f32 %v3830_v33 }
 0x518   :  { %v8530_v16 = vpop.eup %8529 }
 0x519   :  { %v3832_v42 = vmul.f32 %v8530_v16, %v3830_v33  ;;  %vm3838_vm1 = vweird.f32 %v8530_v16 }
 0x51a   :  { %vm3839_vm8 = vmor %vm3837_vm0, %vm3838_vm1 }
 0x51b   :  { %v3833_v54 = vmul.f32 %v8530_v16, %v3832_v42 }
 0x51d   :  { %v3834_v38 = vmul.f32 0.5, %v3833_v54 }
 0x51f   :  { %v3835_v43 = vsub.f32 1.5, %v3834_v38 }
 0x521   :  { %v3836_v51 = vmul.f32 %v8530_v16, %v3835_v43 }
 0x523   :  { %v3840_v5 = vsel %vm3839_vm8, %v8530_v16, %v3836_v51  ;;  %vm11695_vm8 = vcmask 523264  }
 0x524   :  { %v3841_v3 = vmul.f32 %v3840_v5, %v3812_v28  ;;  %v3842_v23 = vmul.f32 %v3840_v5, %v3813_v0  ;;  %v3843_v10 = vmul.f32 %v3840_v5, %v3814_v19 }
 0x526   :  { %v3847_v40 = vmul.f32 %v8411_v46, %v3841_v3  ;;  %v3848_v4 = vmul.f32 %v8411_v46, %v3842_v23  ;;  %v3849_v39 = vmul.f32 %v8411_v46, %v3843_v10  ;;  %v8381_v10 = vld [vmem:[%s11642_s3 + $0xb0] sm:$0xff] }
 0x527   :  { %4099 = vmatpush.bf16.msrb.mxu0 %v8381_v10 }
 0x528   :  { %v3853_v12 = vadd.f32 %v8412_v61, %v3847_v40  ;;  %v3854_v60 = vadd.f32 %v8412_v61, %v3848_v4  ;;  %v3855_v31 = vadd.f32 %v8412_v61, %v3849_v39  ;;  %v8382_v39 = vld [vmem:[%s11642_s3 + $0xb8] sm:$0xff] }
 0x529   :  { %4123 = vmatpush.bf16.msrb.mxu1 %v8382_v39 }
 0x52a   :  { %v3858_v20 = vpack.c.bf16 %v3854_v60, %v3853_v12  ;;  %v3859_v48 = vpack.c.bf16 %v3855_v31, %v3855_v31 }
 0x52c   :  { %8072 = vmatmul.msk.bf16.vlgmr.msra.gmra.mxu2 %vm189_vm2, %v3858_v20 }
 0x53c   :  { %8073 = vmatmul.msk.bf16.gmra.mxu2 %vm189_vm2, %v3859_v48  ;;  %v8384_v48 = vld [vmem:[%s11642_s3 + $0xc8] sm:$0xff] }
 0x53d   :  { %4171 = vmatpush.bf16.msra.mxu3 %v8384_v48 }
 0x5af   :  { %v3885_v1 = vpop.f32.mrf.mxu2 }
 0x5b0   :  { %v3886_v11 = vadd.f32 %v8415_v2, %v3885_v1 }
 0x5b2   :  { %v3894_v58 = vmax.f32 %v3886_v11, 0.0 }
 0x5b7   :  { %v3887_v56 = vpop.f32.mrf.mxu2 }
 0x5b8   :  { %v3888_v7 = vadd.f32 %v8415_v2, %v3887_v56  ;;  %v8385_v56 = vld [vmem:[%s11642_s3 + $0xd0] sm:$0xff] }
 0x5b9   :  { %4195 = vmatpush.bf16.msra.mxu0 %v8385_v56 }
 0x5ba   :  { %v3895_v25 = vmax.f32 %v3888_v7, 0.0  ;;  %v8386_v7 = vld [vmem:[%s11642_s3 + $0xd8] sm:$0xff] }
 0x5bb   :  { %4219 = vmatpush.bf16.msra.mxu1 %v8386_v7 }
 0x5bc   :  { %v3905_v59 = vpack.c.bf16 %v3895_v25, %v3894_v58  ;;  %v8387_v58 = vld [vmem:[%s11642_s3 + $0xe0] sm:$0xff] }
 0x5bd   :  { %v8417_v25 = vld [vmem:[%s11648_s11] ss:$0 sm:$0xff] }
 0x5be   :  { %8090 = vmatmul.msk.bf16.vlgmr.msrb.gmra.mxu3 %vm11695_vm8, %v3905_v59  ;;  %v8388_v59 = vld [vmem:[%s11642_s3 + $0xe8] sm:$0xff] }
 0x5bf   :  { %v3890_v37 = vpop.f32.mrf.mxu2  ;;  %4267 = vmatpush.bf16.msrb.mxu3 %v8388_v59 }
 0x5c0   :  { %v3891_v53 = vadd.f32 %v8415_v2, %v3890_v37 }
 0x5c2   :  { %v3896_v14 = vmax.f32 %v3891_v53, 0.0 }
 0x5c4   :  { %v3906_v27 = vpack.c.bf16 %v3896_v14, %v3896_v14  ;;  %v8418_v14 = vld [vmem:[%s11649_s12] ss:$0 sm:$0xff] }
 0x5c7   :  { %v3892_v30 = vpop.f32.mrf.mxu2 }
 0x5ce   :  { %8091 = vmatmul.msk.bf16.gmra.mxu3 %vm11695_vm8, %v3906_v27 }
 0x641   :  { %v3947_v41 = vpop.f32.mrf.mxu3 }
 0x642   :  { %v3956_v22 = vadd.f32 %v3947_v41, %v3853_v12 }
 0x644   :  { %v3963_v0 = vadd.f32 %v8416_v18, %v3956_v22 }
 0x646   :  { %v3968_v32 = vsel %vm189_vm2, %v3963_v0, 0.0 }
 0x649   :  { %v3949_v13 = vpop.f32.mrf.mxu3 }
 0x64a   :  { %v3957_v35 = vadd.f32 %v3949_v13, %v3854_v60 }
 0x64c   :  { %v3964_v28 = vadd.f32 %v8416_v18, %v3957_v35 }
 0x64e   :  { %v3969_v26 = vsel %vm189_vm2, %v3964_v28, 0.0 }
 0x64f   :  { %v3970_v15 = vadd.f32 %v3969_v26, %v3968_v32 }
 0x651   :  { %v3952_v19 = vpop.f32.mrf.mxu3 }
 0x652   :  { %v3958_v9 = vadd.f32 %v3952_v19, %v3855_v31  ;;  %v8383_v31 = vld [vmem:[%s11642_s3 + $0xc0] sm:$0xff] }
 0x653   :  { %4147 = vmatpush.bf16.msrb.mxu2 %v8383_v31 }
 0x654   :  { %v3965_v44 = vadd.f32 %v8416_v18, %v3958_v9 }
 0x656   :  { %v3971_v45 = vsel %vm189_vm2, %v3965_v44, 0.0 }
 0x657   :  { %v3972_v21 = vadd.f32 %v3971_v45, %v3970_v15  ;;  %4243 = vmatpush.bf16.msra.mxu2 %v8387_v58 }
 0x659   :  { %v3973_v8 = vrot.slane %v3972_v21, 4  ;;  %v3954_v62 = vpop.f32.mrf.mxu3 }
 0x65a   :  { %v8391_v62 = vld [vmem:[%s11642_s3 + $0x100] sm:$0xff] }
 0x65b   :  { %v3974_v34 = vadd.f32 %v3973_v8, %v3972_v21  ;;  %v8389_v21 = vld [vmem:[%s11642_s3 + $0xf0] sm:$0xff]  ;;  %v8390_v8 = vld [vmem:[%s11642_s3 + $0xf8] sm:$0xff] }
 0x65d   :  { %v3975_v6 = vrot.slane %v3974_v34, 2 }
 0x65f   :  { %v3976_v17 = vadd.f32 %v3975_v6, %v3974_v34  ;;  %v8392_v34 = vld [vmem:[%s11642_s3 + $0x108] sm:$0xff]  ;;  %v8393_v6 = vld [vmem:[%s11642_s3 + $0x110] sm:$0xff] }
 0x661   :  { %v3977_v47 = vrot.slane %v3976_v17, 1 }
 0x663   :  { %v3978_v50 = vadd.f32 %v3977_v47, %v3976_v17  ;;  %v8394_v17 = vld [vmem:[%s11642_s3 + $0x118] sm:$0xff]  ;;  %v8395_v47 = vld [vmem:[%s11642_s3 + $0x120] sm:$0xff] }
 0x665   :  { %v3979_v49 = vmul.f32 %v3978_v50, %v10212_v52  ;;  %v8396_v50 = vld [vmem:[%s11642_s3 + $0x128] sm:$0xff] }
 0x667   :  { %v3980_v24 = vsub.f32 %v3963_v0, %v3979_v49  ;;  %v3981_v33 = vsub.f32 %v3964_v28, %v3979_v49  ;;  %v3982_v16 = vsub.f32 %v3965_v44, %v3979_v49  ;;  %v8397_v49 = vld [vmem:[%s11642_s3 + $0x130] sm:$0xff] }
 0x669   :  { %v3983_v42 = vmul.f32 %v3980_v24, %v3980_v24  ;;  %v3984_v54 = vmul.f32 %v3981_v33, %v3981_v33  ;;  %v3985_v38 = vmul.f32 %v3982_v16, %v3982_v16 }
 0x66b   :  { %v3986_v43 = vsel %vm189_vm2, %v3983_v42, 0.0  ;;  %v3987_v51 = vsel %vm189_vm2, %v3984_v54, 0.0  ;;  %v3989_v5 = vsel %vm189_vm2, %v3985_v38, 0.0 }
 0x66c   :  { %v3988_v46 = vadd.f32 %v3987_v51, %v3986_v43 }
 0x66e   :  { %v3990_v61 = vadd.f32 %v3989_v5, %v3988_v46 }
 0x670   :  { %v3991_v3 = vrot.slane %v3990_v61, 4 }
 0x672   :  { %v3992_v23 = vadd.f32 %v3991_v3, %v3990_v61 }
 0x674   :  { %v3993_v40 = vrot.slane %v3992_v23, 2 }
 0x676   :  { %v3994_v4 = vadd.f32 %v3993_v40, %v3992_v23  ;;  %v8401_v40 = vld [vmem:[%s11642_s3 + $0x150] sm:$0xff] }
 0x678   :  { %v3995_v12 = vrot.slane %v3994_v4, 1 }
 0x67a   :  { %v3996_v60 = vadd.f32 %v3995_v12, %v3994_v4  ;;  %v8402_v4 = vld [vmem:[%s11642_s3 + $0x158] sm:$0xff] }
 0x67c   :  { %v3997_v20 = vmul.f32 %v3996_v60, %v10212_v52 }
 0x67e   :  { %v3998_v55 = vadd.f32 1e-05, %v3997_v20 }
 0x680   :  { %8531 = vrsqrt.f32 %v3998_v55  ;;  %vm4005_vm0 = vweird.f32 %v3998_v55 }
 0x686   :  { %v8532_v29 = vpop.eup %8531 }
 0x687   :  { %v4000_v57 = vmul.f32 %v8532_v29, %v3998_v55  ;;  %vm4006_vm1 = vweird.f32 %v8532_v29 }
 0x688   :  { %vm4007_vm8 = vmor %vm4005_vm0, %vm4006_vm1 }
 0x689   :  { %v4001_v63 = vmul.f32 %v8532_v29, %v4000_v57 }
 0x68b   :  { %v4002_v1 = vmul.f32 0.5, %v4001_v63 }
 0x68d   :  { %v4003_v2 = vsub.f32 1.5, %v4002_v1 }
 0x68f   :  { %v4004_v11 = vmul.f32 %v8532_v29, %v4003_v2 }
 0x691   :  { %v4008_v37 = vsel %vm4007_vm8, %v8532_v29, %v4004_v11  ;;  %vm11955_vm8 = vcmask 1045504  }
 0x692   :  { %v4009_v53 = vmul.f32 %v4008_v37, %v3980_v24  ;;  %v4010_v30 = vmul.f32 %v4008_v37, %v3981_v33  ;;  %v4011_v22 = vmul.f32 %v4008_v37, %v3982_v16  ;;  %v8398_v24 = vld [vmem:[%s11642_s3 + $0x138] sm:$0xff]  ;;  %v8399_v33 = vld [vmem:[%s11642_s3 + $0x140] sm:$0xff]  ;;  %v8400_v16 = vld [vmem:[%s11642_s3 + $0x148] sm:$0xff] }
 0x693   :  { %vm11960_vm1 = vmmov %vm11955_vm8 }
 0x694   :  { %v4015_v27 = vmul.f32 %v8417_v25, %v4009_v53  ;;  %v4016_v41 = vmul.f32 %v8417_v25, %v4010_v30  ;;  %v4017_v26 = vmul.f32 %v8417_v25, %v4011_v22  ;;  %vm11961_vm0 = vmmov %vm11960_vm1 }
 0x696   :  { %v10288_v13 = vadd.f32 %v8418_v14, %v4015_v27  ;;  %v10290_v35 = vadd.f32 %v8418_v14, %v4016_v41  ;;  %v10306_v32 = vadd.f32 %v8418_v14, %v4017_v26 }
 0x698   :  { %11874 = vst [vmem:[#allocation28_spill] sm:$0xff] %v10288_v13  ;;  %v4024_v18 = vpack.c.bf16 %v10288_v13, %v10288_v13  ;;  %v4025_v28 = vpack.c.bf16 %v10290_v35, %v10290_v35  ;;  %v4026_v44 = vpack.c.bf16 %v10306_v32, %v10306_v32 }
 0x699   :  { %11875 = vst [vmem:[#allocation31_spill] sm:$0xff] %v10290_v35 }
 0x69a   :  { %v4075_v0 = vunpack.c.l.b16 %v4024_v18  ;;  %v4076_v19 = vunpack.c.l.b16 %v4025_v28  ;;  %11876 = vst [vmem:[#allocation30_spill] sm:$0xff] %v10306_v32  ;;  %v4077_v15 = vunpack.c.l.b16 %v4026_v44 }
 0x69c   :  { %v10296_v9 = vpack.c.b16 %v4076_v19, %v4075_v0  ;;  %v10310_v45 = vpack.c.b16 %v4077_v15, %v4077_v15 }
 0x69e   :  { %8140 = vmatmul.msk.bf16.vlgmr.msrb.gmra.mxu0 %vm189_vm2, %v10296_v9  ;;  %8146 = vmatmul.msk.bf16.vlgmr.msrb.gmra.mxu1 %vm189_vm2, %v10296_v9 }
 0x69f   :  { %8152 = vmatmul.msk.bf16.vlgmr.msrb.gmra.mxu2 %vm189_vm2, %v10296_v9  ;;  %8158 = vmatmul.msk.bf16.vlgmr.msra.gmra.mxu3 %vm189_vm2, %v10296_v9 }
 0x6a0   :  { %4291 = vmatpush.bf16.msrb.mxu0 %v8389_v21  ;;  %4315 = vmatpush.bf16.msrb.mxu1 %v8390_v8 }
 0x6a1   :  { %4339 = vmatpush.bf16.msrb.mxu2 %v8391_v62  ;;  %4363 = vmatpush.bf16.msra.mxu3 %v8392_v34 }
 0x6ae   :  { %8141 = vmatmul.msk.bf16.gmra.mxu0 %vm189_vm2, %v10310_v45  ;;  %8147 = vmatmul.msk.bf16.gmra.mxu1 %vm189_vm2, %v10310_v45 }
 0x6af   :  { %8153 = vmatmul.msk.bf16.gmra.mxu2 %vm189_vm2, %v10310_v45  ;;  %8159 = vmatmul.msk.bf16.gmra.mxu3 %vm189_vm2, %v10310_v45 }
 0x6be   :  { %8164 = vmatmul.msk.bf16.vlgmr.msra.gmra.mxu0 %vm189_vm2, %v10296_v9  ;;  %8170 = vmatmul.msk.bf16.vlgmr.msra.gmra.mxu1 %vm189_vm2, %v10296_v9 }
 0x6bf   :  { %8176 = vmatmul.msk.bf16.vlgmr.msra.gmra.mxu2 %vm189_vm2, %v10296_v9  ;;  %8182 = vmatmul.msk.bf16.vlgmr.msrb.gmra.mxu3 %vm189_vm2, %v10296_v9 }
 0x6c0   :  { %4387 = vmatpush.bf16.msra.mxu0 %v8393_v6  ;;  %4411 = vmatpush.bf16.msra.mxu1 %v8394_v17 }
 0x6c1   :  { %4435 = vmatpush.bf16.msra.mxu2 %v8395_v47  ;;  %4459 = vmatpush.bf16.msrb.mxu3 %v8396_v50 }
 0x6ce   :  { %8165 = vmatmul.msk.bf16.gmra.mxu0 %vm189_vm2, %v10310_v45  ;;  %8171 = vmatmul.msk.bf16.gmra.mxu1 %vm189_vm2, %v10310_v45 }
 0x6cf   :  { %8177 = vmatmul.msk.bf16.gmra.mxu2 %vm189_vm2, %v10310_v45  ;;  %8183 = vmatmul.msk.bf16.gmra.mxu3 %vm189_vm2, %v10310_v45 }
 0x6de   :  { %8188 = vmatmul.msk.bf16.vlgmr.msrb.gmra.mxu0 %vm189_vm2, %v10296_v9  ;;  %8194 = vmatmul.msk.bf16.vlgmr.msrb.gmra.mxu1 %vm189_vm2, %v10296_v9 }
 0x6df   :  { %8200 = vmatmul.msk.bf16.vlgmr.msrb.gmra.mxu2 %vm189_vm2, %v10296_v9  ;;  %8206 = vmatmul.msk.bf16.vlgmr.msra.gmra.mxu3 %vm189_vm2, %v10296_v9 }
 0x6e0   :  { %4483 = vmatpush.bf16.msrb.mxu0 %v8397_v49  ;;  %4507 = vmatpush.bf16.msrb.mxu1 %v8398_v24 }
 0x6e1   :  { %4531 = vmatpush.bf16.msrb.mxu2 %v8399_v33  ;;  %4555 = vmatpush.bf16.msra.mxu3 %v8400_v16 }
 0x6ee   :  { %8189 = vmatmul.msk.bf16.gmra.mxu0 %vm189_vm2, %v10310_v45  ;;  %8195 = vmatmul.msk.bf16.gmra.mxu1 %vm189_vm2, %v10310_v45 }
 0x6ef   :  { %8201 = vmatmul.msk.bf16.gmra.mxu2 %vm189_vm2, %v10310_v45  ;;  %8207 = vmatmul.msk.bf16.gmra.mxu3 %vm189_vm2, %v10310_v45 }
 0x6fe   :  { %8212 = vmatmul.msk.bf16.vlgmr.msra.gmra.mxu0 %vm189_vm2, %v10296_v9  ;;  %8218 = vmatmul.msk.bf16.vlgmr.msra.gmra.mxu1 %vm189_vm2, %v10296_v9 }
 0x6ff   :  { %8224 = vmatmul.msk.bf16.vlgmr.msra.gmra.mxu2 %vm189_vm2, %v10296_v9  ;;  %8230 = vmatmul.msk.bf16.vlgmr.msrb.gmra.mxu3 %vm189_vm2, %v10296_v9 }
 0x700   :  { %4579 = vmatpush.bf16.msra.mxu0 %v8401_v40  ;;  %4603 = vmatpush.bf16.msra.mxu1 %v8402_v4 }
 0x70e   :  { %8213 = vmatmul.msk.bf16.gmra.mxu0 %vm189_vm2, %v10310_v45  ;;  %8219 = vmatmul.msk.bf16.gmra.mxu1 %vm189_vm2, %v10310_v45 }
 0x70f   :  { %8225 = vmatmul.msk.bf16.gmra.mxu2 %vm189_vm2, %v10310_v45  ;;  %8231 = vmatmul.msk.bf16.gmra.mxu3 %vm189_vm2, %v10310_v45 }
 0x71b   :  { %v4101_v42 = vpop.f32.mrf.mxu0  ;;  %v4125_v54 = vpop.f32.mrf.mxu1 }
 0x71c   :  { %v4680_v38 = vrot.slane %v4101_v42, 4  ;;  %4746 = vst [vmem:[#allocation1] ss:$2 sm:$0xff] %v4101_v42  ;;  %v4683_v23 = vrot.slane %v4125_v54, 4 }
 0x71e   :  { %4748 = vst [vmem:[#allocation1 + $0x1] ss:$2 sm:$0xff] %v4680_v38  ;;  %8236 = vmatmul.msk.bf16.vlgmr.msrb.gmra.mxu0 %vm189_vm2, %v10296_v9  ;;  %8242 = vmatmul.msk.bf16.vlgmr.msrb.gmra.mxu1 %vm189_vm2, %v10296_v9 }
 0x71f   :  { %8248 = vmatmul.msk.bf16.vlgmr.msrb.gmra.mxu2 %vm189_vm2, %v10296_v9  ;;  %8254 = vmatmul.msk.bf16.vlgmr.msra.gmra.mxu3 %vm189_vm2, %v10296_v9 }
 0x722   :  { %v4149_v43 = vpop.f32.mrf.mxu2  ;;  %v4173_v51 = vpop.f32.mrf.mxu3 }
 0x723   :  { %v4103_v46 = vpop.f32.mrf.mxu0  ;;  %v4127_v5 = vpop.f32.mrf.mxu1  ;;  %v4686_v55 = vrot.slane %v4149_v43, 4  ;;  %v4689_v59 = vrot.slane %v4173_v51, 4 }
 0x724   :  { %v4681_v61 = vrot.slane %v4103_v46, 4  ;;  %4750 = vst [vmem:[#allocation1 + $0x10] ss:$2 sm:$0xff] %v4103_v46  ;;  %v4684_v63 = vrot.slane %v4127_v5, 4 }
 0x725   :  { %v10412_v3 = vld.sshfl [vmem:[#allocation1] sm:$0xff pattern:$0x75316420] }
 0x726   :  { %4761 = vst [vmem:[#allocation1] ss:$2 sm:$0xff] %v4125_v54 }
 0x727   :  { %4762 = vst [vmem:[#allocation1 + $0x1] ss:$2 sm:$0xff] %v4683_v23 }
 0x728   :  { %4754 = vst [vmem:[#allocation1 + $0x20] ss:$2 sm:$0xff] %v4681_v61 }
 0x72a   :  { %v4151_v12 = vpop.f32.mrf.mxu2  ;;  %v4175_v60 = vpop.f32.mrf.mxu3 }
 0x72b   :  { %v10420_v20 = vld.sshfl [vmem:[#allocation1 + $0x10] sm:$0xff pattern:$0x75316420]  ;;  %v4106_v10 = vpop.f32.mrf.mxu0  ;;  %v4130_v39 = vpop.f32.mrf.mxu1  ;;  %v4687_v41 = vrot.slane %v4151_v12, 4  ;;  %v4690_v62 = vrot.slane %v4175_v60, 4 }
 0x72c   :  { %4763 = vst [vmem:[#allocation1 + $0x10] ss:$2 sm:$0xff] %v4127_v5  ;;  %v4682_v31 = vrot.slane %v4106_v10, 4  ;;  %v4685_v58 = vrot.slane %v4130_v39, 4 }
 0x72d   :  { %4756 = vst [vmem:[#allocation1 + $0x21] ss:$2 sm:$0xff] %v4106_v10 }
 0x72e   :  { %v10422_v48 = vld.sshfl [vmem:[#allocation1] sm:$0xff pattern:$0x75316420]  ;;  %4758 = vst [vmem:[#allocation1 + $0x30] ss:$2 sm:$0xff] %v4682_v31  ;;  %8237 = vmatmul.msk.bf16.gmra.mxu0 %vm189_vm2, %v10310_v45  ;;  %8243 = vmatmul.msk.bf16.gmra.mxu1 %vm189_vm2, %v10310_v45 }
 0x72f   :  { %4771 = vst [vmem:[#allocation1] ss:$2 sm:$0xff] %v4149_v43  ;;  %8249 = vmatmul.msk.bf16.gmra.mxu2 %vm189_vm2, %v10310_v45  ;;  %8255 = vmatmul.msk.bf16.gmra.mxu3 %vm189_vm2, %v10310_v45 }
 0x730   :  { %4772 = vst [vmem:[#allocation1 + $0x1] ss:$2 sm:$0xff] %v4686_v55 }
 0x732   :  { %v4154_v29 = vpop.f32.mrf.mxu2  ;;  %v4178_v57 = vpop.f32.mrf.mxu3 }
 0x733   :  { %v10432_v1 = vld.sshfl [vmem:[#allocation1 + $0x10] sm:$0xff pattern:$0x75316420]  ;;  %v4108_v2 = vpop.f32.mrf.mxu0  ;;  %v4132_v11 = vpop.f32.mrf.mxu1  ;;  %v4688_v18 = vrot.slane %v4154_v29, 4 }
 0x734   :  { %4773 = vst [vmem:[#allocation1 + $0x10] ss:$2 sm:$0xff] %v4151_v12  ;;  %v10434_v56 = vld.sshfl [vmem:[#allocation1 + $0x20] sm:$0xff pattern:$0x75316420] }
 0x735   :  { %v10436_v7 = vld.sshfl [vmem:[#allocation1 + $0x30] sm:$0xff pattern:$0x75316420]  ;;  %4766 = vst [vmem:[#allocation1 + $0x20] ss:$2 sm:$0xff] %v4684_v63 }
 0x736   :  { %4767 = vst [vmem:[#allocation1 + $0x21] ss:$2 sm:$0xff] %v4130_v39 }
 0x737   :  { %v10438_v25 = vld.sshfl [vmem:[#allocation1] sm:$0xff pattern:$0x75316420]  ;;  %4768 = vst [vmem:[#allocation1 + $0x30] ss:$2 sm:$0xff] %v4685_v58 }
 0x738   :  { %4781 = vst [vmem:[#allocation1] ss:$2 sm:$0xff] %v4173_v51 }
 0x739   :  { %4782 = vst [vmem:[#allocation1 + $0x1] ss:$2 sm:$0xff] %v4689_v59 }
 0x73a   :  { %v4156_v37 = vpop.f32.mrf.mxu2  ;;  %v4180_v53 = vpop.f32.mrf.mxu3 }
 0x73b   :  { %v10440_v30 = vld.sshfl [vmem:[#allocation1 + $0x10] sm:$0xff pattern:$0x75316420]  ;;  %v4197_v14 = vpop.f32.mrf.mxu0  ;;  %v4221_v27 = vpop.f32.mrf.mxu1 }
 0x73c   :  { %4783 = vst [vmem:[#allocation1 + $0x10] ss:$2 sm:$0xff] %v4175_v60  ;;  %v4692_v0 = vrot.slane %v4197_v14, 4  ;;  %v4695_v47 = vrot.slane %v4221_v27, 4 }
 0x73d   :  { %v10442_v22 = vld.sshfl [vmem:[#allocation1 + $0x20] sm:$0xff pattern:$0x75316420] }
 0x73e   :  { %v10444_v28 = vld.sshfl [vmem:[#allocation1 + $0x30] sm:$0xff pattern:$0x75316420]  ;;  %4776 = vst [vmem:[#allocation1 + $0x20] ss:$2 sm:$0xff] %v4687_v41  ;;  %8260 = vmatmul.msk.bf16.vlgmr.msra.gmra.mxu0 %vm189_vm2, %v10296_v9  ;;  %8266 = vmatmul.msk.bf16.vlgmr.msra.gmra.mxu1 %vm189_vm2, %v10296_v9  ;;  %v4691_v9 = vrot.slane %v4178_v57, 4 }
 0x73f   :  { %4777 = vst [vmem:[#allocation1 + $0x21] ss:$2 sm:$0xff] %v4154_v29 }
 0x740   :  { %v10450_v19 = vld.sshfl [vmem:[#allocation1] sm:$0xff pattern:$0x75316420]  ;;  %4778 = vst [vmem:[#allocation1 + $0x30] ss:$2 sm:$0xff] %v4688_v18 }
 0x741   :  { %4791 = vst [vmem:[#allocation1] ss:$2 sm:$0xff] %v4197_v14 }
 0x742   :  { %4792 = vst [vmem:[#allocation1 + $0x1] ss:$2 sm:$0xff] %v4692_v0  ;;  %v4245_v26 = vpop.f32.mrf.mxu2  ;;  %v4269_v44 = vpop.f32.mrf.mxu3 }
 0x743   :  { %v10452_v15 = vld.sshfl [vmem:[#allocation1 + $0x10] sm:$0xff pattern:$0x75316420]  ;;  %v4199_v21 = vpop.f32.mrf.mxu0  ;;  %v4223_v8 = vpop.f32.mrf.mxu1  ;;  %v4698_v46 = vrot.slane %v4245_v26, 4  ;;  %v4701_v29 = vrot.slane %v4269_v44, 4 }
 0x744   :  { %4793 = vst [vmem:[#allocation1 + $0x10] ss:$2 sm:$0xff] %v4199_v21  ;;  %v4693_v42 = vrot.slane %v4199_v21, 4 }
 0x746   :  { %v10454_v34 = vld.sshfl [vmem:[#allocation1 + $0x20] sm:$0xff pattern:$0x75316420] }
 0x747   :  { %v10456_v6 = vld.sshfl [vmem:[#allocation1 + $0x30] sm:$0xff pattern:$0x75316420]  ;;  %4786 = vst [vmem:[#allocation1 + $0x20] ss:$2 sm:$0xff] %v4690_v62 }
 0x748   :  { %4787 = vst [vmem:[#allocation1 + $0x21] ss:$2 sm:$0xff] %v4178_v57 }
 0x749   :  { %4788 = vst [vmem:[#allocation1 + $0x30] ss:$2 sm:$0xff] %v4691_v9  ;;  %v10458_v17 = vld.sshfl [vmem:[#allocation1] sm:$0xff pattern:$0x75316420] }
 0x74a   :  { %4801 = vst [vmem:[#allocation1] ss:$2 sm:$0xff] %v4221_v27  ;;  %v4247_v50 = vpop.f32.mrf.mxu2  ;;  %v10460_v49 = vpop.f32.mrf.mxu3 }
 0x74b   :  { %4802 = vst [vmem:[#allocation1 + $0x1] ss:$2 sm:$0xff] %v4695_v47  ;;  %v10462_v24 = vld.sshfl [vmem:[#allocation1 + $0x10] sm:$0xff pattern:$0x75316420]  ;;  %v4202_v33 = vpop.f32.mrf.mxu0  ;;  %v4226_v16 = vpop.f32.mrf.mxu1  ;;  %v4699_v11 = vrot.slane %v4247_v50, 4 }
 0x74c   :  { %4803 = vst [vmem:[#allocation1 + $0x10] ss:$2 sm:$0xff] %v4223_v8  ;;  %v4694_v54 = vrot.slane %v4202_v33, 4  ;;  %v4697_v60 = vrot.slane %v4226_v16, 4 }
 0x74e   :  { %8261 = vmatmul.msk.bf16.gmra.mxu0 %vm189_vm2, %v10310_v45  ;;  %8267 = vmatmul.msk.bf16.gmra.mxu1 %vm189_vm2, %v10310_v45  ;;  %v4696_v45 = vrot.slane %v4223_v8, 4 }
 0x74f   :  { %v10468_v38 = vld.sshfl [vmem:[#allocation1 + $0x20] sm:$0xff pattern:$0x75316420] }
 0x750   :  { %v10470_v43 = vld.sshfl [vmem:[#allocation1 + $0x30] sm:$0xff pattern:$0x75316420]  ;;  %4796 = vst [vmem:[#allocation1 + $0x20] ss:$2 sm:$0xff] %v4693_v42 }
 0x751   :  { %4797 = vst [vmem:[#allocation1 + $0x21] ss:$2 sm:$0xff] %v4202_v33 }
 0x752   :  { %v10472_v51 = vld.sshfl [vmem:[#allocation1] sm:$0xff pattern:$0x75316420]  ;;  %4798 = vst [vmem:[#allocation1 + $0x30] ss:$2 sm:$0xff] %v4694_v54  ;;  %v4250_v5 = vpop.f32.mrf.mxu2  ;;  %v4274_v61 = vpop.f32.mrf.mxu3 }
 0x753   :  { %4811 = vst [vmem:[#allocation1] ss:$2 sm:$0xff] %v4245_v26  ;;  %v10474_v23 = vld.sshfl [vmem:[#allocation1 + $0x10] sm:$0xff pattern:$0x75316420]  ;;  %v4204_v40 = vpop.f32.mrf.mxu0  ;;  %v4228_v4 = vpop.f32.mrf.mxu1  ;;  %v4700_v26 = vrot.slane %v4250_v5, 4 }
 0x754   :  { %4812 = vst [vmem:[#allocation1 + $0x1] ss:$2 sm:$0xff] %v4698_v46  ;;  %v4703_v42 = vrot.slane %v4274_v61, 4 }
 0x755   :  { %4813 = vst [vmem:[#allocation1 + $0x10] ss:$2 sm:$0xff] %v4247_v50 }
 0x758   :  { %v10476_v12 = vld.sshfl [vmem:[#allocation1 + $0x20] sm:$0xff pattern:$0x75316420] }
 0x759   :  { %4806 = vst [vmem:[#allocation1 + $0x20] ss:$2 sm:$0xff] %v4696_v45  ;;  %v10478_v10 = vld.sshfl [vmem:[#allocation1 + $0x30] sm:$0xff pattern:$0x75316420] }
 0x75a   :  { %4807 = vst [vmem:[#allocation1 + $0x21] ss:$2 sm:$0xff] %v4226_v16  ;;  %v4252_v39 = vpop.f32.mrf.mxu2  ;;  %v4276_v31 = vpop.f32.mrf.mxu3 }
 0x75b   :  { %v10480_v55 = vld.sshfl [vmem:[#allocation1] sm:$0xff pattern:$0x75316420]  ;;  %v4293_v57 = vpop.f32.mrf.mxu0  ;;  %v4317_v63 = vpop.f32.mrf.mxu1  ;;  %4808 = vst [vmem:[#allocation1 + $0x30] ss:$2 sm:$0xff] %v4697_v60 }
 0x75c   :  { %4821 = vst [vmem:[#allocation1] ss:$2 sm:$0xff] %v4269_v44  ;;  %v10482_v2 = vld.sshfl [vmem:[#allocation1 + $0x10] sm:$0xff pattern:$0x75316420]  ;;  %v4704_v59 = vrot.slane %v4293_v57, 4 }
 0x75d   :  { %4822 = vst [vmem:[#allocation1 + $0x1] ss:$2 sm:$0xff] %v4701_v29  ;;  %v4702_v44 = vrot.slane %v10460_v49, 4  ;;  %v4707_v33 = vrot.slane %v4317_v63, 4 }
 0x75e   :  { %4823 = vst [vmem:[#allocation1 + $0x10] ss:$2 sm:$0xff] %v10460_v49 }
 0x761   :  { %v10485_v58 = vld.sshfl [vmem:[#allocation1 + $0x20] sm:$0xff pattern:$0x75316420] }
 0x762   :  { %4816 = vst [vmem:[#allocation1 + $0x20] ss:$2 sm:$0xff] %v4699_v11  ;;  %v4341_v37 = vpop.f32.mrf.mxu2  ;;  %v4365_v53 = vpop.f32.mrf.mxu3  ;;  %v10489_v18 = vld.sshfl [vmem:[#allocation1 + $0x30] sm:$0xff pattern:$0x75316420] }
 0x763   :  { %4817 = vst [vmem:[#allocation1 + $0x21] ss:$2 sm:$0xff] %v4250_v5  ;;  %v4295_v14 = vpop.f32.mrf.mxu0  ;;  %v4319_v27 = vpop.f32.mrf.mxu1  ;;  %v4710_v39 = vrot.slane %v4341_v37, 4 }
 0x764   :  { %v10487_v41 = vld.sshfl [vmem:[#allocation1] sm:$0xff pattern:$0x75316420]  ;;  %4818 = vst [vmem:[#allocation1 + $0x30] ss:$2 sm:$0xff] %v4700_v26  ;;  %v4705_v49 = vrot.slane %v4295_v14, 4 }
 0x765   :  { %v10491_v0 = vld.sshfl [vmem:[#allocation1 + $0x10] sm:$0xff pattern:$0x75316420]  ;;  %4831 = vst [vmem:[#allocation1] ss:$2 sm:$0xff] %v4293_v57  ;;  %v4708_v11 = vrot.slane %v4319_v27, 4 }
 0x766   :  { %4832 = vst [vmem:[#allocation1 + $0x1] ss:$2 sm:$0xff] %v4704_v59 }
 0x767   :  { %4833 = vst [vmem:[#allocation1 + $0x10] ss:$2 sm:$0xff] %v4295_v14 }
 0x76a   :  { %v10494_v21 = vld.sshfl [vmem:[#allocation1 + $0x20] sm:$0xff pattern:$0x75316420]  ;;  %v4343_v8 = vpop.f32.mrf.mxu2  ;;  %v10496_v62 = vpop.f32.mrf.mxu3 }
 0x76b   :  { %4826 = vst [vmem:[#allocation1 + $0x20] ss:$2 sm:$0xff] %v4702_v44  ;;  %v4298_v9 = vpop.f32.mrf.mxu0  ;;  %v4322_v47 = vpop.f32.mrf.mxu1  ;;  %v10502_v54 = vld.sshfl [vmem:[#allocation1 + $0x30] sm:$0xff pattern:$0x75316420] }
 0x76c   :  { %4827 = vst [vmem:[#allocation1 + $0x21] ss:$2 sm:$0xff] %v4274_v61  ;;  %v4706_v31 = vrot.slane %v4298_v9, 4 }
 0x76d   :  { %v10498_v50 = vld.sshfl [vmem:[#allocation1] sm:$0xff pattern:$0x75316420]  ;;  %4828 = vst [vmem:[#allocation1 + $0x30] ss:$2 sm:$0xff] %v4703_v42 }
 0x76e   :  { %4841 = vst [vmem:[#allocation1] ss:$2 sm:$0xff] %v4317_v63  ;;  %v10500_v16 = vld.sshfl [vmem:[#allocation1 + $0x10] sm:$0xff pattern:$0x75316420] }
 0x76f   :  { %4842 = vst [vmem:[#allocation1 + $0x1] ss:$2 sm:$0xff] %v4707_v33  ;;  %v4709_v33 = vrot.slane %v4322_v47, 4 }
 0x770   :  { %4843 = vst [vmem:[#allocation1 + $0x10] ss:$2 sm:$0xff] %v4319_v27 }
 0x772   :  { %v4346_v46 = vpop.f32.mrf.mxu2  ;;  %v10504_v5 = vpop.f32.mrf.mxu3 }
 0x773   :  { %v10506_v40 = vld.sshfl [vmem:[#allocation1 + $0x20] sm:$0xff pattern:$0x75316420]  ;;  %v4300_v4 = vpop.f32.mrf.mxu0  ;;  %v4324_v45 = vpop.f32.mrf.mxu1  ;;  %v4715_v36 = vrot.slane %v10504_v5, 4 }
 0x774   :  { %4836 = vst [vmem:[#allocation1 + $0x20] ss:$2 sm:$0xff] %v4705_v49  ;;  %v10512_v29 = vld.sshfl [vmem:[#allocation1 + $0x30] sm:$0xff pattern:$0x75316420] }
 0x775   :  { %4837 = vst [vmem:[#allocation1 + $0x21] ss:$2 sm:$0xff] %v4298_v9  ;;  %v4713_v9 = vrot.slane %v4365_v53, 4 }
 0x776   :  { %v10508_v60 = vld.sshfl [vmem:[#allocation1] sm:$0xff pattern:$0x75316420]  ;;  %4838 = vst [vmem:[#allocation1 + $0x30] ss:$2 sm:$0xff] %v4706_v31 }
 0x777   :  { %4851 = vst [vmem:[#allocation1] ss:$2 sm:$0xff] %v4341_v37  ;;  %v10510_v61 = vld.sshfl [vmem:[#allocation1 + $0x10] sm:$0xff pattern:$0x75316420] }
 0x778   :  { %4852 = vst [vmem:[#allocation1 + $0x1] ss:$2 sm:$0xff] %v4710_v39  ;;  %v4711_v39 = vrot.slane %v4343_v8, 4 }
 0x779   :  { %4853 = vst [vmem:[#allocation1 + $0x10] ss:$2 sm:$0xff] %v4343_v8 }
 0x77a   :  { %v4348_v57 = vpop.f32.mrf.mxu2  ;;  %v4372_v63 = vpop.f32.mrf.mxu3 }
 0x77b   :  { %v4389_v59 = vpop.f32.mrf.mxu0  ;;  %v4413_v14 = vpop.f32.mrf.mxu1 }
 0x77c   :  { %v10514_v26 = vld.sshfl [vmem:[#allocation1 + $0x20] sm:$0xff pattern:$0x75316420]  ;;  %v4716_v57 = vrot.slane %v4389_v59, 4 }
 0x77d   :  { %4846 = vst [vmem:[#allocation1 + $0x20] ss:$2 sm:$0xff] %v4708_v11  ;;  %v10520_v42 = vld.sshfl [vmem:[#allocation1 + $0x30] sm:$0xff pattern:$0x75316420] }
 0x77e   :  { %4847 = vst [vmem:[#allocation1 + $0x21] ss:$2 sm:$0xff] %v4322_v47  ;;  %v4712_v47 = vrot.slane %v4346_v46, 4 }
 0x77f   :  { %v10516_v44 = vld.sshfl [vmem:[#allocation1] sm:$0xff pattern:$0x75316420]  ;;  %4848 = vst [vmem:[#allocation1 + $0x30] ss:$2 sm:$0xff] %v4709_v33 }
 0x780   :  { %11877 = vst [vmem:[#allocation36_spill] sm:$0xff] %v10516_v44  ;;  %v10518_v37 = vld.sshfl [vmem:[#allocation1 + $0x10] sm:$0xff pattern:$0x75316420] }
 0x781   :  { %4861 = vst [vmem:[#allocation1] ss:$2 sm:$0xff] %v4365_v53 }
 0x782   :  { %11878 = vst [vmem:[#allocation33_spill] sm:$0xff] %v10518_v37  ;;  %v4437_v49 = vpop.f32.mrf.mxu2  ;;  %v10523_v27 = vpop.f32.mrf.mxu3 }
 0x783   :  { %4862 = vst [vmem:[#allocation1 + $0x1] ss:$2 sm:$0xff] %v4713_v9  ;;  %v4391_v4 = vpop.f32.mrf.mxu0  ;;  %v4415_v45 = vpop.f32.mrf.mxu1 }
 0x784   :  { %4863 = vst [vmem:[#allocation1 + $0x10] ss:$2 sm:$0xff] %v10496_v62 }
 0x785   :  { %v10525_v31 = vld.sshfl [vmem:[#allocation1 + $0x20] sm:$0xff pattern:$0x75316420] }
 0x786   :  { %11879 = vst [vmem:[#allocation40_spill] sm:$0xff] %v10525_v31  ;;  %v10533_v52 = vld.sshfl [vmem:[#allocation1 + $0x30] sm:$0xff pattern:$0x75316420] }
 0x787   :  { %4856 = vst [vmem:[#allocation1 + $0x20] ss:$2 sm:$0xff] %v4711_v39  ;;  %v4714_v39 = vrot.slane %v10496_v62, 4 }
 0x788   :  { %4857 = vst [vmem:[#allocation1 + $0x21] ss:$2 sm:$0xff] %v4346_v46  ;;  %v4719_v46 = vrot.slane %v4413_v14, 4 }
 0x789   :  { %11882 = vst [vmem:[#allocation34_spill] sm:$0xff] %v10533_v52 }
 0x78a   :  { %v10527_v53 = vld.sshfl [vmem:[#allocation1] sm:$0xff pattern:$0x75316420]  ;;  %v4439_v11 = vpop.f32.mrf.mxu2  ;;  %v10531_v9 = vpop.f32.mrf.mxu3  ;;  %4858 = vst [vmem:[#allocation1 + $0x30] ss:$2 sm:$0xff] %v4712_v47 }
 0x78b   :  { %11880 = vst [vmem:[#allocation32_spill] sm:$0xff] %v10527_v53  ;;  %v10529_v63 = vld.sshfl [vmem:[#allocation1 + $0x10] sm:$0xff pattern:$0x75316420]  ;;  %v4394_v33 = vpop.f32.mrf.mxu0  ;;  %v4418_v8 = vpop.f32.mrf.mxu1 }
 0x78c   :  { %11881 = vst [vmem:[#allocation35_spill] sm:$0xff] %v10529_v63 }
 0x78d   :  { %4871 = vst [vmem:[#allocation1] ss:$2 sm:$0xff] %v4389_v59 }
 0x78e   :  { %4872 = vst [vmem:[#allocation1 + $0x1] ss:$2 sm:$0xff] %v4716_v57 }
 0x78f   :  { %4873 = vst [vmem:[#allocation1 + $0x10] ss:$2 sm:$0xff] %v4391_v4  ;;  %v10536_v32 = vld.sshfl [vmem:[#allocation1 + $0x20] sm:$0xff pattern:$0x75316420] }
 0x790   :  { %11883 = vst [vmem:[#allocation39_spill] sm:$0xff] %v10536_v32 }
 0x791   :  { %4866 = vst [vmem:[#allocation1 + $0x20] ss:$2 sm:$0xff] %v4714_v39  ;;  %v10546_v62 = vld.sshfl [vmem:[#allocation1 + $0x30] sm:$0xff pattern:$0x75316420]  ;;  %v4717_v39 = vrot.slane %v4391_v4, 4 }
 0x792   :  { %4867 = vst [vmem:[#allocation1 + $0x21] ss:$2 sm:$0xff] %v10504_v5  ;;  %v4442_v57 = vpop.f32.mrf.mxu2  ;;  %v10543_v35 = vpop.f32.mrf.mxu3 }
 0x793   :  { %v4396_v47 = vpop.f32.mrf.mxu0  ;;  %v4420_v53 = vpop.f32.mrf.mxu1  ;;  %11886 = vst [vmem:[#allocation37_spill] sm:$0xff] %v10546_v62 }
 0x794   :  { %4868 = vst [vmem:[#allocation1 + $0x30] ss:$2 sm:$0xff] %v4715_v36  ;;  %v4720_v36 = vrot.slane %v4415_v45, 4 }
 0x795   :  { %v10539_v13 = vld.sshfl [vmem:[#allocation1] sm:$0xff pattern:$0x75316420] }
 0x796   :  { %11884 = vst [vmem:[#allocation43_spill] sm:$0xff] %v10539_v13  ;;  %v10541_v59 = vld.sshfl [vmem:[#allocation1 + $0x10] sm:$0xff pattern:$0x75316420]  ;;  %v4722_v13 = vrot.slane %v4437_v49, 4 }
 0x797   :  { %4881 = vst [vmem:[#allocation1] ss:$2 sm:$0xff] %v4413_v14 }
 0x798   :  { %11885 = vst [vmem:[#allocation38_spill] sm:$0xff] %v10541_v59  ;;  %v4718_v59 = vrot.slane %v4394_v33, 4 }
 0x799   :  { %4882 = vst [vmem:[#allocation1 + $0x1] ss:$2 sm:$0xff] %v4719_v46  ;;  %v10548_v32 = vld.sshfl [vmem:[#allocation1 + $0x20] sm:$0xff pattern:$0x75316420] }
 0x79a   :  { %4883 = vst [vmem:[#allocation1 + $0x10] ss:$2 sm:$0xff] %v4415_v45  ;;  %v4444_v63 = vpop.f32.mrf.mxu2  ;;  %v4468_v31 = vpop.f32.mrf.mxu3  ;;  %v4721_v45 = vrot.slane %v4418_v8, 4 }
 0x79b   :  { %11887 = vst [vmem:[#allocation44_spill] sm:$0xff] %v10548_v32  ;;  %v4485_v46 = vpop.f32.mrf.mxu0  ;;  %v4509_v53 = vpop.f32.mrf.mxu1  ;;  %v10554_v47 = vld.sshfl [vmem:[#allocation1 + $0x30] sm:$0xff pattern:$0x75316420] }
 0x79c   :  { %4876 = vst [vmem:[#allocation1 + $0x20] ss:$2 sm:$0xff] %v4717_v39 }
 0x79d   :  { %4877 = vst [vmem:[#allocation1 + $0x21] ss:$2 sm:$0xff] %v4394_v33 }
 0x79e   :  { %11890 = vst [vmem:[#allocation45_spill] sm:$0xff] %v10554_v47 }
 0x79f   :  { %4878 = vst [vmem:[#allocation1 + $0x30] ss:$2 sm:$0xff] %v4718_v59 }
 0x7a0   :  { %v10550_v14 = vld.sshfl [vmem:[#allocation1] sm:$0xff pattern:$0x75316420] }
 0x7a1   :  { %11888 = vst [vmem:[#allocation42_spill] sm:$0xff] %v10550_v14  ;;  %v10552_v5 = vld.sshfl [vmem:[#allocation1 + $0x10] sm:$0xff pattern:$0x75316420] }
 0x7a2   :  { %4891 = vst [vmem:[#allocation1] ss:$2 sm:$0xff] %v4437_v49  ;;  %v10558_v39 = vpop.f32.mrf.mxu2  ;;  %v10560_v33 = vpop.f32.mrf.mxu3  ;;  %v4725_v49 = vrot.slane %v10523_v27, 4 }
 0x7a3   :  { %11889 = vst [vmem:[#allocation41_spill] sm:$0xff] %v10552_v5  ;;  %v4487_v63 = vpop.f32.mrf.mxu0  ;;  %v10565_v14 = vpop.f32.mrf.mxu1 }
 0x7a4   :  { %4892 = vst [vmem:[#allocation1 + $0x1] ss:$2 sm:$0xff] %v4722_v13  ;;  %v10556_v4 = vld.sshfl [vmem:[#allocation1 + $0x20] sm:$0xff pattern:$0x75316420] }
 0x7a5   :  { %4893 = vst [vmem:[#allocation1 + $0x10] ss:$2 sm:$0xff] %v4439_v11 }
 0x7a6   :  { %11891 = vst [vmem:[#allocation14_spill] sm:$0xff] %v10556_v4  ;;  %v10570_v59 = vld.sshfl [vmem:[#allocation1 + $0x30] sm:$0xff pattern:$0x75316420] }
 0x7a7   :  { %4886 = vst [vmem:[#allocation1 + $0x20] ss:$2 sm:$0xff] %v4720_v36  ;;  %v4723_v36 = vrot.slane %v4439_v11, 4 }
 0x7a8   :  { %4887 = vst [vmem:[#allocation1 + $0x21] ss:$2 sm:$0xff] %v4418_v8 }
 0x7a9   :  { %11894 = vst [vmem:[#allocation23_spill] sm:$0xff] %v10570_v59 }
 0x7aa   :  { %4888 = vst [vmem:[#allocation1 + $0x30] ss:$2 sm:$0xff] %v4721_v45  ;;  %v10575_v5 = vpop.f32.mrf.mxu2  ;;  %v10577_v32 = vpop.f32.mrf.mxu3  ;;  %v4726_v45 = vrot.slane %v10531_v9, 4 }
 0x7ab   :  { %v10562_v31 = vld.sshfl [vmem:[#allocation1] sm:$0xff pattern:$0x75316420]  ;;  %v10579_v47 = vpop.f32.mrf.mxu1 }
 0x7ac   :  { %11892 = vst [vmem:[#allocation19_spill] sm:$0xff] %v10562_v31  ;;  %v10568_v13 = vld.sshfl [vmem:[#allocation1 + $0x10] sm:$0xff pattern:$0x75316420]  ;;  %v4728_v31 = vrot.slane %v4485_v46, 4 }
 0x7ad   :  { %4901 = vst [vmem:[#allocation1] ss:$2 sm:$0xff] %v10523_v27  ;;  %v4490_v27 = vpop.f32.mrf.mxu0 }
 0x7ae   :  { %11893 = vst [vmem:[#allocation8_spill] sm:$0xff] %v10568_v13  ;;  %v4724_v13 = vrot.slane %v4442_v57, 4 }
 0x7af   :  { %4902 = vst [vmem:[#allocation1 + $0x1] ss:$2 sm:$0xff] %v4725_v49  ;;  %v10573_v4 = vld.sshfl [vmem:[#allocation1 + $0x20] sm:$0xff pattern:$0x75316420] }
 0x7b0   :  { %4903 = vst [vmem:[#allocation1 + $0x10] ss:$2 sm:$0xff] %v10531_v9 }
 0x7b1   :  { %11895 = vst [vmem:[#allocation24_spill] sm:$0xff] %v10573_v4  ;;  %v10585_v11 = vld.sshfl [vmem:[#allocation1 + $0x30] sm:$0xff pattern:$0x75316420] }
 0x7b2   :  { %4896 = vst [vmem:[#allocation1 + $0x20] ss:$2 sm:$0xff] %v4723_v36  ;;  %v10590_v4 = vpop.f32.mrf.mxu2  ;;  %v10592_v59 = vpop.f32.mrf.mxu3 }
 0x7b3   :  { %4897 = vst [vmem:[#allocation1 + $0x21] ss:$2 sm:$0xff] %v4442_v57  ;;  %v4731_v57 = vrot.slane %v4509_v53, 4 }
 0x7b4   :  { %11898 = vst [vmem:[#allocation11_spill] sm:$0xff] %v10585_v11 }
 0x7b5   :  { %4898 = vst [vmem:[#allocation1 + $0x30] ss:$2 sm:$0xff] %v4724_v13  ;;  %v4492_v62 = vpop.f32.mrf.mxu0  ;;  %v4727_v13 = vrot.slane %v10543_v35, 4 }
 0x7b6   :  { %v10581_v49 = vld.sshfl [vmem:[#allocation1] sm:$0xff pattern:$0x75316420] }
 0x7b7   :  { %11896 = vst [vmem:[#allocation5_spill] sm:$0xff] %v10581_v49  ;;  %v10583_v8 = vld.sshfl [vmem:[#allocation1 + $0x10] sm:$0xff pattern:$0x75316420]  ;;  %v4516_v49 = vpop.f32.mrf.mxu1 }
 0x7b8   :  { %11897 = vst [vmem:[#allocation6_spill] sm:$0xff] %v10583_v8 }
 0x7b9   :  { %4911 = vst [vmem:[#allocation1] ss:$2 sm:$0xff] %v4485_v46 }
 0x7ba   :  { %4912 = vst [vmem:[#allocation1 + $0x1] ss:$2 sm:$0xff] %v4728_v31  ;;  %v10588_v36 = vld.sshfl [vmem:[#allocation1 + $0x20] sm:$0xff pattern:$0x75316420]  ;;  %v4564_v62 = vpop.f32.mrf.mxu3 }
 0x7bb   :  { %4913 = vst [vmem:[#allocation1 + $0x10] ss:$2 sm:$0xff] %v4487_v63 }
 0x7bc   :  { %11899 = vst [vmem:[#allocation12_spill] sm:$0xff] %v10588_v36  ;;  %v10600_v9 = vld.sshfl [vmem:[#allocation1 + $0x30] sm:$0xff pattern:$0x75316420]  ;;  %v4729_v36 = vrot.slane %v4487_v63, 4 }
 0x7bd   :  { %4906 = vst [vmem:[#allocation1 + $0x20] ss:$2 sm:$0xff] %v4726_v45  ;;  %v4540_v45 = vpop.f32.mrf.mxu2  ;;  %v10605_v8 = vpop.f32.mrf.mxu0 }
 0x7be   :  { %4907 = vst [vmem:[#allocation1 + $0x21] ss:$2 sm:$0xff] %v10543_v35  ;;  %v10612_v35 = vrot.slane %v10558_v39, 4 }
 0x7bf   :  { %11902 = vst [vmem:[#allocation21_spill] sm:$0xff] %v10600_v9 }
 0x7c0   :  { %4908 = vst [vmem:[#allocation1 + $0x30] ss:$2 sm:$0xff] %v4727_v13 }
 0x7c1   :  { %v10595_v46 = vld.sshfl [vmem:[#allocation1] sm:$0xff pattern:$0x75316420]  ;;  %11904 = vst [vmem:[#allocation27_spill] sm:$0xff] %v10605_v8 }
 0x7c2   :  { %11900 = vst [vmem:[#allocation17_spill] sm:$0xff] %v10595_v46  ;;  %v10597_v31 = vld.sshfl [vmem:[#allocation1 + $0x10] sm:$0xff pattern:$0x75316420]  ;;  %v10607_v46 = vpop.f32.mrf.mxu1 }
 0x7c3   :  { %4921 = vst [vmem:[#allocation1] ss:$2 sm:$0xff] %v4509_v53 }
 0x7c4   :  { %11901 = vst [vmem:[#allocation18_spill] sm:$0xff] %v10597_v31 }
 0x7c5   :  { %4922 = vst [vmem:[#allocation1 + $0x1] ss:$2 sm:$0xff] %v4731_v57  ;;  %v10603_v49 = vld.sshfl [vmem:[#allocation1 + $0x20] sm:$0xff pattern:$0x75316420]  ;;  %v4730_v57 = vrot.slane %v4490_v27, 4  ;;  %v10622_v45 = vpop.f32.mrf.mxu0 }
 0x7c6   :  { %4923 = vst [vmem:[#allocation1 + $0x10] ss:$2 sm:$0xff] %v10565_v14 }
 0x7c7   :  { %11903 = vst [vmem:[#allocation22_spill] sm:$0xff] %v10603_v49  ;;  %v10618_v63 = vld.sshfl [vmem:[#allocation1 + $0x30] sm:$0xff pattern:$0x75316420] }
 0x7c8   :  { %11905 = vst [vmem:[#allocation26_spill] sm:$0xff] %v10607_v46 }
 0x7c9   :  { %4916 = vst [vmem:[#allocation1 + $0x20] ss:$2 sm:$0xff] %v4729_v36  ;;  %v4732_v36 = vrot.slane %v10565_v14, 4 }
 0x7ca   :  { %4917 = vst [vmem:[#allocation1 + $0x21] ss:$2 sm:$0xff] %v4490_v27  ;;  %v10624_v62 = vpop.f32.mrf.mxu1  ;;  %v10630_v27 = vrot.slane %v10560_v33, 4 }
 0x7cb   :  { %11908 = vst [vmem:[#allocation4_spill] sm:$0xff] %v10618_v63 }
 0x7cc   :  { %v10609_v53 = vld.sshfl [vmem:[#allocation1] sm:$0xff pattern:$0x75316420]  ;;  %4918 = vst [vmem:[#allocation1 + $0x30] ss:$2 sm:$0xff] %v4730_v57  ;;  %v4733_v57 = vrot.slane %v10579_v47, 4 }
 0x7cd   :  { %11906 = vst [vmem:[#allocation3_spill] sm:$0xff] %v10609_v53  ;;  %v10615_v13 = vld.sshfl [vmem:[#allocation1 + $0x10] sm:$0xff pattern:$0x75316420] }
 0x7ce   :  { %5075 = vst [vmem:[#allocation1] ss:$2 sm:$0xff] %v10558_v39 }
 0x7cf   :  { %11907 = vst [vmem:[#allocation2_spill] sm:$0xff] %v10615_v13 }
 0x7d0   :  { %5077 = vst [vmem:[#allocation1 + $0x1] ss:$2 sm:$0xff] %v10612_v35 }
 0x7d1   :  { %5079 = vst [vmem:[#allocation1 + $0x10] ss:$2 sm:$0xff] %v10575_v5  ;;  %v10626_v46 = vld.sshfl [vmem:[#allocation1 + $0x20] sm:$0xff pattern:$0x75316420] }
 0x7d2   :  { %11909 = vst [vmem:[#allocation47_spill] sm:$0xff] %v10622_v45  ;;  %v10640_v63 = vpop.f32.mrf.mxu1 }
 0x7d3   :  { %11910 = vst [vmem:[#allocation48_spill] sm:$0xff] %v10624_v62  ;;  %v10635_v45 = vld.sshfl [vmem:[#allocation1 + $0x30] sm:$0xff pattern:$0x75316420]  ;;  %v10638_v62 = vpop.f32.mrf.mxu0 }
 0x7d4   :  { %11911 = vst [vmem:[#allocation49_spill] sm:$0xff] %v10626_v46 }
 0x7d5   :  { %4926 = vst [vmem:[#allocation1 + $0x20] ss:$2 sm:$0xff] %v4732_v36 }
 0x7d6   :  { %4927 = vst [vmem:[#allocation1 + $0x21] ss:$2 sm:$0xff] %v10579_v47 }
 0x7d7   :  { %v5080_v53 = vld.sshfl [vmem:[#allocation1] sm:$0xff pattern:$0x75316420]  ;;  %11912 = vst [vmem:[#allocation50_spill] sm:$0xff] %v10635_v45 }
 0x7d8   :  { %v5081_v13 = vld.sshfl [vmem:[#allocation1 + $0x10] sm:$0xff pattern:$0x75316420]  ;;  %v5332_v49 = vpack.c.bf16 %v5080_v53, %v5080_v53  ;;  %5090 = vst [vmem:[#allocation1] ss:$2 sm:$0xff] %v10560_v33  ;;  %v10643_v53 = vrot.slane %v10575_v5, 4 }
 0x7d9   :  { %v5333_v14 = vpack.c.bf16 %v5081_v13, %v5081_v13  ;;  %5091 = vst [vmem:[#allocation1 + $0x1] ss:$2 sm:$0xff] %v10630_v27  ;;  %v5004_v13 = vpack.c.bf16 %v10420_v20, %v10420_v20 }
 0x7da   :  { %5092 = vst [vmem:[#allocation1 + $0x10] ss:$2 sm:$0xff] %v10577_v32  ;;  %v5411_v36 = vunpack.c.l.b16 %v5332_v49 }
 0x7db   :  { %v5412_v46 = vunpack.c.l.b16 %v5333_v14  ;;  %11913 = vst [vmem:[#allocation51_spill] sm:$0xff] %v10638_v62  ;;  %v5003_v14 = vpack.c.bf16 %v10412_v3, %v10412_v3  ;;  %v4612_v3 = vpop.f32.mrf.mxu1 }
 0x7dc   :  { %11914 = vst [vmem:[#allocation52_spill] sm:$0xff] %v10640_v63  ;;  %v5407_v63 = vunpack.c.l.b16 %v5004_v13  ;;  %v10664_v13 = vrot.slane %v10577_v32, 4 }
 0x7dd   :  { %4928 = vst [vmem:[#allocation1 + $0x30] ss:$2 sm:$0xff] %v4733_v57  ;;  %v10645_v8 = vld.sshfl [vmem:[#allocation1 + $0x20] sm:$0xff pattern:$0x75316420]  ;;  %v5413_v47 = vpack.c.b16 %v5412_v46, %v5411_v36  ;;  %v10656_v46 = vrot.slane %v10590_v4, 4 }
 0x7de   :  { %11915 = vst [vmem:[#allocation53_spill] sm:$0xff] %v10645_v8  ;;  %v5406_v8 = vunpack.c.l.b16 %v5003_v14 }
 0x7df   :  { %5083 = vst [vmem:[#allocation1 + $0x20] ss:$2 sm:$0xff] %v10643_v53  ;;  %v5418_v49 = vsel %vm1518_vm3, %v5413_v47, 0  ;;  %v4588_v47 = vpop.f32.mrf.mxu0 }
 0x7e0   :  { %5085 = vst [vmem:[#allocation1 + $0x21] ss:$2 sm:$0xff] %v10590_v4  ;;  %5427 = vmatpush.bf16.xpose.msra.mxu2 %v5418_v49  ;;  %v5093_v57 = vld.sshfl [vmem:[#allocation1] sm:$0xff pattern:$0x75316420] }
 0x7e1   :  { %v5094_v62 = vld.sshfl [vmem:[#allocation1 + $0x10] sm:$0xff pattern:$0x75316420]  ;;  %v5336_v45 = vpack.c.bf16 %v5093_v57, %v5093_v57  ;;  %5100 = vst [vmem:[#allocation1] ss:$2 sm:$0xff] %v10558_v39  ;;  %v5408_v57 = vpack.c.b16 %v5407_v63, %v5406_v8  ;;  %v10675_v8 = vrot.slane %v10592_v59, 4 }
 0x7e2   :  { %v5337_v20 = vpack.c.bf16 %v5094_v62, %v5094_v62  ;;  %5101 = vst [vmem:[#allocation1 + $0x1] ss:$2 sm:$0xff] %v10612_v35  ;;  %v5008_v62 = vpack.c.bf16 %v10432_v1, %v10432_v1 }
 0x7e3   :  { %5102 = vst [vmem:[#allocation1 + $0x10] ss:$2 sm:$0xff] %v10575_v5  ;;  %v5471_v49 = vunpack.c.l.b16 %v5336_v45  ;;  %v5007_v45 = vpack.c.bf16 %v10422_v48, %v10422_v48 }
 0x7e4   :  { %v10659_v36 = vld.sshfl [vmem:[#allocation1 + $0x30] sm:$0xff pattern:$0x75316420]  ;;  %v5472_v31 = vunpack.c.l.b16 %v5337_v20  ;;  %v5467_v63 = vunpack.c.l.b16 %v5008_v62 }
 0x7e5   :  { %11916 = vst [vmem:[#allocation54_spill] sm:$0xff] %v10659_v36 }
 0x7e6   :  { %5087 = vst [vmem:[#allocation1 + $0x30] ss:$2 sm:$0xff] %v10656_v46  ;;  %v5473_v9 = vpack.c.b16 %v5472_v31, %v5471_v49 }
 0x7e7   :  { %v5088_v11 = vld.sshfl [vmem:[#allocation1 + $0x20] sm:$0xff pattern:$0x75316420]  ;;  %8268 = vmatmul.msk.bf16.vlgmr.msra.gmra.mxu2 %vm1518_vm3, %v5408_v57  ;;  %v5466_v57 = vunpack.c.l.b16 %v5007_v45 }
 0x7e8   :  { %5095 = vst [vmem:[#allocation1 + $0x20] ss:$2 sm:$0xff] %v10664_v13  ;;  %v5478_v14 = vsel %vm1518_vm3, %v5473_v9, 0  ;;  %v5334_v31 = vpack.c.bf16 %v5088_v11, %v5088_v11 }
 0x7e9   :  { %5096 = vst [vmem:[#allocation1 + $0x21] ss:$2 sm:$0xff] %v10592_v59  ;;  %5487 = vmatpush.bf16.xpose.msrb.mxu0 %v5478_v14  ;;  %v5103_v20 = vld.sshfl [vmem:[#allocation1] sm:$0xff pattern:$0x75316420]  ;;  %v5468_v11 = vpack.c.b16 %v5467_v63, %v5466_v57 }
 0x7ea   :  { %v5104_v47 = vld.sshfl [vmem:[#allocation1 + $0x10] sm:$0xff pattern:$0x75316420]  ;;  %v5340_v1 = vpack.c.bf16 %v5103_v20, %v5103_v20  ;;  %5110 = vst [vmem:[#allocation1] ss:$2 sm:$0xff] %v10560_v33  ;;  %v5441_v36 = vunpack.c.l.b16 %v5334_v31  ;;  %v5012_v20 = vpack.c.bf16 %v10440_v30, %v10440_v30  ;;  %v5011_v31 = vpack.c.bf16 %v10438_v25, %v10438_v25 }
 0x7eb   :  { %v5341_v49 = vpack.c.bf16 %v5104_v47, %v5104_v47  ;;  %5111 = vst [vmem:[#allocation1 + $0x1] ss:$2 sm:$0xff] %v10630_v27  ;;  %v5006_v47 = vpack.c.bf16 %v10436_v7, %v10436_v7 }
 0x7ec   :  { %v5531_v48 = vunpack.c.l.b16 %v5340_v1  ;;  %5112 = vst [vmem:[#allocation1 + $0x10] ss:$2 sm:$0xff] %v10577_v32  ;;  %v5527_v7 = vunpack.c.l.b16 %v5012_v20  ;;  %v5526_v25 = vunpack.c.l.b16 %v5011_v31  ;;  %v5010_v20 = vpack.c.bf16 %v10444_v28, %v10444_v28 }
 0x7ed   :  { %v5089_v3 = vld.sshfl [vmem:[#allocation1 + $0x30] sm:$0xff pattern:$0x75316420]  ;;  %v5532_v14 = vunpack.c.l.b16 %v5341_v49  ;;  %v5437_v49 = vunpack.c.l.b16 %v5006_v47 }
 0x7ee   :  { %v5335_v9 = vpack.c.bf16 %v5089_v3, %v5089_v3  ;;  %5097 = vst [vmem:[#allocation1 + $0x30] ss:$2 sm:$0xff] %v10675_v8 }
 0x7ef   :  { %v5533_v62 = vpack.c.b16 %v5532_v14, %v5531_v48 }
 0x7f0   :  { %v5442_v52 = vunpack.c.l.b16 %v5335_v9  ;;  %v5098_v44 = vld.sshfl [vmem:[#allocation1 + $0x20] sm:$0xff pattern:$0x75316420]  ;;  %8270 = vmatmul.msk.bf16.vlgmr.msrb.gmra.mxu0 %vm1518_vm3, %v5468_v11 }
 0x7f1   :  { %5105 = vst [vmem:[#allocation1 + $0x20] ss:$2 sm:$0xff] %v10643_v53  ;;  %v5538_v45 = vsel %vm1518_vm3, %v5533_v62, 0  ;;  %v5338_v30 = vpack.c.bf16 %v5098_v44, %v5098_v44  ;;  %v5528_v44 = vpack.c.b16 %v5527_v7, %v5526_v25  ;;  %v5497_v7 = vunpack.c.l.b16 %v5010_v20 }
 0x7f2   :  { %v5443_v37 = vpack.c.b16 %v5442_v52, %v5441_v36  ;;  %5106 = vst [vmem:[#allocation1 + $0x21] ss:$2 sm:$0xff] %v10590_v4  ;;  %5547 = vmatpush.bf16.xpose.msrb.mxu2 %v5538_v45  ;;  %v5005_v52 = vpack.c.bf16 %v10434_v56, %v10434_v56  ;;  %v5113_v36 = vld.sshfl [vmem:[#allocation1] sm:$0xff pattern:$0x75316420] }
 0x7f3   :  { %v5344_v3 = vpack.c.bf16 %v5113_v36, %v5113_v36  ;;  %5120 = vst [vmem:[#allocation1] ss:$2 sm:$0xff] %v10558_v39  ;;  %v5114_v57 = vld.sshfl [vmem:[#allocation1 + $0x10] sm:$0xff pattern:$0x75316420]  ;;  %v5501_v14 = vunpack.c.l.b16 %v5338_v30  ;;  %v5009_v36 = vpack.c.bf16 %v10442_v22, %v10442_v22  ;;  %v5015_v22 = vpack.c.bf16 %v10450_v19, %v10450_v19 }
 0x7f4   :  { %v5448_v63 = vsel %vm1518_vm3, %v5443_v37, 0  ;;  %v5345_v48 = vpack.c.bf16 %v5114_v57, %v5114_v57  ;;  %5121 = vst [vmem:[#allocation1 + $0x1] ss:$2 sm:$0xff] %v10612_v35  ;;  %v5436_v37 = vunpack.c.l.b16 %v5005_v52  ;;  %v5016_v52 = vpack.c.bf16 %v10452_v15, %v10452_v15 }
 0x7f5   :  { %5457 = vmatpush.bf16.xpose.msrb.mxu3 %v5448_v63  ;;  %v5099_v1 = vld.sshfl [vmem:[#allocation1 + $0x30] sm:$0xff pattern:$0x75316420]  ;;  %5122 = vst [vmem:[#allocation1 + $0x10] ss:$2 sm:$0xff] %v10575_v5  ;;  %v5591_v11 = vunpack.c.l.b16 %v5344_v3 }
 0x7f6   :  { %v5339_v9 = vpack.c.bf16 %v5099_v1, %v5099_v1  ;;  %5107 = vst [vmem:[#allocation1 + $0x30] ss:$2 sm:$0xff] %v10656_v46  ;;  %v5592_v62 = vunpack.c.l.b16 %v5345_v48  ;;  %v5438_v47 = vpack.c.b16 %v5437_v49, %v5436_v37  ;;  %v5587_v57 = vunpack.c.l.b16 %v5016_v52 }
 0x7f8   :  { %v5502_v56 = vunpack.c.l.b16 %v5339_v9  ;;  %v5593_v31 = vpack.c.b16 %v5592_v62, %v5591_v11  ;;  %v5496_v9 = vunpack.c.l.b16 %v5009_v36  ;;  %v5586_v11 = vunpack.c.l.b16 %v5015_v22 }
 0x7f9   :  { %v5108_v63 = vld.sshfl [vmem:[#allocation1 + $0x20] sm:$0xff pattern:$0x75316420]  ;;  %8272 = vmatmul.msk.bf16.vlgmr.msrb.gmra.mxu2 %vm1518_vm3, %v5528_v44 }
 0x7fa   :  { %v5503_v45 = vpack.c.b16 %v5502_v56, %v5501_v14  ;;  %5115 = vst [vmem:[#allocation1 + $0x20] ss:$2 sm:$0xff] %v10664_v13  ;;  %v5342_v1 = vpack.c.bf16 %v5108_v63, %v5108_v63  ;;  %v5598_v28 = vsel %vm1518_vm3, %v5593_v31, 0  ;;  %v5498_v44 = vpack.c.b16 %v5497_v7, %v5496_v9 }
 0x7fb   :  { %5116 = vst [vmem:[#allocation1 + $0x21] ss:$2 sm:$0xff] %v10592_v59  ;;  %5607 = vmatpush.bf16.xpose.msra.mxu0 %v5598_v28  ;;  %v5123_v15 = vld.sshfl [vmem:[#allocation1] sm:$0xff pattern:$0x75316420]  ;;  %v5013_v63 = vpack.c.bf16 %v10454_v34, %v10454_v34 }
 0x7fc   :  { %8269 = vmatmul.msk.bf16.vlgmr.msrb.gmra.mxu3 %vm1518_vm3, %v5438_v47  ;;  %v5508_v30 = vsel %vm1518_vm3, %v5503_v45, 0  ;;  %v5124_v25 = vld.sshfl [vmem:[#allocation1 + $0x10] sm:$0xff pattern:$0x75316420]  ;;  %v5348_v48 = vpack.c.bf16 %v5123_v15, %v5123_v15  ;;  %5130 = vst [vmem:[#allocation1] ss:$2 sm:$0xff] %v10560_v33  ;;  %v5561_v37 = vunpack.c.l.b16 %v5342_v1  ;;  %v5014_v47 = vpack.c.bf16 %v10456_v6, %v10456_v6 }
 0x7fd   :  { %5517 = vmatpush.bf16.xpose.msrb.mxu1 %v5508_v30  ;;  %v5109_v3 = vld.sshfl [vmem:[#allocation1 + $0x30] sm:$0xff pattern:$0x75316420]  ;;  %v5349_v56 = vpack.c.bf16 %v5124_v25, %v5124_v25  ;;  %5131 = vst [vmem:[#allocation1 + $0x1] ss:$2 sm:$0xff] %v10630_v27  ;;  %v5588_v45 = vpack.c.b16 %v5587_v57, %v5586_v11  ;;  %v5020_v1 = vpack.c.bf16 %v10462_v24, %v10462_v24  ;;  %v5556_v22 = vunpack.c.l.b16 %v5013_v63 }
 0x7fe   :  { %v5343_v49 = vpack.c.bf16 %v5109_v3, %v5109_v3  ;;  %5117 = vst [vmem:[#allocation1 + $0x30] ss:$2 sm:$0xff] %v10675_v8  ;;  %v5651_v62 = vunpack.c.l.b16 %v5348_v48  ;;  %v5557_v28 = vunpack.c.l.b16 %v5014_v47  ;;  %v5019_v3 = vpack.c.bf16 %v10458_v17, %v10458_v17 }
 0x7ff   :  { %5132 = vst [vmem:[#allocation1 + $0x10] ss:$2 sm:$0xff] %v10577_v32  ;;  %v5652_v20 = vunpack.c.l.b16 %v5349_v56  ;;  %v5647_v9 = vunpack.c.l.b16 %v5020_v1  ;;  %v5018_v17 = vpack.c.bf16 %v10470_v43, %v10470_v43  ;;  %v5024_v43 = vpack.c.bf16 %v10474_v23, %v10474_v23 }
 0x800   :  { %v5562_v14 = vunpack.c.l.b16 %v5343_v49  ;;  %v5646_v56 = vunpack.c.l.b16 %v5019_v3 }
 0x801   :  { %v5653_v52 = vpack.c.b16 %v5652_v20, %v5651_v62  ;;  %v5017_v20 = vpack.c.bf16 %v10468_v38, %v10468_v38  ;;  %v5023_v38 = vpack.c.bf16 %v10472_v51, %v10472_v51 }
 0x802   :  { %v5563_v19 = vpack.c.b16 %v5562_v14, %v5561_v37  ;;  %v5118_v31 = vld.sshfl [vmem:[#allocation1 + $0x20] sm:$0xff pattern:$0x75316420]  ;;  %8274 = vmatmul.msk.bf16.vlgmr.msra.gmra.mxu0 %vm1518_vm3, %v5588_v45  ;;  %v5558_v37 = vpack.c.b16 %v5557_v28, %v5556_v22  ;;  %v5648_v62 = vpack.c.b16 %v5647_v9, %v5646_v56 }
 0x803   :  { %v5346_v30 = vpack.c.bf16 %v5118_v31, %v5118_v31  ;;  %5125 = vst [vmem:[#allocation1 + $0x20] ss:$2 sm:$0xff] %v10643_v53  ;;  %v5658_v34 = vsel %vm1518_vm3, %v5653_v52, 0  ;;  %v5616_v1 = vunpack.c.l.b16 %v5017_v20  ;;  %v5706_v9 = vunpack.c.l.b16 %v5023_v38 }
 0x804   :  { %8271 = vmatmul.msk.bf16.vlgmr.msrb.gmra.mxu1 %vm1518_vm3, %v5498_v44  ;;  %v5568_v36 = vsel %vm1518_vm3, %v5563_v19, 0  ;;  %5126 = vst [vmem:[#allocation1 + $0x21] ss:$2 sm:$0xff] %v10590_v4  ;;  %5667 = vmatpush.bf16.xpose.msra.mxu2 %v5658_v34  ;;  %v5133_v49 = vld.sshfl [vmem:[#allocation1] sm:$0xff pattern:$0x75316420]  ;;  %v5027_v20 = vpack.c.bf16 %v10480_v55, %v10480_v55  ;;  %v5026_v38 = vpack.c.bf16 %v10489_v18, %v10489_v18 }
 0x805   :  { %5577 = vmatpush.bf16.xpose.msra.mxu3 %v5568_v36  ;;  %v5119_v6 = vld.sshfl [vmem:[#allocation1 + $0x30] sm:$0xff pattern:$0x75316420]  ;;  %v5621_v15 = vunpack.c.l.b16 %v5346_v30  ;;  %v5352_v25 = vpack.c.bf16 %v5133_v49, %v5133_v49  ;;  %5140 = vst [vmem:[#allocation1] ss:$2 sm:$0xff] %v10558_v39  ;;  %v5617_v36 = vunpack.c.l.b16 %v5018_v17  ;;  %v5032_v18 = vpack.c.bf16 %v10491_v0, %v10491_v0 }
 0x806   :  { %v5347_v7 = vpack.c.bf16 %v5119_v6, %v5119_v6  ;;  %5127 = vst [vmem:[#allocation1 + $0x30] ss:$2 sm:$0xff] %v10656_v46  ;;  %v5134_v57 = vld.sshfl [vmem:[#allocation1 + $0x10] sm:$0xff pattern:$0x75316420]  ;;  %v5766_v55 = vunpack.c.l.b16 %v5027_v20 }
 0x807   :  { %v5353_v48 = vpack.c.bf16 %v5134_v57, %v5134_v57  ;;  %5141 = vst [vmem:[#allocation1 + $0x1] ss:$2 sm:$0xff] %v10612_v35  ;;  %v5711_v44 = vunpack.c.l.b16 %v5352_v25  ;;  %v5618_v22 = vpack.c.b16 %v5617_v36, %v5616_v1 }
 0x808   :  { %v5622_v24 = vunpack.c.l.b16 %v5347_v7  ;;  %5142 = vst [vmem:[#allocation1 + $0x10] ss:$2 sm:$0xff] %v10575_v5  ;;  %v5707_v7 = vunpack.c.l.b16 %v5024_v43 }
 0x809   :  { %v5712_v11 = vunpack.c.l.b16 %v5353_v48  ;;  %v5021_v48 = vpack.c.bf16 %v10476_v12, %v10476_v12 }
 0x80a   :  { %v5623_v14 = vpack.c.b16 %v5622_v24, %v5621_v15  ;;  %v5022_v24 = vpack.c.bf16 %v10478_v10, %v10478_v10  ;;  %v5028_v10 = vpack.c.bf16 %v10482_v2, %v10482_v2 }
 0x80b   :  { %v5128_v47 = vld.sshfl [vmem:[#allocation1 + $0x20] sm:$0xff pattern:$0x75316420]  ;;  %v5713_v45 = vpack.c.b16 %v5712_v11, %v5711_v44  ;;  %8276 = vmatmul.msk.bf16.vlgmr.msra.gmra.mxu2 %vm1518_vm3, %v5648_v62  ;;  %v5676_v12 = vunpack.c.l.b16 %v5021_v48 }
 0x80c   :  { %8273 = vmatmul.msk.bf16.vlgmr.msra.gmra.mxu3 %vm1518_vm3, %v5558_v37  ;;  %v5628_v19 = vsel %vm1518_vm3, %v5623_v14, 0  ;;  %v5350_v31 = vpack.c.bf16 %v5128_v47, %v5128_v47  ;;  %5135 = vst [vmem:[#allocation1 + $0x20] ss:$2 sm:$0xff] %v10664_v13  ;;  %v5708_v37 = vpack.c.b16 %v5707_v7, %v5706_v9  ;;  %v5677_v17 = vunpack.c.l.b16 %v5022_v24 }
 0x80d   :  { %5637 = vmatpush.bf16.xpose.msra.mxu1 %v5628_v19  ;;  %v5129_v63 = vld.sshfl [vmem:[#allocation1 + $0x30] sm:$0xff pattern:$0x75316420]  ;;  %5136 = vst [vmem:[#allocation1 + $0x21] ss:$2 sm:$0xff] %v10592_v59  ;;  %v5718_v30 = vsel %vm1518_vm3, %v5713_v45, 0  ;;  %v5767_v43 = vunpack.c.l.b16 %v5028_v10 }
 0x80e   :  { %v5351_v52 = vpack.c.bf16 %v5129_v63, %v5129_v63  ;;  %5137 = vst [vmem:[#allocation1 + $0x30] ss:$2 sm:$0xff] %v10675_v8  ;;  %5727 = vmatpush.bf16.xpose.msrb.mxu0 %v5718_v30  ;;  %v5681_v6 = vunpack.c.l.b16 %v5350_v31  ;;  %v5143_v28 = vld.sshfl [vmem:[#allocation1] sm:$0xff pattern:$0x75316420]  ;;  %v5678_v31 = vpack.c.b16 %v5677_v17, %v5676_v12  ;;  %v5029_v12 = vpack.c.bf16 %v10494_v21, %v10494_v21 }
 0x80f   :  { %v5144_v23 = vld.sshfl [vmem:[#allocation1 + $0x10] sm:$0xff pattern:$0x75316420]  ;;  %v5356_v3 = vpack.c.bf16 %v5143_v28, %v5143_v28  ;;  %5150 = vst [vmem:[#allocation1] ss:$2 sm:$0xff] %v10560_v33  ;;  %v5025_v28 = vpack.c.bf16 %v10485_v58, %v10485_v58  ;;  %v5768_v7 = vpack.c.b16 %v5767_v43, %v5766_v55 }
 0x810   :  { %v5682_v34 = vunpack.c.l.b16 %v5351_v52  ;;  %v5357_v15 = vpack.c.bf16 %v5144_v23, %v5144_v23  ;;  %5151 = vst [vmem:[#allocation1 + $0x1] ss:$2 sm:$0xff] %v10630_v27  ;;  %v5796_v21 = vunpack.c.l.b16 %v5029_v12 }
 0x811   :  { %5152 = vst [vmem:[#allocation1 + $0x10] ss:$2 sm:$0xff] %v10577_v32  ;;  %v5771_v57 = vunpack.c.l.b16 %v5356_v3  ;;  %v5736_v58 = vunpack.c.l.b16 %v5025_v28 }
 0x812   :  { %v5683_v49 = vpack.c.b16 %v5682_v34, %v5681_v6  ;;  %v5772_v25 = vunpack.c.l.b16 %v5357_v15 }
 0x814   :  { %8275 = vmatmul.msk.bf16.vlgmr.msra.gmra.mxu1 %vm1518_vm3, %v5618_v22  ;;  %v5688_v51 = vsel %vm1518_vm3, %v5683_v49, 0  ;;  %v5138_v14 = vld.sshfl [vmem:[#allocation1 + $0x20] sm:$0xff pattern:$0x75316420]  ;;  %v5773_v56 = vpack.c.b16 %v5772_v25, %v5771_v57  ;;  %v5737_v22 = vunpack.c.l.b16 %v5026_v38 }
 0x815   :  { %5697 = vmatpush.bf16.xpose.msrb.mxu3 %v5688_v51  ;;  %v5139_v44 = vld.sshfl [vmem:[#allocation1 + $0x30] sm:$0xff pattern:$0x75316420]  ;;  %v5354_v11 = vpack.c.bf16 %v5138_v14, %v5138_v14  ;;  %5145 = vst [vmem:[#allocation1 + $0x20] ss:$2 sm:$0xff] %v10643_v53  ;;  %8278 = vmatmul.msk.bf16.vlgmr.msrb.gmra.mxu0 %vm1518_vm3, %v5708_v37  ;;  %v5031_v51 = vpack.c.bf16 %v10487_v41, %v10487_v41  ;;  %v5827_v14 = vunpack.c.l.b16 %v5032_v18 }
 0x816   :  { %v5355_v19 = vpack.c.bf16 %v5139_v44, %v5139_v44  ;;  %5146 = vst [vmem:[#allocation1 + $0x21] ss:$2 sm:$0xff] %v10590_v4  ;;  %v5778_v62 = vsel %vm1518_vm3, %v5773_v56, 0  ;;  %v5738_v37 = vpack.c.b16 %v5737_v22, %v5736_v58 }
 0x817   :  { %5147 = vst [vmem:[#allocation1 + $0x30] ss:$2 sm:$0xff] %v10656_v46  ;;  %5787 = vmatpush.bf16.xpose.msrb.mxu2 %v5778_v62  ;;  %v5741_v47 = vunpack.c.l.b16 %v5354_v11  ;;  %v5153_v63 = vld.sshfl [vmem:[#allocation1] sm:$0xff pattern:$0x75316420]  ;;  %v5030_v11 = vpack.c.bf16 %v10502_v54, %v10502_v54  ;;  %v5826_v41 = vunpack.c.l.b16 %v5031_v51  ;;  %v5036_v54 = vpack.c.bf16 %v10500_v16, %v10500_v16 }
 0x818   :  { %v5742_v45 = vunpack.c.l.b16 %v5355_v19  ;;  %v5154_v2 = vld.sshfl [vmem:[#allocation1 + $0x10] sm:$0xff pattern:$0x75316420]  ;;  %v5360_v36 = vpack.c.bf16 %v5153_v63, %v5153_v63  ;;  %5160 = vst [vmem:[#allocation1] ss:$2 sm:$0xff] %v10558_v39 }
 0x819   :  { %v5361_v30 = vpack.c.bf16 %v5154_v2, %v5154_v2  ;;  %5161 = vst [vmem:[#allocation1 + $0x1] ss:$2 sm:$0xff] %v10612_v35  ;;  %v5828_v20 = vpack.c.b16 %v5827_v14, %v5826_v41  ;;  %v5797_v63 = vunpack.c.l.b16 %v5030_v11 }
 0x81a   :  { %v5743_v52 = vpack.c.b16 %v5742_v45, %v5741_v47  ;;  %5162 = vst [vmem:[#allocation1 + $0x10] ss:$2 sm:$0xff] %v10575_v5  ;;  %v5831_v6 = vunpack.c.l.b16 %v5360_v36 }
 0x81b   :  { %v5832_v34 = vunpack.c.l.b16 %v5361_v30 }
 0x81c   :  { %8277 = vmatmul.msk.bf16.vlgmr.msrb.gmra.mxu3 %vm1518_vm3, %v5678_v31  ;;  %v5748_v1 = vsel %vm1518_vm3, %v5743_v52, 0  ;;  %v5035_v52 = vpack.c.bf16 %v10498_v50, %v10498_v50 }
 0x81d   :  { %5757 = vmatpush.bf16.xpose.msrb.mxu1 %v5748_v1  ;;  %v5148_v23 = vld.sshfl [vmem:[#allocation1 + $0x20] sm:$0xff pattern:$0x75316420]  ;;  %v5833_v3 = vpack.c.b16 %v5832_v34, %v5831_v6  ;;  %v5798_v1 = vpack.c.b16 %v5797_v63, %v5796_v21  ;;  %v5887_v6 = vunpack.c.l.b16 %v5036_v54 }
 0x81e   :  { %v5149_v49 = vld.sshfl [vmem:[#allocation1 + $0x30] sm:$0xff pattern:$0x75316420]  ;;  %v5358_v15 = vpack.c.bf16 %v5148_v23, %v5148_v23  ;;  %5155 = vst [vmem:[#allocation1 + $0x20] ss:$2 sm:$0xff] %v10664_v13  ;;  %8280 = vmatmul.msk.bf16.vlgmr.msrb.gmra.mxu2 %vm1518_vm3, %v5768_v7  ;;  %v5034_v23 = vpack.c.bf16 %v10512_v29, %v10512_v29  ;;  %v5886_v50 = vunpack.c.l.b16 %v5035_v52  ;;  %v5040_v29 = vpack.c.bf16 %v10510_v61, %v10510_v61 }
 0x81f   :  { %v5359_v24 = vpack.c.bf16 %v5149_v49, %v5149_v49  ;;  %5156 = vst [vmem:[#allocation1 + $0x21] ss:$2 sm:$0xff] %v10592_v59  ;;  %v5838_v9 = vsel %vm1518_vm3, %v5833_v3, 0 }
 0x820   :  { %5157 = vst [vmem:[#allocation1 + $0x30] ss:$2 sm:$0xff] %v10675_v8  ;;  %5847 = vmatpush.bf16.xpose.msra.mxu0 %v5838_v9  ;;  %v5801_v57 = vunpack.c.l.b16 %v5358_v15  ;;  %v5163_v48 = vld.sshfl [vmem:[#allocation1] sm:$0xff pattern:$0x75316420]  ;;  %v5033_v15 = vpack.c.bf16 %v10506_v40, %v10506_v40  ;;  %v5888_v18 = vpack.c.b16 %v5887_v6, %v5886_v50  ;;  %v5857_v58 = vunpack.c.l.b16 %v5034_v23 }
 0x821   :  { %v5802_v25 = vunpack.c.l.b16 %v5359_v24  ;;  %v5164_v0 = vld.sshfl [vmem:[#allocation1 + $0x10] sm:$0xff pattern:$0x75316420]  ;;  %v5364_v56 = vpack.c.bf16 %v5163_v48, %v5163_v48  ;;  %5170 = vst [vmem:[#allocation1] ss:$2 sm:$0xff] %v10560_v33 }
 0x822   :  { %v5365_v44 = vpack.c.bf16 %v5164_v0, %v5164_v0  ;;  %5171 = vst [vmem:[#allocation1 + $0x1] ss:$2 sm:$0xff] %v10630_v27  ;;  %v5856_v40 = vunpack.c.l.b16 %v5033_v15 }
 0x823   :  { %v5803_v17 = vpack.c.b16 %v5802_v25, %v5801_v57  ;;  %5172 = vst [vmem:[#allocation1 + $0x10] ss:$2 sm:$0xff] %v10577_v32  ;;  %v5891_v19 = vunpack.c.l.b16 %v5364_v56 }
 0x824   :  { %8279 = vmatmul.msk.bf16.vlgmr.msrb.gmra.mxu1 %vm1518_vm3, %v5738_v37  ;;  %v5892_v62 = vunpack.c.l.b16 %v5365_v44  ;;  %v5039_v37 = vpack.c.bf16 %v10508_v60, %v10508_v60  ;;  %v5947_v44 = vunpack.c.l.b16 %v5040_v29 }
 0x825   :  { %v5808_v10 = vsel %vm1518_vm3, %v5803_v17, 0  ;;  %v5858_v17 = vpack.c.b16 %v5857_v58, %v5856_v40 }
 0x826   :  { %5817 = vmatpush.bf16.xpose.msra.mxu3 %v5808_v10  ;;  %v5158_v47 = vld.sshfl [vmem:[#allocation1 + $0x20] sm:$0xff pattern:$0x75316420]  ;;  %v5893_v45 = vpack.c.b16 %v5892_v62, %v5891_v19  ;;  %v5038_v19 = vpack.c.bf16 %v10520_v42, %v10520_v42  ;;  %v5946_v60 = vunpack.c.l.b16 %v5039_v37  ;;  %v11921_v37 = vld [vmem:[#allocation35_spill] sm:$0xff] }
 0x827   :  { %v5159_v31 = vld.sshfl [vmem:[#allocation1 + $0x30] sm:$0xff pattern:$0x75316420]  ;;  %v5362_v43 = vpack.c.bf16 %v5158_v47, %v5158_v47  ;;  %5165 = vst [vmem:[#allocation1 + $0x20] ss:$2 sm:$0xff] %v10643_v53  ;;  %8282 = vmatmul.msk.bf16.vlgmr.msra.gmra.mxu0 %vm1518_vm3, %v5828_v20  ;;  %v5037_v47 = vpack.c.bf16 %v10514_v26, %v10514_v26  ;;  %v11917_v42 = vld [vmem:[#allocation33_spill] sm:$0xff] }
 0x828   :  { %v5363_v2 = vpack.c.bf16 %v5159_v31, %v5159_v31  ;;  %5166 = vst [vmem:[#allocation1 + $0x21] ss:$2 sm:$0xff] %v10590_v4  ;;  %v5898_v36 = vsel %vm1518_vm3, %v5893_v45, 0  ;;  %v5948_v45 = vpack.c.b16 %v5947_v44, %v5946_v60  ;;  %v11922_v44 = vld [vmem:[#allocation32_spill] sm:$0xff] }
 0x829   :  { %5167 = vst [vmem:[#allocation1 + $0x30] ss:$2 sm:$0xff] %v10656_v46  ;;  %5907 = vmatpush.bf16.xpose.msra.mxu2 %v5898_v36  ;;  %v5861_v30 = vunpack.c.l.b16 %v5362_v43  ;;  %v5173_v55 = vld.sshfl [vmem:[#allocation1] sm:$0xff pattern:$0x75316420]  ;;  %v5917_v43 = vunpack.c.l.b16 %v5038_v19  ;;  %v5044_v36 = vpack.c.bf16 %v11917_v42, %v11917_v42  ;;  %v5916_v26 = vunpack.c.l.b16 %v5037_v47  ;;  %v11924_v42 = vld [vmem:[#allocation39_spill] sm:$0xff] }
 0x82a   :  { %v5862_v38 = vunpack.c.l.b16 %v5363_v2  ;;  %v5174_v16 = vld.sshfl [vmem:[#allocation1 + $0x10] sm:$0xff pattern:$0x75316420]  ;;  %v5368_v34 = vpack.c.bf16 %v5173_v55, %v5173_v55  ;;  %5180 = vst [vmem:[#allocation1] ss:$2 sm:$0xff] %v10558_v39 }
 0x82b   :  { %v5369_v7 = vpack.c.bf16 %v5174_v16, %v5174_v16  ;;  %5181 = vst [vmem:[#allocation1 + $0x1] ss:$2 sm:$0xff] %v10612_v35  ;;  %v5918_v16 = vpack.c.b16 %v5917_v43, %v5916_v26 }
 0x82c   :  { %v5863_v28 = vpack.c.b16 %v5862_v38, %v5861_v30  ;;  %5182 = vst [vmem:[#allocation1 + $0x10] ss:$2 sm:$0xff] %v10575_v5  ;;  %v5951_v22 = vunpack.c.l.b16 %v5368_v34  ;;  %v11918_v30 = vld [vmem:[#allocation36_spill] sm:$0xff]  ;;  %v6007_v34 = vunpack.c.l.b16 %v5044_v36  ;;  %v5045_v36 = vpack.c.bf16 %v11924_v42, %v11924_v42 }
 0x82d   :  { %8281 = vmatmul.msk.bf16.vlgmr.msra.gmra.mxu3 %vm1518_vm3, %v5798_v1  ;;  %v5952_v49 = vunpack.c.l.b16 %v5369_v7  ;;  %v5043_v38 = vpack.c.bf16 %v11918_v30, %v11918_v30 }
 0x82e   :  { %v5868_v3 = vsel %vm1518_vm3, %v5863_v28, 0 }
 0x82f   :  { %5877 = vmatpush.bf16.xpose.msra.mxu1 %v5868_v3  ;;  %v5168_v24 = vld.sshfl [vmem:[#allocation1 + $0x20] sm:$0xff pattern:$0x75316420]  ;;  %v5953_v9 = vpack.c.b16 %v5952_v49, %v5951_v22  ;;  %v11919_v3 = vld [vmem:[#allocation34_spill] sm:$0xff]  ;;  %v6006_v49 = vunpack.c.l.b16 %v5043_v38 }
 0x830   :  { %v5169_v51 = vld.sshfl [vmem:[#allocation1 + $0x30] sm:$0xff pattern:$0x75316420]  ;;  %v5366_v57 = vpack.c.bf16 %v5168_v24, %v5168_v24  ;;  %5175 = vst [vmem:[#allocation1 + $0x20] ss:$2 sm:$0xff] %v10664_v13  ;;  %8284 = vmatmul.msk.bf16.vlgmr.msra.gmra.mxu2 %vm1518_vm3, %v5888_v18  ;;  %v5042_v22 = vpack.c.bf16 %v11919_v3, %v11919_v3 }
 0x831   :  { %v5367_v25 = vpack.c.bf16 %v5169_v51, %v5169_v51  ;;  %5176 = vst [vmem:[#allocation1 + $0x21] ss:$2 sm:$0xff] %v10592_v59  ;;  %v5958_v48 = vsel %vm1518_vm3, %v5953_v9, 0  ;;  %v11920_v9 = vld [vmem:[#allocation40_spill] sm:$0xff]  ;;  %v6008_v51 = vpack.c.b16 %v6007_v34, %v6006_v49 }
 0x832   :  { %5177 = vst [vmem:[#allocation1 + $0x30] ss:$2 sm:$0xff] %v10675_v8  ;;  %5967 = vmatpush.bf16.xpose.msrb.mxu0 %v5958_v48  ;;  %v5921_v14 = vunpack.c.l.b16 %v5366_v57  ;;  %v5183_v56 = vld.sshfl [vmem:[#allocation1] sm:$0xff pattern:$0x75316420]  ;;  %v5041_v58 = vpack.c.bf16 %v11920_v9, %v11920_v9 }
 0x833   :  { %v5922_v0 = vunpack.c.l.b16 %v5367_v25  ;;  %v5184_v61 = vld.sshfl [vmem:[#allocation1 + $0x10] sm:$0xff pattern:$0x75316420]  ;;  %v5372_v11 = vpack.c.bf16 %v5183_v56, %v5183_v56  ;;  %5190 = vst [vmem:[#allocation1] ss:$2 sm:$0xff] %v10560_v33  ;;  %v5977_v25 = vunpack.c.l.b16 %v5042_v22 }
 0x834   :  { %v5373_v10 = vpack.c.bf16 %v5184_v61, %v5184_v61  ;;  %5191 = vst [vmem:[#allocation1 + $0x1] ss:$2 sm:$0xff] %v10630_v27  ;;  %v5047_v61 = vpack.c.bf16 %v11922_v44, %v11922_v44 }
 0x835   :  { %v5923_v41 = vpack.c.b16 %v5922_v0, %v5921_v14  ;;  %5192 = vst [vmem:[#allocation1 + $0x10] ss:$2 sm:$0xff] %v10577_v32  ;;  %v6011_v12 = vunpack.c.l.b16 %v5372_v11  ;;  %v5048_v14 = vpack.c.bf16 %v11921_v37, %v11921_v37  ;;  %v11928_v37 = vld [vmem:[#allocation44_spill] sm:$0xff] }
 0x836   :  { %8283 = vmatmul.msk.bf16.vlgmr.msra.gmra.mxu1 %vm1518_vm3, %v5858_v17  ;;  %v6012_v20 = vunpack.c.l.b16 %v5373_v10  ;;  %v5976_v17 = vunpack.c.l.b16 %v5041_v58 }
 0x837   :  { %v5928_v62 = vsel %vm1518_vm3, %v5923_v41, 0  ;;  %v6067_v60 = vunpack.c.l.b16 %v5048_v14  ;;  %v5049_v14 = vpack.c.bf16 %v11928_v37, %v11928_v37 }
 0x838   :  { %5937 = vmatpush.bf16.xpose.msrb.mxu3 %v5928_v62  ;;  %v5178_v63 = vld.sshfl [vmem:[#allocation1 + $0x20] sm:$0xff pattern:$0x75316420]  ;;  %v6013_v31 = vpack.c.b16 %v6012_v20, %v6011_v12  ;;  %v5978_v19 = vpack.c.b16 %v5977_v25, %v5976_v17 }
 0x839   :  { %v5179_v54 = vld.sshfl [vmem:[#allocation1 + $0x30] sm:$0xff pattern:$0x75316420]  ;;  %v5370_v2 = vpack.c.bf16 %v5178_v63, %v5178_v63  ;;  %5185 = vst [vmem:[#allocation1 + $0x20] ss:$2 sm:$0xff] %v10643_v53  ;;  %8286 = vmatmul.msk.bf16.vlgmr.msrb.gmra.mxu0 %vm1518_vm3, %v5948_v45  ;;  %v11923_v45 = vld [vmem:[#allocation37_spill] sm:$0xff] }
 0x83a   :  { %v5371_v21 = vpack.c.bf16 %v5179_v54, %v5179_v54  ;;  %5186 = vst [vmem:[#allocation1 + $0x21] ss:$2 sm:$0xff] %v10590_v4  ;;  %v6018_v52 = vsel %vm1518_vm3, %v6013_v31, 0  ;;  %v5046_v63 = vpack.c.bf16 %v11923_v45, %v11923_v45  ;;  %v6066_v31 = vunpack.c.l.b16 %v5047_v61 }
 0x83b   :  { %5187 = vst [vmem:[#allocation1 + $0x30] ss:$2 sm:$0xff] %v10656_v46  ;;  %6027 = vmatpush.bf16.xpose.msrb.mxu2 %v6018_v52  ;;  %v5981_v55 = vunpack.c.l.b16 %v5370_v2  ;;  %v5193_v6 = vld.sshfl [vmem:[#allocation1] sm:$0xff pattern:$0x75316420] }
 0x83c   :  { %v5982_v1 = vunpack.c.l.b16 %v5371_v21  ;;  %v5194_v28 = vld.sshfl [vmem:[#allocation1 + $0x10] sm:$0xff pattern:$0x75316420]  ;;  %v5376_v7 = vpack.c.bf16 %v5193_v6, %v5193_v6  ;;  %5200 = vst [vmem:[#allocation1] ss:$2 sm:$0xff] %v10558_v39  ;;  %v6068_v21 = vpack.c.b16 %v6067_v60, %v6066_v31  ;;  %v6037_v30 = vunpack.c.l.b16 %v5046_v63 }
 0x83d   :  { %v5377_v50 = vpack.c.bf16 %v5194_v28, %v5194_v28  ;;  %5201 = vst [vmem:[#allocation1 + $0x1] ss:$2 sm:$0xff] %v10612_v35  ;;  %v6036_v28 = vunpack.c.l.b16 %v5045_v36 }
 0x83e   :  { %v5983_v23 = vpack.c.b16 %v5982_v1, %v5981_v55  ;;  %5202 = vst [vmem:[#allocation1 + $0x10] ss:$2 sm:$0xff] %v10575_v5  ;;  %v6071_v18 = vunpack.c.l.b16 %v5376_v7  ;;  %v11925_v1 = vld [vmem:[#allocation38_spill] sm:$0xff]  ;;  %v11926_v7 = vld [vmem:[#allocation43_spill] sm:$0xff] }
 0x83f   :  { %8285 = vmatmul.msk.bf16.vlgmr.msrb.gmra.mxu3 %vm1518_vm3, %v5918_v16  ;;  %v6072_v24 = vunpack.c.l.b16 %v5377_v50  ;;  %v5052_v6 = vpack.c.bf16 %v11925_v1, %v11925_v1  ;;  %v6038_v49 = vpack.c.b16 %v6037_v30, %v6036_v28  ;;  %v11932_v1 = vld [vmem:[#allocation14_spill] sm:$0xff] }
 0x840   :  { %v5988_v15 = vsel %vm1518_vm3, %v5983_v23, 0  ;;  %v5051_v23 = vpack.c.bf16 %v11926_v7, %v11926_v7 }
 0x841   :  { %5997 = vmatpush.bf16.xpose.msrb.mxu1 %v5988_v15  ;;  %v5188_v57 = vld.sshfl [vmem:[#allocation1 + $0x20] sm:$0xff pattern:$0x75316420]  ;;  %v6073_v29 = vpack.c.b16 %v6072_v24, %v6071_v18  ;;  %v6127_v15 = vunpack.c.l.b16 %v5052_v6  ;;  %v5053_v6 = vpack.c.bf16 %v11932_v1, %v11932_v1 }
 0x842   :  { %v5189_v48 = vld.sshfl [vmem:[#allocation1 + $0x30] sm:$0xff pattern:$0x75316420]  ;;  %v5374_v40 = vpack.c.bf16 %v5188_v57, %v5188_v57  ;;  %5195 = vst [vmem:[#allocation1 + $0x20] ss:$2 sm:$0xff] %v10664_v13  ;;  %8288 = vmatmul.msk.bf16.vlgmr.msrb.gmra.mxu2 %vm1518_vm3, %v6008_v51  ;;  %v11927_v51 = vld [vmem:[#allocation45_spill] sm:$0xff] }
 0x843   :  { %v5375_v0 = vpack.c.bf16 %v5189_v48, %v5189_v48  ;;  %5196 = vst [vmem:[#allocation1 + $0x21] ss:$2 sm:$0xff] %v10592_v59  ;;  %v6078_v56 = vsel %vm1518_vm3, %v6073_v29, 0  ;;  %v5050_v57 = vpack.c.bf16 %v11927_v51, %v11927_v51  ;;  %v6126_v29 = vunpack.c.l.b16 %v5051_v23 }
 0x844   :  { %5197 = vst [vmem:[#allocation1 + $0x30] ss:$2 sm:$0xff] %v10675_v8  ;;  %6087 = vmatpush.bf16.xpose.msra.mxu0 %v6078_v56  ;;  %v6041_v11 = vunpack.c.l.b16 %v5374_v40  ;;  %v5203_v10 = vld.sshfl [vmem:[#allocation1] sm:$0xff pattern:$0x75316420] }
 0x845   :  { %v6042_v41 = vunpack.c.l.b16 %v5375_v0  ;;  %v5204_v62 = vld.sshfl [vmem:[#allocation1 + $0x10] sm:$0xff pattern:$0x75316420]  ;;  %v5380_v12 = vpack.c.bf16 %v5203_v10, %v5203_v10  ;;  %5210 = vst [vmem:[#allocation1] ss:$2 sm:$0xff] %v10560_v33  ;;  %v6128_v0 = vpack.c.b16 %v6127_v15, %v6126_v29  ;;  %v6097_v44 = vunpack.c.l.b16 %v5050_v57 }
 0x846   :  { %v5381_v47 = vpack.c.bf16 %v5204_v62, %v5204_v62  ;;  %5211 = vst [vmem:[#allocation1 + $0x1] ss:$2 sm:$0xff] %v10630_v27  ;;  %v6096_v62 = vunpack.c.l.b16 %v5049_v14 }
 0x847   :  { %v6043_v20 = vpack.c.b16 %v6042_v41, %v6041_v11  ;;  %5212 = vst [vmem:[#allocation1 + $0x10] ss:$2 sm:$0xff] %v10577_v32  ;;  %v6131_v54 = vunpack.c.l.b16 %v5380_v12  ;;  %v11929_v41 = vld [vmem:[#allocation41_spill] sm:$0xff]  ;;  %v11930_v12 = vld [vmem:[#allocation42_spill] sm:$0xff] }
 0x848   :  { %8287 = vmatmul.msk.bf16.vlgmr.msrb.gmra.mxu1 %vm1518_vm3, %v5978_v19  ;;  %v6132_v2 = vunpack.c.l.b16 %v5381_v47  ;;  %v5056_v10 = vpack.c.bf16 %v11929_v41, %v11929_v41  ;;  %v6098_v31 = vpack.c.b16 %v6097_v44, %v6096_v62  ;;  %v11936_v41 = vld [vmem:[#allocation24_spill] sm:$0xff] }
 0x849   :  { %v6048_v43 = vsel %vm1518_vm3, %v6043_v20, 0  ;;  %v5055_v20 = vpack.c.bf16 %v11930_v12, %v11930_v12 }
 0x84a   :  { %6057 = vmatpush.bf16.xpose.msra.mxu3 %v6048_v43  ;;  %v5198_v52 = vld.sshfl [vmem:[#allocation1 + $0x20] sm:$0xff pattern:$0x75316420]  ;;  %v6133_v26 = vpack.c.b16 %v6132_v2, %v6131_v54  ;;  %v6187_v43 = vunpack.c.l.b16 %v5056_v10  ;;  %v5057_v10 = vpack.c.bf16 %v11936_v41, %v11936_v41 }
 0x84b   :  { %v5199_v38 = vld.sshfl [vmem:[#allocation1 + $0x30] sm:$0xff pattern:$0x75316420]  ;;  %v5378_v55 = vpack.c.bf16 %v5198_v52, %v5198_v52  ;;  %5205 = vst [vmem:[#allocation1 + $0x20] ss:$2 sm:$0xff] %v10643_v53  ;;  %8290 = vmatmul.msk.bf16.vlgmr.msra.gmra.mxu0 %vm1518_vm3, %v6068_v21 }
 0x84c   :  { %v5379_v16 = vpack.c.bf16 %v5199_v38, %v5199_v38  ;;  %5206 = vst [vmem:[#allocation1 + $0x21] ss:$2 sm:$0xff] %v10590_v4  ;;  %v6138_v34 = vsel %vm1518_vm3, %v6133_v26, 0  ;;  %v11931_v21 = vld [vmem:[#allocation23_spill] sm:$0xff]  ;;  %v6186_v26 = vunpack.c.l.b16 %v5055_v20  ;;  %v11937_v20 = vld [vmem:[#allocation6_spill] sm:$0xff] }
 0x84d   :  { %5207 = vst [vmem:[#allocation1 + $0x30] ss:$2 sm:$0xff] %v10656_v46  ;;  %6147 = vmatpush.bf16.xpose.msra.mxu2 %v6138_v34  ;;  %v6101_v50 = vunpack.c.l.b16 %v5378_v55  ;;  %v5213_v22 = vld.sshfl [vmem:[#allocation1] sm:$0xff pattern:$0x75316420]  ;;  %v5054_v52 = vpack.c.bf16 %v11931_v21, %v11931_v21 }
 0x84e   :  { %v6102_v3 = vunpack.c.l.b16 %v5379_v16  ;;  %v5214_v18 = vld.sshfl [vmem:[#allocation1 + $0x10] sm:$0xff pattern:$0x75316420]  ;;  %v5384_v24 = vpack.c.bf16 %v5213_v22, %v5213_v22  ;;  %5220 = vst [vmem:[#allocation1] ss:$2 sm:$0xff] %v10558_v39  ;;  %v6188_v16 = vpack.c.b16 %v6187_v43, %v6186_v26 }
 0x84f   :  { %v5385_v58 = vpack.c.bf16 %v5214_v18, %v5214_v18  ;;  %5221 = vst [vmem:[#allocation1 + $0x1] ss:$2 sm:$0xff] %v10612_v35  ;;  %v6157_v7 = vunpack.c.l.b16 %v5054_v52  ;;  %v6156_v18 = vunpack.c.l.b16 %v5053_v6 }
 0x850   :  { %v6103_v9 = vpack.c.b16 %v6102_v3, %v6101_v50  ;;  %5222 = vst [vmem:[#allocation1 + $0x10] ss:$2 sm:$0xff] %v10575_v5  ;;  %v6191_v48 = vunpack.c.l.b16 %v5384_v24  ;;  %v11933_v3 = vld [vmem:[#allocation8_spill] sm:$0xff]  ;;  %v11934_v24 = vld [vmem:[#allocation19_spill] sm:$0xff] }
 0x851   :  { %8289 = vmatmul.msk.bf16.vlgmr.msra.gmra.mxu3 %vm1518_vm3, %v6038_v49  ;;  %v6192_v40 = vunpack.c.l.b16 %v5385_v58  ;;  %v5060_v22 = vpack.c.bf16 %v11933_v3, %v11933_v3  ;;  %v6158_v29 = vpack.c.b16 %v6157_v7, %v6156_v18 }
 0x852   :  { %v6108_v25 = vsel %vm1518_vm3, %v6103_v9, 0  ;;  %v5059_v9 = vpack.c.bf16 %v11934_v24, %v11934_v24 }
 0x853   :  { %6117 = vmatpush.bf16.xpose.msra.mxu1 %v6108_v25  ;;  %v5208_v56 = vld.sshfl [vmem:[#allocation1 + $0x20] sm:$0xff pattern:$0x75316420]  ;;  %v6193_v17 = vpack.c.b16 %v6192_v40, %v6191_v48  ;;  %v6247_v25 = vunpack.c.l.b16 %v5060_v22 }
 0x854   :  { %v5209_v61 = vld.sshfl [vmem:[#allocation1 + $0x30] sm:$0xff pattern:$0x75316420]  ;;  %v5382_v11 = vpack.c.bf16 %v5208_v56, %v5208_v56  ;;  %5215 = vst [vmem:[#allocation1 + $0x20] ss:$2 sm:$0xff] %v10664_v13  ;;  %8292 = vmatmul.msk.bf16.vlgmr.msra.gmra.mxu2 %vm1518_vm3, %v6128_v0 }
 0x855   :  { %v5383_v19 = vpack.c.bf16 %v5209_v61, %v5209_v61  ;;  %5216 = vst [vmem:[#allocation1 + $0x21] ss:$2 sm:$0xff] %v10592_v59  ;;  %v6198_v60 = vsel %vm1518_vm3, %v6193_v17, 0  ;;  %v11935_v0 = vld [vmem:[#allocation11_spill] sm:$0xff]  ;;  %v6246_v17 = vunpack.c.l.b16 %v5059_v9  ;;  %v11941_v9 = vld [vmem:[#allocation18_spill] sm:$0xff] }
 0x856   :  { %5217 = vst [vmem:[#allocation1 + $0x30] ss:$2 sm:$0xff] %v10675_v8  ;;  %6207 = vmatpush.bf16.xpose.msrb.mxu0 %v6198_v60  ;;  %v6161_v47 = vunpack.c.l.b16 %v5382_v11  ;;  %v5223_v63 = vld.sshfl [vmem:[#allocation1] sm:$0xff pattern:$0x75316420]  ;;  %v5058_v56 = vpack.c.bf16 %v11935_v0, %v11935_v0 }
 0x857   :  { %v6162_v45 = vunpack.c.l.b16 %v5383_v19  ;;  %v5224_v54 = vld.sshfl [vmem:[#allocation1 + $0x10] sm:$0xff pattern:$0x75316420]  ;;  %v5388_v2 = vpack.c.bf16 %v5223_v63, %v5223_v63  ;;  %5230 = vst [vmem:[#allocation1] ss:$2 sm:$0xff] %v10560_v33  ;;  %v6216_v63 = vunpack.c.l.b16 %v5057_v10 }
 0x858   :  { %v5389_v36 = vpack.c.bf16 %v5224_v54, %v5224_v54  ;;  %5231 = vst [vmem:[#allocation1 + $0x1] ss:$2 sm:$0xff] %v10630_v27 }
 0x859   :  { %v6163_v42 = vpack.c.b16 %v6162_v45, %v6161_v47  ;;  %5232 = vst [vmem:[#allocation1 + $0x10] ss:$2 sm:$0xff] %v10577_v32  ;;  %v6251_v38 = vunpack.c.l.b16 %v5388_v2  ;;  %v5064_v47 = vpack.c.bf16 %v11937_v20, %v11937_v20 }
 0x85a   :  { %8291 = vmatmul.msk.bf16.vlgmr.msra.gmra.mxu1 %vm1518_vm3, %v6098_v31  ;;  %v6252_v55 = vunpack.c.l.b16 %v5389_v36  ;;  %v11938_v31 = vld [vmem:[#allocation5_spill] sm:$0xff] }
 0x85b   :  { %v6168_v30 = vsel %vm1518_vm3, %v6163_v42, 0  ;;  %v5063_v43 = vpack.c.bf16 %v11938_v31, %v11938_v31  ;;  %v6307_v21 = vunpack.c.l.b16 %v5064_v47 }
 0x85c   :  { %6177 = vmatpush.bf16.xpose.msrb.mxu3 %v6168_v30  ;;  %v5218_v34 = vld.sshfl [vmem:[#allocation1 + $0x20] sm:$0xff pattern:$0x75316420]  ;;  %v6253_v28 = vpack.c.b16 %v6252_v55, %v6251_v38 }
 0x85d   :  { %v5219_v23 = vld.sshfl [vmem:[#allocation1 + $0x30] sm:$0xff pattern:$0x75316420]  ;;  %v5386_v50 = vpack.c.bf16 %v5218_v34, %v5218_v34  ;;  %5225 = vst [vmem:[#allocation1 + $0x20] ss:$2 sm:$0xff] %v10643_v53  ;;  %8294 = vmatmul.msk.bf16.vlgmr.msrb.gmra.mxu0 %vm1518_vm3, %v6188_v16  ;;  %v11939_v55 = vld [vmem:[#allocation21_spill] sm:$0xff]  ;;  %v6306_v16 = vunpack.c.l.b16 %v5063_v43 }
 0x85e   :  { %v5387_v49 = vpack.c.bf16 %v5219_v23, %v5219_v23  ;;  %5226 = vst [vmem:[#allocation1 + $0x21] ss:$2 sm:$0xff] %v10590_v4  ;;  %v6258_v15 = vsel %vm1518_vm3, %v6253_v28, 0  ;;  %v5062_v1 = vpack.c.bf16 %v11939_v55, %v11939_v55 }
 0x85f   :  { %5227 = vst [vmem:[#allocation1 + $0x30] ss:$2 sm:$0xff] %v10656_v46  ;;  %6267 = vmatpush.bf16.xpose.msrb.mxu2 %v6258_v15  ;;  %v6221_v58 = vunpack.c.l.b16 %v5386_v50  ;;  %v5233_v57 = vld.sshfl [vmem:[#allocation1] sm:$0xff pattern:$0x75316420] }
 0x860   :  { %v6222_v51 = vunpack.c.l.b16 %v5387_v49  ;;  %v5234_v48 = vld.sshfl [vmem:[#allocation1 + $0x10] sm:$0xff pattern:$0x75316420]  ;;  %v5392_v40 = vpack.c.bf16 %v5233_v57, %v5233_v57  ;;  %5240 = vst [vmem:[#allocation1] ss:$2 sm:$0xff] %v10558_v39  ;;  %v6248_v39 = vpack.c.b16 %v6247_v25, %v6246_v17  ;;  %v6277_v18 = vunpack.c.l.b16 %v5062_v1 }
 0x861   :  { %v5393_v14 = vpack.c.bf16 %v5234_v48, %v5234_v48  ;;  %5241 = vst [vmem:[#allocation1 + $0x1] ss:$2 sm:$0xff] %v10612_v35  ;;  %v6217_v35 = vunpack.c.l.b16 %v5058_v56  ;;  %v11942_v48 = vld [vmem:[#allocation17_spill] sm:$0xff] }
 0x862   :  { %v6223_v37 = vpack.c.b16 %v6222_v51, %v6221_v58  ;;  %5242 = vst [vmem:[#allocation1 + $0x10] ss:$2 sm:$0xff] %v10575_v5  ;;  %v6311_v61 = vunpack.c.l.b16 %v5392_v40  ;;  %v5068_v58 = vpack.c.bf16 %v11941_v9, %v11941_v9  ;;  %v5067_v40 = vpack.c.bf16 %v11942_v48, %v11942_v48 }
 0x863   :  { %8293 = vmatmul.msk.bf16.vlgmr.msrb.gmra.mxu3 %vm1518_vm3, %v6158_v29  ;;  %v6312_v11 = vunpack.c.l.b16 %v5393_v14  ;;  %v6218_v36 = vpack.c.b16 %v6217_v35, %v6216_v63  ;;  %v11945_v35 = vld [vmem:[#allocation47_spill] sm:$0xff] }
 0x864   :  { %v6228_v44 = vsel %vm1518_vm3, %v6223_v37, 0  ;;  %v4741_v9 = vrot.slane %v11945_v35, 4 }
 0x865   :  { %6237 = vmatpush.bf16.xpose.msrb.mxu1 %v6228_v44  ;;  %v5228_v19 = vld.sshfl [vmem:[#allocation1 + $0x20] sm:$0xff pattern:$0x75316420]  ;;  %v6313_v60 = vpack.c.b16 %v6312_v11, %v6311_v61  ;;  %v6367_v44 = vunpack.c.l.b16 %v5068_v58 }
 0x866   :  { %v5229_v62 = vld.sshfl [vmem:[#allocation1 + $0x30] sm:$0xff pattern:$0x75316420]  ;;  %v5390_v12 = vpack.c.bf16 %v5228_v19, %v5228_v19  ;;  %5235 = vst [vmem:[#allocation1 + $0x20] ss:$2 sm:$0xff] %v10664_v13  ;;  %8296 = vmatmul.msk.bf16.vlgmr.msrb.gmra.mxu2 %vm1518_vm3, %v6248_v39  ;;  %v11944_v39 = vld [vmem:[#allocation4_spill] sm:$0xff] }
 0x867   :  { %v5391_v5 = vpack.c.bf16 %v5229_v62, %v5229_v62  ;;  %5236 = vst [vmem:[#allocation1 + $0x21] ss:$2 sm:$0xff] %v10592_v59  ;;  %v6318_v45 = vsel %vm1518_vm3, %v6313_v60, 0  ;;  %v5066_v19 = vpack.c.bf16 %v11944_v39, %v11944_v39  ;;  %v6366_v60 = vunpack.c.l.b16 %v5067_v40  ;;  %v11946_v62 = vld [vmem:[#allocation22_spill] sm:$0xff] }
 0x868   :  { %5237 = vst [vmem:[#allocation1 + $0x30] ss:$2 sm:$0xff] %v10675_v8  ;;  %6327 = vmatpush.bf16.xpose.msra.mxu0 %v6318_v45  ;;  %v6281_v54 = vunpack.c.l.b16 %v5390_v12  ;;  %v5243_v42 = vld.sshfl [vmem:[#allocation1] sm:$0xff pattern:$0x75316420]  ;;  %v5065_v12 = vpack.c.bf16 %v11946_v62, %v11946_v62 }
 0x869   :  { %v6282_v2 = vunpack.c.l.b16 %v5391_v5  ;;  %v5244_v52 = vld.sshfl [vmem:[#allocation1 + $0x10] sm:$0xff pattern:$0x75316420]  ;;  %v5396_v26 = vpack.c.bf16 %v5243_v42, %v5243_v42  ;;  %5250 = vst [vmem:[#allocation1] ss:$2 sm:$0xff] %v10560_v33  ;;  %v11940_v33 = vld [vmem:[#allocation12_spill] sm:$0xff]  ;;  %v6368_v31 = vpack.c.b16 %v6367_v44, %v6366_v60  ;;  %v6337_v42 = vunpack.c.l.b16 %v5066_v19 }
 0x86a   :  { %v5397_v38 = vpack.c.bf16 %v5244_v52, %v5244_v52  ;;  %5251 = vst [vmem:[#allocation1 + $0x1] ss:$2 sm:$0xff] %v10630_v27  ;;  %v5429_v6 = vpop.f32.mrf.mxu2  ;;  %v5061_v50 = vpack.c.bf16 %v11940_v33, %v11940_v33  ;;  %v6308_v27 = vpack.c.b16 %v6307_v21, %v6306_v16  ;;  %v11947_v52 = vld [vmem:[#allocation2_spill] sm:$0xff]  ;;  %v6336_v1 = vunpack.c.l.b16 %v5065_v12 }
 0x86b   :  { %v6283_v30 = vpack.c.b16 %v6282_v2, %v6281_v54  ;;  %5252 = vst [vmem:[#allocation1 + $0x10] ss:$2 sm:$0xff] %v10577_v32  ;;  %v10935_v34 = vmul.f32 0.35355338, %v5429_v6  ;;  %v6371_v7 = vunpack.c.l.b16 %v5396_v26  ;;  %v5072_v26 = vpack.c.bf16 %v11947_v52, %v11947_v52  ;;  %v11948_v6 = vld [vmem:[#allocation3_spill] sm:$0xff] }
 0x86c   :  { %8295 = vmatmul.msk.bf16.vlgmr.msrb.gmra.mxu1 %vm1518_vm3, %v6218_v36  ;;  %v6372_v23 = vunpack.c.l.b16 %v5397_v38  ;;  %v6276_v25 = vunpack.c.l.b16 %v5061_v50  ;;  %v5071_v16 = vpack.c.bf16 %v11948_v6, %v11948_v6  ;;  %v10982_v50 = vpop.xlane.xlu1 %6662 }
 0x86d   :  { %v6288_v28 = vsel %vm1518_vm3, %v6283_v30, 0  ;;  %v5489_v22 = vpop.f32.mrf.mxu0  ;;  %v6628_v49 = vsel %vm2767_vm5, %v10935_v34, -inf }
 0x86e   :  { %6297 = vmatpush.bf16.xpose.msra.mxu3 %v6288_v28  ;;  %v5238_v3 = vld.sshfl [vmem:[#allocation1 + $0x20] sm:$0xff pattern:$0x75316420]  ;;  %v6373_v15 = vpack.c.b16 %v6372_v23, %v6371_v7  ;;  %6629 = vmax.xlane.f32.xlu1 %v6628_v49  ;;  %v10947_v57 = vmul.f32 0.35355338, %v5489_v22  ;;  %v11949_v28 = vld [vmem:[#allocation26_spill] sm:$0xff]  ;;  %v6426_v58 = vunpack.c.l.b16 %v5071_v16 }
 0x86f   :  { %v5239_v24 = vld.sshfl [vmem:[#allocation1 + $0x30] sm:$0xff pattern:$0x75316420]  ;;  %v5394_v32 = vpack.c.bf16 %v5238_v3, %v5238_v3  ;;  %5245 = vst [vmem:[#allocation1 + $0x20] ss:$2 sm:$0xff] %v10643_v53  ;;  %8298 = vmatmul.msk.bf16.vlgmr.msra.gmra.mxu0 %vm1518_vm3, %v6308_v27  ;;  %v4743_v7 = vrot.slane %v11949_v28, 4  ;;  %v6338_v27 = vpack.c.b16 %v6337_v42, %v6336_v1  ;;  %v6427_v3 = vunpack.c.l.b16 %v5072_v26 }
 0x870   :  { %v5395_v51 = vpack.c.bf16 %v5239_v24, %v5239_v24  ;;  %5246 = vst [vmem:[#allocation1 + $0x21] ss:$2 sm:$0xff] %v10590_v4  ;;  %v6378_v29 = vsel %vm1518_vm3, %v6373_v15, 0  ;;  %v11943_v53 = vld [vmem:[#allocation27_spill] sm:$0xff]  ;;  %v6640_v17 = vsel %vm2767_vm5, %v10947_v57, -inf  ;;  %v6278_v4 = vpack.c.b16 %v6277_v18, %v6276_v25  ;;  %v11950_v18 = vld [vmem:[#allocation50_spill] sm:$0xff] }
 0x871   :  { %5247 = vst [vmem:[#allocation1 + $0x30] ss:$2 sm:$0xff] %v10656_v46  ;;  %v4740_v37 = vrot.slane %v11943_v53, 4  ;;  %6387 = vmatpush.bf16.xpose.msra.mxu2 %v6378_v29  ;;  %v6341_v14 = vunpack.c.l.b16 %v5394_v32  ;;  %v5253_v56 = vld.sshfl [vmem:[#allocation1] sm:$0xff pattern:$0x75316420]  ;;  %6641 = vmax.xlane.f32.xlu2 %v6640_v17  ;;  %v5070_v24 = vpack.c.bf16 %v11950_v18, %v11950_v18  ;;  %v6428_v17 = vpack.c.b16 %v6427_v3, %v6426_v58 }
 0x872   :  { %v6342_v0 = vunpack.c.l.b16 %v5395_v51  ;;  %v5254_v61 = vld.sshfl [vmem:[#allocation1 + $0x10] sm:$0xff pattern:$0x75316420]  ;;  %v5400_v11 = vpack.c.bf16 %v5253_v56, %v5253_v56  ;;  %7328 = vst [vmem:[#allocation1] ss:$2 sm:$0xff] %v11943_v53  ;;  %v5431_v46 = vpop.f32.mrf.mxu2  ;;  %v11951_v51 = vld [vmem:[#allocation48_spill] sm:$0xff] }
 0x873   :  { %v5401_v10 = vpack.c.bf16 %v5254_v61, %v5254_v61  ;;  %7330 = vst [vmem:[#allocation1 + $0x1] ss:$2 sm:$0xff] %v4740_v37  ;;  %v10964_v45 = vmul.f32 0.35355338, %v5431_v46  ;;  %v11952_v29 = vld [vmem:[#allocation49_spill] sm:$0xff]  ;;  %v11956_v26 = vld [vmem:[#allocation54_spill] sm:$0xff] }
 0x874   :  { %v6343_v41 = vpack.c.b16 %v6342_v0, %v6341_v14  ;;  %7332 = vst [vmem:[#allocation1 + $0x10] ss:$2 sm:$0xff] %v11945_v35  ;;  %v6431_v47 = vunpack.c.l.b16 %v5400_v11  ;;  %v5069_v25 = vpack.c.bf16 %v11952_v29, %v11952_v29  ;;  %v11953_v0 = vld [vmem:[#allocation51_spill] sm:$0xff]  ;;  %v6397_v11 = vunpack.c.l.b16 %v5070_v24  ;;  %v6705_v12 = vpop.xlane.xlu1 %6704  ;;  %v11957_v1 = vld [vmem:[#allocation53_spill] sm:$0xff]  ;;  %v6657_v29 = vpop.xlane.xlu0 %6656 }
 0x875   :  { %8297 = vmatmul.msk.bf16.vlgmr.msra.gmra.mxu3 %vm1518_vm3, %v6278_v4  ;;  %v6432_v5 = vunpack.c.l.b16 %v5401_v10  ;;  %v5491_v63 = vpop.f32.mrf.mxu0  ;;  %v4742_v56 = vrot.slane %v11953_v0, 4  ;;  %v5073_v6 = vpack.c.bf16 %v11957_v1, %v11957_v1 }
 0x876   :  { %v6348_v20 = vsel %vm1518_vm3, %v6343_v41, 0  ;;  %v10966_v54 = vmul.f32 0.35355338, %v5491_v63  ;;  %v6396_v62 = vunpack.c.l.b16 %v5069_v25 }
 0x877   :  { %6357 = vmatpush.bf16.xpose.msra.mxu1 %v6348_v20  ;;  %v5248_v43 = vld.sshfl [vmem:[#allocation1 + $0x20] sm:$0xff pattern:$0x75316420]  ;;  %v6433_v2 = vpack.c.b16 %v6432_v5, %v6431_v47 }
 0x878   :  { %v5249_v36 = vld.sshfl [vmem:[#allocation1 + $0x30] sm:$0xff pattern:$0x75316420]  ;;  %v5398_v21 = vpack.c.bf16 %v5248_v43, %v5248_v43  ;;  %5255 = vst [vmem:[#allocation1 + $0x20] ss:$2 sm:$0xff] %v10664_v13  ;;  %8300 = vmatmul.msk.bf16.vlgmr.msra.gmra.mxu2 %vm1518_vm3, %v6368_v31  ;;  %v6643_v38 = vsel %vm2771_vm4, %v10966_v54, -inf  ;;  %v6398_v43 = vpack.c.b16 %v6397_v11, %v6396_v62 }
 0x879   :  { %v5399_v30 = vpack.c.bf16 %v5249_v36, %v5249_v36  ;;  %5256 = vst [vmem:[#allocation1 + $0x21] ss:$2 sm:$0xff] %v10592_v59  ;;  %v6438_v55 = vsel %vm1518_vm3, %v6433_v2, 0  ;;  %v6631_v13 = vsel %vm2771_vm4, %v10964_v45, -inf  ;;  %6644 = vmax.xlane.f32.xlu1 %v6643_v38  ;;  %v6857_v11 = vsel %vm2993_vm13, %v6705_v12, -inf }
 0x87a   :  { %5257 = vst [vmem:[#allocation1 + $0x30] ss:$2 sm:$0xff] %v10675_v8  ;;  %6447 = vmatpush.bf16.xpose.msrb.mxu0 %v6438_v55  ;;  %v6401_v23 = vunpack.c.l.b16 %v5398_v21  ;;  %v7333_v33 = vld.sshfl [vmem:[#allocation1] sm:$0xff pattern:$0x75316420]  ;;  %6632 = vmax.xlane.f32.xlu2 %v6631_v13  ;;  %v4744_v55 = vrot.slane %v11951_v51, 4 }
 0x87b   :  { %v6402_v59 = vunpack.c.l.b16 %v5399_v30  ;;  %v7334_v22 = vld.sshfl [vmem:[#allocation1 + $0x10] sm:$0xff pattern:$0x75316420]  ;;  %v7361_v8 = vpack.c.bf16 %v7333_v33, %v7333_v33  ;;  %7343 = vst [vmem:[#allocation1] ss:$2 sm:$0xff] %v11949_v28  ;;  %v5074_v30 = vpack.c.bf16 %v11956_v26, %v11956_v26 }
 0x87c   :  { %v7362_v15 = vpack.c.bf16 %v7334_v22, %v7334_v22  ;;  %7344 = vst [vmem:[#allocation1 + $0x1] ss:$2 sm:$0xff] %v4743_v7  ;;  %v5549_v32 = vpop.f32.mrf.mxu2 }
 0x87d   :  { %v6403_v49 = vpack.c.b16 %v6402_v59, %v6401_v23  ;;  %7345 = vst [vmem:[#allocation1 + $0x10] ss:$2 sm:$0xff] %v11951_v51  ;;  %v7376_v53 = vunpack.c.l.b16 %v7361_v8  ;;  %v6492_v63 = vmul.f32 0.35355338, %v5549_v32  ;;  %v6457_v24 = vunpack.c.l.b16 %v5074_v30  ;;  %v11022_v51 = vpop.xlane.xlu1 %6710 }
 0x87e   :  { %8299 = vmatmul.msk.bf16.vlgmr.msra.gmra.mxu1 %vm1518_vm3, %v6338_v27  ;;  %v7377_v37 = vunpack.c.l.b16 %v7362_v15 }
 0x87f   :  { %v5459_v48 = vpop.f32.mrf.mxu3  ;;  %v6408_v40 = vsel %vm1518_vm3, %v6403_v49, 0  ;;  %v5609_v39 = vpop.f32.mrf.mxu0  ;;  %v11016_v33 = vsel %vm9512_vm9, %v6492_v63, -1e+30  ;;  %v11959_v49 = vld [vmem:[#allocation52_spill] sm:$0xff] }
 0x880   :  { %v10993_v14 = vmul.f32 0.35355338, %v5459_v48  ;;  %6417 = vmatpush.bf16.xpose.msrb.mxu3 %v6408_v40  ;;  %v5258_v4 = vld.sshfl [vmem:[#allocation1 + $0x20] sm:$0xff pattern:$0x75316420]  ;;  %v7378_v61 = vpack.c.b16 %v7377_v37, %v7376_v53  ;;  %v4745_v15 = vrot.slane %v11959_v49, 4  ;;  %v6456_v48 = vunpack.c.l.b16 %v5073_v6  ;;  %v6681_v53 = vpop.xlane.xlu2 %6680 }
 0x881   :  { %v5519_v44 = vpop.f32.mrf.mxu1  ;;  %v5259_v46 = vld.sshfl [vmem:[#allocation1 + $0x30] sm:$0xff pattern:$0x75316420]  ;;  %v5402_v41 = vpack.c.bf16 %v5258_v4, %v5258_v4  ;;  %7336 = vst [vmem:[#allocation1 + $0x20] ss:$2 sm:$0xff] %v4741_v9  ;;  %8302 = vmatmul.msk.bf16.vlgmr.msrb.gmra.mxu0 %vm1518_vm3, %v6428_v17  ;;  %v6652_v40 = vsel %vm2767_vm5, %v11016_v33, -inf }
 0x882   :  { %v6634_v10 = vsel %vm2767_vm5, %v10993_v14, -inf  ;;  %v5403_v19 = vpack.c.bf16 %v5259_v46, %v5259_v46  ;;  %7338 = vst [vmem:[#allocation1 + $0x21] ss:$2 sm:$0xff] %v11953_v0  ;;  %v11000_v60 = vmul.f32 0.35355338, %v5519_v44  ;;  %v7383_v35 = vsel %vm11955_vm8, %v7378_v61, 0  ;;  %vm11964_vm8 = vmmov %vm11961_vm0 }
 0x883   :  { %6635 = vmax.xlane.f32.xlu0 %v6634_v10  ;;  %7340 = vst [vmem:[#allocation1 + $0x30] ss:$2 sm:$0xff] %v4742_v56  ;;  %7392 = vmatpush.bf16.msrb.mxu2 %v7383_v35  ;;  %v6461_v20 = vunpack.c.l.b16 %v5402_v41  ;;  %v7346_v5 = vld.sshfl [vmem:[#allocation1] sm:$0xff pattern:$0x75316420]  ;;  %v6458_v56 = vpack.c.b16 %v6457_v24, %v6456_v48  ;;  %v6855_v46 = vsel %vm2993_vm13, %v6681_v53, -inf }
 0x884   :  { %11954 = vst [vmem:[#allocation33_spill] sm:$0xff] %v11000_v60  ;;  %v6462_v47 = vunpack.c.l.b16 %v5403_v19  ;;  %v6646_v31 = vsel %vm2767_vm5, %v11000_v60, -inf  ;;  %v7347_v2 = vld.sshfl [vmem:[#allocation1 + $0x10] sm:$0xff pattern:$0x75316420]  ;;  %v7365_v42 = vpack.c.bf16 %v7346_v5, %v7346_v5  ;;  %v5551_v36 = vpop.f32.mrf.mxu2 }
 0x885   :  { %6647 = vmax.xlane.f32.xlu2 %v6646_v31  ;;  %v7366_v52 = vpack.c.bf16 %v7347_v2, %v7347_v2  ;;  %v6496_v3 = vmul.f32 0.35355338, %v5609_v39 }
 0x886   :  { %v6463_v21 = vpack.c.b16 %v6462_v47, %v6461_v20  ;;  %v7436_v28 = vunpack.c.l.b16 %v7365_v42  ;;  %v6854_v47 = vmax.f32 %v6855_v46, %v6857_v11 }
 0x887   :  { %v5461_v38 = vpop.f32.mrf.mxu3  ;;  %8301 = vmatmul.msk.bf16.vlgmr.msrb.gmra.mxu3 %vm1518_vm3, %v6398_v43  ;;  %v7437_v7 = vunpack.c.l.b16 %v7366_v52  ;;  %v5611_v8 = vpop.f32.mrf.mxu0  ;;  %v11029_v4 = vsel %vm9512_vm9, %v6496_v3, -1e+30 }
 0x888   :  { %v11011_v16 = vmul.f32 0.35355338, %v5461_v38  ;;  %v6468_v13 = vsel %vm1518_vm3, %v6463_v21, 0  ;;  %v6664_v19 = vsel %vm2767_vm5, %v11029_v4, -inf  ;;  %v6777_v43 = vpop.xlane.xlu1 %6776  ;;  %v6853_v38 = vsel %vm2993_vm13, %v6657_v29, -inf }
 0x889   :  { %v5521_v23 = vpop.f32.mrf.mxu1  ;;  %6477 = vmatpush.bf16.xpose.msrb.mxu1 %v6468_v13  ;;  %v7341_v27 = vld.sshfl [vmem:[#allocation1 + $0x20] sm:$0xff pattern:$0x75316420]  ;;  %v7438_v18 = vpack.c.b16 %v7437_v7, %v7436_v28  ;;  %v6863_v30 = vsel %vm2993_vm13, %v6777_v43, -inf }
 0x88a   :  { %v6637_v22 = vsel %vm2771_vm4, %v11011_v16, -inf  ;;  %v7342_v32 = vld.sshfl [vmem:[#allocation1 + $0x30] sm:$0xff pattern:$0x75316420]  ;;  %v7363_v9 = vpack.c.bf16 %v7341_v27, %v7341_v27  ;;  %7348 = vst [vmem:[#allocation1 + $0x20] ss:$2 sm:$0xff] %v4744_v55  ;;  %v11053_v55 = vpop.xlane.xlu0 %6686  ;;  %v6856_v7 = vmax.f32 %v6854_v47, %v6863_v30 }
 0x88b   :  { %6638 = vmax.xlane.f32.xlu0 %v6637_v22  ;;  %v7364_v58 = vpack.c.bf16 %v7342_v32, %v7342_v32  ;;  %7349 = vst [vmem:[#allocation1 + $0x21] ss:$2 sm:$0xff] %v11959_v49  ;;  %v7443_v25 = vsel %vm11960_vm1, %v7438_v18, 0  ;;  %v11047_v52 = vmul.f32 0.35355338, %v5521_v23  ;;  %v6729_v23 = vpop.xlane.xlu2 %6728 }
 0x88c   :  { %7350 = vst [vmem:[#allocation1 + $0x30] ss:$2 sm:$0xff] %v4745_v15  ;;  %7452 = vmatpush.bf16.msra.mxu0 %v7443_v25  ;;  %v7406_v37 = vunpack.c.l.b16 %v7363_v9  ;;  %v6859_v27 = vsel %vm2993_vm13, %v6729_v23, -inf  ;;  %v6858_v15 = vmax.f32 %v6856_v7, %v6853_v38 }
 0x88d   :  { %v7407_v0 = vunpack.c.l.b16 %v7364_v58  ;;  %6653 = vmax.xlane.f32.xlu2 %v6652_v40  ;;  %11963 = vst [vmem:[#allocation36_spill] sm:$0xff] %v11047_v52  ;;  %v6649_v18 = vsel %vm2771_vm4, %v11047_v52, -inf }
 0x88e   :  { %v5669_v10 = vpop.f32.mrf.mxu2  ;;  %v6860_v9 = vmax.f32 %v6858_v15, %v6859_v27 }
 0x88f   :  { %v5579_v17 = vpop.f32.mrf.mxu3  ;;  %v7408_v44 = vpack.c.b16 %v7407_v0, %v7406_v37  ;;  %v6500_v20 = vmul.f32 0.35355338, %v5669_v10 }
 0x890   :  { %v6494_v61 = vmul.f32 0.35355338, %v5579_v17  ;;  %8303 = vmatmul.msk.bf16.vlgmr.msrb.gmra.mxu1 %vm1518_vm3, %v6458_v56  ;;  %v6801_v29 = vpop.xlane.xlu1 %6800 }
 0x891   :  { %v5639_v41 = vpop.f32.mrf.mxu1  ;;  %v7413_v39 = vsel %vm11961_vm0, %v7408_v44, 0  ;;  %v11045_v21 = vsel %vm9559_vm11, %v6500_v20, -1e+30  ;;  %v6865_v25 = vsel %vm2993_vm13, %v6801_v29, -inf }
 0x892   :  { %v11039_v35 = vsel %vm9512_vm9, %v6494_v61, -1e+30  ;;  %7422 = vmatpush.bf16.msra.mxu3 %v7413_v39  ;;  %v7351_v62 = vld.sshfl [vmem:[#allocation1 + $0x20] sm:$0xff pattern:$0x75316420]  ;;  %v5729_v31 = vpop.f32.mrf.mxu0  ;;  %v6676_v26 = vsel %vm2767_vm5, %v11045_v21, -inf  ;;  %v6862_v48 = vmax.f32 %v6860_v9, %v6865_v25  ;;  %v6753_v40 = vpop.xlane.xlu0 %6752 }
 0x893   :  { %6665 = vmax.xlane.f32.xlu0 %v6664_v19  ;;  %v6658_v12 = vsel %vm2767_vm5, %v11039_v35, -inf  ;;  %v7352_v5 = vld.sshfl [vmem:[#allocation1 + $0x30] sm:$0xff pattern:$0x75316420]  ;;  %v7367_v63 = vpack.c.bf16 %v7351_v62, %v7351_v62  ;;  %v6504_v42 = vmul.f32 0.35355338, %v5729_v31  ;;  %v11073_v44 = vpop.xlane.xlu2 %6734 }
 0x894   :  { %6659 = vmax.xlane.f32.xlu1 %v6658_v12  ;;  %v7368_v2 = vpack.c.bf16 %v7352_v5, %v7352_v5  ;;  %v6498_v32 = vmul.f32 0.35355338, %v5639_v41  ;;  %v6861_v0 = vsel %vm2993_vm13, %v6753_v40, -inf }
 0x895   :  { %v7466_v1 = vunpack.c.l.b16 %v7367_v63  ;;  %6677 = vmax.xlane.f32.xlu2 %v6676_v26  ;;  %v11057_v28 = vsel %vm9559_vm11, %v6504_v42, -1e+30  ;;  %v11071_v17 = vmax.f32 %v6862_v48, %v6861_v0 }
 0x896   :  { %v7467_v6 = vunpack.c.l.b16 %v7368_v2  ;;  %v6688_v8 = vsel %vm2767_vm5, %v11057_v28, -inf  ;;  %v5671_v49 = vpop.f32.mrf.mxu2  ;;  %v11068_v37 = vsel %vm9512_vm9, %v6498_v32, -1e+30 }
 0x897   :  { %v5581_v13 = vpop.f32.mrf.mxu3  ;;  %11965 = vst [vmem:[#allocation34_spill] sm:$0xff] %v11068_v37  ;;  %v6670_v11 = vsel %vm2767_vm5, %v11068_v37, -inf }
 0x898   :  { %v7468_v3 = vpack.c.b16 %v7467_v6, %v7466_v1  ;;  %v11101_v36 = vpop.xlane.xlu1 %6674 }
 0x899   :  { %v5641_v22 = vpop.f32.mrf.mxu1 }
 0x89a   :  { %v7473_v24 = vsel %vm11964_vm8, %v7468_v3, 0  ;;  %v5731_v58 = vpop.f32.mrf.mxu0  ;;  %v11125_v48 = vpop.xlane.xlu0 %6758 }
 0x89b   :  { %6650 = vmax.xlane.f32.xlu0 %v6649_v18  ;;  %7482 = vmatpush.bf16.msra.mxu1 %v7473_v24  ;;  %v11103_v30 = vpop.xlane.xlu2 %6668 }
 0x89c   :  { %6689 = vmax.xlane.f32.xlu1 %v6688_v8 }
 0x89f   :  { %v5699_v53 = vpop.f32.mrf.mxu3 }
 0x8a0   :  { %v6502_v56 = vmul.f32 0.35355338, %v5699_v53  ;;  %v11109_v23 = vpop.xlane.xlu1 %6824 }
 0x8a1   :  { %v5759_v61 = vpop.f32.mrf.mxu1  ;;  %v5789_v10 = vpop.f32.mrf.mxu2 }
 0x8a2   :  { %v11079_v46 = vsel %vm9559_vm11, %v6502_v56, -1e+30  ;;  %v6506_v41 = vmul.f32 0.35355338, %v5759_v61  ;;  %v6508_v39 = vmul.f32 0.35355338, %v5789_v10 }
 0x8a3   :  { %6671 = vmax.xlane.f32.xlu0 %v6670_v11  ;;  %v6682_v59 = vsel %vm2767_vm5, %v11079_v46, -inf  ;;  %v11113_v22 = vpop.xlane.xlu2 %6692 }
 0x8a4   :  { %6683 = vmax.xlane.f32.xlu2 %v6682_v59  ;;  %v11085_v19 = vsel %vm9559_vm11, %v6506_v41, -1e+30  ;;  %v5849_v12 = vpop.f32.mrf.mxu0  ;;  %v11091_v47 = vsel %vm9616_vm15, %v6508_v39, -1e+30 }
 0x8a5   :  { %11966 = vst [vmem:[#allocation40_spill] sm:$0xff] %v11085_v19  ;;  %v6694_v62 = vsel %vm2767_vm5, %v11085_v19, -inf  ;;  %v6512_v63 = vmul.f32 0.35355338, %v5849_v12  ;;  %v6700_v31 = vsel %vm2767_vm5, %v11091_v47, -inf  ;;  %v11143_v12 = vpop.xlane.xlu0 %6782 }
 0x8a6   :  { %6695 = vmax.xlane.f32.xlu1 %v6694_v62 }
 0x8a7   :  { %v5701_v5 = vpop.f32.mrf.mxu3  ;;  %v11097_v43 = vsel %vm9616_vm15, %v6512_v63, -1e+30 }
 0x8a8   :  { %v6712_v42 = vsel %vm2767_vm5, %v11097_v43, -inf  ;;  %v11133_v56 = vpop.xlane.xlu1 %6698 }
 0x8a9   :  { %v5761_v2 = vpop.f32.mrf.mxu1  ;;  %v5791_v26 = vpop.f32.mrf.mxu2 }
 0x8ab   :  { %6701 = vmax.xlane.f32.xlu0 %v6700_v31  ;;  %v11135_v61 = vpop.xlane.xlu2 %6716 }
 0x8ac   :  { %6713 = vmax.xlane.f32.xlu2 %v6712_v42  ;;  %v5851_v38 = vpop.f32.mrf.mxu0 }
 0x8b0   :  { %v5819_v1 = vpop.f32.mrf.mxu3  ;;  %v11145_v63 = vpop.xlane.xlu1 %6722 }
 0x8b1   :  { %v6510_v6 = vmul.f32 0.35355338, %v5819_v1  ;;  %v6932_v37 = vsel %vm2993_vm13, %v11145_v63, -inf }
 0x8b3   :  { %v5879_v13 = vpop.f32.mrf.mxu1  ;;  %v11107_v7 = vsel %vm9616_vm15, %v6510_v6, -1e+30  ;;  %v5909_v3 = vpop.f32.mrf.mxu2 }
 0x8b4   :  { %v6706_v27 = vsel %vm2767_vm5, %v11107_v7, -inf  ;;  %v6514_v8 = vmul.f32 0.35355338, %v5879_v13  ;;  %v6516_v49 = vmul.f32 0.35355338, %v5909_v3  ;;  %v11149_v2 = vpop.xlane.xlu2 %6740 }
 0x8b5   :  { %6707 = vmax.xlane.f32.xlu0 %v6706_v27 }
 0x8b6   :  { %v5969_v15 = vpop.f32.mrf.mxu0  ;;  %v11117_v24 = vsel %vm9657_vm7, %v6516_v49, -1e+30  ;;  %v11123_v29 = vsel %vm9616_vm15, %v6514_v8, -1e+30 }
 0x8b7   :  { %v6724_v9 = vsel %vm2767_vm5, %v11117_v24, -inf  ;;  %v6520_v58 = vmul.f32 0.35355338, %v5969_v15  ;;  %11969 = vst [vmem:[#allocation35_spill] sm:$0xff] %v11123_v29  ;;  %v6718_v40 = vsel %vm2767_vm5, %v11123_v29, -inf }
 0x8b8   :  { %v5821_v32 = vpop.f32.mrf.mxu3  ;;  %6725 = vmax.xlane.f32.xlu1 %v6724_v9 }
 0x8b9   :  { %v11131_v0 = vsel %vm9657_vm7, %v6520_v58, -1e+30  ;;  %v11165_v32 = vpop.xlane.xlu0 %6806 }
 0x8ba   :  { %v6736_v41 = vsel %vm2767_vm5, %v11131_v0, -inf }
 0x8bb   :  { %v5881_v25 = vpop.f32.mrf.mxu1  ;;  %v5911_v53 = vpop.f32.mrf.mxu2 }
 0x8bc   :  { %v11169_v25 = vpop.xlane.xlu1 %6788  ;;  %v11173_v18 = vpop.xlane.xlu2 %6746 }
 0x8bd   :  { %6719 = vmax.xlane.f32.xlu0 %v6718_v40 }
 0x8be   :  { %v5971_v11 = vpop.f32.mrf.mxu0 }
 0x8c0   :  { %6737 = vmax.xlane.f32.xlu1 %v6736_v41 }
 0x8c2   :  { %v5939_v59 = vpop.f32.mrf.mxu3 }
 0x8c3   :  { %v6518_v10 = vmul.f32 0.35355338, %v5939_v59 }
 0x8c5   :  { %v5999_v39 = vpop.f32.mrf.mxu1  ;;  %v11141_v62 = vsel %vm9657_vm7, %v6518_v10, -1e+30  ;;  %v6029_v20 = vpop.f32.mrf.mxu2 }
 0x8c6   :  { %11970 = vst [vmem:[#allocation32_spill] sm:$0xff] %v11141_v62  ;;  %v6524_v5 = vmul.f32 0.35355338, %v6029_v20  ;;  %v6730_v31 = vsel %vm2767_vm5, %v11141_v62, -inf  ;;  %v6522_v42 = vmul.f32 0.35355338, %v5999_v39  ;;  %v11179_v20 = vpop.xlane.xlu0 %6830 }
 0x8c8   :  { %v6089_v26 = vpop.f32.mrf.mxu0  ;;  %v11153_v1 = vsel %vm9701_vm12, %v6524_v5, -1e+30  ;;  %6731 = vmax.xlane.f32.xlu1 %v6730_v31  ;;  %v11159_v8 = vsel %vm9657_vm7, %v6522_v42, -1e+30 }
 0x8c9   :  { %v6748_v13 = vsel %vm2767_vm5, %v11153_v1, -inf  ;;  %v6528_v27 = vmul.f32 0.35355338, %v6089_v26  ;;  %11972 = vst [vmem:[#allocation37_spill] sm:$0xff] %v11159_v8  ;;  %v6742_v9 = vsel %vm2767_vm5, %v11159_v8, -inf }
 0x8ca   :  { %v5941_v6 = vpop.f32.mrf.mxu3  ;;  %6749 = vmax.xlane.f32.xlu2 %v6748_v13  ;;  %v11187_v13 = vpop.xlane.xlu1 %6794 }
 0x8cb   :  { %v11163_v15 = vsel %vm9701_vm12, %v6528_v27, -1e+30 }
 0x8cc   :  { %v6760_v40 = vsel %vm2767_vm5, %v11163_v15, -inf }
 0x8cd   :  { %v6001_v3 = vpop.f32.mrf.mxu1  ;;  %v6031_v49 = vpop.f32.mrf.mxu2 }
 0x8ce   :  { %v11191_v49 = vpop.xlane.xlu2 %6812 }
 0x8d0   :  { %v6091_v58 = vpop.f32.mrf.mxu0  ;;  %6743 = vmax.xlane.f32.xlu1 %v6742_v9 }
 0x8d2   :  { %6761 = vmax.xlane.f32.xlu2 %v6760_v40 }
 0x8d4   :  { %v6059_v53 = vpop.f32.mrf.mxu3 }
 0x8d5   :  { %v6526_v11 = vmul.f32 0.35355338, %v6059_v53 }
 0x8d7   :  { %v6119_v41 = vpop.f32.mrf.mxu1  ;;  %v11177_v59 = vsel %vm9701_vm12, %v6526_v11, -1e+30  ;;  %v6149_v10 = vpop.f32.mrf.mxu2  ;;  %v6878_v11 = vsel %vm2993_vm13, %v10982_v50, -inf  ;;  %v6880_v50 = vsel %vm2993_vm13, %v11053_v55, -inf }
 0x8d8   :  { %11973 = vst [vmem:[#allocation39_spill] sm:$0xff] %v11177_v59  ;;  %v6532_v39 = vmul.f32 0.35355338, %v6149_v10  ;;  %v6754_v5 = vsel %vm2767_vm5, %v11177_v59, -inf  ;;  %v6530_v31 = vmul.f32 0.35355338, %v6119_v41 }
 0x8d9   :  { %v6882_v41 = vsel %vm2993_vm13, %v11022_v51, -inf }
 0x8da   :  { %v6209_v42 = vpop.f32.mrf.mxu0  ;;  %v11185_v6 = vsel %vm9751_vm14, %v6532_v39, -1e+30  ;;  %6755 = vmax.xlane.f32.xlu2 %v6754_v5  ;;  %v11195_v40 = vsel %vm9701_vm12, %v6530_v31, -1e+30  ;;  %v6765_v39 = vpop.xlane.xlu0 %6764  ;;  %v6879_v38 = vmax.f32 %v6882_v41, %v6878_v11  ;;  %vm12012_vm12 = vcmask 523264  }
 0x8db   :  { %v6772_v3 = vsel %vm2767_vm5, %v11185_v6, -inf  ;;  %v6536_v9 = vmul.f32 0.35355338, %v6209_v42  ;;  %11975 = vst [vmem:[#allocation38_spill] sm:$0xff] %v11195_v40  ;;  %v6766_v5 = vsel %vm2767_vm5, %v11195_v40, -inf }
 0x8dc   :  { %v6061_v27 = vpop.f32.mrf.mxu3  ;;  %6773 = vmax.xlane.f32.xlu0 %v6772_v3 }
 0x8dd   :  { %v11203_v10 = vsel %vm9751_vm14, %v6536_v9, -1e+30 }
 0x8de   :  { %v6784_v31 = vsel %vm2767_vm5, %v11203_v10, -inf }
 0x8df   :  { %v6121_v58 = vpop.f32.mrf.mxu1  ;;  %v6151_v53 = vpop.f32.mrf.mxu2 }
 0x8e0   :  { %v6881_v58 = vmax.f32 %v6879_v38, %v6880_v50  ;;  %v6884_v53 = vsel %vm2993_vm13, %v11073_v44, -inf  ;;  %v6903_v50 = vsel %vm2993_vm13, %v11103_v30, -inf }
 0x8e1   :  { %v11211_v27 = vpop.xlane.xlu1 %6629 }
 0x8e2   :  { %v6211_v42 = vpop.f32.mrf.mxu0  ;;  %6767 = vmax.xlane.f32.xlu2 %v6766_v5  ;;  %v6883_v38 = vmax.f32 %v6881_v58, %v6884_v53 }
 0x8e4   :  { %6785 = vmax.xlane.f32.xlu0 %v6784_v31  ;;  %v11213_v3 = vpop.xlane.xlu2 %6641  ;;  %v6867_v31 = vsel %vm2993_vm13, %v11109_v23, -inf }
 0x8e5   :  { %v6866_v58 = vmax.f32 %v11071_v17, %v6867_v31 }
 0x8e6   :  { %v6179_v51 = vpop.f32.mrf.mxu3 }
 0x8e7   :  { %v6534_v9 = vmul.f32 0.35355338, %v6179_v51  ;;  %v11225_v51 = vpop.xlane.xlu0 %6770 }
 0x8e9   :  { %v6239_v42 = vpop.f32.mrf.mxu1  ;;  %v11219_v11 = vsel %vm9751_vm14, %v6534_v9, -1e+30  ;;  %v6269_v5 = vpop.f32.mrf.mxu2  ;;  %v6886_v9 = vsel %vm2993_vm13, %v11125_v48, -inf }
 0x8ea   :  { %11976 = vst [vmem:[#allocation43_spill] sm:$0xff] %v11219_v11  ;;  %v6538_v41 = vmul.f32 0.35355338, %v6239_v42  ;;  %v6778_v55 = vsel %vm2767_vm5, %v11219_v11, -inf  ;;  %v6540_v40 = vmul.f32 0.35355338, %v6269_v5  ;;  %v6885_v31 = vmax.f32 %v6883_v38, %v6886_v9 }
 0x8eb   :  { %6779 = vmax.xlane.f32.xlu1 %v6778_v55  ;;  %v6911_v38 = vsel %vm2993_vm13, %v6765_v39, -inf }
 0x8ec   :  { %v11229_v44 = vsel %vm9751_vm14, %v6538_v41, -1e+30  ;;  %v6329_v42 = vpop.f32.mrf.mxu0  ;;  %v11239_v55 = vsel %vm9819_vm10, %v6540_v40, -1e+30  ;;  %v6645_v5 = vpop.xlane.xlu1 %6644  ;;  %v6905_v40 = vsel %vm2993_vm13, %v11113_v22, -inf  ;;  %v6909_v22 = vsel %vm2993_vm13, %v11149_v2, -inf }
 0x8ed   :  { %11977 = vst [vmem:[#allocation45_spill] sm:$0xff] %v11229_v44  ;;  %v6790_v8 = vsel %vm2767_vm5, %v11229_v44, -inf  ;;  %v6544_v53 = vmul.f32 0.35355338, %v6329_v42  ;;  %v6796_v30 = vsel %vm2767_vm5, %v11239_v55, -inf  ;;  %v6633_v41 = vpop.xlane.xlu2 %6632  ;;  %v6902_v48 = vsel %vm2993_vm13, %v6645_v5, -inf }
 0x8ee   :  { %v6181_v26 = vpop.f32.mrf.mxu3  ;;  %6791 = vmax.xlane.f32.xlu0 %v6790_v8  ;;  %6797 = vmax.xlane.f32.xlu2 %v6796_v30  ;;  %v6852_v29 = vsel %vm2993_vm13, %v6633_v41, -inf  ;;  %v6904_v44 = vmax.f32 %v6902_v48, %v6903_v50  ;;  %v6888_v8 = vsel %vm2993_vm13, %v11143_v12, -inf  ;;  %v6907_v50 = vsel %vm2993_vm13, %v11135_v61, -inf }
 0x8ef   :  { %v11250_v19 = vsel %vm9819_vm10, %v6544_v53, -1e+30  ;;  %v6868_v17 = vmax.f32 %v6866_v58, %v6852_v29  ;;  %v6887_v9 = vmax.f32 %v6885_v31, %v6888_v8  ;;  %v6890_v61 = vsel %vm2993_vm13, %v11165_v32, -inf }
 0x8f0   :  { %v6808_v5 = vsel %vm2767_vm5, %v11250_v19, -inf  ;;  %v6906_v26 = vmax.f32 %v6904_v44, %v6905_v40  ;;  %v6913_v2 = vsel %vm2993_vm13, %v11169_v25, -inf  ;;  %v6892_v32 = vsel %vm2993_vm13, %v11179_v20, -inf }
 0x8f1   :  { %v6241_v42 = vpop.f32.mrf.mxu1  ;;  %v6271_v30 = vpop.f32.mrf.mxu2  ;;  %v6945_v53 = vsub.f32 %v10964_v45, %v6868_v17  ;;  %v6953_v41 = vsub.f32 -1e+30, %v6868_v17  ;;  %v11270_v45 = vsel %vm2993_vm13, %v11191_v49, -inf  ;;  %v6889_v31 = vmax.f32 %v6887_v9, %v6890_v61 }
 0x8f2   :  { %v6908_v29 = vmax.f32 %v6906_v26, %v6907_v50 }
 0x8f3   :  { %6809 = vmax.xlane.f32.xlu1 %v6808_v5  ;;  %v7018_v12 = vmul.f32 1.442695, %v6945_v53  ;;  %v7034_v48 = vmul.f32 1.442695, %v6953_v41  ;;  %v6891_v53 = vmax.f32 %v6889_v31, %v6892_v32 }
 0x8f4   :  { %v6331_v58 = vpop.f32.mrf.mxu0  ;;  %v6910_v42 = vmax.f32 %v6908_v29, %v6909_v22 }
 0x8f5   :  { %8533 = vpow2.f32 %v7018_v12 }
 0x8f6   :  { %v11262_v44 = vpop.xlane.xlu0 %6635  ;;  %v6912_v40 = vmax.f32 %v6910_v42, %v6911_v38  ;;  %8535 = vpow2.f32 %v7034_v48 }
 0x8f8   :  { %v6299_v17 = vpop.f32.mrf.mxu3  ;;  %v11272_v39 = vpop.xlane.xlu2 %6647  ;;  %v11274_v5 = vmax.f32 %v6912_v40, %v6913_v2 }
 0x8f9   :  { %v6542_v8 = vmul.f32 0.35355338, %v6299_v17 }
 0x8fb   :  { %v6359_v26 = vpop.f32.mrf.mxu1  ;;  %v11280_v25 = vsel %vm9819_vm10, %v6542_v8, -1e+30  ;;  %v6389_v30 = vpop.f32.mrf.mxu2 }
 0x8fc   :  { %11979 = vst [vmem:[#allocation44_spill] sm:$0xff] %v11280_v25  ;;  %v6546_v50 = vmul.f32 0.35355338, %v6359_v26  ;;  %v6802_v22 = vsel %vm2767_vm5, %v11280_v25, -inf  ;;  %v6548_v41 = vmul.f32 0.35355338, %v6389_v30  ;;  %v8534_v38 = vpop.eup %8533 }
 0x8fd   :  { %6803 = vmax.xlane.f32.xlu2 %v6802_v22  ;;  %v8536_v9 = vpop.eup %8535  ;;  %v7177_v32 = vsel %vm2771_vm4, %v8534_v38, 0.0 }
 0x8fe   :  { %v6639_v29 = vpop.xlane.xlu0 %6638  ;;  %v11288_v20 = vsel %vm9819_vm10, %v6546_v50, -1e+30  ;;  %v6449_v48 = vpop.f32.mrf.mxu0  ;;  %v11295_v61 = vsel %vm9888_vm6, %v6548_v41, -1e+30  ;;  %v11304_v26 = vsel %vm2771_vm4, %v8536_v9, 0.0 }
 0x8ff   :  { %11980 = vst [vmem:[#allocation41_spill] sm:$0xff] %v11288_v20  ;;  %v6877_v12 = vsel %vm2993_vm13, %v6639_v29, -inf  ;;  %v6814_v58 = vsel %vm2767_vm5, %v11288_v20, -inf  ;;  %v6820_v17 = vsel %vm2767_vm5, %v11295_v61, -inf  ;;  %v6552_v41 = vmul.f32 0.35355338, %v6449_v48 }
 0x900   :  { %v6893_v2 = vmax.f32 %v6891_v53, %v6877_v12  ;;  %6815 = vmax.xlane.f32.xlu1 %v6814_v58  ;;  %v6301_v40 = vpop.f32.mrf.mxu3  ;;  %6821 = vmax.xlane.f32.xlu0 %v6820_v17  ;;  %v11300_v8 = vpop.xlane.xlu2 %6653  ;;  %v11982_v29 = vld [vmem:[#allocation46_spill] sm:$0xff] }
 0x901   :  { %v11315_v40 = vsel %vm9888_vm6, %v6552_v41, -1e+30 }
 0x902   :  { %v6947_v23 = vsub.f32 %v11011_v16, %v6893_v2  ;;  %v6955_v31 = vsub.f32 -1e+30, %v6893_v2  ;;  %v7179_v16 = vadd.f32 %v11304_v26, %v7177_v32  ;;  %v6832_v32 = vsel %vm2767_vm5, %v11315_v40, -inf }
 0x903   :  { %v6361_v50 = vpop.f32.mrf.mxu1  ;;  %v6391_v53 = vpop.f32.mrf.mxu2 }
 0x904   :  { %v7022_v22 = vmul.f32 1.442695, %v6947_v23  ;;  %v7038_v30 = vmul.f32 1.442695, %v6955_v31  ;;  %v7181_v48 = vadd.f32 %v7179_v16, %v11304_v26 }
 0x905   :  { %6818 = vmax.xlane.f32.xlu2 %v11982_v29 }
 0x906   :  { %8537 = vpow2.f32 %v7022_v22  ;;  %v11307_v12 = vpop.xlane.xlu0 %6665  ;;  %v6451_v2 = vpop.f32.mrf.mxu0 }
 0x907   :  { %8539 = vpow2.f32 %v7038_v30  ;;  %v6660_v38 = vpop.xlane.xlu1 %6659  ;;  %v11986_v25 = vmax.f32 %v11213_v3, %v11307_v12 }
 0x908   :  { %v6869_v9 = vmax.f32 %v11262_v44, %v6660_v38  ;;  %v11320_v22 = vpop.xlane.xlu2 %6677  ;;  %v6928_v44 = vsel %vm2993_vm13, %v11101_v36, -inf  ;;  %v7183_v38 = vadd.f32 %v7181_v48, %v11304_v26 }
 0x90a   :  { %v6419_v17 = vpop.f32.mrf.mxu3 }
 0x90b   :  { %v6550_v31 = vmul.f32 0.35355338, %v6419_v17 }
 0x90c   :  { %v8538_v23 = vpop.eup %8537 }
 0x90d   :  { %v8540_v50 = vpop.eup %8539  ;;  %v7211_v30 = vsel %vm2771_vm4, %v8538_v23, 0.0  ;;  %v6479_v53 = vpop.f32.mrf.mxu1  ;;  %6833 = vmax.xlane.f32.xlu2 %v6832_v32  ;;  %v11327_v41 = vsel %vm9888_vm6, %v6550_v31, -1e+30  ;;  %v6930_v32 = vsel %vm2993_vm13, %v11133_v56, -inf  ;;  %v6934_v56 = vsel %vm2993_vm13, %v11173_v18, -inf }
 0x90e   :  { %11983 = vst [vmem:[#allocation42_spill] sm:$0xff] %v11327_v41  ;;  %v6651_v16 = vpop.xlane.xlu0 %6650  ;;  %v7212_v2 = vsel %vm2771_vm4, %v8540_v50, 0.0  ;;  %v6554_v17 = vmul.f32 0.35355338, %v6479_v53  ;;  %v6826_v49 = vsel %vm2767_vm5, %v11327_v41, -inf }
 0x90f   :  { %v6927_v23 = vsel %vm2993_vm13, %v6651_v16, -inf  ;;  %v7213_v58 = vadd.f32 %v7212_v2, %v7211_v30  ;;  %6827 = vmax.xlane.f32.xlu0 %v6826_v49  ;;  %v6690_v53 = vpop.xlane.xlu1 %6689  ;;  %v7185_v49 = vadd.f32 %v7183_v38, %v11304_v26 }
 0x910   :  { %v6929_v36 = vmax.f32 %v6927_v23, %v6928_v44  ;;  %v11338_v31 = vsel %vm9888_vm6, %v6554_v17, -1e+30  ;;  %v6895_v11 = vmax.f32 %v11986_v25, %v6690_v53 }
 0x911   :  { %11984 = vst [vmem:[#allocation23_spill] sm:$0xff] %v11338_v31  ;;  %v7215_v20 = vadd.f32 %v7213_v58, %v7212_v2  ;;  %v6838_v48 = vsel %vm2767_vm5, %v11338_v31, -inf  ;;  %v6938_v58 = vsel %vm2993_vm13, %v11187_v13, -inf  ;;  %v7187_v38 = vadd.f32 %v7185_v49, %v11304_v26 }
 0x912   :  { %v6931_v50 = vmax.f32 %v6929_v36, %v6930_v32  ;;  %6839 = vmax.xlane.f32.xlu1 %v6838_v48  ;;  %v6421_v30 = vpop.f32.mrf.mxu3  ;;  %v6936_v32 = vsel %vm2993_vm13, %v11225_v51, -inf }
 0x913   :  { %v7217_v44 = vadd.f32 %v7215_v20, %v7212_v2 }
 0x914   :  { %v6933_v16 = vmax.f32 %v6931_v50, %v6932_v37 }
 0x915   :  { %v7219_v42 = vadd.f32 %v7217_v44, %v7212_v2  ;;  %v6481_v17 = vpop.f32.mrf.mxu1 }
 0x916   :  { %v6672_v23 = vpop.xlane.xlu0 %6671  ;;  %v6935_v36 = vmax.f32 %v6933_v16, %v6934_v56  ;;  %v7189_v16 = vadd.f32 %v7187_v38, %v11304_v26 }
 0x917   :  { %v6919_v63 = vmax.f32 %v11272_v39, %v6672_v23  ;;  %v6684_v48 = vpop.xlane.xlu2 %6683  ;;  %v7221_v20 = vadd.f32 %v7219_v42, %v7212_v2  ;;  %6836 = vmax.xlane.f32.xlu0 %v11982_v29 }
 0x918   :  { %v11354_v37 = vmax.f32 %v6869_v9, %v6684_v48  ;;  %v6937_v18 = vmax.f32 %v6935_v36, %v6936_v32  ;;  %v7191_v49 = vadd.f32 %v7189_v16, %v11304_v26  ;;  %v6844_v16 = vmax.f32 %v11211_v27, %v11300_v8 }
 0x919   :  { %v7223_v50 = vadd.f32 %v7221_v20, %v7212_v2  ;;  %v6696_v30 = vpop.xlane.xlu1 %6695 }
 0x91a   :  { %v11356_v13 = vmax.f32 %v6937_v18, %v6938_v58  ;;  %v11358_v44 = vmax.f32 %v6919_v63, %v6696_v30  ;;  %v11368_v9 = vadd.f32 %v7191_v49, %v11304_v26  ;;  %v6845_v49 = vmax.f32 %v6844_v16, %v11320_v22 }
 0x91b   :  { %v7225_v51 = vadd.f32 %v7223_v50, %v7212_v2 }
 0x91c   :  { %v7299_v58 = vsel %vm2771_vm4, %v11368_v9, 0.0 }
 0x91d   :  { %v11361_v56 = vadd.f32 %v7225_v51, %v7212_v2 }
 0x91e   :  { %v6702_v39 = vpop.xlane.xlu0 %6701 }
 0x91f   :  { %11985 = vst [vmem:[#allocation14_spill] sm:$0xff] %v11361_v56  ;;  %v7305_v42 = vsel %vm2771_vm4, %v11361_v56, 0.0  ;;  %6842 = vmax.xlane.f32.xlu0 %v11982_v29  ;;  %v6714_v36 = vpop.xlane.xlu2 %6713 }
 0x920   :  { %7306 = vadd.xlane.f32.xlu2 %v7305_v42  ;;  %v6846_v42 = vmax.f32 %v6845_v49, %v6702_v39  ;;  %v6896_v27 = vmax.f32 %v6895_v11, %v6714_v36 }
 0x927   :  { %7300 = vadd.xlane.f32.xlu0 %v7299_v58 }
 0x928   :  { %v6708_v17 = vpop.xlane.xlu0 %6707 }
 0x929   :  { %v6871_v12 = vmax.f32 %v11354_v37, %v6708_v17 }
 0x92b   :  { %v6726_v63 = vpop.xlane.xlu1 %6725 }
 0x930   :  { %v6720_v23 = vpop.xlane.xlu0 %6719 }
 0x931   :  { %v6921_v2 = vmax.f32 %v11358_v44, %v6720_v23  ;;  %v6847_v23 = vmax.f32 %v6846_v42, %v6726_v63 }
 0x933   :  { %v6738_v38 = vpop.xlane.xlu1 %6737 }
 0x93b   :  { %v6732_v29 = vpop.xlane.xlu1 %6731 }
 0x93d   :  { %v6750_v32 = vpop.xlane.xlu2 %6749 }
 0x93e   :  { %v6848_v56 = vmax.f32 %v6847_v23, %v6750_v32 }
 0x943   :  { %v6744_v26 = vpop.xlane.xlu1 %6743 }
 0x945   :  { %v6762_v48 = vpop.xlane.xlu2 %6761 }
 0x94d   :  { %v6756_v20 = vpop.xlane.xlu2 %6755 }
 0x94f   :  { %v6774_v18 = vpop.xlane.xlu0 %6773 }
 0x950   :  { %v6849_v60 = vmax.f32 %v6848_v56, %v6774_v18 }
 0x955   :  { %v6768_v50 = vpop.xlane.xlu2 %6767 }
 0x957   :  { %v6786_v30 = vpop.xlane.xlu0 %6785 }
 0x95e   :  { %v6780_v58 = vpop.xlane.xlu1 %6779 }
 0x961   :  { %v6798_v51 = vpop.xlane.xlu2 %6797  ;;  %v6792_v44 = vpop.xlane.xlu0 %6791 }
 0x962   :  { %v6850_v41 = vmax.f32 %v6849_v60, %v6798_v51  ;;  %v6897_v60 = vmax.f32 %v6896_v27, %v6738_v38  ;;  %v6922_v38 = vmax.f32 %v6921_v2, %v6744_v26 }
 0x964   :  { %v6923_v51 = vmax.f32 %v6922_v38, %v6768_v50 }
 0x966   :  { %v6810_v59 = vpop.xlane.xlu1 %6809  ;;  %v6924_v42 = vmax.f32 %v6923_v51, %v6792_v44 }
 0x970   :  { %v11376_v31 = vpop.xlane.xlu2 %6803 }
 0x973   :  { %v6822_v52 = vpop.xlane.xlu0 %6821  ;;  %v6816_v36 = vpop.xlane.xlu1 %6815 }
 0x974   :  { %v6851_v62 = vmax.f32 %v6850_v41, %v6822_v52  ;;  %v6898_v41 = vmax.f32 %v6897_v60, %v6762_v48 }
 0x976   :  { %v6944_v8 = vsub.f32 %v10935_v34, %v6851_v62  ;;  %v6952_v22 = vsub.f32 %v11016_v33, %v6851_v62  ;;  %v6960_v39 = vsub.f32 %v11045_v21, %v6851_v62  ;;  %v6968_v32 = vsub.f32 %v11091_v47, %v6851_v62 }
 0x977   :  { %v6976_v56 = vsub.f32 %v11117_v24, %v6851_v62  ;;  %v6984_v18 = vsub.f32 %v11153_v1, %v6851_v62  ;;  %v6992_v52 = vsub.f32 %v11185_v6, %v6851_v62  ;;  %v7000_v33 = vsub.f32 %v11239_v55, %v6851_v62 }
 0x978   :  { %v6819_v63 = vpop.xlane.xlu2 %6818  ;;  %v7016_v3 = vmul.f32 1.442695, %v6944_v8  ;;  %v7032_v25 = vmul.f32 1.442695, %v6952_v22  ;;  %v7048_v11 = vmul.f32 1.442695, %v6960_v39  ;;  %v6872_v21 = vmax.f32 %v6871_v12, %v6732_v29 }
 0x979   :  { %v7064_v34 = vmul.f32 1.442695, %v6968_v32  ;;  %v7008_v47 = vsub.f32 %v11295_v61, %v6851_v62  ;;  %v7080_v24 = vmul.f32 1.442695, %v6976_v56  ;;  %v6899_v53 = vmax.f32 %v6898_v41, %v6786_v30 }
 0x97a   :  { %8541 = vpow2.f32 %v7016_v3  ;;  %v7096_v1 = vmul.f32 1.442695, %v6984_v18  ;;  %v6873_v16 = vmax.f32 %v6872_v21, %v6756_v20  ;;  %v7112_v37 = vmul.f32 1.442695, %v6992_v52 }
 0x97b   :  { %8543 = vpow2.f32 %v7032_v25  ;;  %v6900_v6 = vmax.f32 %v6899_v53, %v6810_v59  ;;  %v7128_v17 = vmul.f32 1.442695, %v7000_v33  ;;  %v7144_v55 = vmul.f32 1.442695, %v7008_v47 }
 0x97c   :  { %8545 = vpow2.f32 %v7048_v11  ;;  %v6874_v48 = vmax.f32 %v6873_v16, %v6780_v58  ;;  %v7321_v62 = vpack.c.bf16 %v11368_v9, %v11368_v9  ;;  %v11398_v26 = vsel %vm2993_vm13, %v6819_v63, -inf }
 0x97d   :  { %8547 = vpow2.f32 %v7064_v34  ;;  %v6925_v22 = vmax.f32 %v6924_v42, %v6816_v36 }
 0x97e   :  { %8549 = vpow2.f32 %v7080_v24  ;;  %v6875_v2 = vmax.f32 %v6874_v48, %v11376_v31  ;;  %v11407_v8 = vunpack.c.l.b16 %v7321_v62 }
 0x97f   :  { %8551 = vpow2.f32 %v7096_v1 }
 0x980   :  { %v6834_v49 = vpop.xlane.xlu2 %6833  ;;  %v8542_v29 = vpop.eup %8541  ;;  %8553 = vpow2.f32 %v7112_v37 }
 0x981   :  { %v11393_v61 = vmax.f32 %v6900_v6, %v6834_v49  ;;  %v8544_v30 = vpop.eup %8543  ;;  %v7160_v59 = vsel %vm2767_vm5, %v8542_v29, 0.0  ;;  %8555 = vpow2.f32 %v7128_v17  ;;  %v11987_v6 = vmax.f32 %v11274_v5, %v11270_v45 }
 0x982   :  { %v6828_v20 = vpop.xlane.xlu0 %6827  ;;  %v8546_v50 = vpop.eup %8545  ;;  %v7161_v58 = vsel %vm2767_vm5, %v8544_v30, 0.0  ;;  %8557 = vpow2.f32 %v7144_v55 }
 0x983   :  { %v6948_v9 = vsub.f32 %v10947_v57, %v11393_v61  ;;  %v8548_v23 = vpop.eup %8547  ;;  %v7162_v27 = vadd.f32 %v7161_v58, %v7160_v59  ;;  %v6956_v31 = vsub.f32 %v11029_v4, %v11393_v61  ;;  %v6964_v44 = vsub.f32 %v11057_v28, %v11393_v61 }
 0x984   :  { %v7163_v32 = vsel %vm2767_vm5, %v8546_v50, 0.0  ;;  %v6972_v63 = vsub.f32 %v11097_v43, %v11393_v61  ;;  %v8550_v56 = vpop.eup %8549  ;;  %v6941_v57 = vmax.f32 %v11356_v13, %v11398_v26  ;;  %v11414_v60 = vmax.f32 %v6875_v2, %v6828_v20 }
 0x985   :  { %v6840_v39 = vpop.xlane.xlu1 %6839  ;;  %v7164_v18 = vadd.f32 %v7163_v32, %v7162_v27  ;;  %v6980_v4 = vsub.f32 %v11131_v0, %v11393_v61  ;;  %v8552_v28 = vpop.eup %8551  ;;  %v7165_v25 = vsel %vm2767_vm5, %v8548_v23, 0.0  ;;  %v6988_v12 = vsub.f32 %v11163_v15, %v11393_v61  ;;  %v11988_v32 = vld [vmem:[#allocation32_spill] sm:$0xff] }
 0x986   :  { %v11418_v3 = vmax.f32 %v6925_v22, %v6840_v39  ;;  %v7024_v52 = vmul.f32 1.442695, %v6948_v9  ;;  %v8554_v43 = vpop.eup %8553  ;;  %v6996_v34 = vsub.f32 %v11203_v10, %v11393_v61  ;;  %v7040_v41 = vmul.f32 1.442695, %v6956_v31 }
 0x987   :  { %v7166_v11 = vadd.f32 %v7165_v25, %v7164_v18  ;;  %v7056_v33 = vmul.f32 1.442695, %v6964_v44  ;;  %v8556_v21 = vpop.eup %8555  ;;  %v7167_v47 = vsel %vm2767_vm5, %v8550_v56, 0.0  ;;  %v7004_v0 = vsub.f32 %v11250_v19, %v11393_v61 }
 0x988   :  { %8559 = vpow2.f32 %v7024_v52  ;;  %v7072_v24 = vmul.f32 1.442695, %v6972_v63  ;;  %v8558_v53 = vpop.eup %8557  ;;  %v7169_v15 = vsel %vm2767_vm5, %v8552_v28, 0.0  ;;  %v7088_v38 = vmul.f32 1.442695, %v6980_v4 }
 0x989   :  { %v7168_v1 = vadd.f32 %v7167_v47, %v7166_v11  ;;  %8561 = vpow2.f32 %v7040_v41  ;;  %v7012_v10 = vsub.f32 %v11315_v40, %v11393_v61  ;;  %v7104_v37 = vmul.f32 1.442695, %v6988_v12  ;;  %v11989_v12 = vld [vmem:[#allocation39_spill] sm:$0xff] }
 0x98a   :  { %v6837_v36 = vpop.xlane.xlu0 %6836  ;;  %8563 = vpow2.f32 %v7056_v33  ;;  %v7120_v51 = vmul.f32 1.442695, %v6996_v34  ;;  %v7171_v48 = vsel %vm2767_vm5, %v8554_v43, 0.0  ;;  %v7173_v49 = vsel %vm2767_vm5, %v8556_v21, 0.0  ;;  %v11990_v34 = vld [vmem:[#allocation36_spill] sm:$0xff]  ;;  %v11991_v47 = vld [vmem:[#allocation43_spill] sm:$0xff] }
 0x98b   :  { %v6917_v16 = vsel %vm2993_vm13, %v6837_v36, -inf  ;;  %v7170_v17 = vadd.f32 %v7169_v15, %v7168_v1  ;;  %8565 = vpow2.f32 %v7072_v24  ;;  %v7175_v55 = vsel %vm2767_vm5, %v8558_v53, 0.0 }
 0x98c   :  { %v6918_v19 = vmax.f32 %v11987_v6, %v6917_v16  ;;  %v7136_v29 = vmul.f32 1.442695, %v7004_v0  ;;  %8567 = vpow2.f32 %v7088_v38  ;;  %v7152_v42 = vmul.f32 1.442695, %v7012_v10 }
 0x98d   :  { %v7172_v40 = vadd.f32 %v7171_v48, %v7170_v17  ;;  %8569 = vpow2.f32 %v7104_v37  ;;  %v6946_v45 = vsub.f32 %v10993_v14, %v11414_v60  ;;  %v6954_v5 = vsub.f32 %v11039_v35, %v11414_v60  ;;  %v11992_v37 = vld [vmem:[#allocation44_spill] sm:$0xff] }
 0x98e   :  { %v6949_v62 = vsub.f32 %v10966_v54, %v6918_v19  ;;  %v6957_v30 = vsub.f32 -1e+30, %v6918_v19  ;;  %v8560_v61 = vpop.eup %8559  ;;  %8571 = vpow2.f32 %v7120_v51  ;;  %v6962_v23 = vsub.f32 %v11079_v46, %v11414_v60  ;;  %v11993_v51 = vld [vmem:[#allocation42_spill] sm:$0xff] }
 0x98f   :  { %v8562_v2 = vpop.eup %8561  ;;  %v7174_v50 = vadd.f32 %v7173_v49, %v7172_v40  ;;  %8573 = vpow2.f32 %v7136_v29  ;;  %v7228_v54 = vsel %vm2767_vm5, %v8560_v61, 0.0  ;;  %v6970_v35 = vsub.f32 %v11107_v7, %v11414_v60 }
 0x990   :  { %v7026_v20 = vmul.f32 1.442695, %v6949_v62  ;;  %v7042_v59 = vmul.f32 1.442695, %v6957_v30  ;;  %v8564_v58 = vpop.eup %8563  ;;  %v7229_v9 = vsel %vm2767_vm5, %v8562_v2, 0.0  ;;  %v6978_v63 = vsub.f32 %v11988_v32, %v11414_v60 }
 0x991   :  { %v8566_v27 = vpop.eup %8565  ;;  %v7176_v31 = vadd.f32 %v7175_v55, %v7174_v50  ;;  %v7230_v44 = vadd.f32 %v7229_v9, %v7228_v54  ;;  %v7231_v39 = vsel %vm2767_vm5, %v8564_v58, 0.0  ;;  %v6986_v52 = vsub.f32 %v11989_v12, %v11414_v60 }
 0x992   :  { %8575 = vpow2.f32 %v7026_v20  ;;  %v6843_v14 = vpop.xlane.xlu0 %6842  ;;  %v8568_v56 = vpop.eup %8567  ;;  %v7233_v7 = vsel %vm2767_vm5, %v8566_v27, 0.0  ;;  %v7020_v43 = vmul.f32 1.442695, %v6946_v45  ;;  %v6994_v0 = vsub.f32 %v11991_v47, %v11414_v60 }
 0x993   :  { %8577 = vpow2.f32 %v7042_v59  ;;  %v6942_v22 = vsel %vm2993_vm13, %v6843_v14, -inf  ;;  %v7296_v18 = vsel %vm2767_vm5, %v7176_v31, 0.0  ;;  %v7320_v4 = vpack.c.bf16 %v7176_v31, %v7176_v31  ;;  %v8570_v25 = vpop.eup %8569  ;;  %v11994_v14 = vld [vmem:[#allocation33_spill] sm:$0xff] }
 0x994   :  { %v6943_v46 = vmax.f32 %v6941_v57, %v6942_v22  ;;  %v7232_v28 = vadd.f32 %v7231_v39, %v7230_v44  ;;  %7297 = vadd.xlane.f32.xlu2 %v7296_v18  ;;  %8579 = vpow2.f32 %v7152_v42  ;;  %v8572_v11 = vpop.eup %8571  ;;  %v7235_v57 = vsel %vm2767_vm5, %v8568_v56, 0.0  ;;  %v11995_v39 = vld [vmem:[#allocation34_spill] sm:$0xff] }
 0x995   :  { %v7371_v21 = vunpack.c.l.b16 %v7320_v4  ;;  %v8574_v26 = vpop.eup %8573  ;;  %8581 = vpow2.f32 %v7020_v43  ;;  %v7036_v24 = vmul.f32 1.442695, %v6954_v5  ;;  %v7237_v10 = vsel %vm2767_vm5, %v8570_v25, 0.0 }
 0x996   :  { %v6951_v41 = vsub.f32 %v11990_v34, %v6943_v46  ;;  %v6959_v33 = vsub.f32 -1e+30, %v6943_v46  ;;  %v7234_v13 = vadd.f32 %v7233_v7, %v7232_v28  ;;  %v7002_v6 = vsub.f32 %v11992_v37, %v11414_v60  ;;  %v11997_v28 = vld [vmem:[#allocation35_spill] sm:$0xff] }
 0x997   :  { %v7373_v15 = vpack.c.b16 %v11407_v8, %v7371_v21  ;;  %8583 = vpow2.f32 %v7036_v24  ;;  %v7052_v19 = vmul.f32 1.442695, %v6962_v23  ;;  %v7010_v48 = vsub.f32 %v11993_v51, %v11414_v60  ;;  %v11999_v21 = vld [vmem:[#allocation38_spill] sm:$0xff] }
 0x998   :  { %v8576_v53 = vpop.eup %8575  ;;  %v7030_v36 = vmul.f32 1.442695, %v6951_v41  ;;  %v7046_v1 = vmul.f32 1.442695, %v6959_v33  ;;  %v7236_v38 = vadd.f32 %v7235_v57, %v7234_v13  ;;  %v7068_v49 = vmul.f32 1.442695, %v6970_v35 }
 0x999   :  { %v8578_v16 = vpop.eup %8577  ;;  %8304 = vmatmul.msk.bf16.vlgmr.msrb.gmra.mxu2 %vm2767_vm5, %v7373_v15  ;;  %v7245_v8 = vsel %vm2771_vm4, %v8576_v53, 0.0  ;;  %v7239_v29 = vsel %vm2767_vm5, %v8572_v11, 0.0  ;;  %v7084_v62 = vmul.f32 1.442695, %v6978_v63  ;;  %v7100_v61 = vmul.f32 1.442695, %v6986_v52 }
 0x99a   :  { %8585 = vpow2.f32 %v7030_v36  ;;  %v7238_v17 = vadd.f32 %v7237_v10, %v7236_v38  ;;  %v8580_v55 = vpop.eup %8579  ;;  %v11474_v30 = vsel %vm2771_vm4, %v8578_v16, 0.0  ;;  %v7241_v45 = vsel %vm2767_vm5, %v8574_v26, 0.0  ;;  %v11996_v63 = vld [vmem:[#allocation40_spill] sm:$0xff]  ;;  %v11998_v41 = vld [vmem:[#allocation37_spill] sm:$0xff] }
 0x99b   :  { %8587 = vpow2.f32 %v7046_v1  ;;  %v8582_v42 = vpop.eup %8581  ;;  %v7116_v60 = vmul.f32 1.442695, %v6994_v0  ;;  %v7247_v59 = vadd.f32 %v11474_v30, %v7245_v8  ;;  %v7243_v50 = vsel %vm2767_vm5, %v8580_v55, 0.0  ;;  %v12000_v38 = vld [vmem:[#allocation45_spill] sm:$0xff] }
 0x99c   :  { %v7240_v40 = vadd.f32 %v7239_v29, %v7238_v17  ;;  %8589 = vpow2.f32 %v7052_v19  ;;  %v7194_v2 = vsel %vm2767_vm5, %v8582_v42, 0.0  ;;  %v7132_v58 = vmul.f32 1.442695, %v7002_v6  ;;  %v12001_v17 = vld [vmem:[#allocation41_spill] sm:$0xff] }
 0x99d   :  { %8591 = vpow2.f32 %v7068_v49  ;;  %v8584_v20 = vpop.eup %8583  ;;  %v7148_v54 = vmul.f32 1.442695, %v7010_v48  ;;  %v6950_v31 = vsub.f32 %v11994_v14, %v11418_v3  ;;  %v6958_v32 = vsub.f32 %v11995_v39, %v11418_v3 }
 0x99e   :  { %v7242_v5 = vadd.f32 %v7241_v45, %v7240_v40  ;;  %8593 = vpow2.f32 %v7084_v62  ;;  %v7195_v27 = vsel %vm2767_vm5, %v8584_v20, 0.0  ;;  %v6966_v56 = vsub.f32 %v11996_v63, %v11418_v3 }
 0x99f   :  { %8595 = vpow2.f32 %v7100_v61  ;;  %v7196_v22 = vadd.f32 %v7195_v27, %v7194_v2  ;;  %v6974_v25 = vsub.f32 %v11997_v28, %v11418_v3  ;;  %v7249_v12 = vadd.f32 %v7247_v59, %v11474_v30  ;;  %v12002_v61 = vld [vmem:[#allocation23_spill] sm:$0xff] }
 0x9a0   :  { %v8586_v9 = vpop.eup %8585  ;;  %v11480_v23 = vadd.f32 %v7243_v50, %v7242_v5  ;;  %8597 = vpow2.f32 %v7116_v60  ;;  %v6982_v33 = vsub.f32 %v11998_v41, %v11418_v3  ;;  %v6990_v13 = vsub.f32 %v11999_v21, %v11418_v3 }
 0x9a1   :  { %v8588_v44 = vpop.eup %8587  ;;  %v7279_v35 = vsel %vm2771_vm4, %v8586_v9, 0.0  ;;  %8599 = vpow2.f32 %v7132_v58  ;;  %v7028_v57 = vmul.f32 1.442695, %v6950_v31  ;;  %v7044_v47 = vmul.f32 1.442695, %v6958_v32 }
 0x9a2   :  { %v8590_v46 = vpop.eup %8589  ;;  %v11491_v18 = vsel %vm2771_vm4, %v8588_v44, 0.0  ;;  %v7308_v4 = vsel %vm2767_vm5, %v11480_v23, 0.0  ;;  %8601 = vpow2.f32 %v7148_v54  ;;  %v7060_v36 = vmul.f32 1.442695, %v6966_v56 }
 0x9a3   :  { %v8592_v7 = vpop.eup %8591  ;;  %v7281_v52 = vadd.f32 %v11491_v18, %v7279_v35  ;;  %7309 = vadd.xlane.f32.xlu0 %v7308_v4  ;;  %v7197_v43 = vsel %vm2767_vm5, %v8590_v46, 0.0  ;;  %v7076_v1 = vmul.f32 1.442695, %v6974_v25  ;;  %v6998_v16 = vsub.f32 %v12000_v38, %v11418_v3 }
 0x9a4   :  { %v8594_v11 = vpop.eup %8593  ;;  %v7198_v34 = vadd.f32 %v7197_v43, %v7196_v22  ;;  %v7199_v26 = vsel %vm2767_vm5, %v8592_v7, 0.0  ;;  %8603 = vpow2.f32 %v7028_v57  ;;  %v7092_v6 = vmul.f32 1.442695, %v6982_v33 }
 0x9a5   :  { %v8596_v0 = vpop.eup %8595  ;;  %v7283_v24 = vadd.f32 %v7281_v52, %v11491_v18  ;;  %v7201_v15 = vsel %vm2767_vm5, %v8594_v11, 0.0  ;;  %8605 = vpow2.f32 %v7044_v47  ;;  %v7006_v51 = vsub.f32 %v12001_v17, %v11418_v3 }
 0x9a6   :  { %v7200_v53 = vadd.f32 %v7199_v26, %v7198_v34  ;;  %v8598_v10 = vpop.eup %8597  ;;  %v7203_v19 = vsel %vm2767_vm5, %v8596_v0, 0.0  ;;  %8607 = vpow2.f32 %v7060_v36  ;;  %v7108_v48 = vmul.f32 1.442695, %v6990_v13 }
 0x9a7   :  { %v8600_v49 = vpop.eup %8599  ;;  %8609 = vpow2.f32 %v7076_v1  ;;  %v7251_v8 = vadd.f32 %v7249_v12, %v11474_v30  ;;  %v7285_v29 = vadd.f32 %v7283_v24, %v11491_v18  ;;  %v7205_v40 = vsel %vm2767_vm5, %v8598_v10, 0.0 }
 0x9a8   :  { %v7202_v37 = vadd.f32 %v7201_v15, %v7200_v53  ;;  %v8602_v62 = vpop.eup %8601  ;;  %v7014_v42 = vsub.f32 %v12002_v61, %v11418_v3  ;;  %v7124_v45 = vmul.f32 1.442695, %v6998_v16  ;;  %8611 = vpow2.f32 %v7092_v6  ;;  %v12003_v3 = vld [vmem:[#allocation14_spill] sm:$0xff] }
 0x9a9   :  { %v7253_v60 = vadd.f32 %v7251_v8, %v11474_v30  ;;  %v7287_v2 = vadd.f32 %v7285_v29, %v11491_v18  ;;  %v7207_v59 = vsel %vm2767_vm5, %v8600_v49, 0.0  ;;  %v7140_v50 = vmul.f32 1.442695, %v7006_v51 }
 0x9aa   :  { %v7204_v55 = vadd.f32 %v7203_v19, %v7202_v37  ;;  %v8604_v20 = vpop.eup %8603  ;;  %8613 = vpow2.f32 %v7108_v48  ;;  %v7323_v31 = vpack.c.bf16 %v12003_v3, %v12003_v3  ;;  %v7209_v44 = vsel %vm2767_vm5, %v8602_v62, 0.0 }
 0x9ab   :  { %v8606_v58 = vpop.eup %8605  ;;  %v7262_v9 = vsel %vm2767_vm5, %v8604_v20, 0.0  ;;  %v7255_v27 = vadd.f32 %v7253_v60, %v11474_v30  ;;  %v7289_v22 = vadd.f32 %v7287_v2, %v11491_v18  ;;  %8615 = vpow2.f32 %v7124_v45  ;;  %v7307_v45 = vpop.xlane.xlu2 %7306  ;;  %v8308_v20 = vld [vmem:[%s11643_s4 + $0x8] sm:$0xf] }
 0x9ac   :  { %v7206_v5 = vadd.f32 %v7205_v40, %v7204_v55  ;;  %v8608_v14 = vpop.eup %8607  ;;  %v7263_v35 = vsel %vm2767_vm5, %v8606_v58, 0.0  ;;  %v7156_v63 = vmul.f32 1.442695, %v7014_v42  ;;  %8617 = vpow2.f32 %v7140_v50  ;;  %v7301_v60 = vpop.xlane.xlu0 %7300 }
 0x9ad   :  { %v8610_v39 = vpop.eup %8609  ;;  %v7264_v56 = vadd.f32 %v7263_v35, %v7262_v9  ;;  %v7265_v46 = vsel %vm2767_vm5, %v8608_v14, 0.0  ;;  %v7257_v4 = vadd.f32 %v7255_v27, %v11474_v30  ;;  %v7291_v28 = vadd.f32 %v7289_v22, %v11491_v18  ;;  %v8309_v22 = vld [vmem:[%s11643_s4 + $0xc] sm:$0xf] }
 0x9ae   :  { %v7208_v54 = vadd.f32 %v7207_v59, %v7206_v5  ;;  %v8612_v25 = vpop.eup %8611  ;;  %v7267_v43 = vsel %vm2767_vm5, %v8610_v39, 0.0  ;;  %v7402_v33 = vunpack.c.l.b16 %v7323_v31  ;;  %8619 = vpow2.f32 %v7156_v63 }
 0x9af   :  { %v7266_v52 = vadd.f32 %v7265_v46, %v7264_v56  ;;  %v7259_v11 = vadd.f32 %v7257_v4, %v11474_v30  ;;  %v7293_v34 = vadd.f32 %v7291_v28, %v11491_v18  ;;  %v7324_v26 = vpack.c.bf16 %v11480_v23, %v11480_v23 }
 0x9b0   :  { %v7210_v32 = vadd.f32 %v7209_v44, %v7208_v54  ;;  %v8614_v41 = vpop.eup %8613  ;;  %v7269_v57 = vsel %vm2767_vm5, %v8612_v25, 0.0  ;;  %v7525_v50 = vsel %vm2993_vm13, %v8308_v20, 0  ;;  %v7572_v39 = vsel %vm2993_vm13, %v8309_v22, 0  ;;  %vm12013_vm13 = vmmov %vm12012_vm12 }
 0x9b1   :  { %v7268_v13 = vadd.f32 %v7267_v43, %v7266_v52  ;;  %v7261_v47 = vadd.f32 %v7259_v11, %v11474_v30  ;;  %v7295_v0 = vadd.f32 %v7293_v34, %v11491_v18  ;;  %v8616_v24 = vpop.eup %8615  ;;  %v7271_v1 = vsel %vm2767_vm5, %v8614_v41, 0.0  ;;  %7534 = vmatpush.bf16.msra.mxu2 %v7525_v50  ;;  %7556 = vmatpush.bf16.msrb.mxu3 %v7525_v50 }
 0x9b2   :  { %v7302_v7 = vsel %vm2767_vm5, %v7210_v32, 0.0  ;;  %v7322_v12 = vpack.c.bf16 %v7210_v32, %v7210_v32  ;;  %v8618_v16 = vpop.eup %8617  ;;  %v7431_v37 = vunpack.c.l.b16 %v7324_v26  ;;  %v7273_v30 = vsel %vm2767_vm5, %v8616_v24, 0.0  ;;  %7581 = vmatpush.bf16.msrb.mxu0 %v7572_v39  ;;  %7603 = vmatpush.bf16.msrb.mxu1 %v7572_v39  ;;  %v12008_v39 = vld [vmem:[#allocation31_spill] sm:$0xff] }
 0x9b3   :  { %7303 = vadd.xlane.f32.xlu1 %v7302_v7  ;;  %v7270_v36 = vadd.f32 %v7269_v57, %v7268_v13  ;;  %v7325_v15 = vpack.c.bf16 %v7261_v47, %v7261_v47  ;;  %v7317_v38 = vsel %vm2771_vm4, %v7295_v0, 0.0  ;;  %v7311_v23 = vsel %vm2771_vm4, %v7261_v47, 0.0 }
 0x9b4   :  { %v7401_v21 = vunpack.c.l.b16 %v7322_v12  ;;  %7318 = vadd.xlane.f32.xlu0 %v7317_v38  ;;  %v8620_v18 = vpop.eup %8619  ;;  %v7275_v17 = vsel %vm2767_vm5, %v8618_v16, 0.0  ;;  %v7327_v49 = vpack.c.bf16 %v7295_v0, %v7295_v0  ;;  %vm12004_vm4 = vcmask 125952  }
 0x9b5   :  { %v7272_v10 = vadd.f32 %v7271_v1, %v7270_v36  ;;  %v7432_v6 = vunpack.c.l.b16 %v7325_v15  ;;  %v7277_v55 = vsel %vm2767_vm5, %v8620_v18, 0.0 }
 0x9b6   :  { %v7403_v53 = vpack.c.b16 %v7402_v33, %v7401_v21  ;;  %v7462_v40 = vunpack.c.l.b16 %v7327_v49  ;;  %v8403_v49 = vld [vmem:[%s11645_s7 + $0x8] sm:$0xff] }
 0x9b7   :  { %v7274_v19 = vadd.f32 %v7273_v30, %v7272_v10  ;;  %v7433_v51 = vpack.c.b16 %v7432_v6, %v7431_v37  ;;  %7737 = vmatpush.bf16.msrb.mxu2 %v8403_v49 }
 0x9b8   :  { %8305 = vmatmul.msk.bf16.vlgmr.msra.gmra.mxu3 %vm2767_vm5, %v7403_v53 }
 0x9b9   :  { %v7276_v48 = vadd.f32 %v7275_v17, %v7274_v19  ;;  %8306 = vmatmul.msk.bf16.vlgmr.msra.gmra.mxu0 %vm2767_vm5, %v7433_v51 }
 0x9bb   :  { %7312 = vadd.xlane.f32.xlu1 %v7311_v23  ;;  %v7278_v8 = vadd.f32 %v7277_v55, %v7276_v48 }
 0x9bd   :  { %v7314_v29 = vsel %vm2767_vm5, %v7278_v8, 0.0  ;;  %v7326_v62 = vpack.c.bf16 %v7278_v8, %v7278_v8 }
 0x9be   :  { %7315 = vadd.xlane.f32.xlu2 %v7314_v29 }
 0x9bf   :  { %v7461_v61 = vunpack.c.l.b16 %v7326_v62 }
 0x9c1   :  { %v7463_v42 = vpack.c.b16 %v7462_v40, %v7461_v61 }
 0x9c3   :  { %8307 = vmatmul.msk.bf16.vlgmr.msra.gmra.mxu1 %vm2767_vm5, %v7463_v42 }
 0xa07   :  { %v7298_v5 = vpop.xlane.xlu2 %7297 }
 0xa08   :  { %8621 = vrcp.f32 %v7298_v5 }
 0xa09   :  { %8623 = vrcp.f32 %v7301_v60 }
 0xa0e   :  { %v8622_v59 = vpop.eup %8621 }
 0xa0f   :  { %v8624_v54 = vpop.eup %8623 }
 0xa16   :  { %v7310_v63 = vpop.xlane.xlu0 %7309 }
 0xa17   :  { %8625 = vrcp.f32 %v7310_v63  ;;  %v12009_v63 = vld [vmem:[#allocation28_spill] sm:$0xff] }
 0xa1c   :  { %v7394_v2 = vpop.f32.mrf.mxu2 }
 0xa1d   :  { %v7497_v58 = vmul.f32 %v8622_v59, %v7394_v2  ;;  %v8626_v28 = vpop.eup %8625 }
 0xa1f   :  { %v7508_v27 = vpack.c.bf16 %v7497_v58, %v7497_v58 }
 0xa21   :  { %v7518_v31 = vunpack.c.l.b16 %v7508_v27 }
 0xa24   :  { %v7396_v9 = vpop.f32.mrf.mxu2 }
 0xa25   :  { %v7498_v14 = vmul.f32 %v8624_v54, %v7396_v9 }
 0xa26   :  { %v7304_v32 = vpop.xlane.xlu1 %7303 }
 0xa27   :  { %v7509_v3 = vpack.c.bf16 %v7498_v14, %v7498_v14  ;;  %8627 = vrcp.f32 %v7304_v32  ;;  %v7319_v11 = vpop.xlane.xlu0 %7318 }
 0xa29   :  { %v7519_v44 = vunpack.c.l.b16 %v7509_v3 }
 0xa2b   :  { %v7520_v35 = vpack.c.b16 %v7519_v44, %v7518_v31 }
 0xa2d   :  { %8310 = vmatmul.msk.bf16.vlgmr.msra.gmra.mxu2 %vm1518_vm3, %v7520_v35  ;;  %v8628_v7 = vpop.eup %8627 }
 0xa2e   :  { %v7313_v56 = vpop.xlane.xlu1 %7312 }
 0xa2f   :  { %8629 = vrcp.f32 %v7313_v56 }
 0xa30   :  { %8631 = vrcp.f32 %v7307_v45 }
 0xa31   :  { %v7316_v25 = vpop.xlane.xlu2 %7315 }
 0xa32   :  { %8633 = vrcp.f32 %v7316_v25 }
 0xa33   :  { %8635 = vrcp.f32 %v7319_v11 }
 0xa35   :  { %v8630_v43 = vpop.eup %8629 }
 0xa36   :  { %v7454_v46 = vpop.f32.mrf.mxu0  ;;  %v8632_v41 = vpop.eup %8631 }
 0xa37   :  { %v7501_v12 = vmul.f32 %v8626_v28, %v7454_v46  ;;  %v12010_v28 = vld [vmem:[#allocation30_spill] sm:$0xff] }
 0xa38   :  { %v8634_v53 = vpop.eup %8633 }
 0xa39   :  { %v7512_v33 = vpack.c.bf16 %v7501_v12, %v7501_v12  ;;  %v8636_v37 = vpop.eup %8635 }
 0xa3b   :  { %v7424_v4 = vpop.f32.mrf.mxu3  ;;  %v7565_v36 = vunpack.c.l.b16 %v7512_v33 }
 0xa3c   :  { %v7499_v52 = vmul.f32 %v8628_v7, %v7424_v4 }
 0xa3e   :  { %v7456_v34 = vpop.f32.mrf.mxu0  ;;  %v7510_v57 = vpack.c.bf16 %v7499_v52, %v7499_v52 }
 0xa3f   :  { %v7502_v13 = vmul.f32 %v8630_v43, %v7456_v34 }
 0xa40   :  { %v7484_v26 = vpop.f32.mrf.mxu1  ;;  %v7543_v15 = vunpack.c.l.b16 %v7510_v57 }
 0xa41   :  { %v7513_v0 = vpack.c.bf16 %v7502_v13, %v7502_v13  ;;  %v7503_v16 = vmul.f32 %v8634_v53, %v7484_v26  ;;  %v12011_v26 = vld [vmem:[#allocation29_spill] sm:$0xff] }
 0xa43   :  { %v7426_v21 = vpop.f32.mrf.mxu3  ;;  %v7566_v1 = vunpack.c.l.b16 %v7513_v0  ;;  %v7514_v6 = vpack.c.bf16 %v7503_v16, %v7503_v16 }
 0xa44   :  { %v7500_v47 = vmul.f32 %v8632_v41, %v7426_v21 }
 0xa45   :  { %v7567_v10 = vpack.c.b16 %v7566_v1, %v7565_v36  ;;  %v7590_v17 = vunpack.c.l.b16 %v7514_v6 }
 0xa46   :  { %v7511_v24 = vpack.c.bf16 %v7500_v47, %v7500_v47 }
 0xa47   :  { %8312 = vmatmul.msk.bf16.vlgmr.msrb.gmra.mxu0 %vm1518_vm3, %v7567_v10 }
 0xa48   :  { %v7544_v38 = vunpack.c.l.b16 %v7511_v24  ;;  %v7486_v30 = vpop.f32.mrf.mxu1 }
 0xa49   :  { %v7504_v18 = vmul.f32 %v8636_v37, %v7486_v30 }
 0xa4a   :  { %v7545_v23 = vpack.c.b16 %v7544_v38, %v7543_v15 }
 0xa4b   :  { %v7515_v19 = vpack.c.bf16 %v7504_v18, %v7504_v18 }
 0xa4c   :  { %8311 = vmatmul.msk.bf16.vlgmr.msrb.gmra.mxu3 %vm1518_vm3, %v7545_v23 }
 0xa4d   :  { %v7591_v51 = vunpack.c.l.b16 %v7515_v19 }
 0xa4f   :  { %v7592_v48 = vpack.c.b16 %v7591_v51, %v7590_v17 }
 0xa51   :  { %8313 = vmatmul.msk.bf16.vlgmr.msrb.gmra.mxu1 %vm1518_vm3, %v7592_v48  ;;  %vm12005_vm3 = vmmov %vm12004_vm4 }
 0xa52   :  { %vm12006_vm5 = vmmov %vm12005_vm3 }
 0xa53   :  { %vm12007_vm9 = vmmov %vm12005_vm3 }
 0xab0   :  { %v7536_v55 = vpop.f32.mrf.mxu2 }
 0xab1   :  { %v7610_v29 = vsel %vm189_vm2, %v7536_v55, 0.0 }
 0xab8   :  { %v7538_v42 = vpop.f32.mrf.mxu2 }
 0xab9   :  { %v7613_v60 = vsel %vm12004_vm4, %v7538_v42, 0.0 }
 0xac4   :  { %v7583_v8 = vpop.f32.mrf.mxu0 }
 0xac5   :  { %v7611_v62 = vsel %vm189_vm2, %v7583_v8, 0.0 }
 0xac6   :  { %v7612_v40 = vadd.f32 %v7611_v62, %v7610_v29 }
 0xac8   :  { %v7626_v61 = vrot.slane %v7612_v40, 4  ;;  %7628 = vst [vmem:[#allocation1] ss:$2 sm:$0xff] %v7612_v40 }
 0xaca   :  { %7630 = vst [vmem:[#allocation1 + $0x1] ss:$2 sm:$0xff] %v7626_v61  ;;  %v8413_v61 = vld [vmem:[%s11640_s5 + $0x1] ss:$0 sm:$0xff] }
 0xacc   :  { %v7585_v5 = vpop.f32.mrf.mxu0 }
 0xacd   :  { %v7614_v2 = vsel %vm12005_vm3, %v7585_v5, 0.0 }
 0xace   :  { %v7605_v20 = vpop.f32.mrf.mxu1  ;;  %v7615_v50 = vadd.f32 %v7614_v2, %v7613_v60 }
 0xacf   :  { %v7558_v45 = vpop.f32.mrf.mxu3  ;;  %v7617_v58 = vsel %vm189_vm2, %v7605_v20, 0.0 }
 0xad0   :  { %v7616_v59 = vsel %vm189_vm2, %v7558_v45, 0.0  ;;  %7632 = vst [vmem:[#allocation1 + $0x10] ss:$2 sm:$0xff] %v7615_v50  ;;  %v8414_v45 = vld [vmem:[%s11641_s6 + $0x1] ss:$0 sm:$0xff] }
 0xad1   :  { %v7618_v54 = vadd.f32 %v7617_v58, %v7616_v59  ;;  %v7639_v22 = vld.sshfl [vmem:[#allocation1] sm:$0xff pattern:$0x75316420] }
 0xad2   :  { %v7645_v56 = vadd.f32 %v7639_v22, %v12009_v63 }
 0xad3   :  { %v7627_v9 = vrot.slane %v7618_v54, 4  ;;  %7634 = vst [vmem:[#allocation1 + $0x11] ss:$2 sm:$0xff] %v7618_v54 }
 0xad4   :  { %v7652_v7 = vsel %vm189_vm2, %v7645_v56, 0.0 }
 0xad5   :  { %7636 = vst [vmem:[#allocation1 + $0x20] ss:$2 sm:$0xff] %v7627_v9 }
 0xad6   :  { %v7607_v14 = vpop.f32.mrf.mxu1 }
 0xad7   :  { %v7560_v27 = vpop.f32.mrf.mxu3  ;;  %v7620_v31 = vsel %vm12007_vm9, %v7607_v14, 0.0 }
 0xad8   :  { %v7619_v3 = vsel %vm12006_vm5, %v7560_v27, 0.0 }
 0xad9   :  { %v7621_v44 = vadd.f32 %v7620_v31, %v7619_v3  ;;  %v8407_v3 = vld [vmem:[%s11647_s9 + $0x38] sm:$0xff]  ;;  %v8406_v31 = vld [vmem:[%s11647_s9 + $0x30] sm:$0xff] }
 0xada   :  { %v7640_v35 = vld.sshfl [vmem:[#allocation1 + $0x10] sm:$0xff pattern:$0x75316420]  ;;  %7796 = vmatpush.bf16.msra.mxu3 %v8407_v3 }
 0xadb   :  { %7638 = vst [vmem:[#allocation1 + $0x21] ss:$2 sm:$0xff] %v7621_v44  ;;  %v7646_v32 = vadd.f32 %v7640_v35, %v12008_v39  ;;  %v8405_v44 = vld [vmem:[%s11647_s9 + $0x28] sm:$0xff]  ;;  %v8404_v35 = vld [vmem:[%s11647_s9 + $0x20] sm:$0xff] }
 0xadc   :  { %v8419_v39 = vld [vmem:[%s11644_s8 + $0x1] ss:$0 sm:$0xff] }
 0xadd   :  { %v7653_v46 = vsel %vm189_vm2, %v7646_v32, 0.0 }
 0xade   :  { %v7654_v12 = vadd.f32 %v7653_v46, %v7652_v7  ;;  %7797 = vmatpush.bf16.msra.mxu3 %v8406_v31 }
 0xae2   :  { %v7641_v4 = vld.sshfl [vmem:[#allocation1 + $0x20] sm:$0xff pattern:$0x75316420]  ;;  %7798 = vmatpush.bf16.msra.mxu3 %v8405_v44 }
 0xae3   :  { %v7647_v25 = vadd.f32 %v7641_v4, %v12010_v28  ;;  %v8421_v44 = vld [vmem:[%s11648_s11 + $0x1] ss:$0 sm:$0xff] }
 0xae5   :  { %v7655_v52 = vsel %vm189_vm2, %v7647_v25, 0.0 }
 0xae6   :  { %v7656_v43 = vadd.f32 %v7655_v52, %v7654_v12  ;;  %7799 = vmatpush.bf16.msra.mxu3 %v8404_v35 }
 0xae8   :  { %v7657_v11 = vrot.slane %v7656_v43, 4 }
 0xaea   :  { %v7658_v34 = vadd.f32 %v7657_v11, %v7656_v43 }
 0xaec   :  { %v7659_v41 = vrot.slane %v7658_v34, 2 }
 0xaee   :  { %v7660_v33 = vadd.f32 %v7659_v41, %v7658_v34 }
 0xaf0   :  { %v7661_v21 = vrot.slane %v7660_v33, 1 }
 0xaf2   :  { %v7662_v13 = vadd.f32 %v7661_v21, %v7660_v33  ;;  %v8420_v21 = vld [vmem:[%s11646_s10 + $0x1] ss:$0 sm:$0xff] }
 0xaf4   :  { %v7663_v57 = vmul.f32 %v7662_v13, %v12011_v26 }
 0xaf6   :  { %v7664_v47 = vsub.f32 %v7645_v56, %v7663_v57  ;;  %v7665_v0 = vsub.f32 %v7646_v32, %v7663_v57  ;;  %v7666_v24 = vsub.f32 %v7647_v25, %v7663_v57 }
 0xaf8   :  { %v7667_v53 = vmul.f32 %v7664_v47, %v7664_v47  ;;  %v7668_v36 = vmul.f32 %v7665_v0, %v7665_v0  ;;  %v7669_v1 = vmul.f32 %v7666_v24, %v7666_v24 }
 0xafa   :  { %v7670_v15 = vsel %vm189_vm2, %v7667_v53, 0.0  ;;  %v7671_v38 = vsel %vm189_vm2, %v7668_v36, 0.0  ;;  %v7673_v10 = vsel %vm189_vm2, %v7669_v1, 0.0 }
 0xafb   :  { %v7672_v16 = vadd.f32 %v7671_v38, %v7670_v15 }
 0xafd   :  { %v7674_v23 = vadd.f32 %v7673_v10, %v7672_v16 }
 0xaff   :  { %v7675_v37 = vrot.slane %v7674_v23, 4 }
 0xb01   :  { %v7676_v30 = vadd.f32 %v7675_v37, %v7674_v23 }
 0xb03   :  { %v7677_v6 = vrot.slane %v7676_v30, 2 }
 0xb05   :  { %v7678_v18 = vadd.f32 %v7677_v6, %v7676_v30 }
 0xb07   :  { %v7679_v19 = vrot.slane %v7678_v18, 1 }
 0xb09   :  { %v7680_v17 = vadd.f32 %v7679_v19, %v7678_v18 }
 0xb0b   :  { %v7681_v51 = vmul.f32 %v7680_v17, %v12011_v26 }
 0xb0d   :  { %v7682_v48 = vadd.f32 1e-05, %v7681_v51 }
 0xb0f   :  { %8637 = vrsqrt.f32 %v7682_v48  ;;  %vm7689_vm15 = vweird.f32 %v7682_v48 }
 0xb15   :  { %v8638_v49 = vpop.eup %8637 }
 0xb16   :  { %v7684_v55 = vmul.f32 %v8638_v49, %v7682_v48  ;;  %vm7690_vm11 = vweird.f32 %v8638_v49 }
 0xb17   :  { %vm7691_vm7 = vmor %vm7689_vm15, %vm7690_vm11 }
 0xb18   :  { %v7685_v8 = vmul.f32 %v8638_v49, %v7684_v55 }
 0xb1a   :  { %v7686_v29 = vmul.f32 0.5, %v7685_v8 }
 0xb1c   :  { %v7687_v62 = vsub.f32 1.5, %v7686_v29 }
 0xb1e   :  { %v7688_v40 = vmul.f32 %v8638_v49, %v7687_v62 }
 0xb20   :  { %v7692_v42 = vsel %vm7691_vm7, %v8638_v49, %v7688_v40 }
 0xb21   :  { %v7693_v5 = vmul.f32 %v7692_v42, %v7664_v47  ;;  %v7694_v60 = vmul.f32 %v7692_v42, %v7665_v0  ;;  %v7695_v54 = vmul.f32 %v7692_v42, %v7666_v24 }
 0xb23   :  { %v7699_v2 = vmul.f32 %v8413_v61, %v7693_v5  ;;  %v7700_v20 = vmul.f32 %v8413_v61, %v7694_v60  ;;  %v7701_v9 = vmul.f32 %v8413_v61, %v7695_v54 }
 0xb25   :  { %v7705_v59 = vadd.f32 %v8414_v45, %v7699_v2  ;;  %v7706_v50 = vadd.f32 %v8414_v45, %v7700_v20  ;;  %v7707_v27 = vadd.f32 %v8414_v45, %v7701_v9 }
 0xb27   :  { %v7711_v58 = vpack.c.bf16 %v7706_v50, %v7705_v59  ;;  %v7712_v14 = vpack.c.bf16 %v7707_v27, %v7707_v27 }
 0xb29   :  { %8323 = vmatmul.msk.bf16.vlgmr.msrb.gmra.mxu2 %vm189_vm2, %v7711_v58 }
 0xb39   :  { %8324 = vmatmul.msk.bf16.gmra.mxu2 %vm189_vm2, %v7712_v14 }
 0xbac   :  { %v7739_v22 = vpop.f32.mrf.mxu2 }
 0xbad   :  { %v7740_v32 = vadd.f32 %v8419_v39, %v7739_v22 }
 0xbaf   :  { %v7748_v46 = vmax.f32 %v7740_v32, 0.0 }
 0xbb4   :  { %v7741_v63 = vpop.f32.mrf.mxu2 }
 0xbb5   :  { %v7742_v56 = vadd.f32 %v8419_v39, %v7741_v63 }
 0xbb7   :  { %v7749_v4 = vmax.f32 %v7742_v56, 0.0 }
 0xbb9   :  { %v7760_v28 = vpack.c.bf16 %v7749_v4, %v7748_v46 }
 0xbbb   :  { %8349 = vmatmul.msk.bf16.vlgmr.msra.gmra.mxu3 %vm12012_vm12, %v7760_v28 }
 0xbbc   :  { %v7744_v25 = vpop.f32.mrf.mxu2 }
 0xbbd   :  { %v7745_v7 = vadd.f32 %v8419_v39, %v7744_v25 }
 0xbbf   :  { %v7750_v52 = vmax.f32 %v7745_v7, 0.0 }
 0xbc1   :  { %v7761_v43 = vpack.c.bf16 %v7750_v52, %v7750_v52 }
 0xbc4   :  { %v7746_v12 = vpop.f32.mrf.mxu2 }
 0xbcb   :  { %8350 = vmatmul.msk.bf16.gmra.mxu3 %vm12013_vm13, %v7761_v43 }
 0xc3e   :  { %v7801_v11 = vpop.f32.mrf.mxu3 }
 0xc3f   :  { %v7810_v33 = vadd.f32 %v7801_v11, %v7705_v59 }
 0xc41   :  { %v7818_v57 = vadd.f32 %v8420_v21, %v7810_v33 }
 0xc43   :  { %v7825_v53 = vsel %vm189_vm2, %v7818_v57, 0.0 }
 0xc46   :  { %v7803_v34 = vpop.f32.mrf.mxu3 }
 0xc47   :  { %v7811_v41 = vadd.f32 %v7803_v34, %v7706_v50 }
 0xc49   :  { %v7819_v13 = vadd.f32 %v8420_v21, %v7811_v41 }
 0xc4b   :  { %v7826_v0 = vsel %vm189_vm2, %v7819_v13, 0.0 }
 0xc4c   :  { %v7827_v1 = vadd.f32 %v7826_v0, %v7825_v53 }
 0xc4e   :  { %v7806_v47 = vpop.f32.mrf.mxu3 }
 0xc4f   :  { %v7812_v24 = vadd.f32 %v7806_v47, %v7707_v27 }
 0xc51   :  { %v7820_v36 = vadd.f32 %v8420_v21, %v7812_v24 }
 0xc53   :  { %v7828_v15 = vsel %vm189_vm2, %v7820_v36, 0.0 }
 0xc54   :  { %v7829_v38 = vadd.f32 %v7828_v15, %v7827_v1 }
 0xc56   :  { %v7830_v16 = vrot.slane %v7829_v38, 4  ;;  %v7808_v10 = vpop.f32.mrf.mxu3 }
 0xc58   :  { %v7831_v23 = vadd.f32 %v7830_v16, %v7829_v38 }
 0xc5a   :  { %v7832_v37 = vrot.slane %v7831_v23, 2 }
 0xc5c   :  { %v7833_v30 = vadd.f32 %v7832_v37, %v7831_v23 }
 0xc5e   :  { %v7834_v6 = vrot.slane %v7833_v30, 1 }
 0xc60   :  { %v7835_v18 = vadd.f32 %v7834_v6, %v7833_v30 }
 0xc62   :  { %v7836_v19 = vmul.f32 %v7835_v18, %v12011_v26 }
 0xc64   :  { %v7837_v17 = vsub.f32 %v7818_v57, %v7836_v19  ;;  %v7838_v51 = vsub.f32 %v7819_v13, %v7836_v19  ;;  %v7839_v48 = vsub.f32 %v7820_v36, %v7836_v19 }
 0xc66   :  { %v7840_v49 = vmul.f32 %v7837_v17, %v7837_v17  ;;  %v7841_v55 = vmul.f32 %v7838_v51, %v7838_v51  ;;  %v7842_v8 = vmul.f32 %v7839_v48, %v7839_v48 }
 0xc68   :  { %v7843_v29 = vsel %vm189_vm2, %v7840_v49, 0.0  ;;  %v7844_v62 = vsel %vm189_vm2, %v7841_v55, 0.0  ;;  %v7846_v61 = vsel %vm189_vm2, %v7842_v8, 0.0 }
 0xc69   :  { %v7845_v40 = vadd.f32 %v7844_v62, %v7843_v29 }
 0xc6b   :  { %v7847_v42 = vadd.f32 %v7846_v61, %v7845_v40 }
 0xc6d   :  { %v7848_v45 = vrot.slane %v7847_v42, 4 }
 0xc6f   :  { %v7849_v5 = vadd.f32 %v7848_v45, %v7847_v42 }
 0xc71   :  { %v7850_v60 = vrot.slane %v7849_v5, 2 }
 0xc73   :  { %v7851_v2 = vadd.f32 %v7850_v60, %v7849_v5 }
 0xc75   :  { %v7852_v20 = vrot.slane %v7851_v2, 1 }
 0xc77   :  { %v7853_v59 = vadd.f32 %v7852_v20, %v7851_v2 }
 0xc79   :  { %v7854_v50 = vmul.f32 %v7853_v59, %v12011_v26  ;;  %v8422_v26 = vld [vmem:[%s11649_s12 + $0x1] ss:$0 sm:$0xff] }
 0xc7b   :  { %v7855_v58 = vadd.f32 1e-05, %v7854_v50 }
 0xc7d   :  { %8639 = vrsqrt.f32 %v7855_v58  ;;  %vm7862_vm10 = vweird.f32 %v7855_v58 }
 0xc83   :  { %v8640_v54 = vpop.eup %8639 }
 0xc84   :  { %v7857_v9 = vmul.f32 %v8640_v54, %v7855_v58  ;;  %vm7863_vm14 = vweird.f32 %v8640_v54 }
 0xc85   :  { %vm7864_vm6 = vmor %vm7862_vm10, %vm7863_vm14 }
 0xc86   :  { %v7858_v27 = vmul.f32 %v8640_v54, %v7857_v9 }
 0xc88   :  { %v7859_v14 = vmul.f32 0.5, %v7858_v27 }
 0xc8a   :  { %v7860_v3 = vsub.f32 1.5, %v7859_v14 }
 0xc8c   :  { %v7861_v31 = vmul.f32 %v8640_v54, %v7860_v3 }
 0xc8e   :  { %v7865_v35 = vsel %vm7864_vm6, %v8640_v54, %v7861_v31 }
 0xc8f   :  { %v7866_v22 = vmul.f32 %v7865_v35, %v7837_v17  ;;  %v7867_v39 = vmul.f32 %v7865_v35, %v7838_v51  ;;  %v7868_v32 = vmul.f32 %v7865_v35, %v7839_v48 }
 0xc91   :  { %v7872_v63 = vmul.f32 %v8421_v44, %v7866_v22  ;;  %v7873_v56 = vmul.f32 %v8421_v44, %v7867_v39  ;;  %v7874_v46 = vmul.f32 %v8421_v44, %v7868_v32 }
 0xc93   :  { %v7878_v4 = vadd.f32 %v8422_v26, %v7872_v63  ;;  %v7879_v28 = vadd.f32 %v8422_v26, %v7873_v56  ;;  %v7880_v25 = vadd.f32 %v8422_v26, %v7874_v46 }
 0xc95   :  { %7881 = vst.msk [vmem:[%s11650_s13] sm:$0xff] %vm189_vm2, %v7878_v4 }
 0xc96   :  { %7882 = vst.msk [vmem:[%s11650_s13 + $0x8] sm:$0xff] %vm189_vm2, %v7879_v28 }
 0xc97   :  { %7883 = vst.msk [vmem:[%s11650_s13 + $0x10] sm:$0xff] %vm189_vm2, %v7880_v25 }

</bundles_post_ra>
